<compile_context>
chip_gen: v7x
topology: tpu7x:2x2x1
jax: 0.10.0
libtpu: 0.0.40
codegen_flags: <defaults>
</compile_context>

<pallas_src>
import functools
import math

import jax
import jax.numpy as jnp
from jax import lax
from jax.experimental import pallas as pl
from jax.experimental.pallas import tpu as pltpu


# ----------------------------------------------------------------------------
# Fused SSH kernel: 3 K-packed implicit GEMMs + folded BN + leaky, all in VMEM.
# ----------------------------------------------------------------------------
def _leaky(v, slope):
    return jnp.where(v >= 0.0, v, jnp.float32(slope) * v)


def _im2col3x3(xp, H, W):
    """xp: (H+2, W+2, C) -> (H*W, 9*C).  Tap order (dh, dw) row-major, matching
    an HWIO (3,3,Cin,Cout) weight reshaped to (9*Cin, Cout)."""
    C = xp.shape[-1]
    cols = []
    for dh in range(3):
        for dw in range(3):
            cols.append(xp[dh:dh + H, dw:dw + W, :].reshape(H * W, C))
    return jnp.concatenate(cols, axis=-1)


def _ssh_kernel(x_ref, w1_ref, sb1_ref, w2_ref, sb2_ref, w3_ref, sb3_ref,
                o_ref, pad_ref, *, H, W, Chalf, C2, slope):
    # x_ref  : (1, H+2, W+2, Cin) bf16   spatially zero-padded input image
    # w1_ref : (9*Cin, Chalf+C2)  bf16   [conv3x3 | conv5x5_1] weights
    # w2_ref : (9*C2,  2*C2)      bf16   [conv5x5 | conv7x7_1] weights
    # w3_ref : (9*C2,  C2)        bf16   conv7x7 weights
    # sbX_ref: (2, CoutX)         f32    row0 = folded BN scale, row1 = bias
    # o_ref  : (1, oup, H*W)      f32    NCHW-flattened, lane-dense on H*W
    # pad_ref: (H+2, W+2, C2)     bf16   VMEM scratch for padded intermediates

    # ---- stage 1: [conv3x3 | conv5x5_1] on x, one K=9*Cin GEMM -------------
    p1 = _im2col3x3(x_ref[0], H, W)                                  # (HW, 9*Cin)
    a1 = jnp.dot(p1, w1_ref[...], preferred_element_type=jnp.float32)
    a1 = a1 * sb1_ref[0:1, :] + sb1_ref[1:2, :]                      # folded BN
    y3 = a1[:, :Chalf]                                               # no act yet
    y5_1 = _leaky(a1[:, Chalf:], slope).astype(jnp.bfloat16)         # (HW, C2)

    # pad y5x5_1 inside VMEM (zero border) for the next implicit GEMM
    pad_ref[...] = jnp.zeros_like(pad_ref)
    pad_ref[1:H + 1, 1:W + 1, :] = y5_1.reshape(H, W, C2)

    # ---- stage 2: [conv5x5 | conv7x7_1] on y5x5_1 ---------------------------
    p2 = _im2col3x3(pad_ref[...], H, W)                              # (HW, 9*C2)
    a2 = jnp.dot(p2, w2_ref[...], preferred_element_type=jnp.float32)
    a2 = a2 * sb2_ref[0:1, :] + sb2_ref[1:2, :]
    y5 = a2[:, :C2]                                                  # no act yet
    y7_1 = _leaky(a2[:, C2:], slope).astype(jnp.bfloat16)

    pad_ref[1:H + 1, 1:W + 1, :] = y7_1.reshape(H, W, C2)            # border still 0

    # ---- stage 3: conv7x7 on y7x7_1 -----------------------------------------
    p3 = _im2col3x3(pad_ref[...], H, W)
    a3 = jnp.dot(p3, w3_ref[...], preferred_element_type=jnp.float32)
    y7 = a3 * sb3_ref[0:1, :] + sb3_ref[1:2, :]

    # ---- epilogue: concat along C, final leaky, lane-dense (C, H*W) store ---
    out = jnp.concatenate([y3, y5, y7], axis=-1)                     # (HW, oup)
    out = _leaky(out, slope)                                         # leaky(cat(...))
    o_ref[0] = out.T                                                 # (oup, HW) == NCHW


def ssh_forward(fused, x_nchw, *, oup, slope):
    """Fused SSH forward.  x_nchw: (N, Cin, H, W) f32 -> (N, oup, H, W) f32."""
    N, Cin, H, W = x_nchw.shape
    Chalf, C2 = oup // 2, oup // 4

    # NCHW -> NHWC (channels on lanes for the implicit GEMM), cast + pad ONCE.
    x = jnp.transpose(x_nchw, (0, 2, 3, 1)).astype(jnp.bfloat16)
    xp = jnp.pad(x, ((0, 0), (1, 1), (1, 1), (0, 0)))

    w1, sb1 = fused["w1"], fused["sb1"]
    w2, sb2 = fused["w2"], fused["sb2"]
    w3, sb3 = fused["w3"], fused["sb3"]

    kern = functools.partial(_ssh_kernel, H=H, W=W, Chalf=Chalf, C2=C2, slope=slope)
    out = pl.pallas_call(
        kern,
        out_shape=jax.ShapeDtypeStruct((N, oup, H * W), jnp.float32),
        grid=(N,),
        in_specs=[
            pl.BlockSpec((1, H + 2, W + 2, Cin), lambda n: (n, 0, 0, 0)),
            pl.BlockSpec(w1.shape, lambda n: (0, 0)),
            pl.BlockSpec(sb1.shape, lambda n: (0, 0)),
            pl.BlockSpec(w2.shape, lambda n: (0, 0)),
            pl.BlockSpec(sb2.shape, lambda n: (0, 0)),
            pl.BlockSpec(w3.shape, lambda n: (0, 0)),
            pl.BlockSpec(sb3.shape, lambda n: (0, 0)),
        ],
        out_specs=pl.BlockSpec((1, oup, H * W), lambda n: (n, 0, 0)),
        scratch_shapes=[pltpu.VMEM((H + 2, W + 2, C2), jnp.bfloat16)],
        compiler_params=pltpu.CompilerParams(dimension_semantics=("parallel",)),
    )(xp, w1, sb1, w2, sb2, w3, sb3)

    # Kernel already emits (N, C, H*W); reshape to NCHW is contiguous (free).
    return out.reshape(N, oup, H, W)


# ----------------------------------------------------------------------------
# Parameters (synthetic, deterministic).  Eval-mode BN is fully folded:
# scale = gamma / sqrt(var + eps), bias = beta - mean * scale.
# ----------------------------------------------------------------------------
def _fold_bn(gamma, beta, mean, var, eps=1e-5):
    scale = gamma / jnp.sqrt(var + eps)
    bias = beta - mean * scale
    return jnp.stack([scale, bias]).astype(jnp.float32)      # (2, C)


class _ParamGen:
    def __init__(self, key):
        self._key = key

    def _next(self):
        self._key, k = jax.random.split(self._key)
        return k

    def conv_bn(self, cin, cout):
        fan_in = 9 * cin
        w = jax.random.normal(self._next(), (3, 3, cin, cout),
                              jnp.float32) * (0.7 / math.sqrt(fan_in))
        gamma = 1.0 + 0.1 * jax.random.normal(self._next(), (cout,), jnp.float32)
        beta = 0.05 * jax.random.normal(self._next(), (cout,), jnp.float32)
        mean = 0.05 * jax.random.normal(self._next(), (cout,), jnp.float32)
        var = 1.0 + 0.1 * jax.random.uniform(self._next(), (cout,), jnp.float32)
        return {"w_f32": w, "sb": _fold_bn(gamma, beta, mean, var)}


def init_ssh(key, inp, oup):
    assert oup % 4 == 0
    pg = _ParamGen(key)
    leaky = 0.1 if oup <= 64 else 0.0
    raw = {
        "conv3x3":   pg.conv_bn(inp, oup // 2),
        "conv5x5_1": pg.conv_bn(inp, oup // 4),
        "conv5x5":   pg.conv_bn(oup // 4, oup // 4),
        "conv7x7_1": pg.conv_bn(oup // 4, oup // 4),
        "conv7x7":   pg.conv_bn(oup // 4, oup // 4),
    }

    # Pack sibling layers (shared input) along Cout for the fused kernel;
    # reshape HWIO -> (9*Cin, Cout) and pre-cast to bf16 once, at init time.
    def pack(*names):
        w = jnp.concatenate([raw[n]["w_f32"] for n in names], axis=-1)  # (3,3,cin,sum_cout)
        cin = w.shape[2]
        w = w.reshape(9 * cin, w.shape[-1]).astype(jnp.bfloat16)
        sb = jnp.concatenate([raw[n]["sb"] for n in names], axis=-1)    # (2, sum_cout)
        return w, sb

    w1, sb1 = pack("conv3x3", "conv5x5_1")
    w2, sb2 = pack("conv5x5", "conv7x7_1")
    w3, sb3 = pack("conv7x7")
    fused = {"w1": w1, "sb1": sb1, "w2": w2, "sb2": sb2, "w3": w3, "sb3": sb3}
    return {"raw": raw, "fused": fused}, leaky


# ----------------------------------------------------------------------------
# f32 XLA reference, mirroring the PyTorch module structure literally.
# ----------------------------------------------------------------------------
def _conv_bn_ref(x, p):
    y = lax.conv_general_dilated(
        x, p["w_f32"], window_strides=(1, 1), padding=((1, 1), (1, 1)),
        dimension_numbers=("NHWC", "HWIO", "NHWC"),
        precision=lax.Precision.HIGHEST)
    return y * p["sb"][0][None, None, None, :] + p["sb"][1][None, None, None, :]


def ssh_forward_ref(raw, x_nchw, *, slope):
    x = jnp.transpose(x_nchw, (0, 2, 3, 1)).astype(jnp.float32)
    y3 = _conv_bn_ref(x, raw["conv3x3"])                               # no act
    y5_1 = _leaky(_conv_bn_ref(x, raw["conv5x5_1"]), slope)
    y5 = _conv_bn_ref(y5_1, raw["conv5x5"])                            # no act
    y7_1 = _leaky(_conv_bn_ref(y5_1, raw["conv7x7_1"]), slope)
    y7 = _conv_bn_ref(y7_1, raw["conv7x7"])                            # no act
    out = jnp.concatenate([y3, y5, y7], axis=-1)
    out = _leaky(out, slope)                                           # leaky(cat(...))
    return jnp.transpose(out, (0, 3, 1, 2))


if __name__ == "__main__":
    key = jax.random.PRNGKey(0)
    k_in, k_par = jax.random.split(key)

    # small shapes consistent with the module: NCHW input, oup divisible by 4
    N, C_in, H, W = 2, 8, 16, 16
    oup = 32                                  # oup <= 64 -> leaky = 0.1
    x = jax.random.normal(k_in, (N, C_in, H, W), jnp.float32)
    params, leaky = init_ssh(k_par, C_in, oup)

    fwd = jax.jit(functools.partial(ssh_forward, oup=oup, slope=leaky))
    out = jax.block_until_ready(fwd(params["fused"], x))
    assert out.shape == (N, oup, H, W), out.shape
    assert bool(jnp.all(jnp.isfinite(out)))

    # check vs an f32 XLA reference (kernel matmuls run with bf16 operands)
    ref_fn = jax.jit(functools.partial(ssh_forward_ref, slope=leaky))
    ref = jax.block_until_ready(ref_fn(params["raw"], x))
    max_err = float(jnp.max(jnp.abs(out - ref)))
    assert max_err < 0.1, f"max abs error vs f32 reference too large: {max_err}"

    print("KERNEL_OK")
</pallas_src>

<mosaic_0001>
module attributes {stable_mosaic.version = 11 : i64} {
  func.func @_ssh_kernel(%arg0: i32, %arg1: memref<1x18x18x8xbf16, #tpu.memory_space<vmem>>, %arg2: memref<72x24xbf16, #tpu.memory_space<vmem>>, %arg3: memref<2x24xf32, #tpu.memory_space<vmem>>, %arg4: memref<72x16xbf16, #tpu.memory_space<vmem>>, %arg5: memref<2x16xf32, #tpu.memory_space<vmem>>, %arg6: memref<72x8xbf16, #tpu.memory_space<vmem>>, %arg7: memref<2x8xf32, #tpu.memory_space<vmem>>, %arg8: memref<1x32x256xf32, #tpu.memory_space<vmem>>, %arg9: memref<18x18x8xbf16, #tpu.memory_space<vmem>>) attributes {dimension_semantics = [#tpu.dimension_semantics<parallel>], iteration_bounds = array<i64: 2>, scalar_prefetch = 0 : i64, scratch_operands = 1 : i64, tpu.core_type = #tpu.core_type<tc>, window_params = [{transform_indices = @transform_0, window_bounds = array<i64: 1, 18, 18, 8>}, {pipeline_mode = #tpu.pipeline_mode<synchronous>, transform_indices = @transform_1, window_bounds = array<i64: 72, 24>}, {pipeline_mode = #tpu.pipeline_mode<synchronous>, transform_indices = @transform_2, window_bounds = array<i64: 2, 24>}, {pipeline_mode = #tpu.pipeline_mode<synchronous>, transform_indices = @transform_3, window_bounds = array<i64: 72, 16>}, {pipeline_mode = #tpu.pipeline_mode<synchronous>, transform_indices = @transform_4, window_bounds = array<i64: 2, 16>}, {pipeline_mode = #tpu.pipeline_mode<synchronous>, transform_indices = @transform_5, window_bounds = array<i64: 72, 8>}, {pipeline_mode = #tpu.pipeline_mode<synchronous>, transform_indices = @transform_6, window_bounds = array<i64: 2, 8>}, {transform_indices = @transform_7, window_bounds = array<i64: 1, 32, 256>}]} {
    %c0 = arith.constant 0 : index
    %c0_0 = arith.constant 0 : index
    %c0_1 = arith.constant 0 : index
    %c0_2 = arith.constant 0 : index
    %0 = vector.load %arg1[%c0, %c0_0, %c0_1, %c0_2] : memref<1x18x18x8xbf16, #tpu.memory_space<vmem>>, vector<1x18x18x8xbf16>
    %1 = vector.shape_cast %0 : vector<1x18x18x8xbf16> to vector<18x18x8xbf16>
    %2 = vector.extract_strided_slice %1 {offsets = [0, 0, 0], sizes = [16, 16, 8], strides = [1, 1, 1]} : vector<18x18x8xbf16> to vector<16x16x8xbf16>
    %3 = vector.shape_cast %2 : vector<16x16x8xbf16> to vector<256x8xbf16>
    %4 = vector.extract_strided_slice %1 {offsets = [0, 1, 0], sizes = [16, 16, 8], strides = [1, 1, 1]} : vector<18x18x8xbf16> to vector<16x16x8xbf16>
    %5 = vector.shape_cast %4 : vector<16x16x8xbf16> to vector<256x8xbf16>
    %6 = vector.extract_strided_slice %1 {offsets = [0, 2, 0], sizes = [16, 16, 8], strides = [1, 1, 1]} : vector<18x18x8xbf16> to vector<16x16x8xbf16>
    %7 = vector.shape_cast %6 : vector<16x16x8xbf16> to vector<256x8xbf16>
    %8 = vector.extract_strided_slice %1 {offsets = [1, 0, 0], sizes = [16, 16, 8], strides = [1, 1, 1]} : vector<18x18x8xbf16> to vector<16x16x8xbf16>
    %9 = vector.shape_cast %8 : vector<16x16x8xbf16> to vector<256x8xbf16>
    %10 = vector.extract_strided_slice %1 {offsets = [1, 1, 0], sizes = [16, 16, 8], strides = [1, 1, 1]} : vector<18x18x8xbf16> to vector<16x16x8xbf16>
    %11 = vector.shape_cast %10 : vector<16x16x8xbf16> to vector<256x8xbf16>
    %12 = vector.extract_strided_slice %1 {offsets = [1, 2, 0], sizes = [16, 16, 8], strides = [1, 1, 1]} : vector<18x18x8xbf16> to vector<16x16x8xbf16>
    %13 = vector.shape_cast %12 : vector<16x16x8xbf16> to vector<256x8xbf16>
    %14 = vector.extract_strided_slice %1 {offsets = [2, 0, 0], sizes = [16, 16, 8], strides = [1, 1, 1]} : vector<18x18x8xbf16> to vector<16x16x8xbf16>
    %15 = vector.shape_cast %14 : vector<16x16x8xbf16> to vector<256x8xbf16>
    %16 = vector.extract_strided_slice %1 {offsets = [2, 1, 0], sizes = [16, 16, 8], strides = [1, 1, 1]} : vector<18x18x8xbf16> to vector<16x16x8xbf16>
    %17 = vector.shape_cast %16 : vector<16x16x8xbf16> to vector<256x8xbf16>
    %18 = vector.extract_strided_slice %1 {offsets = [2, 2, 0], sizes = [16, 16, 8], strides = [1, 1, 1]} : vector<18x18x8xbf16> to vector<16x16x8xbf16>
    %19 = vector.shape_cast %18 : vector<16x16x8xbf16> to vector<256x8xbf16>
    %20 = tpu.concatenate %3, %5, %7, %9, %11, %13, %15, %17, %19 in 1 : vector<256x8xbf16>, vector<256x8xbf16>, vector<256x8xbf16>, vector<256x8xbf16>, vector<256x8xbf16>, vector<256x8xbf16>, vector<256x8xbf16>, vector<256x8xbf16>, vector<256x8xbf16> -> vector<256x72xbf16>
    %c0_3 = arith.constant 0 : index
    %c0_4 = arith.constant 0 : index
    %21 = vector.load %arg2[%c0_3, %c0_4] : memref<72x24xbf16, #tpu.memory_space<vmem>>, vector<72x24xbf16>
    %cst = arith.constant dense<0.000000e+00> : vector<256x24xf32>
    %22 = tpu.matmul %20, %21, %cst {dimension_numbers = #tpu.dot_dimension_numbers<[1], [0], [0], [1], [0, 0, 1, 1], [], []>} : vector<256x72xbf16>, vector<72x24xbf16>, vector<256x24xf32> -> vector<256x24xf32>
    %c0_5 = arith.constant 0 : index
    %c0_6 = arith.constant 0 : index
    %23 = vector.load %arg3[%c0_5, %c0_6] : memref<2x24xf32, #tpu.memory_space<vmem>>, vector<1x24xf32>
    %24 = vector.broadcast %23 : vector<1x24xf32> to vector<256x24xf32>
    %25 = arith.mulf %22, %24 : vector<256x24xf32>
    %c1 = arith.constant 1 : index
    %c0_7 = arith.constant 0 : index
    %26 = vector.load %arg3[%c1, %c0_7] : memref<2x24xf32, #tpu.memory_space<vmem>>, vector<1x24xf32>
    %27 = vector.broadcast %26 : vector<1x24xf32> to vector<256x24xf32>
    %28 = arith.addf %25, %27 : vector<256x24xf32>
    %29 = vector.extract_strided_slice %28 {offsets = [0, 0], sizes = [256, 16], strides = [1, 1]} : vector<256x24xf32> to vector<256x16xf32>
    %30 = vector.extract_strided_slice %28 {offsets = [0, 16], sizes = [256, 8], strides = [1, 1]} : vector<256x24xf32> to vector<256x8xf32>
    %cst_8 = arith.constant 0.000000e+00 : f32
    %31 = vector.broadcast %cst_8 : f32 to vector<256x8xf32>
    %32 = arith.cmpf oge, %30, %31 : vector<256x8xf32>
    %cst_9 = arith.constant 1.000000e-01 : f32
    %33 = vector.broadcast %cst_9 : f32 to vector<256x8xf32>
    %34 = arith.mulf %33, %30 : vector<256x8xf32>
    %35 = arith.select %32, %30, %34 : vector<256x8xi1>, vector<256x8xf32>
    %36 = arith.truncf %35 : vector<256x8xf32> to vector<256x8xbf16>
    %cst_10 = arith.constant 0.000000e+00 : bf16
    %37 = vector.broadcast %cst_10 : bf16 to vector<18x18x8xbf16>
    %c0_11 = arith.constant 0 : index
    %c0_12 = arith.constant 0 : index
    %c0_13 = arith.constant 0 : index
    %38 = vector.load %arg9[%c0_11, %c0_12, %c0_13] : memref<18x18x8xbf16, #tpu.memory_space<vmem>>, vector<18x18x8xbf16>
    tpu.vector_store %arg9[%c0_11, %c0_12, %c0_13], %37 {strides = array<i32>} : memref<18x18x8xbf16, #tpu.memory_space<vmem>>, vector<18x18x8xbf16>,
    %39 = vector.shape_cast %36 : vector<256x8xbf16> to vector<16x16x8xbf16>
    %c1_14 = arith.constant 1 : index
    %c1_15 = arith.constant 1 : index
    %c0_16 = arith.constant 0 : index
    %40 = vector.load %arg9[%c1_14, %c1_15, %c0_16] : memref<18x18x8xbf16, #tpu.memory_space<vmem>>, vector<16x16x8xbf16>
    tpu.vector_store %arg9[%c1_14, %c1_15, %c0_16], %39 {strides = array<i32>} : memref<18x18x8xbf16, #tpu.memory_space<vmem>>, vector<16x16x8xbf16>,
    %c0_17 = arith.constant 0 : index
    %c0_18 = arith.constant 0 : index
    %c0_19 = arith.constant 0 : index
    %41 = vector.load %arg9[%c0_17, %c0_18, %c0_19] : memref<18x18x8xbf16, #tpu.memory_space<vmem>>, vector<18x18x8xbf16>
    %42 = vector.extract_strided_slice %41 {offsets = [0, 0, 0], sizes = [16, 16, 8], strides = [1, 1, 1]} : vector<18x18x8xbf16> to vector<16x16x8xbf16>
    %43 = vector.shape_cast %42 : vector<16x16x8xbf16> to vector<256x8xbf16>
    %44 = vector.extract_strided_slice %41 {offsets = [0, 1, 0], sizes = [16, 16, 8], strides = [1, 1, 1]} : vector<18x18x8xbf16> to vector<16x16x8xbf16>
    %45 = vector.shape_cast %44 : vector<16x16x8xbf16> to vector<256x8xbf16>
    %46 = vector.extract_strided_slice %41 {offsets = [0, 2, 0], sizes = [16, 16, 8], strides = [1, 1, 1]} : vector<18x18x8xbf16> to vector<16x16x8xbf16>
    %47 = vector.shape_cast %46 : vector<16x16x8xbf16> to vector<256x8xbf16>
    %48 = vector.extract_strided_slice %41 {offsets = [1, 0, 0], sizes = [16, 16, 8], strides = [1, 1, 1]} : vector<18x18x8xbf16> to vector<16x16x8xbf16>
    %49 = vector.shape_cast %48 : vector<16x16x8xbf16> to vector<256x8xbf16>
    %50 = vector.extract_strided_slice %41 {offsets = [1, 1, 0], sizes = [16, 16, 8], strides = [1, 1, 1]} : vector<18x18x8xbf16> to vector<16x16x8xbf16>
    %51 = vector.shape_cast %50 : vector<16x16x8xbf16> to vector<256x8xbf16>
    %52 = vector.extract_strided_slice %41 {offsets = [1, 2, 0], sizes = [16, 16, 8], strides = [1, 1, 1]} : vector<18x18x8xbf16> to vector<16x16x8xbf16>
    %53 = vector.shape_cast %52 : vector<16x16x8xbf16> to vector<256x8xbf16>
    %54 = vector.extract_strided_slice %41 {offsets = [2, 0, 0], sizes = [16, 16, 8], strides = [1, 1, 1]} : vector<18x18x8xbf16> to vector<16x16x8xbf16>
    %55 = vector.shape_cast %54 : vector<16x16x8xbf16> to vector<256x8xbf16>
    %56 = vector.extract_strided_slice %41 {offsets = [2, 1, 0], sizes = [16, 16, 8], strides = [1, 1, 1]} : vector<18x18x8xbf16> to vector<16x16x8xbf16>
    %57 = vector.shape_cast %56 : vector<16x16x8xbf16> to vector<256x8xbf16>
    %58 = vector.extract_strided_slice %41 {offsets = [2, 2, 0], sizes = [16, 16, 8], strides = [1, 1, 1]} : vector<18x18x8xbf16> to vector<16x16x8xbf16>
    %59 = vector.shape_cast %58 : vector<16x16x8xbf16> to vector<256x8xbf16>
    %60 = tpu.concatenate %43, %45, %47, %49, %51, %53, %55, %57, %59 in 1 : vector<256x8xbf16>, vector<256x8xbf16>, vector<256x8xbf16>, vector<256x8xbf16>, vector<256x8xbf16>, vector<256x8xbf16>, vector<256x8xbf16>, vector<256x8xbf16>, vector<256x8xbf16> -> vector<256x72xbf16>
    %c0_20 = arith.constant 0 : index
    %c0_21 = arith.constant 0 : index
    %61 = vector.load %arg4[%c0_20, %c0_21] : memref<72x16xbf16, #tpu.memory_space<vmem>>, vector<72x16xbf16>
    %cst_22 = arith.constant dense<0.000000e+00> : vector<256x16xf32>
    %62 = tpu.matmul %60, %61, %cst_22 {dimension_numbers = #tpu.dot_dimension_numbers<[1], [0], [0], [1], [0, 0, 1, 1], [], []>} : vector<256x72xbf16>, vector<72x16xbf16>, vector<256x16xf32> -> vector<256x16xf32>
    %c0_23 = arith.constant 0 : index
    %c0_24 = arith.constant 0 : index
    %63 = vector.load %arg5[%c0_23, %c0_24] : memref<2x16xf32, #tpu.memory_space<vmem>>, vector<1x16xf32>
    %64 = vector.broadcast %63 : vector<1x16xf32> to vector<256x16xf32>
    %65 = arith.mulf %62, %64 : vector<256x16xf32>
    %c1_25 = arith.constant 1 : index
    %c0_26 = arith.constant 0 : index
    %66 = vector.load %arg5[%c1_25, %c0_26] : memref<2x16xf32, #tpu.memory_space<vmem>>, vector<1x16xf32>
    %67 = vector.broadcast %66 : vector<1x16xf32> to vector<256x16xf32>
    %68 = arith.addf %65, %67 : vector<256x16xf32>
    %69 = vector.extract_strided_slice %68 {offsets = [0, 0], sizes = [256, 8], strides = [1, 1]} : vector<256x16xf32> to vector<256x8xf32>
    %70 = vector.extract_strided_slice %68 {offsets = [0, 8], sizes = [256, 8], strides = [1, 1]} : vector<256x16xf32> to vector<256x8xf32>
    %cst_27 = arith.constant 0.000000e+00 : f32
    %71 = vector.broadcast %cst_27 : f32 to vector<256x8xf32>
    %72 = arith.cmpf oge, %70, %71 : vector<256x8xf32>
    %cst_28 = arith.constant 1.000000e-01 : f32
    %73 = vector.broadcast %cst_28 : f32 to vector<256x8xf32>
    %74 = arith.mulf %73, %70 : vector<256x8xf32>
    %75 = arith.select %72, %70, %74 : vector<256x8xi1>, vector<256x8xf32>
    %76 = arith.truncf %75 : vector<256x8xf32> to vector<256x8xbf16>
    %77 = vector.shape_cast %76 : vector<256x8xbf16> to vector<16x16x8xbf16>
    %c1_29 = arith.constant 1 : index
    %c1_30 = arith.constant 1 : index
    %c0_31 = arith.constant 0 : index
    %78 = vector.load %arg9[%c1_29, %c1_30, %c0_31] : memref<18x18x8xbf16, #tpu.memory_space<vmem>>, vector<16x16x8xbf16>
    tpu.vector_store %arg9[%c1_29, %c1_30, %c0_31], %77 {strides = array<i32>} : memref<18x18x8xbf16, #tpu.memory_space<vmem>>, vector<16x16x8xbf16>,
    %c0_32 = arith.constant 0 : index
    %c0_33 = arith.constant 0 : index
    %c0_34 = arith.constant 0 : index
    %79 = vector.load %arg9[%c0_32, %c0_33, %c0_34] : memref<18x18x8xbf16, #tpu.memory_space<vmem>>, vector<18x18x8xbf16>
    %80 = vector.extract_strided_slice %79 {offsets = [0, 0, 0], sizes = [16, 16, 8], strides = [1, 1, 1]} : vector<18x18x8xbf16> to vector<16x16x8xbf16>
    %81 = vector.shape_cast %80 : vector<16x16x8xbf16> to vector<256x8xbf16>
    %82 = vector.extract_strided_slice %79 {offsets = [0, 1, 0], sizes = [16, 16, 8], strides = [1, 1, 1]} : vector<18x18x8xbf16> to vector<16x16x8xbf16>
    %83 = vector.shape_cast %82 : vector<16x16x8xbf16> to vector<256x8xbf16>
    %84 = vector.extract_strided_slice %79 {offsets = [0, 2, 0], sizes = [16, 16, 8], strides = [1, 1, 1]} : vector<18x18x8xbf16> to vector<16x16x8xbf16>
    %85 = vector.shape_cast %84 : vector<16x16x8xbf16> to vector<256x8xbf16>
    %86 = vector.extract_strided_slice %79 {offsets = [1, 0, 0], sizes = [16, 16, 8], strides = [1, 1, 1]} : vector<18x18x8xbf16> to vector<16x16x8xbf16>
    %87 = vector.shape_cast %86 : vector<16x16x8xbf16> to vector<256x8xbf16>
    %88 = vector.extract_strided_slice %79 {offsets = [1, 1, 0], sizes = [16, 16, 8], strides = [1, 1, 1]} : vector<18x18x8xbf16> to vector<16x16x8xbf16>
    %89 = vector.shape_cast %88 : vector<16x16x8xbf16> to vector<256x8xbf16>
    %90 = vector.extract_strided_slice %79 {offsets = [1, 2, 0], sizes = [16, 16, 8], strides = [1, 1, 1]} : vector<18x18x8xbf16> to vector<16x16x8xbf16>
    %91 = vector.shape_cast %90 : vector<16x16x8xbf16> to vector<256x8xbf16>
    %92 = vector.extract_strided_slice %79 {offsets = [2, 0, 0], sizes = [16, 16, 8], strides = [1, 1, 1]} : vector<18x18x8xbf16> to vector<16x16x8xbf16>
    %93 = vector.shape_cast %92 : vector<16x16x8xbf16> to vector<256x8xbf16>
    %94 = vector.extract_strided_slice %79 {offsets = [2, 1, 0], sizes = [16, 16, 8], strides = [1, 1, 1]} : vector<18x18x8xbf16> to vector<16x16x8xbf16>
    %95 = vector.shape_cast %94 : vector<16x16x8xbf16> to vector<256x8xbf16>
    %96 = vector.extract_strided_slice %79 {offsets = [2, 2, 0], sizes = [16, 16, 8], strides = [1, 1, 1]} : vector<18x18x8xbf16> to vector<16x16x8xbf16>
    %97 = vector.shape_cast %96 : vector<16x16x8xbf16> to vector<256x8xbf16>
    %98 = tpu.concatenate %81, %83, %85, %87, %89, %91, %93, %95, %97 in 1 : vector<256x8xbf16>, vector<256x8xbf16>, vector<256x8xbf16>, vector<256x8xbf16>, vector<256x8xbf16>, vector<256x8xbf16>, vector<256x8xbf16>, vector<256x8xbf16>, vector<256x8xbf16> -> vector<256x72xbf16>
    %c0_35 = arith.constant 0 : index
    %c0_36 = arith.constant 0 : index
    %99 = vector.load %arg6[%c0_35, %c0_36] : memref<72x8xbf16, #tpu.memory_space<vmem>>, vector<72x8xbf16>
    %cst_37 = arith.constant dense<0.000000e+00> : vector<256x8xf32>
    %100 = tpu.matmul %98, %99, %cst_37 {dimension_numbers = #tpu.dot_dimension_numbers<[1], [0], [0], [1], [0, 0, 1, 1], [], []>} : vector<256x72xbf16>, vector<72x8xbf16>, vector<256x8xf32> -> vector<256x8xf32>
    %c0_38 = arith.constant 0 : index
    %c0_39 = arith.constant 0 : index
    %101 = vector.load %arg7[%c0_38, %c0_39] : memref<2x8xf32, #tpu.memory_space<vmem>>, vector<1x8xf32>
    %102 = vector.broadcast %101 : vector<1x8xf32> to vector<256x8xf32>
    %103 = arith.mulf %100, %102 : vector<256x8xf32>
    %c1_40 = arith.constant 1 : index
    %c0_41 = arith.constant 0 : index
    %104 = vector.load %arg7[%c1_40, %c0_41] : memref<2x8xf32, #tpu.memory_space<vmem>>, vector<1x8xf32>
    %105 = vector.broadcast %104 : vector<1x8xf32> to vector<256x8xf32>
    %106 = arith.addf %103, %105 : vector<256x8xf32>
    %107 = tpu.concatenate %29, %69, %106 in 1 : vector<256x16xf32>, vector<256x8xf32>, vector<256x8xf32> -> vector<256x32xf32>
    %cst_42 = arith.constant 0.000000e+00 : f32
    %108 = vector.broadcast %cst_42 : f32 to vector<256x32xf32>
    %109 = arith.cmpf oge, %107, %108 : vector<256x32xf32>
    %cst_43 = arith.constant 1.000000e-01 : f32
    %110 = vector.broadcast %cst_43 : f32 to vector<256x32xf32>
    %111 = arith.mulf %110, %107 : vector<256x32xf32>
    %112 = arith.select %109, %107, %111 : vector<256x32xi1>, vector<256x32xf32>
    %113 = tpu.transpose %112, [1, 0] : vector<256x32xf32> -> vector<32x256xf32>
    %c0_44 = arith.constant 0 : index
    %c0_45 = arith.constant 0 : index
    %c0_46 = arith.constant 0 : index
    %114 = vector.load %arg8[%c0_44, %c0_45, %c0_46] : memref<1x32x256xf32, #tpu.memory_space<vmem>>, vector<1x32x256xf32>
    %115 = vector.shape_cast %114 : vector<1x32x256xf32> to vector<32x256xf32>
    %116 = vector.shape_cast %113 : vector<32x256xf32> to vector<1x32x256xf32>
    tpu.vector_store %arg8[%c0_44, %c0_45, %c0_46], %116 {strides = array<i32>} : memref<1x32x256xf32, #tpu.memory_space<vmem>>, vector<1x32x256xf32>,
    return
  }
  func.func @transform_0(%arg0: i32) -> (i32, i32, i32, i32) {
    %c0_i32 = arith.constant 0 : i32
    %c0_i32_0 = arith.constant 0 : i32
    %c0_i32_1 = arith.constant 0 : i32
    %c0_i32_2 = arith.constant 0 : i32
    return %arg0, %c0_i32, %c0_i32_0, %c0_i32_1 : i32, i32, i32, i32
  }
  func.func @transform_1(%arg0: i32) -> (i32, i32) {
    %c0_i32 = arith.constant 0 : i32
    %c0_i32_0 = arith.constant 0 : i32
    %c0_i32_1 = arith.constant 0 : i32
    return %c0_i32, %c0_i32_0 : i32, i32
  }
  func.func @transform_2(%arg0: i32) -> (i32, i32) {
    %c0_i32 = arith.constant 0 : i32
    %c0_i32_0 = arith.constant 0 : i32
    %c0_i32_1 = arith.constant 0 : i32
    return %c0_i32, %c0_i32_0 : i32, i32
  }
  func.func @transform_3(%arg0: i32) -> (i32, i32) {
    %c0_i32 = arith.constant 0 : i32
    %c0_i32_0 = arith.constant 0 : i32
    %c0_i32_1 = arith.constant 0 : i32
    return %c0_i32, %c0_i32_0 : i32, i32
  }
  func.func @transform_4(%arg0: i32) -> (i32, i32) {
    %c0_i32 = arith.constant 0 : i32
    %c0_i32_0 = arith.constant 0 : i32
    %c0_i32_1 = arith.constant 0 : i32
    return %c0_i32, %c0_i32_0 : i32, i32
  }
  func.func @transform_5(%arg0: i32) -> (i32, i32) {
    %c0_i32 = arith.constant 0 : i32
    %c0_i32_0 = arith.constant 0 : i32
    %c0_i32_1 = arith.constant 0 : i32
    return %c0_i32, %c0_i32_0 : i32, i32
  }
  func.func @transform_6(%arg0: i32) -> (i32, i32) {
    %c0_i32 = arith.constant 0 : i32
    %c0_i32_0 = arith.constant 0 : i32
    %c0_i32_1 = arith.constant 0 : i32
    return %c0_i32, %c0_i32_0 : i32, i32
  }
  func.func @transform_7(%arg0: i32) -> (i32, i32, i32) {
    %c0_i32 = arith.constant 0 : i32
    %c0_i32_0 = arith.constant 0 : i32
    %c0_i32_1 = arith.constant 0 : i32
    return %arg0, %c0_i32, %c0_i32_0 : i32, i32, i32
  }
}

</mosaic_0001>

<bundles_post_ra>
// kernel: ssh_forward.1
= control target key start
LH: loop header
LB: loop body
LE: loop exit
PB: predicated region body
PF: predicated region fallthrough
CT: control target
= control target key end

     0   :  { %s8110_s24 = smov 0   ;;  %s12428_s0 = inlined_call_operand.vmem [shape: bf16[2,18,18,8], index: 0, kind: input, shape index: {}]   ;;  %s12429_s1 = inlined_call_operand.vmem [shape: bf16[72,24], index: 1, kind: input, shape index: {}]   ;;  %s12430_s2 = inlined_call_operand.vmem [shape: f32[2,24], index: 2, kind: input, shape index: {}]   ;;  %s12431_s3 = inlined_call_operand.vmem [shape: bf16[72,16], index: 3, kind: input, shape index: {}]   ;;  %s12432_s4 = inlined_call_operand.vmem [shape: f32[2,16], index: 4, kind: input, shape index: {}]   ;;  %s12433_s5 = inlined_call_operand.vmem [shape: bf16[72,8], index: 5, kind: input, shape index: {}]   ;;  %s12434_s6 = inlined_call_operand.vmem [shape: f32[2,8], index: 6, kind: input, shape index: {}]   ;;  %s12435_s7 = inlined_call_operand.vmem [shape: f32[2,32,256], index: 7, kind: output, shape index: {}]  }
   0x1 LB: > { %s7330_s25 = sadd.s32 4294967295, %s8057_s24   ;;  %p7334_p0 = scmp.ge.s32.totalorder %s8057_s24, 1  ;;  %s8057_s24 = sphi %s8110_s24, %s17_s24  }
   0x2   : > { %p237_p1 = scmp.lt.s32.totalorder %s8057_s24, 3 }
   0x4   : > { %p238_p2 = pnand %p7334_p0, %p237_p1 }
   0x6   : > { %241 = sbr.rel (%p238_p2) target bundleno = 2095 (0x82f), region = 48 }
   0xd   : > { %p269_p3 = scmp.lt.s32.totalorder %s7330_s25, 1  ;;  %vm769_vm0 = vcmask 1042432   ;;  %vm770_vm1 = vcmask 1046532   ;;  %vm334_vm2 = vsmask.f32 3328  ;;  %s8059_s30 = smov 24  }
   0xe   : > { %vm335_vm3 = vsmask.f32 7440  ;;  %vm8146_vm4 = vmor %vm769_vm0, %vm770_vm1  ;;  %s8060_s8 = smov 40   ;;  %v7987_v48 = vld [vmem:[%s12429_s1] sm:$0xff]   ;;  %s8061_s11 = smov 16   ;;  %vm12483_vm6 = vcmask 1043456  }
   0xf   : > { %s12911_s25 = smov (!%p269_p3, %s7330_s25), 1  ;;  %vm8189_vm5 = vmor %vm334_vm2, %vm335_vm3  ;;  %7817 = vmatprep.subr.bf16.mxu0 %v7987_v48  ;;  %7943 = vmatprep.subr.bf16.mxu1 %v7987_v48  ;;  %s8062_s12 = smov 8   ;;  %vm1370_vm7 = vcmask 64512   ;;  %vm1419_vm8 = vcmask 130048   ;;  %vm1452_vm9 = vcmask 195584   ;;  %vm12485_vm10 = vcmask 261120  }
  0x10   : > { %s7957_s26 = smul.u32 216, %s12911_s25  ;;  %7818 = vmatpush3.bf16.msra.mxu0 %v7987_v48  ;;  %7948 = vmatpush3.bf16.msra.mxu1 %v7987_v48  ;;  %s8063_s19 = smov 32   ;;  %vm12440_vm11 = vcmask 326656   ;;  %vm12439_vm12 = vcmask 392192   ;;  %vm12438_vm13 = vcmask 457728   ;;  %vm12437_vm14 = vcmask 523264  }
  0x11   : > { %s8064_s20 = smov 48   ;;  %s8065_s21 = smov 56   ;;  %vm12436_vm15 = vcmask 588800   ;;  %vm12484_vm0 = vcmask 60416   ;;  %vm2073_vm1 = vcmask 57344  }
  0x12   : > { %s8124_s29 = scalar_lea.vmem %s12428_s0, %s7957_s26  ;;  %s8066_s22 = smov 64  }
  0x13   : > { %v8127_v0 = vld [vmem:[%s8124_s29 + $0x18] sm:$0xf]  ;;  %v8130_v1 = vld [vmem:[%s8124_s29 + $0x1c] sm:$0xf]  ;;  %v283_v2 = vld [vmem:[%s8124_s29 + $0xc] sm:$0xf] }
  0x14   : > { %v399_v3 = vshrl.u32 %v8130_v1, 16  ;;  %v8136_v4 = vcombine.low %v8127_v0, %v8130_v1  ;;  %v386_v5 = vshrl.u32 %v8127_v0, 16  ;;  %v389_v6 = vshll.u32 %v8127_v0, 16  ;;  %v284_v7 = vld [vmem:[%s8124_s29 + $0x10] sm:$0xf]  ;;  %s8068_s10 = smov 112  }
  0x15   : > { %v371_v8 = vshll.u32 %v284_v7, 16  ;;  %v375_v9 = vshrl.u32 %v284_v7, 16  ;;  %v8141_v10 = vcombine.low %v283_v2, %v284_v7  ;;  %v362_v11 = vshrl.u32 %v283_v2, 16  ;;  %v285_v12 = vld [vmem:[%s8124_s29 + $0x14] sm:$0x1]  ;;  %s8069_s14 = smov 120  }
  0x16   : > { %1165 = vrot.lane.b32.xlu1 %v8136_v4, %s8059_s30  ;;  %v365_v14 = vshll.u32 %v283_v2, 16  ;;  %v7339_v15 = vrot.slane %v283_v2, 9  ;;  %v781_v16 = vrot.slane %v284_v7, 5  ;;  %v784_v17 = vrot.slane %v285_v12, 5  ;;  %v8153_v18 = vld [vmem:[%s8124_s29] sm:$0xf] }
  0x17   : > { %v8155_v19 = vrot.slane %v375_v9, 4  ;;  %1163 = vrot.lane.b32.xlu0 %v8141_v10, %s8059_s30  ;;  %v364_v20 = vrot.slane %v362_v11, 4  ;;  %v8160_v21 = vld [vmem:[%s8124_s29 + $0x4] sm:$0xf]  ;;  %v282_v22 = vld [vmem:[%s8124_s29 + $0x8] sm:$0x1] }
  0x18   : > { %v367_v23 = vrot.slane %v365_v14, 5  ;;  %v782_v24 = vsel %vm8146_vm4, %v7339_v15, %v781_v16  ;;  %v783_v25 = vrot.slane %v781_v16, 4  ;;  %v7338_v26 = vrot.slane %v8153_v18, 9  ;;  %v8174_v35 = vld [vmem:[%s8124_s29 + $0x20] sm:$0x1] }
  0x19   : > { %v774_v27 = vrot.slane %v8160_v21, 5  ;;  %v777_v28 = vrot.slane %v282_v22, 5  ;;  %v338_v29 = vshrl.u32 %v8153_v18, 16  ;;  %v341_v30 = vshll.u32 %v8153_v18, 16  ;;  %v8215_v14 = vld [vmem:[%s8124_s29 + $0x28] sm:$0xf] }
  0x1a   : > { %v785_v31 = vsel %vm8146_vm4, %v783_v25, %v784_v17  ;;  %v347_v32 = vshll.u32 %v8160_v21, 16  ;;  %v351_v33 = vshrl.u32 %v8160_v21, 16  ;;  %v357_v34 = vshll.u32 %v282_v22, 16 }
  0x1b   : > { %v7389_v36 = vcombine.low %v782_v24, %v785_v31  ;;  %v775_v37 = vsel %vm8146_vm4, %v7338_v26, %v774_v27  ;;  %v776_v38 = vrot.slane %v774_v27, 4  ;;  %v340_v39 = vrot.slane %v338_v29, 4  ;;  %v291_v27 = vld [vmem:[%s8124_s29 + $0x2c] sm:$0x1]  ;;  %v7989_v29 = vld [vmem:[%s12429_s1 + $0x10] sm:$0xff]  }
  0x1c   : > { %v343_v40 = vrot.slane %v341_v30, 5  ;;  %v349_v41 = vrot.slane %v347_v32, 5  ;;  %v353_v42 = vrot.slane %v351_v33, 4  ;;  %v359_v43 = vrot.slane %v357_v34, 5 }
  0x1d   : > { %1233 = vrot.lane.b32.xlu0 %v7389_v36, %s8060_s8  ;;  %v778_v44 = vsel %vm8146_vm4, %v776_v38, %v777_v28  ;;  %v7340_v45 = vrot.slane %v8127_v0, 9  ;;  %v788_v46 = vrot.slane %v8130_v1, 5  ;;  %v791_v47 = vrot.slane %v8174_v35, 5 }
  0x1e   : > { %v7388_v49 = vcombine.low %v775_v37, %v778_v44  ;;  %v344_v50 = vor.u32 %v343_v40, %v340_v39  ;;  %v354_v51 = vor.u32 %v353_v42, %v349_v41  ;;  %v368_v52 = vor.u32 %v367_v23, %v364_v20  ;;  %v7991_v40 = vld [vmem:[%s12429_s1 + $0x18] sm:$0xff]  }
  0x1f   : > { %v789_v54 = vsel %vm8146_vm4, %v7340_v45, %v788_v46  ;;  %v790_v55 = vrot.slane %v788_v46, 4  ;;  %v373_v56 = vrot.slane %v371_v8, 5  ;;  %v381_v57 = vshll.u32 %v285_v12, 16  ;;  %v8204_v8 = vld [vmem:[%s8124_s29 + $0x24] sm:$0xf] }
  0x20   : > { %1128 = vrot.lane.b32.xlu1 %v7388_v49, %s8061_s11  ;;  %v345_v58 = vrot.slane %v344_v50, 4  ;;  %v355_v59 = vrot.slane %v354_v51, 4  ;;  %v369_v60 = vrot.slane %v368_v52, 4  ;;  %v388_v61 = vrot.slane %v386_v5, 4  ;;  %v8258_v51 = vld [vmem:[%s8124_s29 + $0x30] sm:$0xf] }
  0x21   : > { %v792_v62 = vsel %vm8146_vm4, %v790_v55, %v791_v47  ;;  %v378_v63 = vor.u32 %v8155_v19, %v373_v56  ;;  %v383_v2 = vrot.slane %v381_v57, 5  ;;  %v391_v7 = vrot.slane %v389_v6, 5  ;;  %v293_v52 = vld [vmem:[%s8124_s29 + $0x34] sm:$0xf] }
  0x22   : > { %v350_v9 = vsel %vm8189_vm5, %v345_v58, %v349_v41  ;;  %v360_v11 = vsel %vm8189_vm5, %v355_v59, %v359_v43  ;;  %v8210_v5 = vcombine.low %v789_v54, %v792_v62  ;;  %v374_v12 = vsel %vm8189_vm5, %v369_v60, %v373_v56 }
  0x23   : > { %v7372_v15 = vcombine.low %v350_v9, %v360_v11  ;;  %v379_v0 = vrot.slane %v378_v63, 4  ;;  %v392_v6 = vor.u32 %v391_v7, %v388_v61  ;;  %v395_v16 = vshll.u32 %v8130_v1, 16  ;;  %v7988_v1 = vld [vmem:[%s12429_s1 + $0x8] sm:$0xff]  }
  0x24   : > { %1130 = vrot.lane.b32.xlu1 %v7389_v36, %s8061_s11  ;;  %v401_v17 = vrot.slane %v399_v3, 4  ;;  %v405_v19 = vshll.u32 %v8174_v35, 16  ;;  %v410_v20 = vshrl.u32 %v8204_v8, 16  ;;  %v413_v22 = vshll.u32 %v8204_v8, 16  ;;  %7819 = vmatprep.subr.bf16.mxu0 %v7988_v1 }
  0x25   : > { %1048 = vrot.lane.b32.xlu0 %v7372_v15, %s8062_s12  ;;  %v384_v23 = vsel %vm8189_vm5, %v379_v0, %v383_v2  ;;  %v393_v24 = vrot.slane %v392_v6, 4  ;;  %v397_v25 = vrot.slane %v395_v16, 5  ;;  %v423_v26 = vshrl.u32 %v8215_v14, 16  ;;  %7944 = vmatprep.subr.bf16.mxu1 %v7988_v1  ;;  %v294_v2 = vld [vmem:[%s8124_s29 + $0x38] sm:$0x1] }
  0x26   : > { %v7373_v3 = vcombine.low %v374_v12, %v384_v23  ;;  %v412_v28 = vrot.slane %v410_v20, 4  ;;  %v407_v31 = vrot.slane %v405_v19, 5  ;;  %v415_v32 = vrot.slane %v413_v22, 5  ;;  %7820 = vmatpush3.bf16.msra.mxu0 %v7988_v1  ;;  %7949 = vmatpush3.bf16.msra.mxu1 %v7988_v1  ;;  %v8279_v6 = vld [vmem:[%s8124_s29 + $0x3c] sm:$0xf] }
  0x27   : > { %v402_v30 = vor.u32 %v401_v17, %v397_v25  ;;  %v419_v33 = vshll.u32 %v8215_v14, 16  ;;  %v425_v34 = vrot.slane %v423_v26, 4  ;;  %v429_v35 = vshll.u32 %v291_v27, 16  ;;  %7821 = vmatprep.subr.bf16.mxu0 %v7989_v29  ;;  %7945 = vmatprep.subr.bf16.mxu1 %v7989_v29  ;;  %v296_v16 = vld [vmem:[%s8124_s29 + $0x40] sm:$0xf] }
  0x28   : > { %1235 = vrot.lane.b32.xlu1 %v8210_v5, %s8060_s8  ;;  %v398_v36 = vsel %vm8189_vm5, %v393_v24, %v397_v25  ;;  %v416_v38 = vor.u32 %v415_v32, %v412_v28  ;;  %v8250_v47 = vcombine.low %v8204_v8, %v8215_v14  ;;  %v795_v48 = vrot.slane %v8215_v14, 5 }
  0x29   : > { %1050 = vrot.lane.b32.xlu0 %v7373_v3, %s8062_s12  ;;  %v403_v37 = vrot.slane %v402_v30, 4  ;;  %v421_v39 = vrot.slane %v419_v33, 5  ;;  %v431_v44 = vrot.slane %v429_v35, 5  ;;  %v7341_v54 = vrot.slane %v8204_v8, 9 }
  0x2a   : > { %v417_v42 = vrot.slane %v416_v38, 4  ;;  %7822 = vmatpush3.bf16.msra.mxu0 %v7989_v29  ;;  %7950 = vmatpush3.bf16.msra.mxu1 %v7989_v29  ;;  %v797_v56 = vrot.slane %v795_v48, 4  ;;  %v798_v57 = vrot.slane %v291_v27, 5  ;;  %v434_v58 = vshrl.u32 %v8258_v51, 16 }
  0x2b   : > { %v408_v41 = vsel %vm8189_vm5, %v403_v37, %v407_v31  ;;  %v426_v43 = vor.u32 %v425_v34, %v421_v39  ;;  %7823 = vmatprep.subr.bf16.mxu0 %v7991_v40  ;;  %7946 = vmatprep.subr.bf16.mxu1 %v7991_v40  ;;  %v437_v59 = vshll.u32 %v8258_v51, 16  ;;  %v447_v60 = vshrl.u32 %v293_v52, 16 }
  0x2c   : > { %v7374_v45 = vcombine.low %v398_v36, %v408_v41  ;;  %v422_v49 = vsel %vm8189_vm5, %v417_v42, %v421_v39  ;;  %v443_v61 = vshll.u32 %v293_v52, 16  ;;  %v796_v62 = vsel %vm8146_vm4, %v7341_v54, %v795_v48 }
  0x2d   : > { %1198 = vrot.lane.b32.xlu0 %v7373_v3, %s8063_s19  ;;  %v427_v46 = vrot.slane %v426_v43, 4  ;;  %v799_v63 = vsel %vm8146_vm4, %v797_v56, %v798_v57  ;;  %v436_v7 = vrot.slane %v434_v58, 4  ;;  %v439_v8 = vrot.slane %v437_v59, 5 }
  0x2e   : > { %1200 = vrot.lane.b32.xlu1 %v7374_v45, %s8063_s19  ;;  %7824 = vmatpush3.bf16.msra.mxu0 %v7991_v40  ;;  %v445_v9 = vrot.slane %v443_v61, 5  ;;  %v449_v11 = vrot.slane %v447_v60, 4  ;;  %v7391_v12 = vcombine.low %v796_v62, %v799_v63  ;;  %v453_v14 = vshll.u32 %v294_v2, 16  ;;  %v7992_v62 = vld [vmem:[%s12429_s1 + $0x20] ss:$0 sps:$4 sm:$0xff]  }
  0x2f   : > { %v432_v50 = vsel %vm8189_vm5, %v427_v46, %v431_v44  ;;  %7951 = vmatpush3.bf16.msra.mxu1 %v7991_v40  ;;  %v440_v15 = vor.u32 %v439_v8, %v436_v7  ;;  %v802_v19 = vrot.slane %v293_v52, 5  ;;  %v458_v20 = vshrl.u32 %v8279_v6, 16  ;;  %v300_v8 = vld [vmem:[%s8124_s29 + $0x50] sm:$0x1]  ;;  %7953 = vmatprep.subr.msk.bf16.mxu0 %vm12483_vm6, %v7992_v62 }
  0x30   : > { %v7375_v55 = vcombine.low %v422_v49, %v432_v50  ;;  %v450_v0 = vor.u32 %v449_v11, %v445_v9  ;;  %v455_v17 = vrot.slane %v453_v14, 5  ;;  %v461_v22 = vshll.u32 %v8279_v6, 16  ;;  %7954 = vmatprep.subr.msk.bf16.mxu1 %vm12483_vm6, %v7992_v62 }
  0x31   : > { %1268 = vrot.lane.b32.xlu0 %v8136_v4, %s8064_s20  ;;  %v441_v23 = vrot.slane %v440_v15, 4  ;;  %v471_v25 = vshrl.u32 %v296_v16, 16  ;;  %v467_v26 = vshll.u32 %v296_v16, 16  ;;  %v8289_v27 = vcombine.low %v8258_v51, %v293_v52  ;;  %v8323_v52 = vld [vmem:[%s8124_s29 + $0x4c] sm:$0xf] }
  0x32   : > { %1270 = vrot.lane.b32.xlu1 %v8250_v47, %s8064_s20  ;;  %v451_v24 = vrot.slane %v450_v0, 4  ;;  %v7342_v1 = vrot.slane %v8258_v51, 9  ;;  %v804_v3 = vrot.slane %v802_v19, 4  ;;  %v805_v28 = vrot.slane %v294_v2, 5  ;;  %v8320_v51 = vld [vmem:[%s8124_s29 + $0x48] sm:$0xf] }
  0x33   : > { %v460_v29 = vrot.slane %v458_v20, 4  ;;  %v463_v30 = vrot.slane %v461_v22, 5  ;;  %v446_v31 = vsel %vm8189_vm5, %v441_v23, %v445_v9  ;;  %v469_v33 = vrot.slane %v467_v26, 5 }
  0x34   : > { %v456_v32 = vsel %vm8189_vm5, %v451_v24, %v455_v17  ;;  %v473_v34 = vrot.slane %v471_v25, 4  ;;  %v803_v36 = vsel %vm8146_vm4, %v7342_v1, %v802_v19  ;;  %v806_v37 = vsel %vm8146_vm4, %v804_v3, %v805_v28  ;;  %v301_v17 = vld [vmem:[%s8124_s29 + $0x54] sm:$0xf]  ;;  %v302_v19 = vld [vmem:[%s8124_s29 + $0x58] sm:$0xf] }
  0x35   : > { %1303 = vrot.lane.b32.xlu0 %v7374_v45, %s8065_s21  ;;  %v7376_v35 = vcombine.low %v446_v31, %v456_v32  ;;  %v464_v38 = vor.u32 %v463_v30, %v460_v29  ;;  %v7392_v41 = vcombine.low %v803_v36, %v806_v37  ;;  %v809_v46 = vrot.slane %v296_v16, 5  ;;  %v303_v37 = vld [vmem:[%s8124_s29 + $0x5c] sm:$0x1] }
  0x36   : > { %1305 = vrot.lane.b32.xlu1 %v7375_v55, %s8065_s21  ;;  %v474_v39 = vor.u32 %v473_v34, %v469_v33  ;;  %v7356_v48 = vcombine.low %v8153_v18, %v8160_v21  ;;  %v7343_v54 = vrot.slane %v8279_v6, 9  ;;  %v482_v58 = vshrl.u32 %v8320_v51, 16 }
  0x37   : > { %v465_v42 = vrot.slane %v464_v38, 4  ;;  %v811_v56 = vrot.slane %v809_v46, 4  ;;  %v485_v59 = vshll.u32 %v8320_v51, 16  ;;  %v495_v60 = vshrl.u32 %v8323_v52, 16 }
  0x38   : > { %v475_v43 = vrot.slane %v474_v39, 4  ;;  %v491_v61 = vshll.u32 %v8323_v52, 16  ;;  %v810_v63 = vsel %vm8146_vm4, %v7343_v54, %v809_v46  ;;  %v484_v7 = vrot.slane %v482_v58, 4 }
  0x39   : > { %1338 = vrot.lane.b32.xlu0 %v8210_v5, %s8066_s22  ;;  %v470_v49 = vsel %vm8189_vm5, %v465_v42, %v469_v33  ;;  %v487_v9 = vrot.slane %v485_v59, 5  ;;  %v1721_v15 = vsel %vm12483_vm6, %v7992_v62, 0  ;;  %v501_v0 = vshll.u32 %v300_v8, 16 }
  0x3a   : > { %1052 = vrot.lane.b32.xlu1 %v7374_v45, %s8062_s12  ;;  %v8311_v45 = vcombine.low %v8279_v6, %v296_v16  ;;  %v493_v11 = vrot.slane %v491_v61, 5  ;;  %7826 = vmatpush3.bf16.msra.mxu0 %v1721_v15  ;;  %v816_v22 = vrot.slane %v8323_v52, 5  ;;  %v506_v23 = vshrl.u32 %v301_v17, 16 }
  0x3b   : > { %v488_v6 = vor.u32 %v487_v9, %v484_v7  ;;  %7952 = vmatpush3.bf16.msra.mxu1 %v1721_v15  ;;  %v503_v20 = vrot.slane %v501_v0, 5  ;;  %v509_v24 = vshll.u32 %v301_v17, 16  ;;  %v519_v1 = vshrl.u32 %v302_v19, 16 }
  0x3c   : > { %v515_v3 = vshll.u32 %v302_v19, 16  ;;  %v8357_v28 = vcombine.low %v8320_v51, %v8323_v52  ;;  %v7344_v29 = vrot.slane %v8320_v51, 9  ;;  %v818_v30 = vrot.slane %v816_v22, 4 }
  0x3d   : > { %1340 = vrot.lane.b32.xlu0 %v7391_v12, %s8066_s22  ;;  %v489_v25 = vrot.slane %v488_v6, 4  ;;  %v819_v31 = vrot.slane %v300_v8, 5  ;;  %v508_v32 = vrot.slane %v506_v23, 4  ;;  %v511_v33 = vrot.slane %v509_v24, 5 }
  0x3e   : > { %1054 = vrot.lane.b32.xlu1 %v7375_v55, %s8062_s12  ;;  %v521_v36 = vrot.slane %v519_v1, 4  ;;  %v817_v39 = vsel %vm8146_vm4, %v7344_v29, %v816_v22  ;;  %v8378_v51 = vcombine.low %v301_v17, %v302_v19  ;;  %v823_v52 = vrot.slane %v302_v19, 5  ;;  %v8403_v22 = vld [vmem:[%s8124_s29 + $0x70] sm:$0xf] }
  0x3f   : > { %v494_v34 = vsel %vm8189_vm5, %v489_v25, %v493_v11  ;;  %v7345_v58 = vrot.slane %v301_v17, 9  ;;  %v826_v59 = vrot.slane %v303_v37, 5  ;;  %v567_v29 = vshrl.u32 %v8403_v22, 16 }
  0x40   : > { %v825_v61 = vrot.slane %v823_v52, 4 }
  0x41   : > { %1132 = vrot.lane.b32.xlu0 %v8210_v5, %s8061_s11  ;;  %v297_v5 = vld [vmem:[%s8124_s29 + $0x44] sm:$0x1]  ;;  %v824_v8 = vsel %vm8146_vm4, %v7345_v58, %v823_v52 }
  0x42   : > { %1134 = vrot.lane.b32.xlu1 %v7391_v12, %s8061_s11  ;;  %v477_v40 = vshll.u32 %v297_v5, 16  ;;  %v812_v57 = vrot.slane %v297_v5, 5  ;;  %v827_v9 = vsel %vm8146_vm4, %v825_v61, %v826_v59  ;;  %v837_v59 = vrot.slane %v8403_v22, 5 }
  0x43   : > { %v7395_v6 = vcombine.low %v824_v8, %v827_v9 }
  0x44   : > { %v479_v44 = vrot.slane %v477_v40, 5  ;;  %v813_v2 = vsel %vm8146_vm4, %v811_v56, %v812_v57  ;;  %v820_v40 = vsel %vm8146_vm4, %v818_v30, %v819_v31  ;;  %v305_v57 = vld [vmem:[%s8124_s29 + $0x64] sm:$0xf]  ;;  %v563_v30 = vshll.u32 %v8403_v22, 16 }
  0x45   : > { %1167 = vrot.lane.b32.xlu0 %v8250_v47, %s8059_s30  ;;  %v7393_v14 = vcombine.low %v810_v63, %v813_v2  ;;  %v543_v2 = vshrl.u32 %v305_v57, 16  ;;  %v539_v7 = vshll.u32 %v305_v57, 16  ;;  %v830_v25 = vrot.slane %v305_v57, 5 }
  0x46   : > { %1169 = vrot.lane.b32.xlu1 %v8289_v27, %s8059_s30  ;;  %v480_v50 = vsel %vm8189_vm5, %v475_v43, %v479_v44  ;;  %v525_v43 = vshll.u32 %v303_v37, 16  ;;  %v7394_v44 = vcombine.low %v817_v39, %v820_v40  ;;  %v569_v39 = vrot.slane %v567_v29, 4  ;;  %v309_v40 = vld [vmem:[%s8124_s29 + $0x74] sm:$0x1] }
  0x47   : > { %v541_v15 = vrot.slane %v539_v7, 5  ;;  %v545_v0 = vrot.slane %v543_v2, 4  ;;  %v840_v8 = vrot.slane %v309_v40, 5 }
  0x49   : > { %1202 = vrot.lane.b32.xlu0 %v7375_v55, %s8063_s19  ;;  %v7377_v55 = vcombine.low %v470_v49, %v480_v50  ;;  %v527_v50 = vrot.slane %v525_v43, 5  ;;  %v546_v19 = vor.u32 %v545_v0, %v541_v15 }
  0x4a   : > { %1204 = vrot.lane.b32.xlu1 %v7376_v35, %s8063_s19 }
  0x4b   : > { %v547_v1 = vrot.slane %v546_v19, 4 }
  0x4d   : > { %1237 = vrot.lane.b32.xlu0 %v7391_v12, %s8060_s8  ;;  %v497_v12 = vrot.slane %v495_v60, 4 }
  0x4e   : > { %1239 = vrot.lane.b32.xlu1 %v7392_v41, %s8060_s8 }
  0x4f   : > { %v498_v16 = vor.u32 %v497_v12, %v493_v11 }
  0x51   : > { %1272 = vrot.lane.b32.xlu0 %v8289_v27, %s8064_s20  ;;  %v499_v26 = vrot.slane %v498_v16, 4 }
  0x52   : > { %1274 = vrot.lane.b32.xlu1 %v8311_v45, %s8064_s20 }
  0x53   : > { %v504_v5 = vsel %vm8189_vm5, %v499_v26, %v503_v20  ;;  %v8400_v20 = vld [vmem:[%s8124_s29 + $0x6c] sm:$0xf] }
  0x54   : > { %v7378_v38 = vcombine.low %v494_v34, %v504_v5  ;;  %v554_v26 = vshrl.u32 %v8400_v20, 16  ;;  %v832_v34 = vrot.slane %v830_v25, 4  ;;  %v8441_v58 = vcombine.low %v8400_v20, %v8403_v22 }
  0x55   : > { %1307 = vrot.lane.b32.xlu0 %v7376_v35, %s8065_s21  ;;  %v7347_v7 = vrot.slane %v8400_v20, 9 }
  0x56   : > { %1309 = vrot.lane.b32.xlu1 %v7377_v55, %s8065_s21 }
  0x59   : > { %1342 = vrot.lane.b32.xlu0 %v7392_v41, %s8066_s22 }
  0x5a   : > { %1056 = vrot.lane.b32.xlu1 %v7376_v35, %s8062_s12  ;;  %v517_v35 = vrot.slane %v515_v3, 5  ;;  %v557_v3 = vshll.u32 %v8400_v20, 16 }
  0x5c   : > { %v522_v42 = vor.u32 %v521_v36, %v517_v35  ;;  %v559_v37 = vrot.slane %v557_v3, 5 }
  0x5d   : > { %1344 = vrot.lane.b32.xlu0 %v7393_v14, %s8066_s22 }
  0x5e   : > { %1058 = vrot.lane.b32.xlu1 %v7377_v55, %s8062_s12  ;;  %v523_v49 = vrot.slane %v522_v42, 4 }
  0x60   : > { %v528_v56 = vsel %vm8189_vm5, %v523_v49, %v527_v50  ;;  %v573_v49 = vshll.u32 %v309_v40, 16 }
  0x61   : > { %1136 = vrot.lane.b32.xlu0 %v7392_v41, %s8061_s11  ;;  %v512_v41 = vor.u32 %v511_v33, %v508_v32 }
  0x62   : > { %1138 = vrot.lane.b32.xlu1 %v7393_v14, %s8061_s11 }
  0x63   : > { %v513_v46 = vrot.slane %v512_v41, 4 }
  0x65   : > { %1171 = vrot.lane.b32.xlu0 %v8311_v45, %s8059_s30  ;;  %v518_v54 = vsel %vm8189_vm5, %v513_v46, %v517_v35  ;;  %v556_v35 = vrot.slane %v554_v26, 4 }
  0x66   : > { %1173 = vrot.lane.b32.xlu1 %v8357_v28, %s8059_s30  ;;  %v7379_v60 = vcombine.low %v518_v54, %v528_v56 }
  0x69   : > { %1206 = vrot.lane.b32.xlu0 %v7377_v55, %s8063_s19  ;;  %v304_v55 = vld [vmem:[%s8124_s29 + $0x60] sm:$0xf] }
  0x6a   : > { %1208 = vrot.lane.b32.xlu1 %v7378_v38, %s8063_s19  ;;  %v530_v62 = vshrl.u32 %v304_v55, 16  ;;  %v533_v63 = vshll.u32 %v304_v55, 16  ;;  %v8412_v31 = vcombine.low %v304_v55, %v305_v57  ;;  %v7346_v32 = vrot.slane %v304_v55, 9 }
  0x6b   : > { %v575_v55 = vrot.slane %v573_v49, 5 }
  0x6c   : > { %v532_v11 = vrot.slane %v530_v62, 4  ;;  %v535_v12 = vrot.slane %v533_v63, 5  ;;  %v831_v42 = vsel %vm8146_vm4, %v7346_v32, %v830_v25  ;;  %v8449_v62 = vld [vmem:[%s8124_s29 + $0x78] sm:$0xf]  ;;  %v8452_v63 = vld [vmem:[%s8124_s29 + $0x7c] sm:$0xf] }
  0x6d   : > { %1241 = vrot.lane.b32.xlu0 %v7393_v14, %s8060_s8  ;;  %v306_v14 = vld [vmem:[%s8124_s29 + $0x68] sm:$0x1]  ;;  %v591_v0 = vshrl.u32 %v8452_v63, 16  ;;  %v8507_v18 = vcombine.low %v8449_v62, %v8452_v63  ;;  %v7348_v21 = vrot.slane %v8449_v62, 9 }
  0x6e   : > { %1243 = vrot.lane.b32.xlu1 %v7394_v44, %s8060_s8  ;;  %v536_v16 = vor.u32 %v535_v12, %v532_v11  ;;  %v549_v17 = vshll.u32 %v306_v14, 16  ;;  %v833_v5 = vrot.slane %v306_v14, 5  ;;  %v839_v12 = vrot.slane %v837_v59, 4 }
  0x6f   : > { %v578_v14 = vshrl.u32 %v8449_v62, 16  ;;  %v593_v26 = vrot.slane %v591_v0, 4 }
  0x70   : > { %v537_v23 = vrot.slane %v536_v16, 4  ;;  %v551_v24 = vrot.slane %v549_v17, 5  ;;  %v834_v43 = vsel %vm8146_vm4, %v832_v34, %v833_v5  ;;  %v838_v17 = vsel %vm8146_vm4, %v7347_v7, %v837_v59  ;;  %v8483_v34 = vld [vmem:[%s8124_s29 + $0x84] sm:$0xf]  ;;  %v8486_v5 = vld [vmem:[%s8124_s29 + $0x88] sm:$0xf] }
  0x71   : > { %1276 = vrot.lane.b32.xlu0 %v8357_v28, %s8064_s20  ;;  %v8430_v50 = vcombine.low %v831_v42, %v834_v43  ;;  %v841_v19 = vsel %vm8146_vm4, %v839_v12, %v840_v8  ;;  %v580_v20 = vrot.slane %v578_v14, 4  ;;  %v615_v43 = vshrl.u32 %v8486_v5, 16  ;;  %v8519_v8 = vld [vmem:[%s8124_s29 + $0x8c] sm:$0x1] }
  0x72   : > { %1278 = vrot.lane.b32.xlu1 %v8378_v51, %s8064_s20  ;;  %v542_v33 = vsel %vm8189_vm5, %v537_v23, %v541_v15  ;;  %v552_v36 = vsel %vm8189_vm5, %v547_v1, %v551_v24  ;;  %v581_v15 = vshll.u32 %v8449_v62, 16  ;;  %v312_v24 = vld [vmem:[%s8124_s29 + $0x80] sm:$0x1]  ;;  %v8477_v1 = vcombine.low %v838_v17, %v841_v19 }
  0x73   : > { %v7380_v41 = vcombine.low %v542_v33, %v552_v36  ;;  %v621_v19 = vshll.u32 %v8519_v8, 16 }
  0x74   : > { %v583_v22 = vrot.slane %v581_v15, 5 }
  0x75   : > { %1311 = vrot.lane.b32.xlu0 %v7378_v38, %s8065_s21 }
  0x76   : > { %1313 = vrot.lane.b32.xlu1 %v7379_v60, %s8065_s21  ;;  %v584_v29 = vor.u32 %v583_v22, %v580_v20 }
  0x78   : > { %v585_v36 = vrot.slane %v584_v29, 4 }
  0x79   : > { %1346 = vrot.lane.b32.xlu0 %v7394_v44, %s8066_s22 }
  0x7a   : > { %1060 = vrot.lane.b32.xlu1 %v7378_v38, %s8062_s12  ;;  %v565_v38 = vrot.slane %v563_v30, 5  ;;  %v597_v30 = vshll.u32 %v312_v24, 16 }
  0x7c   : > { %v570_v46 = vor.u32 %v569_v39, %v565_v38  ;;  %v605_v39 = vshll.u32 %v8483_v34, 16 }
  0x7d   : > { %1348 = vrot.lane.b32.xlu0 %v7395_v6, %s8066_s22 }
  0x7e   : > { %1062 = vrot.lane.b32.xlu1 %v7379_v60, %s8062_s12  ;;  %v571_v56 = vrot.slane %v570_v46, 4 }
  0x80   : > { %v576_v61 = vsel %vm8189_vm5, %v571_v56, %v575_v55 }
  0x81   : > { %1140 = vrot.lane.b32.xlu0 %v7394_v44, %s8061_s11  ;;  %v560_v44 = vor.u32 %v559_v37, %v556_v35  ;;  %v844_v35 = vrot.slane %v8452_v63, 5  ;;  %v599_v37 = vrot.slane %v597_v30, 5  ;;  %v623_v30 = vrot.slane %v621_v19, 5 }
  0x82   : > { %1142 = vrot.lane.b32.xlu1 %v7395_v6, %s8061_s11 }
  0x83   : > { %v561_v54 = vrot.slane %v560_v44, 4  ;;  %v611_v44 = vshll.u32 %v8486_v5, 16  ;;  %v845_v15 = vsel %vm8146_vm4, %v7348_v21, %v844_v35 }
  0x85   : > { %1175 = vrot.lane.b32.xlu0 %v8378_v51, %s8059_s30 }
  0x86   : > { %1177 = vrot.lane.b32.xlu1 %v8412_v31, %s8059_s30 }
  0x88   : > { %v8434_v57 = vpop.permute.xlu1 %1165 }
  0x89   : > { %1210 = vrot.lane.b32.xlu0 %v7379_v60, %s8063_s19  ;;  %v8432_v52 = vpop.permute.xlu0 %1163  ;;  %v566_v60 = vsel %vm8189_vm5, %v561_v54, %v565_v38  ;;  %v602_v38 = vshrl.u32 %v8483_v34, 16 }
  0x8a   : > { %1212 = vrot.lane.b32.xlu1 %v7380_v41, %s8063_s19  ;;  %v8461_v11 = vcombine.low %v566_v60, %v576_v61  ;;  %v607_v60 = vrot.slane %v605_v39, 5  ;;  %v613_v61 = vrot.slane %v611_v44, 5  ;;  %v854_v44 = vrot.slane %v8519_v8, 5  ;;  %v318_v8 = vld [vmem:[%s8124_s29 + $0x98] sm:$0x1] }
  0x8b   : > { %v604_v55 = vrot.slane %v602_v38, 4 }
  0x8d   : > { %1245 = vrot.lane.b32.xlu0 %v7395_v6, %s8060_s8  ;;  %v587_v6 = vshll.u32 %v8452_v63, 16  ;;  %v617_v63 = vrot.slane %v615_v43, 4  ;;  %v8576_v43 = vld [vmem:[%s8124_s29 + $0x94] sm:$0xf] }
  0x8e   : > { %1247 = vrot.lane.b32.xlu1 %v8430_v50, %s8060_s8 }
  0x8f   : > { %v8456_v2 = vpop.permute.xlu0 %1233  ;;  %v589_v25 = vrot.slane %v587_v6, 5  ;;  %v618_v17 = vor.u32 %v617_v63, %v613_v61 }
  0x91   : > { %1280 = vrot.lane.b32.xlu0 %v8412_v31, %s8064_s20  ;;  %v594_v33 = vor.u32 %v593_v26, %v589_v25  ;;  %v590_v56 = vsel %vm8189_vm5, %v585_v36, %v589_v25  ;;  %v8561_v36 = vcombine.low %v8483_v34, %v8486_v5 }
  0x92   : > { %1282 = vrot.lane.b32.xlu1 %v8441_v58, %s8064_s20  ;;  %v1129_v9 = vpop.permute.xlu1 %1128 }
  0x93   : > { %v595_v42 = vrot.slane %v594_v33, 4 }
  0x95   : > { %1315 = vrot.lane.b32.xlu0 %v7380_v41, %s8065_s21 }
  0x96   : > { %1317 = vrot.lane.b32.xlu1 %v8461_v11, %s8065_s21  ;;  %v1131_v16 = vpop.permute.xlu1 %1130 }
  0x97   : > { %v1049_v23 = vpop.permute.xlu0 %1048 }
  0x98   : > { %v1373_v40 = vsel %vm1370_vm7, %v7356_v48, %v1049_v23  ;;  %v847_v48 = vrot.slane %v312_v24, 5 }
  0x99   : > { %1350 = vrot.lane.b32.xlu0 %v8430_v50, %s8066_s22  ;;  %v1421_v54 = vsel %vm1419_vm8, %v1373_v40, %v1129_v9  ;;  %v8570_v40 = vld [vmem:[%s8124_s29 + $0x90] sm:$0xf] }
  0x9a   : > { %1064 = vrot.lane.b32.xlu1 %v7380_v41, %s8062_s12  ;;  %v8480_v3 = vpop.permute.xlu1 %1235  ;;  %v1454_v9 = vsel %vm1452_vm9, %v1421_v54, %v8432_v52  ;;  %v626_v21 = vshrl.u32 %v8570_v40, 16 }
  0x9b   : > { %v1051_v32 = vpop.permute.xlu0 %1050 }
  0x9c   : > { %v1376_v49 = vsel %vm1370_vm7, %v8141_v10, %v1051_v32  ;;  %v846_v10 = vrot.slane %v844_v35, 4 }
  0x9d   : > { %1352 = vrot.lane.b32.xlu0 %v8477_v1, %s8066_s22  ;;  %v1423_v62 = vsel %vm1419_vm8, %v1376_v49, %v1131_v16  ;;  %v608_v16 = vor.u32 %v607_v60, %v604_v55 }
  0x9e   : > { %1066 = vrot.lane.b32.xlu1 %v8461_v11, %s8062_s12  ;;  %v848_v0 = vsel %vm8146_vm4, %v846_v10, %v847_v48  ;;  %v1456_v52 = vsel %vm1452_vm9, %v1423_v62, %v8434_v57  ;;  %v629_v48 = vshll.u32 %v8570_v40, 16  ;;  %v635_v10 = vshll.u32 %v8576_v43, 16 }
  0x9f   : > { %v1199_v41 = vpop.permute.xlu0 %1198  ;;  %v8545_v57 = vcombine.low %v845_v15, %v848_v0  ;;  %v609_v29 = vrot.slane %v608_v16, 4 }
  0xa0   : > { %v1201_v46 = vpop.permute.xlu1 %1200  ;;  %v1487_v12 = vsel %vm12485_vm10, %v1454_v9, %v1199_v41  ;;  %v631_v60 = vrot.slane %v629_v48, 5  ;;  %v637_v63 = vrot.slane %v635_v10, 5 }
  0xa1   : > { %1144 = vrot.lane.b32.xlu0 %v8430_v50, %s8061_s11  ;;  %v600_v50 = vsel %vm8189_vm5, %v595_v42, %v599_v37  ;;  %v1520_v22 = vsel %vm12440_vm11, %v1487_v12, %v8456_v2  ;;  %v1489_v23 = vsel %vm12485_vm10, %v1456_v52, %v1201_v46  ;;  %v619_v2 = vrot.slane %v618_v17, 4  ;;  %v8612_v17 = vld [vmem:[%s8124_s29 + $0xa0] sm:$0xf] }
  0xa2   : > { %1146 = vrot.lane.b32.xlu1 %v8477_v1, %s8061_s11  ;;  %v8528_v14 = vcombine.low %v590_v56, %v600_v50  ;;  %v1522_v33 = vsel %vm12440_vm11, %v1489_v23, %v8480_v3  ;;  %v851_v37 = vrot.slane %v8486_v5, 5  ;;  %v614_v3 = vsel %vm8189_vm5, %v609_v29, %v613_v61 }
  0xa3   : > { %v1269_v59 = vpop.permute.xlu0 %1268  ;;  %v7349_v5 = vrot.slane %v8483_v34, 9  ;;  %v639_v56 = vshrl.u32 %v8576_v43, 16  ;;  %v628_v50 = vrot.slane %v626_v21, 4  ;;  %v645_v52 = vshll.u32 %v318_v8, 16 }
  0xa4   : > { %v1271_v7 = vpop.permute.xlu1 %1270  ;;  %v1553_v24 = vsel %vm12439_vm12, %v1520_v22, %v1269_v59  ;;  %v853_v49 = vrot.slane %v851_v37, 4  ;;  %v659_v29 = vshll.u32 %v8612_v17, 16 }
  0xa5   : > { %1179 = vrot.lane.b32.xlu0 %v8441_v58, %s8059_s30  ;;  %v1555_v35 = vsel %vm12439_vm12, %v1522_v33, %v1271_v7  ;;  %v852_v34 = vsel %vm8146_vm4, %v7349_v5, %v851_v37  ;;  %v641_v62 = vrot.slane %v639_v56, 4  ;;  %v632_v12 = vor.u32 %v631_v60, %v628_v50 }
  0xa6   : > { %1181 = vrot.lane.b32.xlu1 %v8507_v18, %s8059_s30  ;;  %v855_v59 = vsel %vm8146_vm4, %v853_v49, %v854_v44  ;;  %v861_v33 = vrot.slane %v318_v8, 5 }
  0xa7   : > { %v1304_v6 = vpop.permute.xlu0 %1303  ;;  %v8604_v9 = vcombine.low %v852_v34, %v855_v59  ;;  %v642_v0 = vor.u32 %v641_v62, %v637_v63  ;;  %v633_v19 = vrot.slane %v632_v12, 4 }
  0xa8   : > { %v1306_v20 = vpop.permute.xlu1 %1305  ;;  %v1586_v25 = vsel %vm12438_vm13, %v1553_v24, %v1304_v6  ;;  %v8609_v6 = vld [vmem:[%s8124_s29 + $0x9c] sm:$0xf] }
  0xa9   : > { %1214 = vrot.lane.b32.xlu0 %v8461_v11, %s8063_s19  ;;  %v1588_v38 = vsel %vm12438_vm13, %v1555_v35, %v1306_v20  ;;  %v858_v20 = vrot.slane %v8576_v43, 5  ;;  %v653_v22 = vshll.u32 %v8609_v6, 16  ;;  %v643_v24 = vrot.slane %v642_v0, 4 }
  0xaa   : > { %1216 = vrot.lane.b32.xlu1 %v8528_v14, %s8063_s19  ;;  %v638_v35 = vsel %vm8189_vm5, %v633_v19, %v637_v63 }
  0xab   : > { %v1339_v26 = vpop.permute.xlu0 %1338  ;;  %v860_v37 = vrot.slane %v858_v20, 4 }
  0xac   : > { %v8548_v32 = vpop.permute.xlu1 %1052  ;;  %v1619_v11 = vsel %vm12437_vm14, %v1586_v25, %v1339_v26  ;;  %v647_v25 = vrot.slane %v645_v52, 5  ;;  %v663_v26 = vshrl.u32 %v8612_v17, 16 }
  0xad   : > { %1249 = vrot.lane.b32.xlu0 %v8477_v1, %s8060_s8  ;;  %7827 = vmatprep.mubr.msk.bf16.mxu0 %vm12436_vm15, %v1619_v11  ;;  %v624_v1 = vsel %vm8189_vm5, %v619_v2, %v623_v30  ;;  %v8627_v30 = vcombine.low %v8570_v40, %v8576_v43  ;;  %v7350_v11 = vrot.slane %v8570_v40, 9  ;;  %v661_v40 = vrot.slane %v659_v29, 5  ;;  %v8699_v29 = vld [vmem:[%s8124_s29 + $0xac] sm:$0xf] }
  0xae   : > { %1251 = vrot.lane.b32.xlu1 %v8545_v57, %s8060_s8  ;;  %v8585_v46 = vcombine.low %v614_v3, %v624_v1  ;;  %v648_v1 = vsel %vm8189_vm5, %v643_v24, %v647_v25  ;;  %v665_v43 = vrot.slane %v663_v26, 4  ;;  %v8693_v24 = vld [vmem:[%s8124_s29 + $0xa8] sm:$0xf] }
  0xaf   : > { %v1341_v39 = vpop.permute.xlu0 %1340 }
  0xb0   : > { %v8572_v41 = vpop.permute.xlu1 %1054  ;;  %v1621_v42 = vsel %vm12437_vm14, %v1588_v38, %v1341_v39  ;;  %v655_v39 = vrot.slane %v653_v22, 5  ;;  %v666_v10 = vor.u32 %v665_v43, %v661_v40 }
  0xb1   : > { %1284 = vrot.lane.b32.xlu0 %v8507_v18, %s8064_s20  ;;  %7828 = vmatmul.mubr.msk.bf16.vlgmr.msra.gmra.mrb[0].mxu0 %vm12436_vm15, %v1621_v42  ;;  %v8640_v42 = vld [vmem:[%s8124_s29 + $0xa4] sm:$0x1]  ;;  %v1382_v44 = vsel %vm1370_vm7, %v8250_v47, %v8572_v41  ;;  %v862_v47 = vsel %vm8146_vm4, %v860_v37, %v861_v33  ;;  %v677_v37 = vshll.u32 %v8693_v24, 16 }
  0xb2   : > { %1286 = vrot.lane.b32.xlu1 %v8561_v36, %s8064_s20  ;;  %v669_v21 = vshll.u32 %v8640_v42, 16 }
  0xb3   : > { %v1133_v54 = vpop.permute.xlu0 %1132 }
  0xb4   : > { %v8591_v55 = vpop.permute.xlu1 %1134  ;;  %v671_v63 = vrot.slane %v669_v21, 5 }
  0xb5   : > { %1319 = vrot.lane.b32.xlu0 %v8528_v14, %s8065_s21 }
  0xb6   : > { %1321 = vrot.lane.b32.xlu1 %v8585_v46, %s8065_s21 }
  0xb7   : > { %v1168_v61 = vpop.permute.xlu0 %1167 }
  0xb8   : > { %v1170_v7 = vpop.permute.xlu1 %1169 }
  0xb9   : > { %1354 = vrot.lane.b32.xlu0 %v8545_v57, %s8066_s22 }
  0xba   : > { %1068 = vrot.lane.b32.xlu1 %v8528_v14, %s8062_s12  ;;  %v650_v14 = vshrl.u32 %v8609_v6, 16 }
  0xbb   : > { %v1203_v15 = vpop.permute.xlu0 %1202 }
  0xbc   : > { %v1205_v16 = vpop.permute.xlu1 %1204  ;;  %v652_v38 = vrot.slane %v650_v14, 4 }
  0xbd   : > { %1356 = vrot.lane.b32.xlu0 %v8604_v9, %s8066_s22 }
  0xbe   : > { %1070 = vrot.lane.b32.xlu1 %v8585_v46, %s8062_s12  ;;  %v656_v41 = vor.u32 %v655_v39, %v652_v38  ;;  %v687_v39 = vshrl.u32 %v8699_v29, 16 }
  0xbf   : > { %v1238_v23 = vpop.permute.xlu0 %1237 }
  0xc0   : > { %v1240_v2 = vpop.permute.xlu1 %1239  ;;  %v657_v12 = vrot.slane %v656_v41, 4 }
  0xc1   : > { %1148 = vrot.lane.b32.xlu0 %v8545_v57, %s8061_s11  ;;  %v1379_v57 = vsel %vm1370_vm7, %v8136_v4, %v8548_v32  ;;  %v8650_v4 = vcombine.low %v638_v35, %v648_v1  ;;  %v859_v32 = vsel %vm8146_vm4, %v7350_v11, %v858_v20  ;;  %v865_v20 = vrot.slane %v8612_v17, 5 }
  0xc2   : > { %1150 = vrot.lane.b32.xlu1 %v8604_v9, %s8061_s11  ;;  %v1425_v49 = vsel %vm1419_vm8, %v1379_v57, %v1133_v54  ;;  %v1427_v54 = vsel %vm1419_vm8, %v1382_v44, %v8591_v55  ;;  %v674_v35 = vshrl.u32 %v8693_v24, 16  ;;  %v683_v57 = vshll.u32 %v8699_v29, 16 }
  0xc3   : > { %v1273_v3 = vpop.permute.xlu0 %1272  ;;  %v1458_v48 = vsel %vm1452_vm9, %v1425_v49, %v1168_v61  ;;  %v8667_v61 = vcombine.low %v859_v32, %v862_v47  ;;  %v1460_v62 = vsel %vm1452_vm9, %v1427_v54, %v1170_v7  ;;  %v867_v33 = vrot.slane %v865_v20, 4  ;;  %v324_v32 = vld [vmem:[%s8124_s29 + $0xb0] sm:$0x1] }
  0xc4   : > { %v1275_v5 = vpop.permute.xlu1 %1274  ;;  %v1491_v34 = vsel %vm12485_vm10, %v1458_v48, %v1203_v15  ;;  %v667_v15 = vrot.slane %v666_v10, 4  ;;  %v1493_v0 = vsel %vm12485_vm10, %v1460_v62, %v1205_v16  ;;  %v8684_v16 = vcombine.low %v8609_v6, %v8612_v17  ;;  %v8732_v10 = vld [vmem:[%s8124_s29 + $0xb4] sm:$0xf] }
  0xc5   : > { %1183 = vrot.lane.b32.xlu0 %v8561_v36, %s8059_s30  ;;  %v1524_v50 = vsel %vm12440_vm11, %v1491_v34, %v1238_v23  ;;  %v1526_v19 = vsel %vm12440_vm11, %v1493_v0, %v1240_v2  ;;  %v662_v23 = vsel %vm8189_vm5, %v657_v12, %v661_v40  ;;  %v7351_v17 = vrot.slane %v8609_v6, 9  ;;  %v8735_v34 = vld [vmem:[%s8124_s29 + $0xb8] sm:$0xf] }
  0xc6   : > { %1185 = vrot.lane.b32.xlu1 %v8627_v30, %s8059_s30  ;;  %v1557_v60 = vsel %vm12439_vm12, %v1524_v50, %v1273_v3  ;;  %v1559_v7 = vsel %vm12439_vm12, %v1526_v19, %v1275_v5  ;;  %v868_v2 = vrot.slane %v8640_v42, 5  ;;  %v676_v42 = vrot.slane %v674_v35, 4 }
  0xc7   : > { %v1308_v56 = vpop.permute.xlu0 %1307  ;;  %v866_v6 = vsel %vm8146_vm4, %v7351_v17, %v865_v20  ;;  %v679_v40 = vrot.slane %v677_v37, 5  ;;  %v685_v5 = vrot.slane %v683_v57, 5  ;;  %v689_v44 = vrot.slane %v687_v39, 4 }
  0xc8   : > { %v1310_v59 = vpop.permute.xlu1 %1309  ;;  %v1590_v55 = vsel %vm12438_vm13, %v1557_v60, %v1308_v56  ;;  %v869_v1 = vsel %vm8146_vm4, %v867_v33, %v868_v2  ;;  %v693_v41 = vshll.u32 %v324_v32, 16  ;;  %v872_v50 = vrot.slane %v8699_v29, 5 }
  0xc9   : > { %1218 = vrot.lane.b32.xlu0 %v8585_v46, %s8063_s19  ;;  %v1592_v14 = vsel %vm12438_vm13, %v1559_v7, %v1310_v59  ;;  %v8727_v21 = vcombine.low %v866_v6, %v869_v1  ;;  %v680_v48 = vor.u32 %v679_v40, %v676_v42  ;;  %v690_v47 = vor.u32 %v689_v44, %v685_v5 }
  0xca   : > { %1220 = vrot.lane.b32.xlu1 %v8650_v4, %s8063_s19  ;;  %v701_v60 = vshll.u32 %v8732_v10, 16  ;;  %v707_v12 = vshll.u32 %v8735_v34, 16  ;;  %v8750_v0 = vcombine.low %v8693_v24, %v8699_v29  ;;  %v875_v19 = vrot.slane %v324_v32, 5 }
  0xcb   : > { %v1343_v8 = vpop.permute.xlu0 %1342  ;;  %v681_v59 = vrot.slane %v680_v48, 4  ;;  %v691_v62 = vrot.slane %v690_v47, 4  ;;  %v874_v20 = vrot.slane %v872_v50, 4 }
  0xcc   : > { %v8672_v52 = vpop.permute.xlu1 %1056  ;;  %v1623_v46 = vsel %vm12437_vm14, %v1590_v55, %v1343_v8  ;;  %v695_v55 = vrot.slane %v693_v41, 5  ;;  %v711_v8 = vshrl.u32 %v8735_v34, 16 }
  0xcd   : > { %1253 = vrot.lane.b32.xlu0 %v8604_v9, %s8060_s8  ;;  %7831 = vmatprep.mubr.msk.bf16.mxu0 %vm12436_vm15, %v1623_v46  ;;  %v672_v9 = vsel %vm8189_vm5, %v667_v15, %v671_v63  ;;  %v7352_v46 = vrot.slane %v8693_v24, 9  ;;  %v686_v7 = vsel %vm8189_vm5, %v681_v59, %v685_v5  ;;  %v709_v24 = vrot.slane %v707_v12, 5 }
  0xce   : > { %1255 = vrot.lane.b32.xlu1 %v8667_v61, %s8060_s8  ;;  %v8708_v11 = vcombine.low %v662_v23, %v672_v9  ;;  %v696_v9 = vsel %vm8189_vm5, %v691_v62, %v695_v55  ;;  %v713_v29 = vrot.slane %v711_v8, 4  ;;  %v8819_v55 = vld [vmem:[%s8124_s29 + $0xc4] sm:$0xf] }
  0xcf   : > { %v1345_v22 = vpop.permute.xlu0 %1344 }
  0xd0   : > { %v8695_v25 = vpop.permute.xlu1 %1058  ;;  %v1625_v26 = vsel %vm12437_vm14, %v1592_v14, %v1345_v22  ;;  %v703_v22 = vrot.slane %v701_v60, 5  ;;  %v714_v57 = vor.u32 %v713_v29, %v709_v24 }
  0xd1   : > { %1288 = vrot.lane.b32.xlu0 %v8627_v30, %s8064_s20  ;;  %7832 = vmatmul.mubr.msk.bf16.gmra.mrb[4].mxu0 %vm12436_vm15, %v1625_v26  ;;  %v8763_v26 = vld [vmem:[%s8124_s29 + $0xbc] sm:$0x1]  ;;  %v1388_v2 = vsel %vm1370_vm7, %v8311_v45, %v8695_v25  ;;  %v876_v45 = vsel %vm8146_vm4, %v874_v20, %v875_v19 }
  0xd2   : > { %1290 = vrot.lane.b32.xlu1 %v8684_v16, %s8064_s20  ;;  %v717_v35 = vshll.u32 %v8763_v26, 16  ;;  %v882_v20 = vrot.slane %v8763_v26, 5 }
  0xd3   : > { %v1137_v38 = vpop.permute.xlu0 %1136 }
  0xd4   : > { %v8714_v3 = vpop.permute.xlu1 %1138  ;;  %v719_v5 = vrot.slane %v717_v35, 5  ;;  %v8863_v35 = vld [vmem:[%s8124_s29 + $0xcc] sm:$0xf] }
  0xd5   : > { %1323 = vrot.lane.b32.xlu0 %v8650_v4, %s8065_s21 }
  0xd6   : > { %1325 = vrot.lane.b32.xlu1 %v8708_v11, %s8065_s21 }
  0xd7   : > { %v1172_v43 = vpop.permute.xlu0 %1171 }
  0xd8   : > { %v1174_v49 = vpop.permute.xlu1 %1173 }
  0xd9   : > { %1358 = vrot.lane.b32.xlu0 %v8667_v61, %s8066_s22 }
  0xda   : > { %1072 = vrot.lane.b32.xlu1 %v8650_v4, %s8062_s12  ;;  %v698_v4 = vshrl.u32 %v8732_v10, 16 }
  0xdb   : > { %v1207_v56 = vpop.permute.xlu0 %1206 }
  0xdc   : > { %v1209_v54 = vpop.permute.xlu1 %1208  ;;  %v700_v14 = vrot.slane %v698_v4, 4  ;;  %v8811_v4 = vld [vmem:[%s8124_s29 + $0xc0] sm:$0xf] }
  0xdd   : > { %1360 = vrot.lane.b32.xlu0 %v8727_v21, %s8066_s22  ;;  %v888_v19 = vshll.u32 %v8811_v4, 16 }
  0xde   : > { %1074 = vrot.lane.b32.xlu1 %v8708_v11, %s8062_s12  ;;  %v704_v25 = vor.u32 %v703_v22, %v700_v14  ;;  %v898_v14 = vshrl.u32 %v8819_v55, 16  ;;  %v894_v22 = vshll.u32 %v8819_v55, 16 }
  0xdf   : > { %v1242_v63 = vpop.permute.xlu0 %1241 }
  0xe0   : > { %v1244_v15 = vpop.permute.xlu1 %1243  ;;  %v705_v48 = vrot.slane %v704_v25, 4  ;;  %v8853_v29 = vrot.slane %v894_v22, 5 }
  0xe1   : > { %1152 = vrot.lane.b32.xlu0 %v8667_v61, %s8061_s11  ;;  %v1385_v61 = vsel %vm1370_vm7, %v8289_v27, %v8672_v52  ;;  %v8773_v27 = vcombine.low %v686_v7, %v696_v9  ;;  %v873_v52 = vsel %vm8146_vm4, %v7352_v46, %v872_v50  ;;  %v885_v46 = vshrl.u32 %v8811_v4, 16 }
  0xe2   : > { %1154 = vrot.lane.b32.xlu1 %v8727_v21, %s8061_s11  ;;  %v1429_v33 = vsel %vm1419_vm8, %v1385_v61, %v1137_v38  ;;  %v1431_v38 = vsel %vm1419_vm8, %v1388_v2, %v8714_v3  ;;  %v8845_v9 = vrot.slane %v888_v19, 5 }
  0xe3   : > { %v1277_v23 = vpop.permute.xlu0 %1276  ;;  %v1462_v37 = vsel %vm1452_vm9, %v1429_v33, %v1172_v43  ;;  %v8790_v43 = vcombine.low %v873_v52, %v876_v45  ;;  %v1464_v44 = vsel %vm1452_vm9, %v1431_v38, %v1174_v49  ;;  %v879_v49 = vrot.slane %v8735_v34, 5  ;;  %v8858_v33 = vld [vmem:[%s8124_s29 + $0xc8] sm:$0x1]  ;;  %v8872_v45 = vld [vmem:[%s8124_s29 + $0xd0] sm:$0xf] }
  0xe4   : > { %v1279_v17 = vpop.permute.xlu1 %1278  ;;  %v1495_v6 = vsel %vm12485_vm10, %v1462_v37, %v1207_v56  ;;  %v715_v56 = vrot.slane %v714_v57, 4  ;;  %v1497_v47 = vsel %vm12485_vm10, %v1464_v44, %v1209_v54  ;;  %v8808_v54 = vcombine.low %v8732_v10, %v8735_v34 }
  0xe5   : > { %1187 = vrot.lane.b32.xlu0 %v8684_v16, %s8059_s30  ;;  %v1528_v42 = vsel %vm12440_vm11, %v1495_v6, %v1242_v63  ;;  %v1530_v59 = vsel %vm12440_vm11, %v1497_v47, %v1244_v15  ;;  %v7353_v34 = vrot.slane %v8732_v10, 9  ;;  %v881_v15 = vrot.slane %v879_v49, 4 }
  0xe6   : > { %1189 = vrot.lane.b32.xlu1 %v8750_v0, %s8059_s30  ;;  %v1561_v40 = vsel %vm12439_vm12, %v1528_v42, %v1277_v23  ;;  %v1563_v50 = vsel %vm12439_vm12, %v1530_v59, %v1279_v17  ;;  %v720_v62 = vsel %vm8189_vm5, %v715_v56, %v719_v5  ;;  %v8843_v23 = vrot.slane %v885_v46, 4 }
  0xe7   : > { %v1312_v39 = vpop.permute.xlu0 %1311  ;;  %v880_v26 = vsel %vm8146_vm4, %v7353_v34, %v879_v49  ;;  %v900_v17 = vrot.slane %v898_v14, 4  ;;  %v904_v57 = vshll.u32 %v8858_v33, 16  ;;  %v919_v6 = vshrl.u32 %v8863_v35, 16 }
  0xe8   : > { %v1314_v1 = vpop.permute.xlu1 %1313  ;;  %v1594_v3 = vsel %vm12438_vm13, %v1561_v40, %v1312_v39  ;;  %v891_v39 = vor.u32 %v8845_v9, %v8843_v23  ;;  %v8067_v42 = vmov 0   ;;  %v932_v40 = vshrl.u32 %v8872_v45, 16 }
  0xe9   : > { %1222 = vrot.lane.b32.xlu0 %v8708_v11, %s8063_s19  ;;  %v1596_v60 = vsel %vm12438_vm13, %v1563_v50, %v1314_v1  ;;  %v901_v25 = vor.u32 %v900_v17, %v8853_v29  ;;  %v922_v1 = vshll.u32 %v8863_v35, 16  ;;  %2071 = vst.msk [vmem:[#allocation2] sm:$0xf] %vm12484_vm0, %v8067_v42  ;;  %2072 = vst.msk [vmem:[#allocation2 + $0x4] sm:$0xf] %vm12484_vm0, %v8067_v42  ;;  %v928_v5 = vshll.u32 %v8872_v45, 16 }
  0xea   : > { %1224 = vrot.lane.b32.xlu1 %v8773_v27, %s8063_s19  ;;  %2075 = vst.msk [vmem:[#allocation2 + $0xc] sm:$0xf] %vm12484_vm0, %v8067_v42  ;;  %2076 = vst.msk [vmem:[#allocation2 + $0x10] sm:$0xf] %vm12484_vm0, %v8067_v42  ;;  %v892_v44 = vrot.slane %v891_v39, 4  ;;  %v913_v56 = vrot.slane %v8819_v55, 5 }
  0xeb   : > { %v1347_v32 = vpop.permute.xlu0 %1346  ;;  %2078 = vst.msk [vmem:[#allocation2 + $0x18] sm:$0xf] %vm12484_vm0, %v8067_v42  ;;  %2079 = vst.msk [vmem:[#allocation2 + $0x1c] sm:$0xf] %vm12484_vm0, %v8067_v42  ;;  %v921_v47 = vrot.slane %v919_v6, 4  ;;  %v8999_v49 = vrot.slane %v928_v5, 5 }
  0xec   : > { %v8795_v11 = vpop.permute.xlu1 %1060  ;;  %v1627_v41 = vsel %vm12437_vm14, %v1594_v3, %v1347_v32  ;;  %2081 = vst.msk [vmem:[#allocation2 + $0x24] sm:$0xf] %vm12484_vm0, %v8067_v42  ;;  %2082 = vst.msk [vmem:[#allocation2 + $0x28] sm:$0xf] %vm12484_vm0, %v8067_v42  ;;  %v902_v3 = vrot.slane %v901_v25, 4  ;;  %v906_v32 = vrot.slane %v904_v57, 5 }
  0xed   : > { %1257 = vrot.lane.b32.xlu0 %v8727_v21, %s8060_s8  ;;  %7835 = vmatprep.mubr.msk.bf16.mxu0 %vm12436_vm15, %v1627_v41  ;;  %v710_v21 = vsel %vm8189_vm5, %v705_v48, %v709_v24  ;;  %v883_v24 = vsel %vm8146_vm4, %v881_v15, %v882_v20  ;;  %2084 = vst.msk [vmem:[#allocation2 + $0x30] sm:$0xf] %vm12484_vm0, %v8067_v42  ;;  %2085 = vst.msk [vmem:[#allocation2 + $0x34] sm:$0xf] %vm12484_vm0, %v8067_v42  ;;  %v924_v41 = vrot.slane %v922_v1, 5 }
  0xee   : > { %1259 = vrot.lane.b32.xlu1 %v8790_v43, %s8060_s8  ;;  %v8832_v7 = vcombine.low %v710_v21, %v720_v62  ;;  %v8867_v37 = vcombine.low %v880_v26, %v883_v24  ;;  %2087 = vst.msk [vmem:[#allocation2 + $0x3c] sm:$0xf] %vm12484_vm0, %v8067_v42  ;;  %2088 = vst.msk [vmem:[#allocation2 + $0x40] sm:$0xf] %vm12484_vm0, %v8067_v42  ;;  %v934_v50 = vrot.slane %v932_v40, 4  ;;  %v915_v46 = vrot.slane %v913_v56, 4 }
  0xef   : > { %v1349_v63 = vpop.permute.xlu0 %1348  ;;  %2090 = vst.msk [vmem:[#allocation2 + $0x48] sm:$0xf] %vm12484_vm0, %v8067_v42  ;;  %2091 = vst.msk [vmem:[#allocation2 + $0x4c] sm:$0xf] %vm12484_vm0, %v8067_v42  ;;  %v897_v21 = vsel %vm8189_vm5, %v892_v44, %v8853_v29  ;;  %v907_v62 = vsel %vm8189_vm5, %v902_v3, %v906_v32  ;;  %v925_v19 = vor.u32 %v924_v41, %v921_v47 }
  0xf0   : > { %v8821_v8 = vpop.permute.xlu1 %1062  ;;  %v1629_v12 = vsel %vm12437_vm14, %v1596_v60, %v1349_v63  ;;  %2093 = vst.msk [vmem:[#allocation2 + $0x54] sm:$0xf] %vm12484_vm0, %v8067_v42  ;;  %2094 = vst.msk [vmem:[#allocation2 + $0x58] sm:$0xf] %vm12484_vm0, %v8067_v42  ;;  %v9004_v60 = vld [vmem:[%s8124_s29 + $0xd4] sm:$0x1]  ;;  %v9010_v63 = vcombine.low %v8811_v4, %v8819_v55  ;;  %v935_v22 = vor.u32 %v934_v50, %v8999_v49 }
  0xf1   : > { %1292 = vrot.lane.b32.xlu0 %v8750_v0, %s8064_s20  ;;  %7836 = vmatmul.mubr.msk.bf16.gmra.mrb[8].mxu0 %vm12436_vm15, %v1629_v12  ;;  %2096 = vst.msk [vmem:[#allocation2 + $0x60] sm:$0xf] %vm12484_vm0, %v8067_v42  ;;  %2097 = vst.msk [vmem:[#allocation2 + $0x64] sm:$0xf] %vm12484_vm0, %v8067_v42  ;;  %v7354_v12 = vrot.slane %v8811_v4, 9  ;;  %v916_v55 = vrot.slane %v8858_v33, 5  ;;  %v1394_v4 = vsel %vm1370_vm7, %v8378_v51, %v8821_v8 }
  0xf2   : > { %1294 = vrot.lane.b32.xlu1 %v8808_v54, %s8064_s20  ;;  %2099 = vst.msk [vmem:[#allocation2 + $0x6c] sm:$0xf] %vm12484_vm0, %v8067_v42  ;;  %2100 = vst.msk [vmem:[#allocation2 + $0x70] sm:$0xf] %vm12484_vm0, %v8067_v42  ;;  %v9018_v34 = vld [vmem:[#allocation2] sm:$0xf]  ;;  %v7405_v26 = vcombine.low %v897_v21, %v907_v62 }
  0xf3   : > { %v8837_v61 = vpop.permute.xlu0 %1140  ;;  %2102 = vst.msk [vmem:[#allocation2 + $0x78] sm:$0xf] %vm12484_vm0, %v8067_v42  ;;  %2103 = vst.msk [vmem:[#allocation2 + $0x7c] sm:$0xf] %vm12484_vm0, %v8067_v42  ;;  %v9024_v20 = vld [vmem:[#allocation2 + $0x4] sm:$0xf]  ;;  %v914_v17 = vsel %vm8146_vm4, %v7354_v12, %v913_v56  ;;  %v917_v33 = vsel %vm8146_vm4, %v915_v46, %v916_v55 }
  0xf4   : > { %v8839_v10 = vpop.permute.xlu1 %1142  ;;  %2105 = vst.msk [vmem:[#allocation2 + $0x84] sm:$0xf] %vm12484_vm0, %v8067_v42  ;;  %2106 = vst.msk [vmem:[#allocation2 + $0x88] sm:$0xf] %vm12484_vm0, %v8067_v42  ;;  %v938_v23 = vshll.u32 %v9004_v60, 16  ;;  %v2807_v24 = vshll.u32 %v9024_v20, 16 }
  0xf5   : > { %1327 = vrot.lane.b32.xlu0 %v8773_v27, %s8065_s21  ;;  %2108 = vst.msk [vmem:[#allocation2 + $0x90] sm:$0xf] %vm12484_vm0, %v8067_v42  ;;  %2109 = vst.msk [vmem:[#allocation2 + $0x94] sm:$0xf] %vm12484_vm0, %v8067_v42  ;;  %v2811_v29 = vshrl.u32 %v9024_v20, 16  ;;  %v926_v39 = vrot.slane %v925_v19, 4 }
  0xf6   : > { %1329 = vrot.lane.b32.xlu1 %v8832_v7, %s8065_s21  ;;  %2111 = vst.msk [vmem:[#allocation2 + $0x9c] sm:$0xf] %vm12484_vm0, %v8067_v42  ;;  %2112 = vst.msk [vmem:[#allocation2 + $0xa0] sm:$0xf] %vm12484_vm0, %v8067_v42  ;;  %v936_v6 = vrot.slane %v935_v22, 4  ;;  %v940_v1 = vrot.slane %v938_v23, 5 }
  0xf7   : > { %v8855_v2 = vpop.permute.xlu0 %1175  ;;  %2114 = vst.msk [vmem:[#allocation2 + $0xa8] sm:$0xf] %vm12484_vm0, %v8067_v42  ;;  %2115 = vst.msk [vmem:[#allocation2 + $0xac] sm:$0xf] %vm12484_vm0, %v8067_v42  ;;  %v2809_v3 = vrot.slane %v2807_v24, 5  ;;  %v2813_v32 = vrot.slane %v2811_v29, 4  ;;  %v931_v62 = vsel %vm8189_vm5, %v926_v39, %v8999_v49 }
  0xf8   : > { %v8860_v52 = vpop.permute.xlu1 %1177  ;;  %2117 = vst.msk [vmem:[#allocation2 + $0xb4] sm:$0xf] %vm12484_vm0, %v8067_v42  ;;  %2118 = vst.msk [vmem:[#allocation2 + $0xb8] sm:$0xf] %vm12484_vm0, %v8067_v42  ;;  %v950_v49 = vrot.slane %v9004_v60, 5 }
  0xf9   : > { %1362 = vrot.lane.b32.xlu0 %v8790_v43, %s8066_s22  ;;  %2120 = vst.msk [vmem:[#allocation2 + $0xc0] sm:$0xf] %vm12484_vm0, %v8067_v42  ;;  %2121 = vst.msk [vmem:[#allocation2 + $0xc4] sm:$0xf] %vm12484_vm0, %v8067_v42  ;;  %v2814_v46 = vor.u32 %v2813_v32, %v2809_v3 }
  0xfa   : > { %1076 = vrot.lane.b32.xlu1 %v8773_v27, %s8062_s12  ;;  %2123 = vst.msk [vmem:[#allocation2 + $0xcc] sm:$0xf] %vm12484_vm0, %v8067_v42  ;;  %2124 = vst.msk [vmem:[#allocation2 + $0xd0] sm:$0xf] %vm12484_vm0, %v8067_v42 }
  0xfb   : > { %v8878_v38 = vpop.permute.xlu0 %1210  ;;  %2074 = vst.msk [vmem:[#allocation2 + $0x8] sm:$0x1] %vm2073_vm1, %v8067_v42  ;;  %2077 = vst.msk [vmem:[#allocation2 + $0x14] sm:$0x1] %vm2073_vm1, %v8067_v42 }
  0xfc   : > { %v8954_v27 = vpop.permute.xlu1 %1212  ;;  %2080 = vst.msk [vmem:[#allocation2 + $0x20] sm:$0x1] %vm2073_vm1, %v8067_v42  ;;  %2083 = vst.msk [vmem:[#allocation2 + $0x2c] sm:$0x1] %vm2073_vm1, %v8067_v42 }
  0xfd   : > { %1364 = vrot.lane.b32.xlu0 %v8867_v37, %s8066_s22  ;;  %2086 = vst.msk [vmem:[#allocation2 + $0x38] sm:$0x1] %vm2073_vm1, %v8067_v42  ;;  %2089 = vst.msk [vmem:[#allocation2 + $0x44] sm:$0x1] %vm2073_vm1, %v8067_v42 }
  0xfe   : > { %1078 = vrot.lane.b32.xlu1 %v8832_v7, %s8062_s12  ;;  %2092 = vst.msk [vmem:[#allocation2 + $0x50] sm:$0x1] %vm2073_vm1, %v8067_v42  ;;  %2095 = vst.msk [vmem:[#allocation2 + $0x5c] sm:$0x1] %vm2073_vm1, %v8067_v42 }
  0xff   : > { %v1246_v48 = vpop.permute.xlu0 %1245  ;;  %2098 = vst.msk [vmem:[#allocation2 + $0x68] sm:$0x1] %vm2073_vm1, %v8067_v42  ;;  %2101 = vst.msk [vmem:[#allocation2 + $0x74] sm:$0x1] %vm2073_vm1, %v8067_v42 }
 0x100   : > { %2104 = vst.msk [vmem:[#allocation2 + $0x80] sm:$0x1] %vm2073_vm1, %v8067_v42  ;;  %2107 = vst.msk [vmem:[#allocation2 + $0x8c] sm:$0x1] %vm2073_vm1, %v8067_v42  ;;  %v1248_v59 = vpop.permute.xlu1 %1247 }
 0x101   : > { %2110 = vst.msk [vmem:[#allocation2 + $0x98] sm:$0x1] %vm2073_vm1, %v8067_v42  ;;  %2113 = vst.msk [vmem:[#allocation2 + $0xa4] sm:$0x1] %vm2073_vm1, %v8067_v42  ;;  %1156 = vrot.lane.b32.xlu0 %v8790_v43, %s8061_s11  ;;  %v1391_v43 = vsel %vm1370_vm7, %v8357_v28, %v8795_v11  ;;  %v2798_v28 = vshrl.u32 %v9018_v34, 16  ;;  %v2801_v11 = vshll.u32 %v9018_v34, 16 }
 0x102   : > { %2116 = vst.msk [vmem:[#allocation2 + $0xb0] sm:$0x1] %vm2073_vm1, %v8067_v42  ;;  %2119 = vst.msk [vmem:[#allocation2 + $0xbc] sm:$0x1] %vm2073_vm1, %v8067_v42  ;;  %1158 = vrot.lane.b32.xlu1 %v8867_v37, %s8061_s11  ;;  %v1433_v9 = vsel %vm1419_vm8, %v1391_v43, %v8837_v61  ;;  %v1435_v61 = vsel %vm1419_vm8, %v1394_v4, %v8839_v10  ;;  %v7406_v10 = vcombine.low %v914_v17, %v917_v33  ;;  %v2745_v47 = vld [vmem:[#allocation2 + $0x8] sm:$0x1] }
 0x103   : > { %2122 = vst.msk [vmem:[#allocation2 + $0xc8] sm:$0x1] %vm2073_vm1, %v8067_v42  ;;  %2125 = vst.msk [vmem:[#allocation2 + $0xd4] sm:$0x1] %vm2073_vm1, %v8067_v42  ;;  %v1281_v15 = vpop.permute.xlu0 %1280  ;;  %v1466_v51 = vsel %vm1452_vm9, %v1433_v9, %v8855_v2  ;;  %v947_v2 = vrot.slane %v8872_v45, 5  ;;  %v2800_v40 = vrot.slane %v2798_v28, 4 }
 0x104   : > { %v1283_v14 = vpop.permute.xlu1 %1282  ;;  %v1499_v25 = vsel %vm12485_vm10, %v1466_v51, %v8878_v38  ;;  %v2803_v5 = vrot.slane %v2801_v11, 5  ;;  %v1468_v38 = vsel %vm1452_vm9, %v1435_v61, %v8860_v52  ;;  %v941_v52 = vsel %vm8189_vm5, %v936_v6, %v940_v1 }
 0x105   : > { %1191 = vrot.lane.b32.xlu0 %v8808_v54, %s8059_s30  ;;  %v1532_v42 = vsel %vm12440_vm11, %v1499_v25, %v1246_v48  ;;  %v1501_v41 = vsel %vm12485_vm10, %v1468_v38, %v8954_v27  ;;  %v949_v27 = vrot.slane %v947_v2, 4  ;;  %v2817_v55 = vshll.u32 %v2745_v47, 16 }
 0x106   : > { %1193 = vrot.lane.b32.xlu1 %v9010_v63, %s8059_s30  ;;  %v1565_v44 = vsel %vm12439_vm12, %v1532_v42, %v1281_v15  ;;  %v1534_v12 = vsel %vm12440_vm11, %v1501_v41, %v1248_v59  ;;  %v2804_v43 = vor.u32 %v2803_v5, %v2800_v40  ;;  %v2815_v4 = vrot.slane %v2814_v46, 4 }
 0x107   : > { %v1316_v8 = vpop.permute.xlu0 %1315  ;;  %v1567_v15 = vsel %vm12439_vm12, %v1534_v12, %v1283_v14  ;;  %v951_v60 = vsel %vm8146_vm4, %v949_v27, %v950_v49  ;;  %v2819_v28 = vrot.slane %v2817_v55, 5  ;;  %v3231_v11 = vrot.slane %v9024_v20, 5 }
 0x108   : > { %v1318_v57 = vpop.permute.xlu1 %1317  ;;  %v1598_v56 = vsel %vm12438_vm13, %v1565_v44, %v1316_v8  ;;  %v2805_v23 = vrot.slane %v2804_v43, 4  ;;  %v7465_v8 = vrot.slane %v9018_v34, 9  ;;  %v3234_v33 = vrot.slane %v2745_v47, 5 }
 0x109   : > { %1226 = vrot.lane.b32.xlu0 %v8832_v7, %s8063_s19  ;;  %v7407_v7 = vcombine.low %v8863_v35, %v8872_v45  ;;  %v7355_v45 = vrot.slane %v8863_v35, 9  ;;  %v1600_v19 = vsel %vm12438_vm13, %v1567_v15, %v1318_v57  ;;  %v7408_v35 = vcombine.low %v931_v62, %v941_v52 }
 0x10a   : > { %1228 = vrot.lane.b32.xlu1 %v7405_v26, %s8063_s19  ;;  %v2810_v29 = vsel %vm8189_vm5, %v2805_v23, %v2809_v3  ;;  %v2820_v51 = vsel %vm8189_vm5, %v2815_v4, %v2819_v28  ;;  %v3233_v17 = vrot.slane %v3231_v11, 4 }
 0x10b   : > { %v1351_v48 = vpop.permute.xlu0 %1350  ;;  %v948_v14 = vsel %vm8146_vm4, %v7355_v45, %v947_v2  ;;  %v7499_v20 = vcombine.low %v2810_v29, %v2820_v51 }
 0x10c   : > { %v1065_v50 = vpop.permute.xlu1 %1064  ;;  %v1631_v21 = vsel %vm12437_vm14, %v1598_v56, %v1351_v48  ;;  %v3235_v25 = vsel %vm8146_vm4, %v3233_v17, %v3234_v33 }
 0x10d   : > { %1261 = vrot.lane.b32.xlu0 %v8867_v37, %s8060_s8  ;;  %7839 = vmatprep.mubr.msk.bf16.mxu0 %vm12436_vm15, %v1631_v21  ;;  %v1397_v2 = vsel %vm1370_vm7, %v8412_v31, %v1065_v50 }
 0x10e   : > { %1263 = vrot.lane.b32.xlu1 %v7406_v10, %s8060_s8 }
 0x10f   : > { %v1353_v59 = vpop.permute.xlu0 %1352 }
 0x110   : > { %v1067_v22 = vpop.permute.xlu1 %1066  ;;  %v1633_v37 = vsel %vm12437_vm14, %v1600_v19, %v1353_v59 }
 0x111   : > { %1296 = vrot.lane.b32.xlu0 %v9010_v63, %s8064_s20  ;;  %7840 = vmatmul.mubr.msk.bf16.gmra.mrb[12].mxu0 %vm12436_vm15, %v1633_v37  ;;  %v7409_v63 = vcombine.low %v948_v14, %v951_v60  ;;  %v1400_v44 = vsel %vm1370_vm7, %v8441_v58, %v1067_v22 }
 0x112   : > { %1298 = vrot.lane.b32.xlu1 %v7407_v7, %s8064_s20 }
 0x113   : > { %v1145_v9 = vpop.permute.xlu0 %1144 }
 0x114   : > { %v1147_v24 = vpop.permute.xlu1 %1146 }
 0x115   : > { %1331 = vrot.lane.b32.xlu0 %v7405_v26, %s8065_s21  ;;  %v3232_v26 = vsel %vm8146_vm4, %v7465_v8, %v3231_v11  ;;  %v1439_v38 = vsel %vm1419_vm8, %v1400_v44, %v1147_v24 }
 0x116   : > { %1333 = vrot.lane.b32.xlu1 %v7408_v35, %s8065_s21  ;;  %v7515_v34 = vcombine.low %v3232_v26, %v3235_v25 }
 0x117   : > { %v1180_v39 = vpop.permute.xlu0 %1179 }
 0x118   : > { %v1182_v61 = vpop.permute.xlu1 %1181 }
 0x119   : > { %1366 = vrot.lane.b32.xlu0 %v7406_v10, %s8066_s22  ;;  %v1437_v10 = vsel %vm1419_vm8, %v1397_v2, %v1145_v9  ;;  %v1472_v31 = vsel %vm1452_vm9, %v1439_v38, %v1182_v61 }
 0x11a   : > { %1368 = vrot.lane.b32.xlu1 %v7409_v63, %s8066_s22  ;;  %v1470_v3 = vsel %vm1452_vm9, %v1437_v10, %v1180_v39 }
 0x11b   : > { %v1215_v57 = vpop.permute.xlu0 %1214 }
 0x11c   : > { %v1217_v6 = vpop.permute.xlu1 %1216  ;;  %v1503_v56 = vsel %vm12485_vm10, %v1470_v3, %v1215_v57 }
 0x11d   : > { %3505 = vrot.lane.b32.xlu0 %v7499_v20, %s8062_s12  ;;  %v1505_v58 = vsel %vm12485_vm10, %v1472_v31, %v1217_v6 }
 0x11f   : > { %v1250_v1 = vpop.permute.xlu0 %1249 }
 0x120   : > { %v1252_v42 = vpop.permute.xlu1 %1251  ;;  %v1536_v7 = vsel %vm12440_vm11, %v1503_v56, %v1250_v1 }
 0x121   : > { %3585 = vrot.lane.b32.xlu0 %v7515_v34, %s8061_s11  ;;  %v1538_v52 = vsel %vm12440_vm11, %v1505_v58, %v1252_v42 }
 0x123   : > { %v1285_v40 = vpop.permute.xlu0 %1284 }
 0x124   : > { %v1287_v5 = vpop.permute.xlu1 %1286  ;;  %v1569_v47 = vsel %vm12439_vm12, %v1536_v7, %v1285_v40 }
 0x125   : > { %v1571_v12 = vsel %vm12439_vm12, %v1538_v52, %v1287_v5 }
 0x127   : > { %v1320_v32 = vpop.permute.xlu0 %1319 }
 0x128   : > { %v1322_v48 = vpop.permute.xlu1 %1321  ;;  %v1602_v41 = vsel %vm12438_vm13, %v1569_v47, %v1320_v32 }
 0x129   : > { %v1604_v45 = vsel %vm12438_vm13, %v1571_v12, %v1322_v48 }
 0x12b   : > { %v1355_v50 = vpop.permute.xlu0 %1354 }
 0x12c   : > { %v1069_v21 = vpop.permute.xlu1 %1068  ;;  %v1635_v62 = vsel %vm12437_vm14, %v1602_v41, %v1355_v50 }
 0x12d   : > { %7843 = vmatprep.mubr.msk.bf16.mxu1 %vm12436_vm15, %v1635_v62  ;;  %v1403_v14 = vsel %vm1370_vm7, %v8507_v18, %v1069_v21 }
 0x12f   : > { %v1357_v27 = vpop.permute.xlu0 %1356 }
 0x130   : > { %v1071_v43 = vpop.permute.xlu1 %1070  ;;  %v1637_v15 = vsel %vm12437_vm14, %v1604_v45, %v1357_v27 }
 0x131   : > { %7844 = vmatmul.mubr.msk.bf16.vlgmr.msra.gmra.mrb[0].mxu1 %vm12436_vm15, %v1637_v15  ;;  %v1406_v4 = vsel %vm1370_vm7, %v8561_v36, %v1071_v43 }
 0x133   : > { %v1149_v49 = vpop.permute.xlu0 %1148 }
 0x134   : > { %v1151_v46 = vpop.permute.xlu1 %1150  ;;  %v1441_v28 = vsel %vm1419_vm8, %v1403_v14, %v1149_v49 }
 0x135   : > { %v1443_v24 = vsel %vm1419_vm8, %v1406_v4, %v1151_v46 }
 0x137   : > { %v1184_v55 = vpop.permute.xlu0 %1183 }
 0x138   : > { %v1186_v19 = vpop.permute.xlu1 %1185  ;;  %v1474_v11 = vsel %vm1452_vm9, %v1441_v28, %v1184_v55 }
 0x139   : > { %v1476_v18 = vsel %vm1452_vm9, %v1443_v24, %v1186_v19 }
 0x13b   : > { %v1219_v59 = vpop.permute.xlu0 %1218 }
 0x13c   : > { %v1221_v22 = vpop.permute.xlu1 %1220  ;;  %v1507_v63 = vsel %vm12485_vm10, %v1474_v11, %v1219_v59 }
 0x13d   : > { %v1509_v36 = vsel %vm12485_vm10, %v1476_v18, %v1221_v22 }
 0x13f   : > { %v1254_v37 = vpop.permute.xlu0 %1253 }
 0x140   : > { %v1256_v35 = vpop.permute.xlu1 %1255  ;;  %v1540_v51 = vsel %vm12440_vm11, %v1507_v63, %v1254_v37 }
 0x141   : > { %v1542_v20 = vsel %vm12440_vm11, %v1509_v36, %v1256_v35 }
 0x143   : > { %v1289_v23 = vpop.permute.xlu0 %1288 }
 0x144   : > { %v1291_v60 = vpop.permute.xlu1 %1290  ;;  %v1573_v8 = vsel %vm12439_vm12, %v1540_v51, %v1289_v23 }
 0x145   : > { %v1575_v26 = vsel %vm12439_vm12, %v1542_v20, %v1291_v60 }
 0x147   : > { %v1324_v9 = vpop.permute.xlu0 %1323 }
 0x148   : > { %v1326_v29 = vpop.permute.xlu1 %1325  ;;  %v1606_v17 = vsel %vm12438_vm13, %v1573_v8, %v1324_v9 }
 0x149   : > { %v1608_v25 = vsel %vm12438_vm13, %v1575_v26, %v1326_v29 }
 0x14b   : > { %v1359_v33 = vpop.permute.xlu0 %1358 }
 0x14c   : > { %v1639_v39 = vsel %vm12437_vm14, %v1606_v17, %v1359_v33  ;;  %v1073_v61 = vpop.permute.xlu1 %1072 }
 0x14d   : > { %7847 = vmatprep.mubr.msk.bf16.mxu1 %vm12436_vm15, %v1639_v39  ;;  %v1409_v2 = vsel %vm1370_vm7, %v8627_v30, %v1073_v61  ;;  %v9184_v39 = vld [vmem:[%s12430_s2 + $0x1] ss:$0 sm:$0xff] }
 0x14f   : > { %v1361_v57 = vpop.permute.xlu0 %1360 }
 0x150   : > { %v1641_v6 = vsel %vm12437_vm14, %v1608_v25, %v1361_v57  ;;  %v1075_v34 = vpop.permute.xlu1 %1074 }
 0x151   : > { %7848 = vmatmul.mubr.msk.bf16.gmra.mrb[4].mxu1 %vm12436_vm15, %v1641_v6  ;;  %v1412_v10 = vsel %vm1370_vm7, %v8684_v16, %v1075_v34 }
 0x153   : > { %v1153_v1 = vpop.permute.xlu0 %1152 }
 0x154   : > { %v1155_v42 = vpop.permute.xlu1 %1154  ;;  %v1445_v44 = vsel %vm1419_vm8, %v1409_v2, %v1153_v1 }
 0x155   : > { %v1447_v56 = vsel %vm1419_vm8, %v1412_v10, %v1155_v42 }
 0x157   : > { %v1188_v40 = vpop.permute.xlu0 %1187 }
 0x158   : > { %v1190_v5 = vpop.permute.xlu1 %1189  ;;  %v1478_v38 = vsel %vm1452_vm9, %v1445_v44, %v1188_v40 }
 0x159   : > { %v1480_v31 = vsel %vm1452_vm9, %v1447_v56, %v1190_v5 }
 0x15b   : > { %v1223_v3 = vpop.permute.xlu0 %1222 }
 0x15c   : > { %v1225_v32 = vpop.permute.xlu1 %1224  ;;  %v1511_v7 = vsel %vm12485_vm10, %v1478_v38, %v1223_v3 }
 0x15d   : > { %v1513_v50 = vsel %vm12485_vm10, %v1480_v31, %v1225_v32 }
 0x15f   : > { %v1258_v48 = vpop.permute.xlu0 %1257 }
 0x160   : > { %v1260_v47 = vpop.permute.xlu1 %1259  ;;  %v1544_v30 = vsel %vm12440_vm11, %v1511_v7, %v1258_v48 }
 0x161   : > { %v1546_v21 = vsel %vm12440_vm11, %v1513_v50, %v1260_v47 }
 0x163   : > { %v1293_v41 = vpop.permute.xlu0 %1292 }
 0x164   : > { %v1295_v58 = vpop.permute.xlu1 %1294  ;;  %v1577_v16 = vsel %vm12439_vm12, %v1544_v30, %v1293_v41 }
 0x165   : > { %v1579_v45 = vsel %vm12439_vm12, %v1546_v21, %v1295_v58 }
 0x167   : > { %v1328_v62 = vpop.permute.xlu0 %1327 }
 0x168   : > { %v1330_v52 = vpop.permute.xlu1 %1329  ;;  %v1610_v12 = vsel %vm12438_vm13, %v1577_v16, %v1328_v62 }
 0x169   : > { %v1612_v49 = vsel %vm12438_vm13, %v1579_v45, %v1330_v52 }
 0x16b   : > { %v1363_v27 = vpop.permute.xlu0 %1362 }
 0x16c   : > { %v1643_v43 = vsel %vm12437_vm14, %v1610_v12, %v1363_v27  ;;  %v1077_v15 = vpop.permute.xlu1 %1076 }
 0x16d   : > { %7851 = vmatprep.mubr.msk.bf16.mxu1 %vm12436_vm15, %v1643_v43  ;;  %v1415_v35 = vsel %vm1370_vm7, %v8750_v0, %v1077_v15 }
 0x16f   : > { %v1365_v46 = vpop.permute.xlu0 %1364 }
 0x170   : > { %v1645_v55 = vsel %vm12437_vm14, %v1612_v49, %v1365_v46  ;;  %v1079_v19 = vpop.permute.xlu1 %1078 }
 0x171   : > { %7852 = vmatmul.mubr.msk.bf16.gmra.mrb[8].mxu1 %vm12436_vm15, %v1645_v55  ;;  %v1418_v14 = vsel %vm1370_vm7, %v8808_v54, %v1079_v19  ;;  %v9177_v54 = vld [vmem:[%s12430_s2] ss:$0 sm:$0xff] }
 0x173   : > { %v1157_v59 = vpop.permute.xlu0 %1156 }
 0x174   : > { %v1159_v22 = vpop.permute.xlu1 %1158  ;;  %v1449_v60 = vsel %vm1419_vm8, %v1415_v35, %v1157_v59 }
 0x175   : > { %v1451_v4 = vsel %vm1419_vm8, %v1418_v14, %v1159_v22 }
 0x177   : > { %v1192_v37 = vpop.permute.xlu0 %1191 }
 0x178   : > { %v1194_v23 = vpop.permute.xlu1 %1193  ;;  %v1482_v9 = vsel %vm1452_vm9, %v1449_v60, %v1192_v37 }
 0x179   : > { %v1484_v24 = vsel %vm1452_vm9, %v1451_v4, %v1194_v23 }
 0x17b   : > { %v1227_v28 = vpop.permute.xlu0 %1226 }
 0x17c   : > { %v1229_v11 = vpop.permute.xlu1 %1228  ;;  %v1515_v51 = vsel %vm12485_vm10, %v1482_v9, %v1227_v28 }
 0x17d   : > { %v1517_v0 = vsel %vm12485_vm10, %v1484_v24, %v1229_v11 }
 0x17f   : > { %v1262_v63 = vpop.permute.xlu0 %1261 }
 0x180   : > { %v1264_v29 = vpop.permute.xlu1 %1263  ;;  %v1548_v18 = vsel %vm12440_vm11, %v1515_v51, %v1262_v63  ;;  %v12530_v63 = vmov 0 }
 0x181   : > { %v1550_v17 = vsel %vm12440_vm11, %v1517_v0, %v1264_v29  ;;  %v2638_v29 = vld [vmem:[#allocation2 + $0x18] sm:$0xf] }
 0x183   : > { %v1297_v8 = vpop.permute.xlu0 %1296 }
 0x184   : > { %v1299_v33 = vpop.permute.xlu1 %1298  ;;  %v7829_v36 = vpop.f32.mrb[0].mxu0  ;;  %v1581_v57 = vsel %vm12439_vm12, %v1548_v18, %v1297_v8  ;;  %v2629_v18 = vld [vmem:[#allocation2 + $0xc] sm:$0xf] }
 0x185   : > { %v1891_v61 = vmul.f32 %v7829_v36, %v9177_v54  ;;  %v1757_v20 = vpop.f32.mrb[1].mxu0  ;;  %v1583_v6 = vsel %vm12439_vm12, %v1550_v17, %v1299_v33 }
 0x186   : > { %v1889_v26 = vmul.f32 %v9177_v54, %v1757_v20  ;;  %v7830_v25 = vpop.f32.mrb[2].mxu0 }
 0x187   : > { %v9191_v34 = vadd.f32 %v9184_v39, %v1891_v61  ;;  %v1760_v1 = vpop.f32.mrb[3].mxu0  ;;  %v1332_v42 = vpop.permute.xlu0 %1331  ;;  %v1892_v60 = vmul.f32 %v7830_v25, %v9177_v54 }
 0x188   : > { %v9194_v2 = vadd.f32 %v9184_v39, %v1889_v26  ;;  %v1334_v40 = vpop.permute.xlu1 %1333  ;;  %v1614_v10 = vsel %vm12438_vm13, %v1581_v57, %v1332_v42  ;;  %v1890_v14 = vmul.f32 %v9177_v54, %v1760_v1 }
 0x189   : > { %12526 = vst [vmem:[#allocation3_spill] sm:$0xff] %v9191_v34  ;;  %vm1960_vm2 = vcmp.ge.f32.partialorder %v9191_v34, 0.0  ;;  %v1992_v5 = vmul.f32 0.1, %v9191_v34  ;;  %v1616_v3 = vsel %vm12438_vm13, %v1583_v6, %v1334_v40  ;;  %v9244_v28 = vadd.f32 %v9184_v39, %v1892_v60 }
 0x18a   : > { %12527 = vst [vmem:[#allocation4_spill] sm:$0xff] %v9194_v2  ;;  %vm1958_vm3 = vcmp.ge.f32.partialorder %v9194_v2, 0.0  ;;  %v1990_v44 = vmul.f32 0.1, %v9194_v2  ;;  %v9241_v4 = vadd.f32 %v9184_v39, %v1890_v14 }
 0x18b   : > { %v2024_v32 = vsel %vm1960_vm2, %v9191_v34, %v1992_v5  ;;  %v1367_v38 = vpop.permute.xlu0 %1366  ;;  %12529 = vst [vmem:[#allocation6_spill] sm:$0xff] %v9244_v28  ;;  %vm2627_vm2 = vsmask.f32 7938  ;;  %v1993_v51 = vmul.f32 0.1, %v9244_v28 }
 0x18c   : > { %v7692_v56 = vpack.c.bf16 %v2024_v32, %v2024_v32  ;;  %v2022_v48 = vsel %vm1958_vm3, %v9194_v2, %v1990_v44  ;;  %v1369_v7 = vpop.permute.xlu1 %1368  ;;  %v1647_v31 = vsel %vm12437_vm14, %v1614_v10, %v1367_v38  ;;  %12528 = vst [vmem:[#allocation5_spill] sm:$0xff] %v9241_v4  ;;  %v1991_v9 = vmul.f32 0.1, %v9241_v4 }
 0x18d   : > { %v7690_v47 = vpack.c.bf16 %v2022_v48, %v2022_v48  ;;  %v1649_v30 = vsel %vm12437_vm14, %v1616_v3, %v1369_v7  ;;  %7855 = vmatprep.mubr.msk.bf16.mxu1 %vm12436_vm15, %v1647_v31  ;;  %vm1959_vm3 = vcmp.ge.f32.partialorder %v9241_v4, 0.0  ;;  %vm1961_vm14 = vcmp.ge.f32.partialorder %v9244_v28, 0.0 }
 0x18e   : > { %v2227_v41 = vshrl.u32 %v7692_v56, 16  ;;  %7856 = vmatmul.mubr.msk.bf16.gmra.mrb[12].mxu1 %vm12436_vm15, %v1649_v30  ;;  %v2230_v16 = vshll.u32 %v7692_v56, 16  ;;  %vm9251_vm15 = vmand %vm12484_vm0, %vm2627_vm2  ;;  %v2023_v61 = vsel %vm1959_vm3, %v9241_v4, %v1991_v9  ;;  %v2025_v5 = vsel %vm1961_vm14, %v9244_v28, %v1993_v51 }
 0x18f   : > { %v2210_v50 = vshrl.u32 %v7690_v47, 16  ;;  %v2213_v62 = vshll.u32 %v7690_v47, 16  ;;  %v9237_v23 = vpop.permute.xlu0 %3505  ;;  %v12531_v63 = vsel %vm9251_vm15, 4294967295, %v12530_v63  ;;  %v9278_v3 = vpack.c.bf16 %v2023_v61, %v2023_v61 }
 0x190   : > { %v9208_v58 = vrot.slane %v2227_v41, 7  ;;  %12532 = vst [vmem:[#allocation7_spill] sm:$0xff] %v12531_v63  ;;  %v7693_v47 = vpack.c.bf16 %v2025_v5, %v2025_v5 }
 0x191   : > { %v9210_v21 = vrot.slane %v2210_v50, 7  ;;  %v2218_v9 = vshrl.u32 %v9278_v3, 16 }
 0x192   : > { %v2232_v52 = vor.u32 %v2230_v16, %v9208_v58 }
 0x193   : > { %v2215_v12 = vor.u32 %v2213_v62, %v9210_v21  ;;  %v9246_v11 = vpop.permute.xlu0 %3585 }
 0x194   : > { %2487 = vrot.lane.b32.xlu1 %v2232_v52, %s8068_s10 }
 0x195   : > { %2481 = vrot.lane.b32.xlu0 %v2215_v12, %s8068_s10 }
 0x1a4   : > { %v7833_v45 = vpop.f32.mrb[4].mxu0 }
 0x1a5   : > { %v1773_v27 = vpop.f32.mrb[5].mxu0  ;;  %v1895_v56 = vmul.f32 %v7833_v45, %v9177_v54 }
 0x1a6   : > { %v9216_v43 = vpop.f32.mrb[6].mxu0  ;;  %v1893_v50 = vmul.f32 %v9177_v54, %v1773_v27 }
 0x1a7   : > { %v9218_v15 = vpop.f32.mrb[7].mxu0  ;;  %v9297_v45 = vadd.f32 %v9184_v39, %v1895_v56  ;;  %v1896_v14 = vmul.f32 %v9216_v43, %v9177_v54 }
 0x1a9   : > { %12537 = vst [vmem:[#allocation12_spill] sm:$0xff] %v9297_v45  ;;  %v1996_v43 = vmul.f32 0.1, %v9297_v45 }
 0x1c4   : > { %v9220_v49 = vpop.f32.mrb[8].mxu0 }
 0x1c5   : > { %v9222_v46 = vpop.f32.mrb[9].mxu0 }
 0x1c6   : > { %v9224_v55 = vpop.f32.mrb[10].mxu0 }
 0x1c7   : > { %v9226_v19 = vpop.f32.mrb[11].mxu0 }
 0x1e4   : > { %v9228_v59 = vpop.f32.mrb[12].mxu0 }
 0x1e5   : > { %v9230_v22 = vpop.f32.mrb[13].mxu0 }
 0x1e6   : > { %v9232_v37 = vpop.f32.mrb[14].mxu0 }
 0x1e7   : > { %v9234_v35 = vpop.f32.mrb[15].mxu0 }
 0x204   : > { %v7845_v24 = vpop.f32.mrb[0].mxu1 }
 0x205   : > { %v1907_v0 = vmul.f32 %v7845_v24, %v9177_v54  ;;  %v1821_v8 = vpop.f32.mrb[1].mxu1 }
 0x206   : > { %v1905_v17 = vmul.f32 %v9177_v54, %v1821_v8  ;;  %v2488_v33 = vpop.permute.xlu1 %2487  ;;  %v7846_v36 = vpop.f32.mrb[2].mxu1  ;;  %v2235_v8 = vshrl.u32 %v7693_v47, 16 }
 0x207   : > { %v9261_v20 = vadd.f32 %v9184_v39, %v1907_v0  ;;  %v2639_v26 = vsel %vm9251_vm15, %v2488_v33, %v2638_v29  ;;  %v1908_v25 = vmul.f32 %v7846_v36, %v9177_v54  ;;  %v1824_v57 = vpop.f32.mrb[3].mxu1  ;;  %v2482_v6 = vpop.permute.xlu0 %2481  ;;  %v9307_v0 = vadd.f32 %v9184_v39, %v1893_v50 }
 0x208   : > { %v9267_v1 = vadd.f32 %v9184_v39, %v1905_v17  ;;  %2640 = vst [vmem:[#allocation2 + $0x18] sm:$0xf] %v2639_v26  ;;  %v1906_v42 = vmul.f32 %v9177_v54, %v1824_v57  ;;  %v2630_v40 = vsel %vm9251_vm15, %v2482_v6, %v2629_v18  ;;  %v9312_v36 = vadd.f32 %v9184_v39, %v1896_v14 }
 0x209   : > { %12533 = vst [vmem:[#allocation8_spill] sm:$0xff] %v9261_v20  ;;  %vm1976_vm2 = vcmp.ge.f32.partialorder %v9261_v20, 0.0  ;;  %v2008_v44 = vmul.f32 0.1, %v9261_v20  ;;  %v9276_v10 = vadd.f32 %v9184_v39, %v1908_v25  ;;  %2631 = vst [vmem:[#allocation2 + $0xc] sm:$0xf] %v2630_v40 }
 0x20a   : > { %12534 = vst [vmem:[#allocation9_spill] sm:$0xff] %v9267_v1  ;;  %vm1974_vm3 = vcmp.ge.f32.partialorder %v9267_v1, 0.0  ;;  %v2006_v32 = vmul.f32 0.1, %v9267_v1  ;;  %v9283_v38 = vadd.f32 %v9184_v39, %v1906_v42  ;;  %12538 = vst [vmem:[#allocation13_spill] sm:$0xff] %v9307_v0  ;;  %v2220_v57 = vrot.slane %v2218_v9, 7 }
 0x20b   : > { %12535 = vst [vmem:[#allocation10_spill] sm:$0xff] %v9276_v10  ;;  %v2040_v48 = vsel %vm1976_vm2, %v9261_v20, %v2008_v44  ;;  %vm1977_vm14 = vcmp.ge.f32.partialorder %v9276_v10, 0.0  ;;  %v2009_v7 = vmul.f32 0.1, %v9276_v10  ;;  %12539 = vst [vmem:[#allocation14_spill] sm:$0xff] %v9312_v36  ;;  %v2237_v42 = vrot.slane %v2235_v8, 7 }
 0x20c   : > { %12536 = vst [vmem:[#allocation11_spill] sm:$0xff] %v9283_v38  ;;  %v7708_v31 = vpack.c.bf16 %v2040_v48, %v2040_v48  ;;  %v2038_v30 = vsel %vm1974_vm3, %v9267_v1, %v2006_v32  ;;  %v2007_v41 = vmul.f32 0.1, %v9283_v38  ;;  %vm1975_vm13 = vcmp.ge.f32.partialorder %v9283_v38, 0.0 }
 0x20d   : > { %v7706_v16 = vpack.c.bf16 %v2038_v30, %v2038_v30  ;;  %v2041_v62 = vsel %vm1977_vm14, %v9276_v10, %v2009_v7  ;;  %v1994_v6 = vmul.f32 0.1, %v9307_v0  ;;  %vm1962_vm2 = vcmp.ge.f32.partialorder %v9307_v0, 0.0 }
 0x20e   : > { %v9294_v52 = vpack.c.bf16 %v2041_v62, %v2041_v62  ;;  %v2363_v12 = vshrl.u32 %v7708_v31, 16  ;;  %v2039_v24 = vsel %vm1975_vm13, %v9283_v38, %v2007_v41  ;;  %v2366_v29 = vshll.u32 %v7708_v31, 16 }
 0x20f   : > { %v2346_v60 = vshrl.u32 %v7706_v16, 16  ;;  %v7707_v61 = vpack.c.bf16 %v2039_v24, %v2039_v24  ;;  %vm1964_vm13 = vcmp.ge.f32.partialorder %v9297_v45, 0.0  ;;  %v2349_v25 = vshll.u32 %v7706_v16, 16 }
 0x210   : > { %v9303_v27 = vrot.slane %v2363_v12, 7  ;;  %v2371_v51 = vshrl.u32 %v9294_v52, 16  ;;  %vm2206_vm3 = vsmask.f32 256  ;;  %vm2207_vm14 = vsmask.f32 4368 }
 0x211   : > { %v2348_v33 = vrot.slane %v2346_v60, 7  ;;  %v2028_v5 = vsel %vm1964_vm13, %v9297_v45, %v1996_v43  ;;  %v1997_v44 = vmul.f32 0.1, %v9312_v36  ;;  %v2238_v32 = vshll.u32 %v7693_v47, 16  ;;  %vm9330_vm13 = vmor %vm2206_vm3, %vm2207_vm14 }
 0x212   : > { %v2368_v18 = vor.u32 %v2366_v29, %v9303_v27  ;;  %v2373_v17 = vrot.slane %v2371_v51, 7  ;;  %v2354_v56 = vshrl.u32 %v7707_v61, 16  ;;  %vm1965_vm12 = vcmp.ge.f32.partialorder %v9312_v36, 0.0 }
 0x213   : > { %v2351_v40 = vor.u32 %v2349_v25, %v2348_v33  ;;  %v2225_v48 = vrot.slane %v2220_v57, 4  ;;  %v2026_v7 = vsel %vm1962_vm2, %v9307_v0, %v1994_v6  ;;  %v1894_v31 = vmul.f32 %v9177_v54, %v9218_v15 }
 0x214   : > { %2535 = vrot.lane.b32.xlu1 %v2368_v18, %s8068_s10  ;;  %v2378_v26 = vrot.slane %v2373_v17, 4  ;;  %v2240_v30 = vor.u32 %v2238_v32, %v2237_v42  ;;  %v2221_v41 = vshll.u32 %v9278_v3, 16  ;;  %v7696_v50 = vpack.c.bf16 %v2028_v5, %v2028_v5 }
 0x215   : > { %v2242_v16 = vrot.slane %v2237_v42, 4  ;;  %v12540_v47 = vmov 0  ;;  %v2029_v62 = vsel %vm1965_vm12, %v9312_v36, %v1997_v44  ;;  %v2233_v12 = vrot.slane %v9208_v58, 4 }
 0x216   : > { %2539 = vrot.lane.b32.xlu0 %v2378_v26, %s8068_s10  ;;  %v12541_v47 = vsel %vm9330_vm13, 4294967295, %v12540_v47  ;;  %v2223_v14 = vor.u32 %v2221_v41, %v2220_v57  ;;  %v2356_v60 = vrot.slane %v2354_v56, 7  ;;  %v7694_v15 = vpack.c.bf16 %v2026_v7, %v2026_v7 }
 0x217   : > { %12542 = vst [vmem:[#allocation15_spill] sm:$0xff] %v12541_v47  ;;  %v9338_v3 = vadd.f32 %v9184_v39, %v1894_v31  ;;  %v2241_v9 = vsel %vm9330_vm13, %v2233_v12, %v2240_v30  ;;  %v2216_v24 = vrot.slane %v9210_v21, 4  ;;  %v2357_v29 = vshll.u32 %v7707_v61, 16 }
 0x218   : > { %2529 = vrot.lane.b32.xlu1 %v2351_v40, %s8068_s10  ;;  %v9343_v51 = vpack.c.bf16 %v2029_v62, %v2029_v62  ;;  %v2261_v8 = vshrl.u32 %v7696_v50, 16  ;;  %v2374_v43 = vshll.u32 %v9294_v52, 16  ;;  %v2361_v26 = vrot.slane %v2356_v60, 4 }
 0x219   : > { %12543 = vst [vmem:[#allocation16_spill] sm:$0xff] %v9338_v3  ;;  %v2224_v58 = vsel %vm9330_vm13, %v2216_v24, %v2223_v14  ;;  %v2359_v18 = vor.u32 %v2357_v29, %v2356_v60  ;;  %v2244_v25 = vshrl.u32 %v7694_v15, 16  ;;  %v1995_v57 = vmul.f32 0.1, %v9338_v3 }
 0x21a   : > { %2485 = vrot.lane.b32.xlu0 %v2225_v48, %s8068_s10  ;;  %v2352_v6 = vrot.slane %v2348_v33, 4  ;;  %v2376_v21 = vor.u32 %v2374_v43, %v2373_v17  ;;  %vm1963_vm12 = vcmp.ge.f32.partialorder %v9338_v3, 0.0  ;;  %v9353_v61 = vrot.slane %v2261_v8, 7 }
 0x21b   : > { %v2269_v42 = vshrl.u32 %v9343_v51, 16  ;;  %v2369_v52 = vrot.slane %v9303_v27, 4  ;;  %v2264_v44 = vshll.u32 %v7696_v50, 16  ;;  %v9360_v32 = vrot.slane %v2244_v25, 7 }
 0x21c   : > { %2491 = vrot.lane.b32.xlu1 %v2242_v16, %s8068_s10  ;;  %v2360_v40 = vsel %vm9330_vm13, %v2352_v6, %v2359_v18  ;;  %v2027_v17 = vsel %vm1963_vm12, %v9338_v3, %v1995_v57  ;;  %v2247_v30 = vshll.u32 %v7694_v15, 16  ;;  %v1899_v50 = vmul.f32 %v9220_v49, %v9177_v54 }
 0x21d   : > { %v2377_v48 = vsel %vm9330_vm13, %v2369_v52, %v2376_v21  ;;  %v2266_v27 = vor.u32 %v2264_v44, %v9353_v61  ;;  %v9369_v41 = vrot.slane %v2269_v42, 7  ;;  %v1900_v21 = vmul.f32 %v9224_v55, %v9177_v54 }
 0x21e   : > { %2489 = vrot.lane.b32.xlu0 %v2241_v9, %s8068_s10  ;;  %v2249_v15 = vor.u32 %v2247_v30, %v9360_v32  ;;  %v7695_v9 = vpack.c.bf16 %v2027_v17, %v2027_v17  ;;  %v9396_v18 = vadd.f32 %v9184_v39, %v1899_v50 }
 0x220   : > { %2483 = vrot.lane.b32.xlu1 %v2224_v58, %s8068_s10  ;;  %v2276_v58 = vrot.slane %v9369_v41, 4  ;;  %12548 = vst [vmem:[#allocation21_spill] sm:$0xff] %v9396_v18  ;;  %v2000_v17 = vmul.f32 0.1, %v9396_v18 }
 0x222   : > { %2533 = vrot.lane.b32.xlu0 %v2361_v26, %s8068_s10 }
 0x224   : > { %2531 = vrot.lane.b32.xlu1 %v2360_v40, %s8068_s10  ;;  %v7849_v5 = vpop.f32.mrb[4].mxu1 }
 0x225   : > { %v1911_v33 = vmul.f32 %v7849_v5, %v9177_v54  ;;  %v1837_v56 = vpop.f32.mrb[5].mxu1 }
 0x226   : > { %v1909_v7 = vmul.f32 %v9177_v54, %v1837_v56  ;;  %2537 = vrot.lane.b32.xlu0 %v2377_v48, %s8068_s10  ;;  %v7850_v31 = vpop.f32.mrb[6].mxu1  ;;  %v2252_v48 = vshrl.u32 %v7695_v9, 16 }
 0x227   : > { %v9374_v16 = vadd.f32 %v9184_v39, %v1911_v33  ;;  %v1912_v62 = vmul.f32 %v7850_v31, %v9177_v54  ;;  %v1840_v12 = vpop.f32.mrb[7].mxu1 }
 0x228   : > { %v9378_v14 = vadd.f32 %v9184_v39, %v1909_v7  ;;  %v1910_v60 = vmul.f32 %v9177_v54, %v1840_v12  ;;  %2499 = vrot.lane.b32.xlu1 %v2266_v27, %s8068_s10  ;;  %v9414_v27 = vadd.f32 %v9184_v39, %v1900_v21 }
 0x229   : > { %12544 = vst [vmem:[#allocation17_spill] sm:$0xff] %v9374_v16  ;;  %vm1980_vm2 = vcmp.ge.f32.partialorder %v9374_v16, 0.0  ;;  %v2012_v49 = vmul.f32 0.1, %v9374_v16  ;;  %v9386_v24 = vadd.f32 %v9184_v39, %v1912_v62 }
 0x22a   : > { %12545 = vst [vmem:[#allocation18_spill] sm:$0xff] %v9378_v14  ;;  %vm1978_vm14 = vcmp.ge.f32.partialorder %v9378_v14, 0.0  ;;  %v2010_v29 = vmul.f32 0.1, %v9378_v14  ;;  %v9391_v8 = vadd.f32 %v9184_v39, %v1910_v60  ;;  %2493 = vrot.lane.b32.xlu0 %v2249_v15, %s8068_s10  ;;  %12549 = vst [vmem:[#allocation22_spill] sm:$0xff] %v9414_v27  ;;  %v2254_v60 = vrot.slane %v2252_v48, 7 }
 0x22b   : > { %12546 = vst [vmem:[#allocation19_spill] sm:$0xff] %v9386_v24  ;;  %v2044_v43 = vsel %vm1980_vm2, %v9374_v16, %v2012_v49  ;;  %vm1981_vm12 = vcmp.ge.f32.partialorder %v9386_v24, 0.0  ;;  %v2013_v26 = vmul.f32 0.1, %v9386_v24  ;;  %vm1968_vm2 = vcmp.ge.f32.partialorder %v9396_v18, 0.0 }
 0x22c   : > { %12547 = vst [vmem:[#allocation20_spill] sm:$0xff] %v9391_v8  ;;  %v7712_v25 = vpack.c.bf16 %v2044_v43, %v2044_v43  ;;  %v2042_v57 = vsel %vm1978_vm14, %v9378_v14, %v2010_v29  ;;  %vm1979_vm11 = vcmp.ge.f32.partialorder %v9391_v8, 0.0  ;;  %v2011_v6 = vmul.f32 0.1, %v9391_v8 }
 0x22d   : > { %v7710_v42 = vpack.c.bf16 %v2042_v57, %v2042_v57  ;;  %v2045_v40 = vsel %vm1981_vm12, %v9386_v24, %v2013_v26  ;;  %v2032_v12 = vsel %vm1968_vm2, %v9396_v18, %v2000_v17  ;;  %v2255_v43 = vshll.u32 %v7695_v9, 16 }
 0x22e   : > { %v7713_v52 = vpack.c.bf16 %v2045_v40, %v2045_v40  ;;  %v2043_v5 = vsel %vm1979_vm11, %v9391_v8, %v2011_v6  ;;  %2503 = vrot.lane.b32.xlu0 %v2276_v58, %s8068_s10  ;;  %v2397_v44 = vshrl.u32 %v7712_v25, 16  ;;  %v2400_v31 = vshll.u32 %v7712_v25, 16 }
 0x22f   : > { %v7711_v33 = vpack.c.bf16 %v2043_v5, %v2043_v5  ;;  %v2380_v56 = vshrl.u32 %v7710_v42, 16  ;;  %v2383_v29 = vshll.u32 %v7710_v42, 16  ;;  %v2001_v58 = vmul.f32 0.1, %v9414_v27 }
 0x230   : > { %v9411_v7 = vrot.slane %v2397_v44, 7  ;;  %v2405_v55 = vshrl.u32 %v7713_v52, 16  ;;  %v7700_v26 = vpack.c.bf16 %v2032_v12, %v2032_v12  ;;  %vm1969_vm11 = vcmp.ge.f32.partialorder %v9414_v27, 0.0 }
 0x231   : > { %v2382_v62 = vrot.slane %v2380_v56, 7  ;;  %v2388_v15 = vshrl.u32 %v7711_v33, 16  ;;  %v2257_v57 = vor.u32 %v2255_v43, %v2254_v60  ;;  %v2272_v6 = vshll.u32 %v9343_v51, 16 }
 0x232   : > { %v2402_v30 = vor.u32 %v2400_v31, %v9411_v7  ;;  %v2407_v50 = vrot.slane %v2405_v55, 7  ;;  %v2259_v40 = vrot.slane %v2254_v60, 4  ;;  %v2033_v5 = vsel %vm1969_vm11, %v9414_v27, %v2001_v58 }
 0x233   : > { %v2385_v25 = vor.u32 %v2383_v29, %v2382_v62  ;;  %v2390_v21 = vrot.slane %v2388_v15, 7  ;;  %v2250_v42 = vrot.slane %v9360_v32, 4  ;;  %v2274_v44 = vor.u32 %v2272_v6, %v9369_v41 }
 0x234   : > { %2547 = vrot.lane.b32.xlu1 %v2402_v30, %s8068_s10  ;;  %v2412_v49 = vrot.slane %v2407_v50, 4  ;;  %v2391_v9 = vshll.u32 %v7711_v33, 16  ;;  %v1897_v17 = vmul.f32 %v9177_v54, %v9222_v46  ;;  %v2295_v56 = vshrl.u32 %v7700_v26, 16 }
 0x235   : > { %v1898_v51 = vmul.f32 %v9177_v54, %v9226_v19  ;;  %v2258_v48 = vsel %vm9330_vm13, %v2250_v42, %v2257_v57  ;;  %v2267_v31 = vrot.slane %v9353_v61, 4  ;;  %v9435_v30 = vpack.c.bf16 %v2033_v5, %v2033_v5 }
 0x236   : > { %2551 = vrot.lane.b32.xlu0 %v2412_v49, %s8068_s10  ;;  %v2393_v55 = vor.u32 %v2391_v9, %v2390_v21  ;;  %v2386_v46 = vrot.slane %v2382_v62, 4  ;;  %v9441_v41 = vadd.f32 %v9184_v39, %v1897_v17  ;;  %v9444_v19 = vrot.slane %v2295_v56, 7 }
 0x237   : > { %v2275_v32 = vsel %vm9330_vm13, %v2267_v31, %v2274_v44  ;;  %v9447_v33 = vadd.f32 %v9184_v39, %v1898_v51  ;;  %v2408_v12 = vshll.u32 %v7713_v52, 16  ;;  %v2395_v60 = vrot.slane %v2390_v21, 4 }
 0x238   : > { %2541 = vrot.lane.b32.xlu1 %v2385_v25, %s8068_s10  ;;  %12550 = vst [vmem:[#allocation23_spill] sm:$0xff] %v9441_v41  ;;  %v2394_v61 = vsel %vm9330_vm13, %v2386_v46, %v2393_v55  ;;  %v2298_v15 = vshll.u32 %v7700_v26, 16  ;;  %v2303_v62 = vshrl.u32 %v9435_v30, 16  ;;  %v1998_v29 = vmul.f32 0.1, %v9441_v41 }
 0x239   : > { %12551 = vst [vmem:[#allocation24_spill] sm:$0xff] %v9447_v33  ;;  %v2410_v49 = vor.u32 %v2408_v12, %v2407_v50  ;;  %vm1966_vm14 = vcmp.ge.f32.partialorder %v9441_v41, 0.0  ;;  %v1999_v43 = vmul.f32 0.1, %v9447_v33  ;;  %v2403_v25 = vrot.slane %v9411_v7, 4 }
 0x23a   : > { %2497 = vrot.lane.b32.xlu0 %v2259_v40, %s8068_s10  ;;  %v2300_v58 = vor.u32 %v2298_v15, %v9444_v19  ;;  %vm1967_vm12 = vcmp.ge.f32.partialorder %v9447_v33, 0.0  ;;  %v9461_v26 = vrot.slane %v2303_v62, 7  ;;  %v2030_v21 = vsel %vm1966_vm14, %v9441_v41, %v1998_v29 }
 0x23b   : > { %v2411_v6 = vsel %vm9330_vm13, %v2403_v25, %v2410_v49  ;;  %v2031_v5 = vsel %vm1967_vm12, %v9447_v33, %v1999_v43  ;;  %v1903_v12 = vmul.f32 %v9228_v59, %v9177_v54 }
 0x23c   : > { %2495 = vrot.lane.b32.xlu1 %v2258_v48, %s8068_s10  ;;  %v2310_v51 = vrot.slane %v9461_v26, 4  ;;  %v7698_v48 = vpack.c.bf16 %v2030_v21, %v2030_v21 }
 0x23e   : > { %2501 = vrot.lane.b32.xlu0 %v2275_v32, %s8068_s10  ;;  %v7699_v32 = vpack.c.bf16 %v2031_v5, %v2031_v5 }
 0x240   : > { %2543 = vrot.lane.b32.xlu1 %v2394_v61, %s8068_s10  ;;  %v2286_v21 = vshrl.u32 %v7699_v32, 16 }
 0x242   : > { %2545 = vrot.lane.b32.xlu0 %v2395_v60, %s8068_s10 }
 0x244   : > { %2511 = vrot.lane.b32.xlu1 %v2300_v58, %s8068_s10  ;;  %v7853_v52 = vpop.f32.mrb[8].mxu1  ;;  %v1904_v58 = vmul.f32 %v9232_v37, %v9177_v54 }
 0x245   : > { %v1915_v50 = vmul.f32 %v7853_v52, %v9177_v54  ;;  %v1853_v57 = vpop.f32.mrb[9].mxu1 }
 0x246   : > { %v1913_v40 = vmul.f32 %v9177_v54, %v1853_v57  ;;  %2549 = vrot.lane.b32.xlu0 %v2411_v6, %s8068_s10  ;;  %v7854_v7 = vpop.f32.mrb[10].mxu1  ;;  %v9504_v57 = vadd.f32 %v9184_v39, %v1903_v12  ;;  %v1902_v6 = vmul.f32 %v9177_v54, %v9234_v35  ;;  %v2281_v35 = vshll.u32 %v7698_v48, 16 }
 0x247   : > { %v9471_v42 = vadd.f32 %v9184_v39, %v1915_v50  ;;  %v1916_v44 = vmul.f32 %v7854_v7, %v9177_v54  ;;  %v1856_v9 = vpop.f32.mrb[11].mxu1  ;;  %v2278_v50 = vshrl.u32 %v7698_v48, 16 }
 0x248   : > { %v9475_v17 = vadd.f32 %v9184_v39, %v1913_v40  ;;  %v1914_v56 = vmul.f32 %v9177_v54, %v1856_v9  ;;  %12556 = vst [vmem:[#allocation29_spill] sm:$0xff] %v9504_v57 }
 0x249   : > { %12552 = vst [vmem:[#allocation25_spill] sm:$0xff] %v9471_v42  ;;  %vm1984_vm2 = vcmp.ge.f32.partialorder %v9471_v42, 0.0  ;;  %v2016_v31 = vmul.f32 0.1, %v9471_v42  ;;  %v9482_v55 = vadd.f32 %v9184_v39, %v1916_v44  ;;  %v9513_v44 = vadd.f32 %v9184_v39, %v1904_v58 }
 0x24a   : > { %12553 = vst [vmem:[#allocation26_spill] sm:$0xff] %v9475_v17  ;;  %vm1982_vm11 = vcmp.ge.f32.partialorder %v9475_v17, 0.0  ;;  %v2014_v46 = vmul.f32 0.1, %v9475_v17  ;;  %v9487_v61 = vadd.f32 %v9184_v39, %v1914_v56  ;;  %2515 = vrot.lane.b32.xlu0 %v2310_v51, %s8068_s10  ;;  %v2280_v51 = vrot.slane %v2278_v50, 7 }
 0x24b   : > { %12554 = vst [vmem:[#allocation27_spill] sm:$0xff] %v9482_v55  ;;  %v2048_v60 = vsel %vm1984_vm2, %v9471_v42, %v2016_v31  ;;  %vm1985_vm14 = vcmp.ge.f32.partialorder %v9482_v55, 0.0  ;;  %v2017_v15 = vmul.f32 0.1, %v9482_v55  ;;  %12557 = vst [vmem:[#allocation30_spill] sm:$0xff] %v9513_v44  ;;  %vm1972_vm2 = vcmp.ge.f32.partialorder %v9504_v57, 0.0 }
 0x24c   : > { %12555 = vst [vmem:[#allocation28_spill] sm:$0xff] %v9487_v61  ;;  %v7716_v62 = vpack.c.bf16 %v2048_v60, %v2048_v60  ;;  %v2046_v49 = vsel %vm1982_vm11, %v9475_v17, %v2014_v46  ;;  %v2015_v29 = vmul.f32 0.1, %v9487_v61  ;;  %vm1983_vm12 = vcmp.ge.f32.partialorder %v9487_v61, 0.0 }
 0x24d   : > { %v2049_v43 = vsel %vm1985_vm14, %v9482_v55, %v2017_v15  ;;  %v7714_v25 = vpack.c.bf16 %v2046_v49, %v2046_v49  ;;  %v2004_v46 = vmul.f32 0.1, %v9504_v57  ;;  %v9519_v60 = vadd.f32 %v9184_v39, %v1902_v6 }
 0x24e   : > { %v9501_v59 = vpack.c.bf16 %v2049_v43, %v2049_v43  ;;  %v2431_v52 = vshrl.u32 %v7716_v62, 16  ;;  %v2047_v40 = vsel %vm1983_vm12, %v9487_v61, %v2015_v29  ;;  %v2434_v37 = vshll.u32 %v7716_v62, 16 }
 0x24f   : > { %v2414_v31 = vshrl.u32 %v7714_v25, 16  ;;  %v7715_v12 = vpack.c.bf16 %v2047_v40, %v2047_v40  ;;  %12558 = vst [vmem:[#allocation31_spill] sm:$0xff] %v9519_v60  ;;  %v2288_v62 = vrot.slane %v2286_v21, 7  ;;  %v2005_v49 = vmul.f32 0.1, %v9513_v44 }
 0x250   : > { %v9509_v7 = vrot.slane %v2431_v52, 7  ;;  %v2439_v5 = vshrl.u32 %v9501_v59, 16  ;;  %v1901_v29 = vmul.f32 %v9177_v54, %v9230_v22  ;;  %vm1973_vm11 = vcmp.ge.f32.partialorder %v9513_v44, 0.0 }
 0x251   : > { %v2283_v58 = vor.u32 %v2281_v35, %v2280_v51  ;;  %v2416_v48 = vrot.slane %v2414_v31, 7  ;;  %v2036_v43 = vsel %vm1972_vm2, %v9504_v57, %v2004_v46  ;;  %v2306_v52 = vshll.u32 %v9435_v30, 16 }
 0x252   : > { %v2436_v9 = vor.u32 %v2434_v37, %v9509_v7  ;;  %v2441_v56 = vrot.slane %v2439_v5, 7  ;;  %v2422_v50 = vshrl.u32 %v7715_v12, 16  ;;  %v2003_v6 = vmul.f32 0.1, %v9519_v60 }
 0x253   : > { %v2293_v21 = vrot.slane %v2288_v62, 4  ;;  %v2417_v40 = vshll.u32 %v7714_v25, 16  ;;  %v2289_v37 = vshll.u32 %v7699_v32, 16  ;;  %v2037_v22 = vsel %vm1973_vm11, %v9513_v44, %v2005_v49  ;;  %v2740_v44 = vld [vmem:[#allocation2 + $0xc8] sm:$0x1] }
 0x254   : > { %2559 = vrot.lane.b32.xlu1 %v2436_v9, %s8068_s10  ;;  %v2446_v15 = vrot.slane %v2441_v56, 4  ;;  %vm1971_vm14 = vcmp.ge.f32.partialorder %v9519_v60, 0.0  ;;  %v2308_v5 = vor.u32 %v2306_v52, %v9461_v26  ;;  %v7704_v9 = vpack.c.bf16 %v2036_v43, %v2036_v43 }
 0x255   : > { %v9535_v31 = vadd.f32 %v9184_v39, %v1901_v29  ;;  %v2419_v30 = vor.u32 %v2417_v40, %v2416_v48  ;;  %v2291_v46 = vor.u32 %v2289_v37, %v2288_v62  ;;  %v2301_v35 = vrot.slane %v9444_v19, 4 }
 0x256   : > { %2563 = vrot.lane.b32.xlu0 %v2446_v15, %s8068_s10  ;;  %v2424_v15 = vrot.slane %v2422_v50, 7  ;;  %v2035_v32 = vsel %vm1971_vm14, %v9519_v60, %v2003_v6  ;;  %v2284_v25 = vrot.slane %v2280_v51, 4  ;;  %v2425_v49 = vshll.u32 %v7715_v12, 16 }
 0x257   : > { %12559 = vst [vmem:[#allocation32_spill] sm:$0xff] %v9535_v31  ;;  %v2309_v26 = vsel %vm9330_vm13, %v2301_v35, %v2308_v5  ;;  %v2002_v29 = vmul.f32 0.1, %v9535_v31  ;;  %v2329_v19 = vshrl.u32 %v7704_v9, 16  ;;  %vm1970_vm12 = vcmp.ge.f32.partialorder %v9535_v31, 0.0 }
 0x258   : > { %2505 = vrot.lane.b32.xlu1 %v2283_v58, %s8068_s10  ;;  %v9539_v58 = vpack.c.bf16 %v2037_v22, %v2037_v22  ;;  %v2292_v62 = vsel %vm9330_vm13, %v2284_v25, %v2291_v46  ;;  %v9550_v43 = vpack.c.bf16 %v2035_v32, %v2035_v32  ;;  %v2427_v52 = vor.u32 %v2425_v49, %v2424_v15 }
 0x259   : > { %v2442_v50 = vshll.u32 %v9501_v59, 16  ;;  %v2429_v51 = vrot.slane %v2424_v15, 4  ;;  %v2420_v6 = vrot.slane %v2416_v48, 4  ;;  %v2034_v40 = vsel %vm1970_vm12, %v9535_v31, %v2002_v29 }
 0x25a   : > { %2509 = vrot.lane.b32.xlu0 %v2293_v21, %s8068_s10  ;;  %v2337_v12 = vshrl.u32 %v9539_v58, 16  ;;  %v2331_v22 = vrot.slane %v2329_v19, 7  ;;  %v2437_v59 = vrot.slane %v9509_v7, 4  ;;  %v2320_v35 = vshrl.u32 %v9550_v43, 16 }
 0x25b   : > { %v2444_v21 = vor.u32 %v2442_v50, %v2441_v56  ;;  %v2428_v46 = vsel %vm9330_vm13, %v2420_v6, %v2427_v52  ;;  %v2332_v56 = vshll.u32 %v7704_v9, 16  ;;  %v7702_v25 = vpack.c.bf16 %v2034_v40, %v2034_v40 }
 0x25c   : > { %2553 = vrot.lane.b32.xlu1 %v2419_v30, %s8068_s10  ;;  %v2339_v32 = vrot.slane %v2337_v12, 7 }
 0x25d   : > { %v2334_v52 = vor.u32 %v2332_v56, %v2331_v22 }
 0x25e   : > { %2513 = vrot.lane.b32.xlu0 %v2309_v26, %s8068_s10 }
 0x260   : > { %2507 = vrot.lane.b32.xlu1 %v2292_v62, %s8068_s10  ;;  %v2445_v62 = vsel %vm9330_vm13, %v2437_v59, %v2444_v21 }
 0x261   : > { %v7857_v37 = vpop.f32.mrb[12].mxu1 }
 0x262   : > { %2557 = vrot.lane.b32.xlu0 %v2429_v51, %s8068_s10  ;;  %v1919_v5 = vmul.f32 %v7857_v37, %v9177_v54  ;;  %v1869_v30 = vpop.f32.mrb[13].mxu1  ;;  %v2322_v51 = vrot.slane %v2320_v35, 7  ;;  %v2312_v37 = vshrl.u32 %v7702_v25, 16 }
 0x263   : > { %v1917_v15 = vmul.f32 %v9177_v54, %v1869_v30  ;;  %v7858_v48 = vpop.f32.mrb[14].mxu1 }
 0x264   : > { %2555 = vrot.lane.b32.xlu1 %v2428_v46, %s8068_s10  ;;  %v9565_v26 = vadd.f32 %v9184_v39, %v1919_v5  ;;  %v1920_v49 = vmul.f32 %v7858_v48, %v9177_v54  ;;  %v1872_v29 = vpop.f32.mrb[15].mxu1  ;;  %v2327_v35 = vrot.slane %v2322_v51, 4 }
 0x265   : > { %v9571_v7 = vadd.f32 %v9184_v39, %v1917_v15  ;;  %v1918_v19 = vmul.f32 %v9177_v54, %v1872_v29  ;;  %v2344_v54 = vrot.slane %v2339_v32, 4  ;;  %v2340_v15 = vshll.u32 %v9539_v58, 16 }
 0x266   : > { %12560 = vst [vmem:[#allocation33_spill] sm:$0xff] %v9565_v26  ;;  %2561 = vrot.lane.b32.xlu0 %v2445_v62, %s8068_s10  ;;  %vm1988_vm2 = vcmp.ge.f32.partialorder %v9565_v26, 0.0  ;;  %v2020_v9 = vmul.f32 0.1, %v9565_v26  ;;  %v9578_v50 = vadd.f32 %v9184_v39, %v1920_v49 }
 0x267   : > { %12561 = vst [vmem:[#allocation34_spill] sm:$0xff] %v9571_v7  ;;  %vm1986_vm11 = vcmp.ge.f32.partialorder %v9571_v7, 0.0  ;;  %v2018_v12 = vmul.f32 0.1, %v9571_v7  ;;  %v9583_v6 = vadd.f32 %v9184_v39, %v1918_v19  ;;  %v2342_v19 = vor.u32 %v2340_v15, %v2339_v32 }
 0x268   : > { %12562 = vst [vmem:[#allocation35_spill] sm:$0xff] %v9578_v50  ;;  %2523 = vrot.lane.b32.xlu1 %v2334_v52, %s8068_s10  ;;  %v2052_v21 = vsel %vm1988_vm2, %v9565_v26, %v2020_v9  ;;  %vm1989_vm14 = vcmp.ge.f32.partialorder %v9578_v50, 0.0  ;;  %v2021_v40 = vmul.f32 0.1, %v9578_v50  ;;  %v2315_v32 = vshll.u32 %v7702_v25, 16  ;;  %vm9617_vm2 = vmand %vm2073_vm1, %vm2206_vm3 }
 0x269   : > { %12563 = vst [vmem:[#allocation36_spill] sm:$0xff] %v9583_v6  ;;  %v7720_v5 = vpack.c.bf16 %v2052_v21, %v2052_v21  ;;  %v2050_v30 = vsel %vm1986_vm11, %v9571_v7, %v2018_v12  ;;  %vm1987_vm12 = vcmp.ge.f32.partialorder %v9583_v6, 0.0  ;;  %v2019_v46 = vmul.f32 0.1, %v9583_v6 }
 0x26a   : > { %2527 = vrot.lane.b32.xlu0 %v2344_v54, %s8068_s10  ;;  %v7718_v39 = vpack.c.bf16 %v2050_v30, %v2050_v30  ;;  %v2053_v59 = vsel %vm1989_vm14, %v9578_v50, %v2021_v40  ;;  %v2335_v12 = vrot.slane %v2331_v22, 4  ;;  %v2314_v30 = vrot.slane %v2312_v37, 7 }
 0x26b   : > { %v7721_v48 = vpack.c.bf16 %v2053_v59, %v2053_v59  ;;  %v2051_v56 = vsel %vm1987_vm12, %v9583_v6, %v2019_v46  ;;  %v2465_v49 = vshrl.u32 %v7720_v5, 16  ;;  %v2468_v29 = vshll.u32 %v7720_v5, 16  ;;  %v2701_v6 = vld [vmem:[#allocation2 + $0x84] sm:$0xf] }
 0x26c   : > { %v7719_v62 = vpack.c.bf16 %v2051_v56, %v2051_v56  ;;  %v2448_v26 = vshrl.u32 %v7718_v39, 16  ;;  %v2343_v40 = vsel %vm9330_vm13, %v2335_v12, %v2342_v19  ;;  %v2317_v5 = vor.u32 %v2315_v32, %v2314_v30 }
 0x26d   : > { %v2467_v52 = vrot.slane %v2465_v49, 7  ;;  %v2473_v9 = vshrl.u32 %v7721_v48, 16  ;;  %v2476_v50 = vshll.u32 %v7721_v48, 16  ;;  %v2451_v15 = vshll.u32 %v7718_v39, 16 }
 0x26e   : > { %2521 = vrot.lane.b32.xlu0 %v2327_v35, %s8068_s10  ;;  %v2456_v21 = vshrl.u32 %v7719_v62, 16  ;;  %v2450_v35 = vrot.slane %v2448_v26, 7  ;;  %v2323_v25 = vshll.u32 %v9550_v43, 16  ;;  %v2318_v26 = vrot.slane %v2314_v30, 4  ;;  %v2687_v30 = vld [vmem:[#allocation2 + $0x6c] sm:$0xf] }
 0x26f   : > { %v2470_v54 = vor.u32 %v2468_v29, %v2467_v52  ;;  %v2475_v59 = vrot.slane %v2473_v9, 7  ;;  %v2471_v22 = vrot.slane %v2467_v52, 4  ;;  %v2694_v9 = vld [vmem:[#allocation2 + $0x78] sm:$0xf]  ;;  %vm12582_vm1 = vcmask 326656  }
 0x270   : > { %v2458_v58 = vrot.slane %v2456_v21, 7  ;;  %v2453_v37 = vor.u32 %v2451_v15, %v2450_v35  ;;  %v2325_v29 = vor.u32 %v2323_v25, %v2322_v51  ;;  %v2454_v19 = vrot.slane %v2450_v35, 4 }
 0x271   : > { %2571 = vrot.lane.b32.xlu1 %v2470_v54, %s8068_s10  ;;  %v2478_v56 = vor.u32 %v2476_v50, %v2475_v59  ;;  %v2480_v48 = vrot.slane %v2475_v59, 4  ;;  %v2459_v50 = vshll.u32 %v7719_v62, 16  ;;  %v12564_v51 = vmov 0  ;;  %v2698_v62 = vld [vmem:[#allocation2 + $0x80] sm:$0x1] }
 0x272   : > { %2525 = vrot.lane.b32.xlu0 %v2343_v40, %s8068_s10  ;;  %v2463_v46 = vrot.slane %v2458_v58, 4  ;;  %v2326_v39 = vsel %vm9330_vm13, %v2318_v26, %v2325_v29  ;;  %v12565_v51 = vsel %vm9617_vm2, 4294967295, %v12564_v51  ;;  %v2635_v59 = vld [vmem:[#allocation2 + $0x14] sm:$0x1]  ;;  %vm12583_vm3 = vcmask 392192  }
 0x273   : > { %v2479_v49 = vsel %vm9330_vm13, %v2471_v22, %v2478_v56  ;;  %v2461_v52 = vor.u32 %v2459_v50, %v2458_v58  ;;  %12566 = vst [vmem:[#allocation37_spill] sm:$0xff] %v12565_v51  ;;  %v2652_v50 = vld [vmem:[#allocation2 + $0x30] sm:$0xf]  ;;  %vm12584_vm11 = vcmask 457728   ;;  %vm12585_vm14 = vcmask 523264  }
 0x274   : > { %vm12586_vm12 = vcmask 588800  }
 0x275   : > { %2517 = vrot.lane.b32.xlu1 %v2317_v5, %s8068_s10  ;;  %v2462_v12 = vsel %vm9330_vm13, %v2454_v19, %v2461_v52 }
 0x276   : > { %2569 = vrot.lane.b32.xlu0 %v2463_v46, %s8068_s10  ;;  %v2642_v46 = vld [vmem:[#allocation2 + $0x20] sm:$0x1] }
 0x279   : > { %2565 = vrot.lane.b32.xlu1 %v2453_v37, %s8068_s10 }
 0x27a   : > { %2573 = vrot.lane.b32.xlu0 %v2479_v49, %s8068_s10  ;;  %v2691_v49 = vld [vmem:[#allocation2 + $0x74] sm:$0x1] }
 0x27d   : > { %2575 = vrot.lane.b32.xlu1 %v2480_v48, %s8068_s10 }
 0x281   : > { %2519 = vrot.lane.b32.xlu1 %v2326_v39, %s8068_s10  ;;  %v9636_v39 = vld [vmem:[#allocation2 + $0x18] sm:$0xf] }
 0x285   : > { %2567 = vrot.lane.b32.xlu1 %v2462_v12, %s8068_s10  ;;  %v2645_v12 = vld [vmem:[#allocation2 + $0x24] sm:$0xf] }
 0x286   : > { %v2536_v43 = vpop.permute.xlu1 %2535 }
 0x287   : > { %v2695_v21 = vsel %vm9251_vm15, %v2536_v43, %v2694_v9 }
 0x288   : > { %2696 = vst [vmem:[#allocation2 + $0x78] sm:$0xf] %v2695_v21  ;;  %v2540_v54 = vpop.permute.xlu0 %2539 }
 0x289   : > { %v2699_v40 = vsel %vm9617_vm2, %v2540_v54, %v2698_v62  ;;  %v2656_v54 = vld [vmem:[#allocation2 + $0x38] sm:$0x1] }
 0x28a   : > { %2700 = vst [vmem:[#allocation2 + $0x80] sm:$0x1] %v2699_v40  ;;  %v2530_v58 = vpop.permute.xlu1 %2529 }
 0x28b   : > { %v2688_v32 = vsel %vm9251_vm15, %v2530_v58, %v2687_v30 }
 0x28c   : > { %2689 = vst [vmem:[#allocation2 + $0x6c] sm:$0xf] %v2688_v32  ;;  %v2486_v5 = vpop.permute.xlu0 %2485 }
 0x28d   : > { %v2636_v35 = vsel %vm9617_vm2, %v2486_v5, %v2635_v59 }
 0x28e   : > { %2637 = vst [vmem:[#allocation2 + $0x14] sm:$0x1] %v2636_v35  ;;  %v2492_v15 = vpop.permute.xlu1 %2491 }
 0x28f   : > { %v2643_v22 = vsel %vm9617_vm2, %v2492_v15, %v2642_v46  ;;  %v9654_v58 = vld [vmem:[#allocation2 + $0x78] sm:$0xf] }
 0x290   : > { %2644 = vst [vmem:[#allocation2 + $0x20] sm:$0x1] %v2643_v22  ;;  %v2490_v56 = vpop.permute.xlu0 %2489  ;;  %v7475_v61 = vrot.slane %v9654_v58, 9 }
 0x291   : > { %2641 = vst.msk [vmem:[#allocation2 + $0x1c] sm:$0xf] %vm12484_vm0, %v2490_v56 }
 0x292   : > { %v2484_v37 = vpop.permute.xlu1 %2483 }
 0x293   : > { %2632 = vst.msk [vmem:[#allocation2 + $0x10] sm:$0xf] %vm12484_vm0, %v2484_v37  ;;  %v9675_v37 = vld [vmem:[#allocation2 + $0xc] sm:$0xf] }
 0x294   : > { %v2534_v25 = vpop.permute.xlu0 %2533 }
 0x295   : > { %v2692_v48 = vsel %vm9617_vm2, %v2534_v25, %v2691_v49  ;;  %v2708_v49 = vld [vmem:[#allocation2 + $0x90] sm:$0xf]  ;;  %v9677_v25 = vld [vmem:[#allocation2 + $0x6c] sm:$0xf]  ;;  %v9705_v42 = vld [vmem:[#allocation2 + $0x14] sm:$0x1] }
 0x296   : > { %2693 = vst [vmem:[#allocation2 + $0x74] sm:$0x1] %v2692_v48  ;;  %v2532_v29 = vpop.permute.xlu1 %2531 }
 0x297   : > { %2690 = vst.msk [vmem:[#allocation2 + $0x70] sm:$0xf] %vm12484_vm0, %v2532_v29  ;;  %v9664_v46 = vld [vmem:[#allocation2 + $0x20] sm:$0x1] }
 0x298   : > { %v2538_v26 = vpop.permute.xlu0 %2537  ;;  %v9638_v19 = vld [vmem:[#allocation2 + $0x1c] sm:$0xf]  ;;  %v3248_v48 = vrot.slane %v9664_v46, 5 }
 0x299   : > { %2697 = vst.msk [vmem:[#allocation2 + $0x7c] sm:$0xf] %vm12484_vm0, %v2538_v26  ;;  %v9643_v52 = vcombine.low %v9636_v39, %v9638_v19  ;;  %v3245_v30 = vrot.slane %v9638_v19, 5 }
 0x29a   : > { %v2500_v9 = vpop.permute.xlu1 %2499  ;;  %v9666_v35 = vld [vmem:[#allocation2 + $0x10] sm:$0xf] }
 0x29b   : > { %v2653_v43 = vsel %vm9251_vm15, %v2500_v9, %v2652_v50  ;;  %3725 = vrot.lane.b32.xlu0 %v9643_v52, %s8064_s20  ;;  %3622 = vrot.lane.b32.xlu1 %v9643_v52, %s8059_s30  ;;  %v3247_v22 = vrot.slane %v3245_v30, 4  ;;  %v9682_v29 = vcombine.low %v9675_v37, %v9666_v35  ;;  %v9688_v50 = vld [vmem:[#allocation2 + $0x80] sm:$0x1] }
 0x29c   : > { %2654 = vst [vmem:[#allocation2 + $0x30] sm:$0xf] %v2653_v43  ;;  %v2494_v62 = vpop.permute.xlu0 %2493  ;;  %v7467_v43 = vrot.slane %v9636_v39, 9 }
 0x29d   : > { %v2646_v21 = vsel %vm9251_vm15, %v2494_v62, %v2645_v12  ;;  %v2712_v12 = vld [vmem:[#allocation2 + $0x98] sm:$0x1]  ;;  %v3249_v62 = vsel %vm8146_vm4, %v3247_v22, %v3248_v48  ;;  %v3304_v22 = vrot.slane %v9688_v50, 5 }
 0x29e   : > { %2647 = vst [vmem:[#allocation2 + $0x24] sm:$0xf] %v2646_v21  ;;  %v9668_v15 = vld [vmem:[#allocation2 + $0x70] sm:$0xf]  ;;  %v3246_v7 = vsel %vm8146_vm4, %v7467_v43, %v3245_v30  ;;  %v3241_v43 = vrot.slane %v9705_v42, 5 }
 0x29f   : > { %v9686_v26 = vcombine.low %v9677_v25, %v9668_v15  ;;  %v7517_v55 = vcombine.low %v3246_v7, %v3249_v62  ;;  %v3294_v24 = vrot.slane %v9668_v15, 5 }
 0x2a0   : > { %v2504_v40 = vpop.permute.xlu0 %2503  ;;  %v9656_v59 = vld [vmem:[#allocation2 + $0x7c] sm:$0xf] }
 0x2a1   : > { %v2657_v32 = vsel %vm9617_vm2, %v2504_v40, %v2656_v54  ;;  %v9662_v5 = vcombine.low %v9654_v58, %v9656_v59  ;;  %v3301_v56 = vrot.slane %v9656_v59, 5  ;;  %v3238_v54 = vrot.slane %v9666_v35, 5 }
 0x2a2   : > { %2658 = vst [vmem:[#allocation2 + $0x38] sm:$0x1] %v2657_v32 }
 0x2a3   : > { %3741 = vrot.lane.b32.xlu0 %v9662_v5, %s8064_s20  ;;  %3638 = vrot.lane.b32.xlu1 %v9662_v5, %s8059_s30  ;;  %v3303_v21 = vrot.slane %v3301_v56, 4  ;;  %v3240_v17 = vrot.slane %v3238_v54, 4 }
 0x2a6   : > { %v2548_v9 = vpop.permute.xlu1 %2547 }
 0x2a7   : > { %v2709_v40 = vsel %vm9251_vm15, %v2548_v9, %v2708_v49  ;;  %3620 = vrot.lane.b32.xlu0 %v9682_v29, %s8059_s30  ;;  %3739 = vrot.lane.b32.xlu1 %v9686_v26, %s8064_s20  ;;  %v2649_v9 = vld [vmem:[#allocation2 + $0x2c] sm:$0x1] }
 0x2a8   : > { %2710 = vst [vmem:[#allocation2 + $0x90] sm:$0xf] %v2709_v40  ;;  %v2552_v32 = vpop.permute.xlu0 %2551  ;;  %v3305_v40 = vsel %vm8146_vm4, %v3303_v21, %v3304_v22  ;;  %v7466_v22 = vrot.slane %v9675_v37, 9 }
 0x2a9   : > { %v2713_v48 = vsel %vm9617_vm2, %v2552_v32, %v2712_v12  ;;  %v3302_v12 = vsel %vm8146_vm4, %v7475_v61, %v3301_v56  ;;  %v9721_v32 = vld [vmem:[#allocation2 + $0x74] sm:$0x1] }
 0x2aa   : > { %2714 = vst [vmem:[#allocation2 + $0x98] sm:$0x1] %v2713_v48  ;;  %v2542_v49 = vpop.permute.xlu1 %2541  ;;  %v7525_v21 = vcombine.low %v3302_v12, %v3305_v40  ;;  %v3242_v48 = vsel %vm8146_vm4, %v3240_v17, %v3241_v43  ;;  %v3239_v56 = vsel %vm8146_vm4, %v7466_v22, %v3238_v54  ;;  %v7474_v17 = vrot.slane %v9677_v25, 9 }
 0x2ab   : > { %v2702_v30 = vsel %vm9251_vm15, %v2542_v49, %v2701_v6  ;;  %3636 = vrot.lane.b32.xlu0 %v9686_v26, %s8059_s30  ;;  %3692 = vrot.lane.b32.xlu1 %v7517_v55, %s8060_s8  ;;  %v3296_v49 = vrot.slane %v3294_v24, 4  ;;  %v7516_v40 = vcombine.low %v3239_v56, %v3242_v48  ;;  %v2855_v43 = vshll.u32 %v9638_v19, 16 }
 0x2ac   : > { %2703 = vst [vmem:[#allocation2 + $0x84] sm:$0xf] %v2702_v30  ;;  %v2498_v7 = vpop.permute.xlu0 %2497  ;;  %v3295_v22 = vsel %vm8146_vm4, %v7474_v17, %v3294_v24  ;;  %v2846_v56 = vshrl.u32 %v9636_v39, 16  ;;  %v9751_v17 = vld [vmem:[#allocation2 + $0x30] sm:$0xf] }
 0x2ad   : > { %v2650_v62 = vsel %vm9617_vm2, %v2498_v7, %v2649_v9  ;;  %v3297_v9 = vrot.slane %v9721_v32, 5  ;;  %v2705_v7 = vld [vmem:[#allocation2 + $0x8c] sm:$0x1] }
 0x2ae   : > { %2651 = vst [vmem:[#allocation2 + $0x2c] sm:$0x1] %v2650_v62  ;;  %v2496_v6 = vpop.permute.xlu1 %2495  ;;  %v2859_v62 = vshrl.u32 %v9638_v19, 16  ;;  %v2849_v19 = vshll.u32 %v9636_v39, 16 }
 0x2af   : > { %2648 = vst.msk [vmem:[#allocation2 + $0x28] sm:$0xf] %vm12484_vm0, %v2496_v6  ;;  %3795 = vrot.lane.b32.xlu0 %v7517_v55, %s8066_s22  ;;  %3708 = vrot.lane.b32.xlu1 %v7525_v21, %s8060_s8  ;;  %v3298_v12 = vsel %vm8146_vm4, %v3296_v49, %v3297_v9  ;;  %v2666_v6 = vld [vmem:[#allocation2 + $0x48] sm:$0xf]  ;;  %v2857_v9 = vrot.slane %v2855_v43, 5  ;;  %v2848_v43 = vrot.slane %v2846_v56, 4 }
 0x2b0   : > { %v2502_v61 = vpop.permute.xlu0 %2501  ;;  %v3051_v56 = vshrl.u32 %v9656_v59, 16 }
 0x2b1   : > { %2655 = vst.msk [vmem:[#allocation2 + $0x34] sm:$0xf] %vm12484_vm0, %v2502_v61  ;;  %v7524_v61 = vcombine.low %v3295_v22, %v3298_v12  ;;  %v2670_v12 = vld [vmem:[#allocation2 + $0x50] sm:$0x1]  ;;  %v2865_v22 = vshll.u32 %v9664_v46, 16 }
 0x2b2   : > { %v2544_v30 = vpop.permute.xlu1 %2543 }
 0x2b3   : > { %2704 = vst.msk [vmem:[#allocation2 + $0x88] sm:$0xf] %vm12484_vm0, %v2544_v30  ;;  %3589 = vrot.lane.b32.xlu0 %v7517_v55, %s8061_s11  ;;  %3587 = vrot.lane.b32.xlu1 %v7516_v40, %s8061_s11  ;;  %v2861_v30 = vrot.slane %v2859_v62, 4  ;;  %v2851_v62 = vrot.slane %v2849_v19, 5  ;;  %v9769_v19 = vld [vmem:[#allocation2 + $0x90] sm:$0xf] }
 0x2b4   : > { %v2546_v54 = vpop.permute.xlu0 %2545 }
 0x2b5   : > { %v2706_v48 = vsel %vm9617_vm2, %v2546_v54, %v2705_v7  ;;  %v2862_v54 = vor.u32 %v2861_v30, %v2857_v9  ;;  %v2867_v30 = vrot.slane %v2865_v22, 5 }
 0x2b6   : > { %2707 = vst [vmem:[#allocation2 + $0x8c] sm:$0x1] %v2706_v48  ;;  %v2512_v49 = vpop.permute.xlu1 %2511 }
 0x2b7   : > { %v2667_v55 = vsel %vm9251_vm15, %v2512_v49, %v2666_v6  ;;  %3811 = vrot.lane.b32.xlu0 %v7525_v21, %s8066_s22  ;;  %3603 = vrot.lane.b32.xlu1 %v7524_v61, %s8061_s11  ;;  %v2852_v49 = vor.u32 %v2851_v62, %v2848_v43  ;;  %v3041_v43 = vshll.u32 %v9654_v58, 16 }
 0x2b8   : > { %2668 = vst [vmem:[#allocation2 + $0x48] sm:$0xf] %v2667_v55  ;;  %v2550_v24 = vpop.permute.xlu0 %2549  ;;  %v9753_v7 = vld [vmem:[#allocation2 + $0x34] sm:$0xf]  ;;  %v2863_v55 = vrot.slane %v2862_v54, 4 }
 0x2b9   : > { %2711 = vst.msk [vmem:[#allocation2 + $0x94] sm:$0xf] %vm12484_vm0, %v2550_v24  ;;  %v9758_v39 = vcombine.low %v9751_v17, %v9753_v7  ;;  %v3047_v24 = vshll.u32 %v9656_v59, 16  ;;  %v2853_v62 = vrot.slane %v2852_v49, 4  ;;  %v3043_v8 = vrot.slane %v3041_v43, 5 }
 0x2ba   : > { %v2868_v54 = vsel %vm8189_vm5, %v2863_v55, %v2867_v30  ;;  %v9786_v49 = vld [vmem:[#allocation2 + $0x28] sm:$0xf]  ;;  %v9792_v30 = vld [vmem:[#allocation2 + $0x24] sm:$0xf] }
 0x2bb   : > { %3605 = vrot.lane.b32.xlu0 %v7525_v21, %s8061_s11  ;;  %3626 = vrot.lane.b32.xlu1 %v9758_v39, %s8059_s30  ;;  %v3049_v59 = vrot.slane %v3047_v24, 5  ;;  %v2858_v22 = vsel %vm8189_vm5, %v2853_v62, %v2857_v9  ;;  %v3057_v9 = vshll.u32 %v9688_v50, 16  ;;  %v9799_v43 = vcombine.low %v9792_v30, %v9786_v49 }
 0x2bc   : > { %v2516_v6 = vpop.permute.xlu0 %2515 }
 0x2bd   : > { %v2671_v48 = vsel %vm9617_vm2, %v2516_v6, %v2670_v12  ;;  %v3038_v12 = vshrl.u32 %v9654_v58, 16  ;;  %v3053_v6 = vrot.slane %v3051_v56, 4  ;;  %v2726_v58 = vld [vmem:[#allocation2 + $0xb0] sm:$0x1]  ;;  %v2659_v56 = vld [vmem:[#allocation2 + $0x3c] sm:$0xf] }
 0x2be   : > { %2672 = vst [vmem:[#allocation2 + $0x50] sm:$0x1] %v2671_v48  ;;  %v7501_v48 = vcombine.low %v2858_v22, %v2868_v54  ;;  %v2663_v54 = vld [vmem:[#allocation2 + $0x44] sm:$0x1] }
 0x2bf   : > { %3690 = vrot.lane.b32.xlu0 %v7516_v40, %s8060_s8  ;;  %v2722_v40 = vld [vmem:[#allocation2 + $0xa8] sm:$0xf]  ;;  %v3040_v16 = vrot.slane %v3038_v12, 4  ;;  %v3054_v10 = vor.u32 %v3053_v6, %v3049_v59 }
 0x2c0   : > { %v9771_v21 = vld [vmem:[#allocation2 + $0x94] sm:$0xf] }
 0x2c1   : > { %v9775_v46 = vcombine.low %v9769_v19, %v9771_v21  ;;  %v3044_v62 = vor.u32 %v3043_v8, %v3040_v16  ;;  %v3055_v6 = vrot.slane %v3054_v10, 4  ;;  %v2715_v16 = vld [vmem:[#allocation2 + $0x9c] sm:$0xf]  ;;  %v3059_v8 = vrot.slane %v3057_v9, 5 }
 0x2c2   : > { %v3027_v9 = vshrl.u32 %v9668_v15, 16 }
 0x2c3   : > { %12567 = vst [vmem:[#allocation38_spill] sm:$0xff] %v9775_v46  ;;  %3809 = vrot.lane.b32.xlu0 %v7524_v61, %s8066_s22  ;;  %3642 = vrot.lane.b32.xlu1 %v9775_v46, %s8059_s30 }
 0x2c6   : > { %v2560_v14 = vpop.permute.xlu1 %2559 }
 0x2c7   : > { %v2723_v55 = vsel %vm9251_vm15, %v2560_v14, %v2722_v40  ;;  %3706 = vrot.lane.b32.xlu0 %v7524_v61, %s8060_s8  ;;  %3657 = vrot.lane.b32.xlu1 %v7501_v48, %s8063_s19  ;;  %v2831_v14 = vshll.u32 %v9666_v35, 16  ;;  %v2835_v40 = vshrl.u32 %v9666_v35, 16  ;;  %v2825_v35 = vshll.u32 %v9675_v37, 16 }
 0x2c8   : > { %2724 = vst [vmem:[#allocation2 + $0xa8] sm:$0xf] %v2723_v55  ;;  %v2564_v24 = vpop.permute.xlu0 %2563  ;;  %v3045_v55 = vrot.slane %v3044_v62, 4 }
 0x2c9   : > { %v2727_v12 = vsel %vm9617_vm2, %v2564_v24, %v2726_v58  ;;  %v2822_v58 = vshrl.u32 %v9675_v37, 16  ;;  %v9813_v24 = vrot.slane %v2831_v14, 5 }
 0x2ca   : > { %2728 = vst [vmem:[#allocation2 + $0xb0] sm:$0x1] %v2727_v12  ;;  %v2506_v61 = vpop.permute.xlu1 %2505  ;;  %v3060_v12 = vsel %vm8189_vm5, %v3055_v6, %v3059_v8  ;;  %v3050_v62 = vsel %vm8189_vm5, %v3045_v55, %v3049_v59  ;;  %v2841_v55 = vshll.u32 %v9705_v42, 16 }
 0x2cb   : > { %v2660_v22 = vsel %vm9251_vm15, %v2506_v61, %v2659_v56  ;;  %3729 = vrot.lane.b32.xlu0 %v9758_v39, %s8064_s20  ;;  %3727 = vrot.lane.b32.xlu1 %v9799_v43, %s8064_s20  ;;  %v2837_v61 = vrot.slane %v2835_v40, 4  ;;  %v7509_v14 = vcombine.low %v3050_v62, %v3060_v12  ;;  %v2824_v6 = vrot.slane %v2822_v58, 4  ;;  %v9835_v58 = vld [vmem:[#allocation2 + $0x84] sm:$0xf]  ;;  %v2680_v62 = vld [vmem:[#allocation2 + $0x60] sm:$0xf] }
 0x2cc   : > { %2661 = vst [vmem:[#allocation2 + $0x3c] sm:$0xf] %v2660_v22  ;;  %v2510_v50 = vpop.permute.xlu0 %2509  ;;  %v3023_v22 = vshll.u32 %v9668_v15, 16  ;;  %v2827_v40 = vrot.slane %v2825_v35, 5  ;;  %v3014_v15 = vshrl.u32 %v9677_v25, 16 }
 0x2cd   : > { %v2664_v10 = vsel %vm9617_vm2, %v2510_v50, %v2663_v54  ;;  %v2719_v54 = vld [vmem:[#allocation2 + $0xa4] sm:$0x1]  ;;  %v2838_v8 = vor.u32 %v2837_v61, %v9813_v24 }
 0x2ce   : > { %2665 = vst [vmem:[#allocation2 + $0x44] sm:$0x1] %v2664_v10  ;;  %v2554_v56 = vpop.permute.xlu1 %2553  ;;  %v3017_v10 = vshll.u32 %v9677_v25, 16  ;;  %v2828_v25 = vor.u32 %v2827_v40, %v2824_v6  ;;  %v2684_v40 = vld [vmem:[#allocation2 + $0x68] sm:$0x1] }
 0x2cf   : > { %v2716_v20 = vsel %vm9251_vm15, %v2554_v56, %v2715_v16  ;;  %3745 = vrot.lane.b32.xlu0 %v9775_v46, %s8064_s20  ;;  %3509 = vrot.lane.b32.xlu1 %v7501_v48, %s8062_s12  ;;  %v9828_v16 = vld [vmem:[#allocation2 + $0x88] sm:$0xf]  ;;  %v3029_v56 = vrot.slane %v3027_v9, 4  ;;  %v3016_v9 = vrot.slane %v3014_v15, 4 }
 0x2d0   : > { %2717 = vst [vmem:[#allocation2 + $0x9c] sm:$0xf] %v2716_v20  ;;  %v2514_v37 = vpop.permute.xlu0 %2513  ;;  %v3025_v20 = vrot.slane %v3023_v22, 5  ;;  %v9842_v12 = vcombine.low %v9835_v58, %v9828_v16  ;;  %v2839_v22 = vrot.slane %v2838_v8, 4  ;;  %v2829_v15 = vrot.slane %v2828_v25, 4 }
 0x2d1   : > { %2669 = vst.msk [vmem:[#allocation2 + $0x4c] sm:$0xf] %vm12484_vm0, %v2514_v37 }
 0x2d2   : > { %v2508_v50 = vpop.permute.xlu1 %2507  ;;  %12568 = vst [vmem:[#allocation39_spill] sm:$0xff] %v9842_v12  ;;  %v3030_v37 = vor.u32 %v3029_v56, %v3025_v20 }
 0x2d3   : > { %2662 = vst.msk [vmem:[#allocation2 + $0x40] sm:$0xf] %vm12484_vm0, %v2508_v50  ;;  %3760 = vrot.lane.b32.xlu0 %v7501_v48, %s8065_s21  ;;  %3673 = vrot.lane.b32.xlu1 %v7509_v14, %s8063_s19  ;;  %v3019_v48 = vrot.slane %v3017_v10, 5  ;;  %v3033_v50 = vshll.u32 %v9721_v32, 16  ;;  %v2834_v32 = vsel %vm8189_vm5, %v2829_v15, %v9813_v24 }
 0x2d4   : > { %v2558_v59 = vpop.permute.xlu0 %2557  ;;  %v3031_v56 = vrot.slane %v3030_v37, 4  ;;  %v3259_v37 = vrot.slane %v9753_v7, 5 }
 0x2d5   : > { %v2720_v35 = vsel %vm9617_vm2, %v2558_v59, %v2719_v54  ;;  %v2843_v54 = vrot.slane %v2841_v55, 5  ;;  %v3020_v10 = vor.u32 %v3019_v48, %v3016_v9 }
 0x2d6   : > { %2721 = vst [vmem:[#allocation2 + $0xa4] sm:$0x1] %v2720_v35  ;;  %v2556_v61 = vpop.permute.xlu1 %2555  ;;  %v3035_v35 = vrot.slane %v3033_v50, 5  ;;  %v2736_v50 = vld [vmem:[#allocation2 + $0xc0] sm:$0xf] }
 0x2d7   : > { %2718 = vst.msk [vmem:[#allocation2 + $0xa0] sm:$0xf] %vm12484_vm0, %v2556_v61  ;;  %3624 = vrot.lane.b32.xlu0 %v9799_v43, %s8059_s30  ;;  %3743 = vrot.lane.b32.xlu1 %v9842_v12, %s8064_s20  ;;  %v2844_v8 = vsel %vm8189_vm5, %v2839_v22, %v2843_v54  ;;  %v2677_v22 = vld [vmem:[#allocation2 + $0x5c] sm:$0x1]  ;;  %v3021_v9 = vrot.slane %v3020_v10, 4 }
 0x2d8   : > { %v2562_v42 = vpop.permute.xlu0 %2561  ;;  %v7500_v61 = vcombine.low %v2834_v32, %v2844_v8  ;;  %v3036_v48 = vsel %vm8189_vm5, %v3031_v56, %v3035_v35  ;;  %v9872_v54 = vld [vmem:[#allocation2 + $0x38] sm:$0x1]  ;;  %v2733_v32 = vld [vmem:[#allocation2 + $0xbc] sm:$0x1]  ;;  %v7469_v35 = vrot.slane %v9751_v17, 9 }
 0x2d9   : > { %2725 = vst.msk [vmem:[#allocation2 + $0xac] sm:$0xf] %vm12484_vm0, %v2562_v42  ;;  %v3026_v24 = vsel %vm8189_vm5, %v3021_v9, %v3025_v20  ;;  %v3262_v10 = vrot.slane %v9872_v54, 5  ;;  %v9881_v56 = vld [vmem:[#allocation2 + $0x98] sm:$0x1] }
 0x2da   : > { %v2524_v6 = vpop.permute.xlu1 %2523 }
 0x2db   : > { %v2681_v59 = vsel %vm9251_vm15, %v2524_v6, %v2680_v62  ;;  %3776 = vrot.lane.b32.xlu0 %v7509_v14, %s8065_s21  ;;  %3525 = vrot.lane.b32.xlu1 %v7509_v14, %s8062_s12  ;;  %v7508_v62 = vcombine.low %v3026_v24, %v3036_v48  ;;  %v3261_v6 = vrot.slane %v3259_v37, 4  ;;  %v3260_v48 = vsel %vm8146_vm4, %v7469_v35, %v3259_v37 }
 0x2dc   : > { %2682 = vst [vmem:[#allocation2 + $0x60] sm:$0xf] %v2681_v59  ;;  %v2528_v55 = vpop.permute.xlu0 %2527  ;;  %v3252_v59 = vrot.slane %v9786_v49, 5  ;;  %v3318_v24 = vrot.slane %v9881_v56, 5  ;;  %v2907_v35 = vshrl.u32 %v9753_v7, 16 }
 0x2dd   : > { %v2685_v25 = vsel %vm9617_vm2, %v2528_v55, %v2684_v40  ;;  %v3315_v40 = vrot.slane %v9771_v21, 5  ;;  %v2673_v55 = vld [vmem:[#allocation2 + $0x54] sm:$0xf] }
 0x2de   : > { %2686 = vst [vmem:[#allocation2 + $0x68] sm:$0x1] %v2685_v25  ;;  %v3263_v25 = vsel %vm8146_vm4, %v3261_v6, %v3262_v10  ;;  %v3308_v10 = vrot.slane %v9828_v16, 5  ;;  %v2909_v1 = vrot.slane %v2907_v35, 4 }
 0x2df   : > { %3640 = vrot.lane.b32.xlu0 %v9842_v12, %s8059_s30  ;;  %3507 = vrot.lane.b32.xlu1 %v7500_v61, %s8062_s12 }
 0x2e0   : > { %v2522_v14 = vpop.permute.xlu0 %2521  ;;  %v3310_v38 = vrot.slane %v3308_v10, 4 }
 0x2e1   : > { %v2678_v42 = vsel %vm9617_vm2, %v2522_v14, %v2677_v22  ;;  %v7477_v14 = vrot.slane %v9769_v19, 9 }
 0x2e2   : > { %2679 = vst [vmem:[#allocation2 + $0x5c] sm:$0x1] %v2678_v42  ;;  %v9893_v42 = vld [vmem:[#allocation2 + $0x2c] sm:$0x1] }
 0x2e3   : > { %3655 = vrot.lane.b32.xlu0 %v7500_v61, %s8063_s19  ;;  %3774 = vrot.lane.b32.xlu1 %v7508_v62, %s8065_s21  ;;  %v2572_v15 = vpop.permute.xlu1 %2571  ;;  %v3317_v61 = vrot.slane %v3315_v40, 4 }
 0x2e4   : > { %v2526_v8 = vpop.permute.xlu0 %2525  ;;  %v2737_v20 = vsel %vm9251_vm15, %v2572_v15, %v2736_v50  ;;  %v7519_v15 = vcombine.low %v3260_v48, %v3263_v25  ;;  %v2897_v48 = vshll.u32 %v9751_v17, 16 }
 0x2e5   : > { %2683 = vst.msk [vmem:[#allocation2 + $0x64] sm:$0xf] %vm12484_vm0, %v2526_v8  ;;  %2738 = vst [vmem:[#allocation2 + $0xc0] sm:$0xf] %v2737_v20  ;;  %v3254_v8 = vrot.slane %v3252_v59, 4  ;;  %v3319_v37 = vsel %vm8146_vm4, %v3317_v61, %v3318_v24  ;;  %v2903_v20 = vshll.u32 %v9753_v7, 16 }
 0x2e6   : > { %v2894_v61 = vshrl.u32 %v9751_v17, 16 }
 0x2e7   : > { %3671 = vrot.lane.b32.xlu0 %v7508_v62, %s8063_s19  ;;  %3523 = vrot.lane.b32.xlu1 %v7508_v62, %s8062_s12  ;;  %v2518_v22 = vpop.permute.xlu1 %2517  ;;  %v2729_v62 = vld [vmem:[#allocation2 + $0xb4] sm:$0xf] }
 0x2e8   : > { %v2570_v9 = vpop.permute.xlu0 %2569  ;;  %v2674_v50 = vsel %vm9251_vm15, %v2518_v22, %v2673_v55  ;;  %v3255_v55 = vrot.slane %v9893_v42, 5 }
 0x2e9   : > { %v2734_v6 = vsel %vm9617_vm2, %v2570_v9, %v2733_v32  ;;  %2675 = vst [vmem:[#allocation2 + $0x54] sm:$0xf] %v2674_v50  ;;  %v9907_v32 = vld [vmem:[#allocation2 + $0x8c] sm:$0x1]  ;;  %v3316_v9 = vsel %vm8146_vm4, %v7477_v14, %v3315_v40  ;;  %v7468_v50 = vrot.slane %v9792_v30, 9  ;;  %v2905_v14 = vrot.slane %v2903_v20, 5 }
 0x2ea   : > { %2735 = vst [vmem:[#allocation2 + $0xbc] sm:$0x1] %v2734_v6  ;;  %v9916_v24 = vcombine.low %v3316_v9, %v3319_v37  ;;  %v3256_v6 = vsel %vm8146_vm4, %v3254_v8, %v3255_v55  ;;  %v3311_v40 = vrot.slane %v9907_v32, 5  ;;  %v2896_v37 = vrot.slane %v2894_v61, 4 }
 0x2eb   : > { %3799 = vrot.lane.b32.xlu0 %v7519_v15, %s8066_s22  ;;  %3696 = vrot.lane.b32.xlu1 %v7519_v15, %s8060_s8  ;;  %v2566_v25 = vpop.permute.xlu1 %2565  ;;  %v2913_v61 = vshll.u32 %v9872_v54, 16  ;;  %v8016_v54 = vld [vmem:[%s12431_s3 + $0x8] sm:$0xff]  }
 0x2ec   : > { %v2574_v22 = vpop.permute.xlu0 %2573  ;;  %v2730_v7 = vsel %vm9251_vm15, %v2566_v25, %v2729_v62  ;;  %v3253_v62 = vsel %vm8146_vm4, %v7468_v50, %v3252_v59  ;;  %v2899_v25 = vrot.slane %v2897_v48, 5  ;;  %v3312_v20 = vsel %vm8146_vm4, %v3310_v38, %v3311_v40  ;;  %v8014_v59 = vld [vmem:[%s12431_s3] sm:$0xff]  }
 0x2ed   : > { %2739 = vst.msk [vmem:[#allocation2 + $0xc4] sm:$0xf] %vm12484_vm0, %v2574_v22  ;;  %2731 = vst [vmem:[#allocation2 + $0xb4] sm:$0xf] %v2730_v7  ;;  %v7518_v55 = vcombine.low %v3253_v62, %v3256_v6  ;;  %v7476_v22 = vrot.slane %v9835_v58, 9  ;;  %7859 = vmatprep.subr.bf16.mxu1 %v8014_v59  ;;  %v3095_v7 = vshll.u32 %v9771_v21, 16 }
 0x2ee   : > { %v2900_v9 = vor.u32 %v2899_v25, %v2896_v37  ;;  %v3099_v50 = vshrl.u32 %v9771_v21, 16  ;;  %7860 = vmatpush3.bf16.msra.mxu1 %v8014_v59  ;;  %v9950_v6 = vld [vmem:[#allocation2 + $0x48] sm:$0xf]  ;;  %v3086_v21 = vshrl.u32 %v9769_v19, 16  ;;  %v3089_v37 = vshll.u32 %v9769_v19, 16  ;;  %v8017_v19 = vld [vmem:[%s12431_s3 + $0x10] sm:$0xff]  }
 0x2ef   : > { %3593 = vrot.lane.b32.xlu0 %v7519_v15, %s8061_s11  ;;  %3712 = vrot.lane.b32.xlu1 %v9916_v24, %s8060_s8  ;;  %v2576_v17 = vpop.permute.xlu1 %2575  ;;  %v2910_v15 = vor.u32 %v2909_v1, %v2905_v14  ;;  %v9941_v1 = vld [vmem:[#allocation2 + $0x4c] sm:$0xf]  ;;  %v2879_v25 = vshll.u32 %v9786_v49, 16  ;;  %v2870_v59 = vshrl.u32 %v9792_v30, 16 }
 0x2f0   : > { %v2741_v8 = vsel %vm9617_vm2, %v2576_v17, %v2740_v44  ;;  %v3309_v44 = vsel %vm8146_vm4, %v7476_v22, %v3308_v10  ;;  %v2901_v40 = vrot.slane %v2900_v9, 4  ;;  %v2915_v17 = vrot.slane %v2913_v61, 5  ;;  %7861 = vmatprep.subr.bf16.mxu1 %v8016_v54 }
 0x2f1   : > { %2742 = vst [vmem:[#allocation2 + $0xc8] sm:$0x1] %v2741_v8  ;;  %v7526_v48 = vcombine.low %v3309_v44, %v3312_v20  ;;  %v2911_v38 = vrot.slane %v2910_v15, 4  ;;  %v9955_v62 = vcombine.low %v9950_v6, %v9941_v1  ;;  %v3101_v22 = vrot.slane %v3099_v50, 4 }
 0x2f2   : > { %v2883_v20 = vshrl.u32 %v9786_v49, 16  ;;  %7862 = vmatpush3.bf16.msra.mxu1 %v8016_v54  ;;  %v2906_v15 = vsel %vm8189_vm5, %v2901_v40, %v2905_v14  ;;  %v3088_v9 = vrot.slane %v3086_v21, 4  ;;  %v3091_v49 = vrot.slane %v3089_v37, 5  ;;  %v9982_v14 = vld [vmem:[#allocation2 + $0x3c] sm:$0xf] }
 0x2f3   : > { %3797 = vrot.lane.b32.xlu0 %v7518_v55, %s8066_s22  ;;  %3591 = vrot.lane.b32.xlu1 %v7518_v55, %s8061_s11  ;;  %v2520_v35 = vpop.permute.xlu1 %2519  ;;  %v2916_v8 = vsel %vm8189_vm5, %v2911_v38, %v2915_v17  ;;  %v2881_v61 = vrot.slane %v2879_v25, 5  ;;  %v9973_v38 = vld [vmem:[#allocation2 + $0x40] sm:$0xf]  ;;  %v3071_v54 = vshll.u32 %v9828_v16, 16  ;;  %v3105_v40 = vshll.u32 %v9881_v56, 16 }
 0x2f4   : > { %2676 = vst.msk [vmem:[#allocation2 + $0x58] sm:$0xf] %vm12484_vm0, %v2520_v35  ;;  %v2873_v35 = vshll.u32 %v9792_v30, 16  ;;  %v7503_v44 = vcombine.low %v2906_v15, %v2916_v8  ;;  %7863 = vmatprep.subr.bf16.mxu1 %v8017_v19  ;;  %v2885_v50 = vrot.slane %v2883_v20, 4  ;;  %v8018_v30 = vld [vmem:[%s12431_s3 + $0x18] sm:$0xff]   ;;  %v2872_v17 = vrot.slane %v2870_v59, 4 }
 0x2f5   : > { %v9987_v37 = vcombine.low %v9982_v14, %v9973_v38  ;;  %v3062_v25 = vshrl.u32 %v9835_v58, 16  ;;  %v3073_v20 = vrot.slane %v3071_v54, 5  ;;  %v3107_v56 = vrot.slane %v3105_v40, 5  ;;  %v8019_v59 = vld [vmem:[%s12431_s3 + $0x20] ss:$0 sps:$4 sm:$0xff]  }
 0x2f6   : > { %7864 = vmatpush3.bf16.msra.mxu1 %v8017_v19  ;;  %v2875_v21 = vrot.slane %v2873_v35, 5  ;;  %v2889_v15 = vshll.u32 %v9893_v42, 16  ;;  %v4168_v42 = vsel %vm12483_vm6, %v8019_v59, 0  ;;  %v2927_v27 = vshll.u32 %v9973_v38, 16 }
 0x2f7   : > { %3694 = vrot.lane.b32.xlu0 %v7518_v55, %s8060_s8  ;;  %3607 = vrot.lane.b32.xlu1 %v7526_v48, %s8061_s11  ;;  %v2568_v10 = vpop.permute.xlu1 %2567  ;;  %v3097_v55 = vrot.slane %v3095_v7, 5 }
 0x2f8   : > { %2732 = vst.msk [vmem:[#allocation2 + $0xb8] sm:$0xf] %vm12484_vm0, %v2568_v10  ;;  %v3075_v10 = vshrl.u32 %v9828_v16, 16  ;;  %v3092_v16 = vor.u32 %v3091_v49, %v3088_v9  ;;  %7865 = vmatprep.subr.bf16.mxu1 %v8018_v30  ;;  %v2876_v35 = vor.u32 %v2875_v21, %v2872_v17  ;;  %v3064_v9 = vrot.slane %v3062_v25, 4  ;;  %v10012_v25 = vld [vmem:[#allocation2 + $0xa0] sm:$0xf] }
 0x2f9   : > { %v3102_v7 = vor.u32 %v3101_v22, %v3097_v55  ;;  %v2886_v22 = vor.u32 %v2885_v50, %v2881_v61  ;;  %v2891_v40 = vrot.slane %v2889_v15, 5  ;;  %v2763_v15 = vld [vmem:[#allocation2 + $0x50] sm:$0x1]  ;;  %vm12606_vm0 = vcmask 588800  }
 0x2fa   : > { %v3077_v19 = vrot.slane %v3075_v10, 4  ;;  %7866 = vmatpush3.bf16.msra.mxu1 %v8018_v30  ;;  %v3081_v10 = vshll.u32 %v9907_v32, 16  ;;  %v2877_v21 = vrot.slane %v2876_v35, 4 }
 0x2fb   : > { %3813 = vrot.lane.b32.xlu0 %v7526_v48, %s8066_s22  ;;  %3630 = vrot.lane.b32.xlu1 %v9955_v62, %s8059_s30  ;;  %v3103_v8 = vrot.slane %v3102_v7, 4  ;;  %v2887_v50 = vrot.slane %v2886_v22, 4  ;;  %v10021_v22 = vld [vmem:[#allocation2 + $0x9c] sm:$0xf] }
 0x2fc   : > { %v3078_v54 = vor.u32 %v3077_v19, %v3073_v20  ;;  %7955 = vmatprep.subr.msk.bf16.mxu1 %vm12483_vm6, %v8019_v59 }
 0x2fd   : > { %v3108_v7 = vsel %vm8189_vm5, %v3103_v8, %v3107_v56  ;;  %v2892_v32 = vsel %vm8189_vm5, %v2887_v50, %v2891_v40  ;;  %v3083_v8 = vrot.slane %v3081_v10, 5  ;;  %v10025_v56 = vcombine.low %v10021_v22, %v10012_v25 }
 0x2fe   : > { %7868 = vmatpush3.bf16.msra.mxu1 %v4168_v42  ;;  %v3266_v42 = vrot.slane %v9973_v38, 5 }
 0x2ff   : > { %3710 = vrot.lane.b32.xlu0 %v7526_v48, %s8060_s8  ;;  %3661 = vrot.lane.b32.xlu1 %v7503_v44, %s8063_s19  ;;  %v3065_v48 = vshll.u32 %v9835_v58, 16  ;;  %v3093_v58 = vrot.slane %v3092_v16, 4  ;;  %12569 = vst [vmem:[#allocation40_spill] sm:$0xff] %v10025_v56 }
 0x301   : > { %v3067_v49 = vrot.slane %v3065_v48, 5  ;;  %v3098_v30 = vsel %vm8189_vm5, %v3093_v58, %v3097_v55  ;;  %v3079_v48 = vrot.slane %v3078_v54, 4  ;;  %v2882_v55 = vsel %vm8189_vm5, %v2877_v21, %v2881_v61 }
 0x302   : > { %v10008_v17 = vcombine.low %v3098_v30, %v3108_v7  ;;  %v7502_v19 = vcombine.low %v2882_v55, %v2892_v32  ;;  %v7471_v54 = vrot.slane %v9950_v6, 9  ;;  %v3268_v32 = vrot.slane %v3266_v42, 4 }
 0x303   : > { %3733 = vrot.lane.b32.xlu0 %v9955_v62, %s8064_s20  ;;  %3731 = vrot.lane.b32.xlu1 %v9987_v37, %s8064_s20  ;;  %v3068_v16 = vor.u32 %v3067_v49, %v3064_v9  ;;  %v3084_v58 = vsel %vm8189_vm5, %v3079_v48, %v3083_v8  ;;  %v3276_v9 = vrot.slane %v2763_v15, 5  ;;  %v2951_v48 = vshll.u32 %v9941_v1, 16 }
 0x304   : > { %v2955_v8 = vshrl.u32 %v9941_v1, 16 }
 0x305   : > { %v3069_v59 = vrot.slane %v3068_v16, 4  ;;  %v10050_v16 = vld [vmem:[#allocation2 + $0x44] sm:$0x1] }
 0x306   : > { %v3269_v55 = vrot.slane %v10050_v16, 5 }
 0x307   : > { %3764 = vrot.lane.b32.xlu0 %v7503_v44, %s8065_s21  ;;  %3513 = vrot.lane.b32.xlu1 %v7503_v44, %s8062_s12  ;;  %v3273_v44 = vrot.slane %v9941_v1, 5  ;;  %v3074_v61 = vsel %vm8189_vm5, %v3069_v59, %v3073_v20  ;;  %v2953_v1 = vrot.slane %v2951_v48, 5  ;;  %v2961_v48 = vshll.u32 %v2763_v15, 16 }
 0x308   : > { %v7510_v50 = vcombine.low %v3074_v61, %v3084_v58  ;;  %v2942_v58 = vshrl.u32 %v9950_v6, 16  ;;  %v7470_v61 = vrot.slane %v9982_v14, 9 }
 0x309   : > { %v3275_v35 = vrot.slane %v3273_v44, 4  ;;  %v3274_v20 = vsel %vm8146_vm4, %v7471_v54, %v3273_v44  ;;  %v2957_v54 = vrot.slane %v2955_v8, 4  ;;  %v2963_v15 = vrot.slane %v2961_v48, 5 }
 0x30a   : > { %v2937_v48 = vshll.u32 %v10050_v16, 16  ;;  %v2769_v16 = vld [vmem:[#allocation2 + $0x68] sm:$0x1] }
 0x30b   : > { %3628 = vrot.lane.b32.xlu0 %v9987_v37, %s8059_s30  ;;  %3677 = vrot.lane.b32.xlu1 %v10008_v17, %s8063_s19  ;;  %v3277_v10 = vsel %vm8146_vm4, %v3275_v35, %v3276_v9  ;;  %v2945_v35 = vshll.u32 %v9950_v6, 16  ;;  %v3270_v9 = vsel %vm8146_vm4, %v3268_v32, %v3269_v55  ;;  %v2944_v6 = vrot.slane %v2942_v58, 4 }
 0x30c   : > { %v7521_v21 = vcombine.low %v3274_v20, %v3277_v10  ;;  %v2958_v31 = vor.u32 %v2957_v54, %v2953_v1  ;;  %v2931_v32 = vshrl.u32 %v9973_v38, 16  ;;  %v2929_v54 = vrot.slane %v2927_v27, 5  ;;  %v10086_v38 = vld [vmem:[#allocation2 + $0x60] sm:$0xf] }
 0x30d   : > { %v10034_v49 = vpop.permute.xlu1 %3622  ;;  %v10036_v7 = vpop.permute.xlu0 %3725  ;;  %v2947_v60 = vrot.slane %v2945_v35, 5  ;;  %v2921_v35 = vshll.u32 %v9982_v14, 16  ;;  %v7473_v0 = vrot.slane %v10086_v38, 9  ;;  %v2993_v34 = vshll.u32 %v10086_v38, 16 }
 0x30e   : > { %v2959_v58 = vrot.slane %v2958_v31, 4 }
 0x30f   : > { %3659 = vrot.lane.b32.xlu0 %v7502_v19, %s8063_s19  ;;  %3747 = vrot.lane.b32.xlu1 %v10025_v56, %s8064_s20  ;;  %v2948_v55 = vor.u32 %v2947_v60, %v2944_v6 }
 0x310   : > { %v2964_v31 = vsel %vm8189_vm5, %v2959_v58, %v2963_v15 }
 0x311   : > { %v2949_v6 = vrot.slane %v2948_v55, 4  ;;  %v2765_v55 = vld [vmem:[#allocation2 + $0x58] sm:$0xf] }
 0x312   : > { %v2975_v2 = vshll.u32 %v2765_v55, 16  ;;  %v2979_v51 = vshrl.u32 %v2765_v55, 16 }
 0x313   : > { %3675 = vrot.lane.b32.xlu0 %v7510_v50, %s8063_s19  ;;  %3762 = vrot.lane.b32.xlu1 %v7502_v19, %s8065_s21 }
 0x315   : > { %v10046_v30 = vpop.permute.xlu1 %3638  ;;  %v10048_v40 = vpop.permute.xlu0 %3741 }
 0x317   : > { %3511 = vrot.lane.b32.xlu1 %v7502_v19, %s8062_s12  ;;  %3803 = vrot.lane.b32.xlu0 %v7521_v21, %s8066_s22  ;;  %v3267_v19 = vsel %vm8146_vm4, %v7470_v61, %v3266_v42  ;;  %v2918_v61 = vshrl.u32 %v9982_v14, 16  ;;  %v2923_v14 = vrot.slane %v2921_v35, 5  ;;  %v2939_v35 = vrot.slane %v2937_v48, 5 }
 0x318   : > { %v7520_v57 = vcombine.low %v3267_v19, %v3270_v9  ;;  %v2768_v9 = vld [vmem:[#allocation2 + $0x64] sm:$0xf]  ;;  %v2933_v19 = vrot.slane %v2931_v32, 4 }
 0x319   : > { %v10057_v59 = vpop.permute.xlu1 %3739  ;;  %v10059_v44 = vpop.permute.xlu0 %3620  ;;  %v10093_v60 = vcombine.low %v10086_v38, %v2768_v9  ;;  %v2920_v27 = vrot.slane %v2918_v61, 4  ;;  %v3287_v58 = vrot.slane %v2768_v9, 5  ;;  %v2999_v3 = vshll.u32 %v2768_v9, 16 }
 0x31a   : > { %12570 = vst [vmem:[#allocation41_spill] sm:$0xff] %v10057_v59  ;;  %v2934_v32 = vor.u32 %v2933_v19, %v2929_v54 }
 0x31b   : > { %3778 = vrot.lane.b32.xlu1 %v7510_v50, %s8065_s21  ;;  %3597 = vrot.lane.b32.xlu0 %v7521_v21, %s8061_s11  ;;  %v2924_v36 = vor.u32 %v2923_v14, %v2920_v27  ;;  %v3290_v14 = vrot.slane %v2769_v16, 5 }
 0x31c   : > { %v2935_v45 = vrot.slane %v2934_v32, 4 }
 0x31d   : > { %v10070_v10 = vpop.permute.xlu1 %3692  ;;  %v10072_v20 = vpop.permute.xlu0 %3636  ;;  %v2925_v15 = vrot.slane %v2924_v36, 4  ;;  %v3003_v36 = vshrl.u32 %v2768_v9, 16 }
 0x31f   : > { %3527 = vrot.lane.b32.xlu1 %v7510_v50, %s8062_s12  ;;  %3801 = vrot.lane.b32.xlu0 %v7520_v57, %s8066_s22  ;;  %v2930_v27 = vsel %vm8189_vm5, %v2925_v15, %v2929_v54  ;;  %v3288_v54 = vsel %vm8146_vm4, %v7473_v0, %v3287_v58  ;;  %v2990_v15 = vshrl.u32 %v10086_v38, 16 }
 0x321   : > { %v10078_v8 = vpop.permute.xlu1 %3708  ;;  %v10080_v42 = vpop.permute.xlu0 %3795 }
 0x322   : > { %12571 = vst [vmem:[#allocation42_spill] sm:$0xff] %v10078_v8 }
 0x323   : > { %3698 = vrot.lane.b32.xlu0 %v7520_v57, %s8060_s8  ;;  %3700 = vrot.lane.b32.xlu1 %v7521_v21, %s8060_s8  ;;  %v2954_v21 = vsel %vm8189_vm5, %v2949_v6, %v2953_v1  ;;  %v2940_v6 = vsel %vm8189_vm5, %v2935_v45, %v2939_v35  ;;  %v3280_v35 = vrot.slane %v2765_v55, 5 }
 0x324   : > { %v7505_v41 = vcombine.low %v2954_v21, %v2964_v31  ;;  %v3289_v31 = vrot.slane %v3287_v58, 4  ;;  %v7504_v48 = vcombine.low %v2930_v27, %v2940_v6  ;;  %v2766_v27 = vld [vmem:[#allocation2 + $0x5c] sm:$0x1]  ;;  %v2992_v58 = vrot.slane %v2990_v15, 4 }
 0x325   : > { %v10088_v50 = vpop.permute.xlu1 %3587  ;;  %v10090_v18 = vpop.permute.xlu0 %3589  ;;  %v3282_v4 = vrot.slane %v3280_v35, 4  ;;  %v3283_v0 = vrot.slane %v2766_v27, 5  ;;  %v3009_v15 = vshll.u32 %v2769_v16, 16 }
 0x326   : > { %v3291_v45 = vsel %vm8146_vm4, %v3289_v31, %v3290_v14  ;;  %v3001_v31 = vrot.slane %v2999_v3, 5  ;;  %v3005_v14 = vrot.slane %v3003_v36, 4  ;;  %v2977_v36 = vrot.slane %v2975_v2, 5 }
 0x327   : > { %3595 = vrot.lane.b32.xlu1 %v7520_v57, %s8061_s11  ;;  %3737 = vrot.lane.b32.xlu0 %v10093_v60, %s8064_s20  ;;  %v2764_v57 = vld [vmem:[#allocation2 + $0x54] sm:$0xf]  ;;  %v7523_v9 = vcombine.low %v3288_v54, %v3291_v45  ;;  %v2995_v45 = vrot.slane %v2993_v34, 5  ;;  %v3284_v3 = vsel %vm8146_vm4, %v3282_v4, %v3283_v0  ;;  %v3011_v2 = vrot.slane %v3009_v15, 5 }
 0x328   : > { %v10112_v1 = vcombine.low %v2764_v57, %v2765_v55  ;;  %v7472_v46 = vrot.slane %v2764_v57, 9  ;;  %v3006_v54 = vor.u32 %v3005_v14, %v3001_v31  ;;  %v2969_v38 = vshll.u32 %v2764_v57, 16 }
 0x329   : > { %v10103_v33 = vpop.permute.xlu0 %3811  ;;  %v10105_v61 = vpop.permute.xlu1 %3603  ;;  %v2981_v55 = vrot.slane %v2979_v51, 4  ;;  %v2996_v14 = vor.u32 %v2995_v45, %v2992_v58  ;;  %v2985_v51 = vshll.u32 %v2766_v27, 16 }
 0x32a   : > { %12572 = vst [vmem:[#allocation43_spill] sm:$0xff] %v10103_v33  ;;  %v2971_v4 = vrot.slane %v2969_v38, 5 }
 0x32b   : > { %3768 = vrot.lane.b32.xlu0 %v7505_v41, %s8065_s21  ;;  %3634 = vrot.lane.b32.xlu1 %v10093_v60, %s8059_s30  ;;  %v2997_v16 = vrot.slane %v2996_v14, 4  ;;  %v3110_v14 = vshrl.u32 %v10021_v22, 16 }
 0x32d   : > { %v10110_v19 = vpop.permute.xlu0 %3605  ;;  %v10121_v32 = vpop.permute.xlu1 %3626 }
 0x32e   : > { %12573 = vst [vmem:[#allocation44_spill] sm:$0xff] %v10110_v19 }
 0x32f   : > { %3632 = vrot.lane.b32.xlu0 %v10112_v1, %s8059_s30  ;;  %3665 = vrot.lane.b32.xlu1 %v7505_v41, %s8063_s19 }
 0x331   : > { %v10123_v21 = vpop.permute.xlu0 %3690 }
 0x333   : > { %3663 = vrot.lane.b32.xlu0 %v7504_v48, %s8063_s19  ;;  %3735 = vrot.lane.b32.xlu1 %v10112_v1, %s8064_s20 }
 0x335   : > { %v10134_v28 = vpop.permute.xlu1 %3642  ;;  %v10136_v6 = vpop.permute.xlu0 %3809 }
 0x336   : > { %12574 = vst [vmem:[#allocation45_spill] sm:$0xff] %v10134_v28  ;;  %12575 = vst [vmem:[#allocation46_spill] sm:$0xff] %v10136_v6  ;;  %v2966_v28 = vshrl.u32 %v2764_v57, 16  ;;  %v3007_v6 = vrot.slane %v3006_v54, 4  ;;  %v2982_v57 = vor.u32 %v2981_v55, %v2977_v36 }
 0x337   : > { %3517 = vrot.lane.b32.xlu1 %v7505_v41, %s8062_s12  ;;  %3807 = vrot.lane.b32.xlu0 %v7523_v9, %s8066_s22  ;;  %v3281_v41 = vsel %vm8146_vm4, %v7472_v46, %v3280_v35 }
 0x338   : > { %v7522_v34 = vcombine.low %v3281_v41, %v3284_v3  ;;  %v2968_v19 = vrot.slane %v2966_v28, 4  ;;  %v3012_v35 = vsel %vm8189_vm5, %v3007_v6, %v3011_v2  ;;  %v2983_v58 = vrot.slane %v2982_v57, 4 }
 0x339   : > { %v10141_v63 = vpop.permute.xlu1 %3657  ;;  %v10143_v47 = vpop.permute.xlu0 %3706  ;;  %v3002_v28 = vsel %vm8189_vm5, %v2997_v16, %v3001_v31  ;;  %v3119_v6 = vshll.u32 %v10012_v25, 16  ;;  %v3113_v57 = vshll.u32 %v10021_v22, 16  ;;  %v8046_v16 = vld [vmem:[#allocation2 + $0x4] sm:$0xf] }
 0x33a   : > { %v2972_v3 = vor.u32 %v2971_v4, %v2968_v19  ;;  %v7507_v54 = vcombine.low %v3002_v28, %v3012_v35  ;;  %v3123_v19 = vshrl.u32 %v10012_v25, 16  ;;  %v3322_v4 = vrot.slane %v10012_v25, 5 }
 0x33b   : > { %3766 = vrot.lane.b32.xlu1 %v7504_v48, %s8065_s21  ;;  %3601 = vrot.lane.b32.xlu0 %v7523_v9, %s8061_s11  ;;  %v3121_v2 = vrot.slane %v3119_v6, 5 }
 0x33c   : > { %v2973_v38 = vrot.slane %v2972_v3, 4  ;;  %v3324_v28 = vrot.slane %v3322_v4, 4 }
 0x33d   : > { %v10151_v33 = vpop.permute.xlu1 %3727  ;;  %v10153_v8 = vpop.permute.xlu0 %3729 }
 0x33f   : > { %3515 = vrot.lane.b32.xlu1 %v7504_v48, %s8062_s12  ;;  %3805 = vrot.lane.b32.xlu0 %v7522_v34, %s8066_s22  ;;  %v2987_v48 = vrot.slane %v2985_v51, 5  ;;  %v3125_v51 = vrot.slane %v3123_v19, 4 }
 0x341   : > { %v10157_v0 = vpop.permute.xlu1 %3509  ;;  %v10159_v46 = vpop.permute.xlu0 %3745  ;;  %v2988_v55 = vsel %vm8189_vm5, %v2983_v58, %v2987_v48  ;;  %v2784_v58 = vld [vmem:[#allocation2 + $0xa4] sm:$0x1]  ;;  %v3112_v48 = vrot.slane %v3110_v14, 4  ;;  %v3126_v25 = vor.u32 %v3125_v51, %v3121_v2 }
 0x342   : > { %12576 = vst [vmem:[#allocation47_spill] sm:$0xff] %v10159_v46  ;;  %v3129_v6 = vshll.u32 %v2784_v58, 16  ;;  %v10216_v46 = vld [vmem:[#allocation2 + $0xac] sm:$0xf] }
 0x343   : > { %3702 = vrot.lane.b32.xlu0 %v7522_v34, %s8060_s8  ;;  %3704 = vrot.lane.b32.xlu1 %v7523_v9, %s8060_s8  ;;  %v2978_v9 = vsel %vm8189_vm5, %v2973_v38, %v2977_v36  ;;  %v3115_v38 = vrot.slane %v3113_v57, 5  ;;  %v3127_v51 = vrot.slane %v3126_v25, 4 }
 0x344   : > { %v7506_v15 = vcombine.low %v2978_v9, %v2988_v55  ;;  %v3325_v55 = vrot.slane %v2784_v58, 5 }
 0x345   : > { %v10167_v45 = vpop.permute.xlu1 %3673  ;;  %v3761_v27 = vpop.permute.xlu0 %3760  ;;  %v3116_v57 = vor.u32 %v3115_v38, %v3112_v48 }
 0x346   : > { %12577 = vst [vmem:[#allocation48_spill] sm:$0xff] %v10167_v45  ;;  %v3326_v14 = vsel %vm8146_vm4, %v3324_v28, %v3325_v55 }
 0x347   : > { %3599 = vrot.lane.b32.xlu1 %v7522_v34, %s8061_s11  ;;  %3772 = vrot.lane.b32.xlu0 %v7507_v54, %s8065_s21  ;;  %v8045_v34 = vld [vmem:[#allocation2] sm:$0xf]  ;;  %v3117_v25 = vrot.slane %v3116_v57, 4  ;;  %v10231_v57 = vld [vmem:[#allocation2 + $0xa8] sm:$0xf] }
 0x348   : > { %v7483_v36 = vcombine.low %v8045_v34, %v8046_v16  ;;  %v7478_v16 = vrot.slane %v10021_v22, 9 }
 0x349   : > { %v10177_v31 = vpop.permute.xlu1 %3743  ;;  %v10179_v41 = vpop.permute.xlu0 %3624 }
 0x34a   : > { %12578 = vst [vmem:[#allocation49_spill] sm:$0xff] %v10177_v31  ;;  %v3829_v19 = vsel %vm1370_vm7, %v7483_v36, %v9237_v23  ;;  %v3323_v23 = vsel %vm8146_vm4, %v7478_v16, %v3322_v4  ;;  %v3131_v36 = vrot.slane %v3129_v6, 5  ;;  %v3122_v4 = vsel %vm8189_vm5, %v3117_v25, %v3121_v2 }
 0x34b   : > { %3667 = vrot.lane.b32.xlu0 %v7506_v15, %s8063_s19  ;;  %3669 = vrot.lane.b32.xlu1 %v7507_v54, %s8063_s19  ;;  %v7528_v48 = vcombine.low %v3323_v23, %v3326_v14 }
 0x34c   : > { %v3132_v55 = vsel %vm8189_vm5, %v3127_v51, %v3131_v36  ;;  %v3147_v51 = vshrl.u32 %v10216_v46, 16 }
 0x34d   : > { %v10186_v35 = vpop.permute.xlu1 %3525  ;;  %v10188_v3 = vpop.permute.xlu0 %3776  ;;  %v7512_v16 = vcombine.low %v3122_v4, %v3132_v55 }
 0x34e   : > { %12579 = vst [vmem:[#allocation50_spill] sm:$0xff] %v10188_v3  ;;  %v3149_v36 = vrot.slane %v3147_v51, 4  ;;  %v2788_v51 = vld [vmem:[#allocation2 + $0xb4] sm:$0xf] }
 0x34f   : > { %3780 = vrot.lane.b32.xlu0 %v10008_v17, %s8065_s21  ;;  %3521 = vrot.lane.b32.xlu1 %v7507_v54, %s8062_s12  ;;  %v3876_v54 = vsel %vm1419_vm8, %v3829_v19, %v9246_v11 }
 0x350   : > { %v3908_v22 = vsel %vm1452_vm9, %v3876_v54, %v10059_v44 }
 0x351   : > { %v10195_v9 = vpop.permute.xlu1 %3507  ;;  %v10197_v34 = vpop.permute.xlu0 %3640 }
 0x352   : > { %12580 = vst [vmem:[#allocation51_spill] sm:$0xff] %v10197_v34  ;;  %v3161_v34 = vshll.u32 %v2788_v51, 16 }
 0x353   : > { %3815 = vrot.lane.b32.xlu0 %v9916_v24, %s8066_s22  ;;  %3770 = vrot.lane.b32.xlu1 %v7506_v15, %s8065_s21 }
 0x354   : > { %v3163_v45 = vrot.slane %v3161_v34, 5 }
 0x355   : > { %v10211_v58 = vpop.permute.xlu1 %3774  ;;  %v3656_v28 = vpop.permute.xlu0 %3655 }
 0x356   : > { %12581 = vst [vmem:[#allocation52_spill] sm:$0xff] %v10211_v58  ;;  %v3940_v38 = vsel %vm12485_vm10, %v3908_v22, %v3656_v28 }
 0x357   : > { %v3972_v11 = vsel %vm12582_vm1, %v3940_v38, %v10123_v21  ;;  %3817 = vrot.lane.b32.xlu0 %v7528_v48, %s8066_s22  ;;  %3519 = vrot.lane.b32.xlu1 %v7506_v15, %s8062_s12  ;;  %v3143_v21 = vshll.u32 %v10216_v46, 16 }
 0x358   : > { %v4004_v44 = vsel %vm12583_vm3, %v3972_v11, %v10036_v7  ;;  %v3134_v7 = vshrl.u32 %v10231_v57, 16  ;;  %v2789_v11 = vld [vmem:[#allocation2 + $0xb8] sm:$0xf]  ;;  %vm12590_vm3 = vmmov %vm12582_vm1 }
 0x359   : > { %v10226_v6 = vpop.permute.xlu1 %3523  ;;  %v10228_v19 = vpop.permute.xlu0 %3671  ;;  %v4036_v14 = vsel %vm12584_vm11, %v4004_v44, %v3761_v27  ;;  %v3137_v27 = vshll.u32 %v10231_v57, 16  ;;  %v3145_v23 = vrot.slane %v3143_v21, 5  ;;  %v3329_v21 = vrot.slane %v10216_v46, 5 }
 0x35a   : > { %v4068_v15 = vsel %vm12585_vm14, %v4036_v14, %v10080_v42  ;;  %v2787_v42 = vld [vmem:[#allocation2 + $0xb0] sm:$0x1]  ;;  %v3336_v31 = vrot.slane %v2789_v11, 5  ;;  %vm12591_vm11 = vcmask 392192  }
 0x35b   : > { %3782 = vrot.lane.b32.xlu1 %v7512_v16, %s8065_s21  ;;  %3609 = vrot.lane.b32.xlu0 %v9916_v24, %s8061_s11  ;;  %v3136_v24 = vrot.slane %v3134_v7, 4  ;;  %v3139_v22 = vrot.slane %v3137_v27, 5  ;;  %v3150_v25 = vor.u32 %v3149_v36, %v3145_v23  ;;  %v3153_v55 = vshll.u32 %v2787_v42, 16  ;;  %vm12592_vm14 = vmmov %vm12591_vm11 }
 0x35c   : > { %7869 = vmatprep.mubr.msk.bf16.mxu1 %vm12586_vm12, %v4068_v15  ;;  %v3167_v15 = vshll.u32 %v2789_v11, 16  ;;  %v3171_v7 = vshrl.u32 %v2789_v11, 16  ;;  %vm12593_vm12 = vcmask 457728  }
 0x35d   : > { %v10243_v2 = vpop.permute.xlu1 %3696  ;;  %v10245_v54 = vpop.permute.xlu0 %3799  ;;  %v3140_v44 = vor.u32 %v3139_v22, %v3136_v24  ;;  %v3151_v14 = vrot.slane %v3150_v25, 4  ;;  %v3155_v27 = vrot.slane %v3153_v55, 5  ;;  %v10270_v24 = vcombine.low %v10231_v57, %v10216_v46 }
 0x35e   : > { %v3331_v25 = vrot.slane %v3329_v21, 4  ;;  %v3169_v58 = vrot.slane %v3167_v15, 5  ;;  %v3173_v3 = vrot.slane %v3171_v7, 4  ;;  %v2790_v7 = vld [vmem:[#allocation2 + $0xbc] sm:$0x1] }
 0x35f   : > { %3529 = vrot.lane.b32.xlu1 %v10008_v17, %s8062_s12  ;;  %3644 = vrot.lane.b32.xlu0 %v10025_v56, %s8059_s30  ;;  %v3141_v36 = vrot.slane %v3140_v44, 4  ;;  %12589 = vst [vmem:[#allocation55_spill] sm:$0xff] %v10270_v24  ;;  %v3156_v22 = vsel %vm8189_vm5, %v3151_v14, %v3155_v27  ;;  %v7479_v27 = vrot.slane %v10231_v57, 9 }
 0x360   : > { %v3174_v12 = vor.u32 %v3173_v3, %v3169_v58 }
 0x361   : > { %v10251_v28 = vpop.permute.xlu1 %3712  ;;  %v10253_v38 = vpop.permute.xlu0 %3593  ;;  %v3146_v46 = vsel %vm8189_vm5, %v3141_v36, %v3145_v23  ;;  %v3330_v23 = vsel %vm8146_vm4, %v7479_v27, %v3329_v21  ;;  %v3177_v36 = vshll.u32 %v2790_v7, 16 }
 0x362   : > { %12587 = vst [vmem:[#allocation53_spill] sm:$0xff] %v10251_v28  ;;  %v3158_v28 = vshrl.u32 %v2788_v51, 16  ;;  %v7513_v14 = vcombine.low %v3146_v46, %v3156_v22  ;;  %v3175_v3 = vrot.slane %v3174_v12, 4 }
 0x363   : > { %3531 = vrot.lane.b32.xlu1 %v7512_v16, %s8062_s12  ;;  %3679 = vrot.lane.b32.xlu0 %v7512_v16, %s8063_s19 }
 0x364   : > { %v3160_v59 = vrot.slane %v3158_v28, 4 }
 0x365   : > { %v10257_v4 = vpop.permute.xlu1 %3591  ;;  %v10259_v17 = vpop.permute.xlu0 %3797 }
 0x366   : > { %v3164_v34 = vor.u32 %v3163_v45, %v3160_v59  ;;  %v3832_v59 = vsel %vm1370_vm7, %v9682_v29, %v10195_v9 }
 0x367   : > { %3611 = vrot.lane.b32.xlu1 %v7528_v48, %s8061_s11  ;;  %3714 = vrot.lane.b32.xlu0 %v7528_v48, %s8060_s8  ;;  %v3332_v48 = vrot.slane %v2787_v42, 5  ;;  %v3339_v42 = vrot.slane %v2790_v7, 5 }
 0x368   : > { %v3165_v12 = vrot.slane %v3164_v34, 4 }
 0x369   : > { %v10264_v16 = vpop.permute.xlu1 %3607  ;;  %v10266_v56 = vpop.permute.xlu0 %3694  ;;  %v3333_v15 = vsel %vm8146_vm4, %v3331_v25, %v3332_v48  ;;  %v7480_v25 = vrot.slane %v2788_v51, 9  ;;  %v3179_v48 = vrot.slane %v3177_v36, 5 }
 0x36a   : > { %12588 = vst [vmem:[#allocation54_spill] sm:$0xff] %v10264_v16  ;;  %v3338_v16 = vrot.slane %v3336_v31, 4  ;;  %v7529_v46 = vcombine.low %v3330_v23, %v3333_v15  ;;  %v10323_v23 = vld [vmem:[#allocation2 + $0xc0] sm:$0xf] }
 0x36b   : > { %3646 = vrot.lane.b32.xlu1 %v10270_v24, %s8059_s30  ;;  %3749 = vrot.lane.b32.xlu0 %v10270_v24, %s8064_s20  ;;  %v3337_v21 = vsel %vm8146_vm4, %v7480_v25, %v3336_v31  ;;  %v10305_v24 = vcombine.low %v2788_v51, %v2789_v11  ;;  %v3180_v45 = vsel %vm8189_vm5, %v3175_v3, %v3179_v48  ;;  %v10315_v31 = vld [vmem:[#allocation2 + $0xc4] sm:$0xf]  ;;  %v3342_v34 = vshrl.u32 %v10323_v23, 16 }
 0x36c   : > { %v3340_v28 = vsel %vm8146_vm4, %v3338_v16, %v3339_v42  ;;  %v3170_v11 = vsel %vm8189_vm5, %v3165_v12, %v3169_v58  ;;  %v3878_v51 = vsel %vm1419_vm8, %v3832_v59, %v10088_v50  ;;  %v3351_v42 = vshll.u32 %v10315_v31, 16 }
 0x36d   : > { %v10280_v55 = vpop.permute.xlu1 %3630  ;;  %v10282_v44 = vpop.permute.xlu0 %3813  ;;  %v7530_v15 = vcombine.low %v3337_v21, %v3340_v28  ;;  %v7514_v9 = vcombine.low %v3170_v11, %v3180_v45  ;;  %v3355_v36 = vshrl.u32 %v10315_v31, 16  ;;  %v3910_v58 = vsel %vm1452_vm9, %v3878_v51, %v10034_v49  ;;  %v10353_v51 = vld [vmem:[#allocation2 + $0xd0] sm:$0xf] }
 0x36e   : > { %v3835_v50 = vsel %vm1370_vm7, %v9643_v52, %v10157_v0  ;;  %v3345_v3 = vshll.u32 %v10323_v23, 16  ;;  %v3353_v21 = vrot.slane %v3351_v42, 5  ;;  %v3942_v49 = vsel %vm12485_vm10, %v3910_v58, %v10141_v63  ;;  %v10347_v0 = vld [vmem:[#allocation2 + $0xcc] sm:$0xf] }
 0x36f   : > { %3681 = vrot.lane.b32.xlu1 %v7513_v14, %s8063_s19  ;;  %3784 = vrot.lane.b32.xlu0 %v7513_v14, %s8065_s21  ;;  %v3357_v48 = vrot.slane %v3355_v36, 4  ;;  %v3880_v52 = vsel %vm1419_vm8, %v3835_v50, %v10090_v18  ;;  %v3344_v11 = vrot.slane %v3342_v34, 4  ;;  %v3974_v63 = vsel %vm12582_vm1, %v3942_v49, %v10070_v10  ;;  %vm12594_vm1 = vmmov %vm12593_vm12 }
 0x370   : > { %v3912_v59 = vsel %vm1452_vm9, %v3880_v52, %v10179_v41  ;;  %v3376_v41 = vshrl.u32 %v10347_v0, 16  ;;  %v3379_v34 = vshll.u32 %v10347_v0, 16  ;;  %v3385_v10 = vshll.u32 %v10353_v51, 16 }
 0x371   : > { %v10291_v22 = vpop.permute.xlu1 %3661  ;;  %v10293_v57 = vpop.permute.xlu0 %3710  ;;  %v3358_v36 = vor.u32 %v3357_v48, %v3353_v21  ;;  %v4006_v48 = vsel %vm12592_vm14, %v3974_v63, %v10151_v33 }
 0x372   : > { %v3378_v33 = vrot.slane %v3376_v41, 4  ;;  %v3381_v63 = vrot.slane %v3379_v34, 5 }
 0x373   : > { %3716 = vrot.lane.b32.xlu1 %v7529_v46, %s8060_s8  ;;  %3819 = vrot.lane.b32.xlu0 %v7529_v46, %s8066_s22 }
 0x375   : > { %v10301_v27 = vpop.permute.xlu1 %3731  ;;  %v10303_v7 = vpop.permute.xlu0 %3733 }
 0x377   : > { %3751 = vrot.lane.b32.xlu1 %v10305_v24, %s8064_s20  ;;  %3821 = vrot.lane.b32.xlu0 %v7530_v15, %s8066_s22 }
 0x379   : > { %v10321_v16 = vpop.permute.xlu1 %3513  ;;  %v3765_v29 = vpop.permute.xlu0 %3764 }
 0x37b   : > { %3786 = vrot.lane.b32.xlu1 %v7514_v9, %s8065_s21  ;;  %3613 = vrot.lane.b32.xlu0 %v7529_v46, %s8061_s11  ;;  %v2793_v46 = vld [vmem:[#allocation2 + $0xc8] sm:$0x1] }
 0x37c   : > { %v3361_v58 = vshll.u32 %v2793_v46, 16 }
 0x37d   : > { %v10334_v25 = vpop.permute.xlu1 %3677  ;;  %v10336_v28 = vpop.permute.xlu0 %3628 }
 0x37f   : > { %3533 = vrot.lane.b32.xlu1 %v7513_v14, %s8062_s12  ;;  %3648 = vrot.lane.b32.xlu0 %v10305_v24, %s8059_s30  ;;  %v3347_v14 = vrot.slane %v3345_v3, 5  ;;  %v3389_v3 = vshrl.u32 %v10353_v51, 16 }
 0x381   : > { %v10351_v12 = vpop.permute.xlu1 %3747  ;;  %v3660_v45 = vpop.permute.xlu0 %3659 }
 0x382   : > { %v3944_v42 = vsel %vm12485_vm10, %v3912_v59, %v3660_v45  ;;  %v3348_v59 = vor.u32 %v3347_v14, %v3344_v11  ;;  %v3359_v45 = vrot.slane %v3358_v36, 4  ;;  %v3391_v11 = vrot.slane %v3389_v3, 4 }
 0x383   : > { %v3976_v18 = vsel %vm12590_vm3, %v3944_v42, %v10266_v56  ;;  %3535 = vrot.lane.b32.xlu1 %v7514_v9, %s8062_s12  ;;  %3683 = vrot.lane.b32.xlu0 %v7514_v9, %s8063_s19  ;;  %v3363_v42 = vrot.slane %v3361_v58, 5  ;;  %vm12595_vm3 = vcmask 523264   ;;  %v3382_v3 = vor.u32 %v3381_v63, %v3378_v33 }
 0x384   : > { %v4008_v50 = vsel %vm12591_vm11, %v3976_v18, %v10153_v8  ;;  %v3370_v18 = vrot.slane %v10315_v31, 5  ;;  %vm12596_vm11 = vcmask 588800   ;;  %vm12597_vm14 = vmmov %vm12595_vm3  ;;  %v3349_v58 = vrot.slane %v3348_v59, 4 }
 0x385   : > { %v3763_v49 = vpop.permute.xlu1 %3762  ;;  %v10370_v56 = vpop.permute.xlu0 %3675  ;;  %v4040_v52 = vsel %vm12593_vm12, %v4008_v50, %v3765_v29  ;;  %v3387_v50 = vrot.slane %v3385_v10, 5  ;;  %vm12598_vm12 = vmmov %vm12596_vm11  ;;  %v3364_v41 = vsel %vm8189_vm5, %v3359_v45, %v3363_v42  ;;  %v7481_v59 = vrot.slane %v10323_v23, 9 }
 0x386   : > { %v4038_v9 = vsel %vm12594_vm1, %v4006_v48, %v3763_v49  ;;  %v4072_v29 = vsel %vm12597_vm14, %v4040_v52, %v10245_v54  ;;  %v3373_v48 = vrot.slane %v2793_v46, 5  ;;  %v3372_v54 = vrot.slane %v3370_v18, 4 }
 0x387   : > { %v4070_v8 = vsel %vm12595_vm3, %v4038_v9, %v10259_v17  ;;  %3615 = vrot.lane.b32.xlu1 %v7530_v15, %s8061_s11  ;;  %3718 = vrot.lane.b32.xlu0 %v7530_v15, %s8060_s8  ;;  %v7531_v17 = vcombine.low %v10323_v23, %v10315_v31  ;;  %v2796_v15 = vld [vmem:[#allocation2 + $0xd4] sm:$0x1]  ;;  %v3354_v34 = vsel %vm8189_vm5, %v3349_v58, %v3353_v21  ;;  %v3383_v45 = vrot.slane %v3382_v3, 4 }
 0x388   : > { %7870 = vmatmul.mubr.msk.bf16.vlgmr.msra.gmra.mrb[16].mxu1 %vm12596_vm11, %v4070_v8  ;;  %v3392_v10 = vor.u32 %v3391_v11, %v3387_v50  ;;  %v3395_v49 = vshll.u32 %v2796_v15, 16  ;;  %v7532_v9 = vcombine.low %v3354_v34, %v3364_v41  ;;  %v3374_v46 = vsel %vm8146_vm4, %v3372_v54, %v3373_v48 }
 0x389   : > { %v3512_v14 = vpop.permute.xlu1 %3511  ;;  %7873 = vmatprep.mubr.msk.bf16.mxu1 %vm12598_vm12, %v4072_v29  ;;  %v10383_v36 = vpop.permute.xlu0 %3803  ;;  %v3371_v21 = vsel %vm8146_vm4, %v7481_v59, %v3370_v18  ;;  %v3404_v33 = vrot.slane %v10353_v51, 5  ;;  %v7534_v23 = vcombine.low %v10347_v0, %v10353_v51  ;;  %v3388_v18 = vsel %vm8189_vm5, %v3383_v45, %v3387_v50 }
 0x38a   : > { %v3393_v42 = vrot.slane %v3392_v10, 4  ;;  %v3397_v8 = vrot.slane %v3395_v49, 5  ;;  %v7533_v11 = vcombine.low %v3371_v21, %v3374_v46  ;;  %v3407_v48 = vrot.slane %v2796_v15, 5 }
 0x38b   : > { %3650 = vrot.lane.b32.xlu1 %v7531_v17, %s8059_s30  ;;  %3753 = vrot.lane.b32.xlu0 %v7531_v17, %s8064_s20  ;;  %v7482_v17 = vrot.slane %v10347_v0, 9  ;;  %v3406_v41 = vrot.slane %v3404_v33, 4  ;;  %v3838_v15 = vsel %vm1370_vm7, %v9799_v43, %v3512_v14  ;;  %v3841_v46 = vsel %vm1370_vm7, %v9758_v39, %v10321_v16 }
 0x38c   : > { %v3398_v58 = vsel %vm8189_vm5, %v3393_v42, %v3397_v8  ;;  %v3882_v21 = vsel %vm1419_vm8, %v3838_v15, %v10257_v4  ;;  %v3884_v8 = vsel %vm1419_vm8, %v3841_v46, %v10253_v38  ;;  %vm12599_vm1 = vcmask 326656  }
 0x38d   : > { %v10393_v52 = vpop.permute.xlu1 %3778  ;;  %v10395_v31 = vpop.permute.xlu0 %3597  ;;  %v7535_v3 = vcombine.low %v3388_v18, %v3398_v58  ;;  %v3405_v10 = vsel %vm8146_vm4, %v7482_v17, %v3404_v33  ;;  %v3408_v51 = vsel %vm8146_vm4, %v3406_v41, %v3407_v48  ;;  %v3914_v33 = vsel %vm1452_vm9, %v3882_v21, %v10121_v32  ;;  %vm12601_vm11 = vmmov %vm12599_vm1 }
 0x38e   : > { %v7536_v50 = vcombine.low %v3405_v10, %v3408_v51  ;;  %v3916_v43 = vsel %vm1452_vm9, %v3884_v8, %v10336_v28  ;;  %v3946_v4 = vsel %vm12485_vm10, %v3914_v33, %v10291_v22  ;;  %vm12600_vm3 = vcmask 392192  }
 0x38f   : > { %3685 = vrot.lane.b32.xlu1 %v7532_v9, %s8063_s19  ;;  %3788 = vrot.lane.b32.xlu0 %v7532_v9, %s8065_s21  ;;  %v3978_v32 = vsel %vm12601_vm11, %v3946_v4, %v10243_v2  ;;  %vm12602_vm14 = vmmov %vm12600_vm3  ;;  %vm12603_vm12 = vcmask 457728  }
 0x390   : > { %v4010_v28 = vsel %vm12602_vm14, %v3978_v32, %v10301_v27  ;;  %vm12604_vm6 = vmmov %vm12603_vm12 }
 0x391   : > { %v10405_v29 = vpop.permute.xlu1 %3527  ;;  %v3802_v63 = vpop.permute.xlu0 %3801 }
 0x393   : > { %3720 = vrot.lane.b32.xlu1 %v7533_v11, %s8060_s8  ;;  %3823 = vrot.lane.b32.xlu0 %v7533_v11, %s8066_s22 }
 0x395   : > { %v3701_v54 = vpop.permute.xlu1 %3700  ;;  %v3699_v34 = vpop.permute.xlu0 %3698 }
 0x397   : > { %3755 = vrot.lane.b32.xlu1 %v7534_v23, %s8064_s20 }
 0x399   : > { %v3596_v0 = vpop.permute.xlu1 %3595  ;;  %v3738_v49 = vpop.permute.xlu0 %3737 }
 0x39b   : > { %3790 = vrot.lane.b32.xlu1 %v7535_v3, %s8065_s21 }
 0x39d   : > { %v10422_v9 = vpop.permute.xlu1 %3634  ;;  %v3769_v59 = vpop.permute.xlu0 %3768 }
 0x39f   : > { %3825 = vrot.lane.b32.xlu1 %v7536_v50, %s8066_s22 }
 0x3a1   : > { %v3666_v45 = vpop.permute.xlu1 %3665  ;;  %v3633_v42 = vpop.permute.xlu0 %3632 }
 0x3a5   : > { %v3736_v14 = vpop.permute.xlu1 %3735  ;;  %v3664_v11 = vpop.permute.xlu0 %3663 }
 0x3a6   : > { %v3948_v23 = vsel %vm12485_vm10, %v3916_v43, %v3664_v11 }
 0x3a7   : > { %v3980_v39 = vsel %vm12599_vm1, %v3948_v23, %v3699_v34  ;;  %vm12605_vm1 = vcmask 523264  }
 0x3a8   : > { %v4012_v38 = vsel %vm12600_vm3, %v3980_v39, %v10303_v7  ;;  %vm12607_vm10 = vmmov %vm12605_vm1 }
 0x3a9   : > { %v3518_v16 = vpop.permute.xlu1 %3517  ;;  %v3808_v17 = vpop.permute.xlu0 %3807  ;;  %v4044_v41 = vsel %vm12603_vm12, %v4012_v38, %v3769_v59  ;;  %vm12608_vm3 = vmmov %vm12606_vm0 }
 0x3aa   : > { %v4076_v22 = vsel %vm12607_vm10, %v4044_v41, %v10383_v36  ;;  %v3847_v51 = vsel %vm1370_vm7, %v9955_v62, %v3518_v16  ;;  %vm12610_vm10 = vmmov %vm12601_vm11 }
 0x3ab   : > { %v3888_v15 = vsel %vm1419_vm8, %v3847_v51, %v10395_v31  ;;  %vm12612_vm11 = vmmov %vm12602_vm14 }
 0x3ac   : > { %v3920_v21 = vsel %vm1452_vm9, %v3888_v15, %v3633_v42  ;;  %vm12613_vm14 = vmmov %vm12610_vm10 }
 0x3ad   : > { %v3767_v18 = vpop.permute.xlu1 %3766  ;;  %v3602_v58 = vpop.permute.xlu0 %3601  ;;  %vm12614_vm12 = vmmov %vm12612_vm11 }
 0x3ae   : > { %v4042_v48 = vsel %vm12604_vm6, %v4010_v28, %v3767_v18  ;;  %vm12609_vm6 = vcmask 261120  }
 0x3af   : > { %v4074_v34 = vsel %vm12605_vm1, %v4042_v48, %v3802_v63  ;;  %vm12615_vm1 = vcmask 457728  }
 0x3b0   : > { %7874 = vmatmul.mubr.msk.bf16.gmra.mrb[20].mxu1 %vm12606_vm0, %v4074_v34  ;;  %vm12611_vm0 = vmmov %vm12609_vm6 }
 0x3b1   : > { %v3516_v7 = vpop.permute.xlu1 %3515  ;;  %7877 = vmatprep.mubr.msk.bf16.mxu1 %vm12608_vm3, %v4076_v22  ;;  %v3806_v2 = vpop.permute.xlu0 %3805  ;;  %vm12616_vm3 = vmmov %vm12611_vm0  ;;  %v12626_v22 = vld [vmem:[#allocation48_spill] sm:$0xff] }
 0x3b2   : > { %v3844_v27 = vsel %vm1370_vm7, %v9987_v37, %v3516_v7  ;;  %v12628_v7 = vld [vmem:[#allocation41_spill] sm:$0xff] }
 0x3b3   : > { %v3886_v50 = vsel %vm1419_vm8, %v3844_v27, %v3596_v0  ;;  %v12633_v27 = vld [vmem:[#allocation52_spill] sm:$0xff] }
 0x3b4   : > { %v3918_v36 = vsel %vm1452_vm9, %v3886_v50, %v10280_v55  ;;  %v12635_v50 = vld [vmem:[#allocation51_spill] sm:$0xff] }
 0x3b5   : > { %v3705_v3 = vpop.permute.xlu1 %3704  ;;  %v3703_v10 = vpop.permute.xlu0 %3702  ;;  %v3950_v62 = vsel %vm12611_vm0, %v3918_v36, %v3666_v45  ;;  %vm12619_vm0 = vcmask 588800   ;;  %v12637_v36 = vld [vmem:[#allocation46_spill] sm:$0xff] }
 0x3b6   : > { %v3982_v23 = vsel %vm12613_vm14, %v3950_v62, %v3701_v54  ;;  %vm12621_vm14 = vmmov %vm12619_vm0 }
 0x3b7   : > { %v4014_v39 = vsel %vm12614_vm12, %v3982_v23, %v3736_v14  ;;  %vm12622_vm12 = vcmask 326656   ;;  %v12648_v23 = vld [vmem:[#allocation49_spill] sm:$0xff] }
 0x3b9   : > { %v3600_v63 = vpop.permute.xlu1 %3599  ;;  %v3773_v59 = vpop.permute.xlu0 %3772 }
 0x3bd   : > { %v3670_v46 = vpop.permute.xlu1 %3669  ;;  %v3668_v8 = vpop.permute.xlu0 %3667 }
 0x3be   : > { %v3952_v33 = vsel %vm12609_vm6, %v3920_v21, %v3668_v8  ;;  %vm12617_vm6 = vmmov %vm12615_vm1  ;;  %v12640_v8 = vld [vmem:[#allocation42_spill] sm:$0xff] }
 0x3bf   : > { %v3984_v37 = vsel %vm12610_vm10, %v3952_v33, %v3703_v10  ;;  %vm12618_vm10 = vcmask 523264  }
 0x3c0   : > { %v4016_v11 = vsel %vm12612_vm11, %v3984_v37, %v3738_v49  ;;  %v3856_v49 = vsel %vm1370_vm7, %v9686_v26, %v10226_v6  ;;  %vm12620_vm11 = vmmov %vm12618_vm10  ;;  %v12643_v37 = vld [vmem:[#allocation43_spill] sm:$0xff] }
 0x3c1   : > { %v3522_v43 = vpop.permute.xlu1 %3521  ;;  %v3781_v0 = vpop.permute.xlu0 %3780  ;;  %v4048_v45 = vsel %vm12615_vm1, %v4016_v11, %v3773_v59  ;;  %v3894_v14 = vsel %vm1419_vm8, %v3856_v49, %v10105_v61  ;;  %vm12623_vm1 = vcmask 392192  }
 0x3c2   : > { %v3853_v31 = vsel %vm1370_vm7, %v10093_v60, %v3522_v43  ;;  %v3926_v18 = vsel %vm1452_vm9, %v3894_v14, %v10046_v30  ;;  %v12646_v43 = vld [vmem:[#allocation45_spill] sm:$0xff] }
 0x3c3   : > { %v3892_v55 = vsel %vm1419_vm8, %v3853_v31, %v3602_v58  ;;  %v3859_v58 = vsel %vm1370_vm7, %v9662_v5, %v10186_v35  ;;  %v12632_v5 = vld [vmem:[#allocation44_spill] sm:$0xff] }
 0x3c4   : > { %v3924_v42 = vsel %vm1452_vm9, %v3892_v55, %v10072_v20  ;;  %v4080_v20 = vsel %vm12620_vm11, %v4048_v45, %v3808_v17  ;;  %vm12631_vm11 = vcmask 457728   ;;  %v3896_v35 = vsel %vm1419_vm8, %v3859_v58, %v12632_v5  ;;  %v12651_v45 = vld [vmem:[#allocation47_spill] sm:$0xff] }
 0x3c5   : > { %v3771_v4 = vpop.permute.xlu1 %3770  ;;  %v3816_v16 = vpop.permute.xlu0 %3815  ;;  %v3956_v60 = vsel %vm12616_vm3, %v3924_v42, %v10228_v19 }
 0x3c6   : > { %v4046_v54 = vsel %vm12617_vm6, %v4014_v39, %v3771_v4  ;;  %v3988_v26 = vsel %vm12622_vm12, %v3956_v60, %v10143_v47  ;;  %vm12625_vm6 = vmmov %vm12622_vm12  ;;  %vm12638_vm12 = vcmask 523264  }
 0x3c7   : > { %v4078_v38 = vsel %vm12618_vm10, %v4046_v54, %v3806_v2  ;;  %v4020_v61 = vsel %vm12623_vm1, %v3988_v26, %v10048_v40  ;;  %vm12627_vm10 = vmmov %vm12616_vm3  ;;  %v12630_v2 = vld [vmem:[#allocation50_spill] sm:$0xff]  ;;  %v12656_v26 = vld [vmem:[#allocation53_spill] sm:$0xff] }
 0x3c8   : > { %7878 = vmatmul.mubr.msk.bf16.gmra.mrb[24].mxu1 %vm12619_vm0, %v4078_v38  ;;  %vm12629_vm0 = vmmov %vm12623_vm1  ;;  %v4052_v10 = vsel %vm12631_vm11, %v4020_v61, %v12630_v2  ;;  %v12654_v54 = vld [vmem:[#allocation38_spill] sm:$0xff] }
 0x3c9   : > { %v3520_v32 = vpop.permute.xlu1 %3519  ;;  %7881 = vmatprep.mubr.msk.bf16.mxu1 %vm12621_vm14, %v4080_v20  ;;  %v3818_v28 = vpop.permute.xlu0 %3817  ;;  %vm12634_vm14 = vmmov %vm12631_vm11 }
 0x3ca   : > { %v3850_v6 = vsel %vm1370_vm7, %v10112_v1, %v3520_v32  ;;  %v12624_v1 = vld [vmem:[#allocation39_spill] sm:$0xff]  ;;  %vm12639_vm1 = vmmov %vm12616_vm3 }
 0x3cb   : > { %v3890_v19 = vsel %vm1419_vm8, %v3850_v6, %v3600_v63  ;;  %v3862_v34 = vsel %vm1370_vm7, %v12624_v1, %v10405_v29  ;;  %v3928_v29 = vsel %vm1452_vm9, %v3896_v35, %v12635_v50  ;;  %v12636_v63 = vld [vmem:[#allocation54_spill] sm:$0xff] }
 0x3cc   : > { %v3922_v17 = vsel %vm1452_vm9, %v3890_v19, %v10422_v9  ;;  %v3958_v9 = vsel %vm12627_vm10, %v3926_v18, %v12626_v22  ;;  %v3960_v21 = vsel %vm12639_vm1, %v3928_v29, %v10370_v56  ;;  %vm12644_vm10 = vmmov %vm12638_vm12 }
 0x3cd   : > { %v3954_v47 = vsel %vm12616_vm3, %v3922_v17, %v3670_v46  ;;  %v3783_v41 = vpop.permute.xlu1 %3782  ;;  %v3610_v48 = vpop.permute.xlu0 %3609  ;;  %vm12641_vm3 = vmmov %vm12625_vm6  ;;  %v4084_v62 = vsel %vm12644_vm10, %v4052_v10, %v12643_v37 }
 0x3ce   : > { %v3986_v30 = vsel %vm12625_vm6, %v3954_v47, %v3705_v3  ;;  %v3898_v3 = vsel %vm1419_vm8, %v3862_v34, %v12636_v63  ;;  %v3990_v33 = vsel %vm12641_vm3, %v3958_v9, %v12640_v8  ;;  %vm12642_vm6 = vcmask 588800   ;;  %vm12647_vm11 = vmmov %vm12641_vm3  ;;  %v5125_v9 = vld [vmem:[#allocation2] sm:$0xf] }
 0x3cf   : > { %v4018_v40 = vsel %vm12629_vm0, %v3986_v30, %v12628_v7  ;;  %vm12645_vm0 = vmmov %vm12642_vm6  ;;  %v3930_v11 = vsel %vm1452_vm9, %v3898_v3, %v12646_v43  ;;  %v3992_v31 = vsel %vm12647_vm11, %v3960_v21, %v10293_v57  ;;  %v12666_v30 = vld [vmem:[#allocation40_spill] sm:$0xff]  ;;  %v5180_v5 = vshrl.u32 %v5125_v9, 16 }
 0x3d0   : > { %v4050_v51 = vsel %vm12634_vm14, %v4018_v40, %v12633_v27  ;;  %vm12649_vm14 = vcmask 392192   ;;  %v3962_v4 = vsel %vm12639_vm1, %v3930_v11, %v10334_v25  ;;  %v5126_v7 = vld [vmem:[#allocation2 + $0x4] sm:$0xf]  ;;  %v7592_v40 = vrot.slane %v5125_v9, 9 }
 0x3d1   : > { %v3530_v59 = vpop.permute.xlu1 %3529  ;;  %v3645_v15 = vpop.permute.xlu0 %3644  ;;  %v4082_v46 = vsel %vm12638_vm12, %v4050_v51, %v12637_v36  ;;  %v4022_v55 = vsel %vm12649_vm14, %v3990_v33, %v12648_v23  ;;  %vm12650_vm12 = vcmask 457728   ;;  %vm12652_vm3 = vmmov %vm12649_vm14  ;;  %vm12657_vm14 = vcmask 588800   ;;  %v5176_v36 = vld [vmem:[#allocation2 + $0xcc] sm:$0xf]  ;;  %v5177_v33 = vld [vmem:[#allocation2 + $0xd0] sm:$0xf] }
 0x3d2   : > { %7882 = vmatmul.mubr.msk.bf16.gmra.mrb[28].mxu1 %vm12642_vm6, %v4082_v46  ;;  %v4054_v39 = vsel %vm12650_vm12, %v4022_v55, %v10393_v52  ;;  %v4024_v49 = vsel %vm12652_vm3, %v3992_v31, %v12651_v45  ;;  %vm12653_vm6 = vmmov %vm12650_vm12  ;;  %v3865_v38 = vsel %vm1370_vm7, %v12654_v54, %v3530_v59  ;;  %v3994_v52 = vsel %vm12647_vm11, %v3962_v4, %v12656_v26 }
 0x3d3   : > { %7885 = vmatprep.mubr.msk.bf16.mxu1 %vm12645_vm0, %v4084_v62  ;;  %v4056_v60 = vsel %vm12653_vm6, %v4024_v49, %v3781_v0  ;;  %v4086_v14 = vsel %vm12644_vm10, %v4054_v39, %v10282_v44  ;;  %vm12655_vm0 = vmmov %vm12644_vm10  ;;  %v3900_v25 = vsel %vm1419_vm8, %v3865_v38, %v3610_v48  ;;  %vm12662_vm10 = vcmask 261120  }
 0x3d4   : > { %v4088_v32 = vsel %vm12655_vm0, %v4056_v60, %v3816_v16  ;;  %vm12658_vm12 = vmmov %vm12657_vm14  ;;  %v3932_v44 = vsel %vm1452_vm9, %v3900_v25, %v3645_v15  ;;  %v5613_v2 = vrot.slane %v5126_v7, 5  ;;  %v5183_v27 = vshll.u32 %v5125_v9, 16 }
 0x3d5   : > { %v3532_v56 = vpop.permute.xlu1 %3531  ;;  %v3680_v42 = vpop.permute.xlu0 %3679  ;;  %vm12659_vm1 = vmmov %vm12652_vm3  ;;  %v5189_v51 = vshll.u32 %v5126_v7, 16  ;;  %v5182_v46 = vrot.slane %v5180_v5, 4  ;;  %v5193_v62 = vshrl.u32 %v5126_v7, 16  ;;  %v7661_v45 = vcombine.low %v5176_v36, %v5177_v33 }
 0x3d6   : > { %v4026_v0 = vsel %vm12659_vm1, %v3994_v52, %v10351_v12  ;;  %vm12660_vm3 = vmmov %vm12653_vm6  ;;  %v3964_v58 = vsel %vm12662_vm10, %v3932_v44, %v3680_v42  ;;  %v5614_v3 = vsel %vm8146_vm4, %v7592_v40, %v5613_v2  ;;  %v5615_v59 = vrot.slane %v5613_v2, 4 }
 0x3d7   : > { %v4058_v18 = vsel %vm12660_vm3, %v4026_v0, %v3783_v41  ;;  %vm12661_vm6 = vmmov %vm12655_vm0  ;;  %v3868_v41 = vsel %vm1370_vm7, %v12666_v30, %v3532_v56  ;;  %v5185_v21 = vrot.slane %v5183_v27, 5  ;;  %v5191_v37 = vrot.slane %v5189_v51, 5 }
 0x3d8   : > { %v4090_v61 = vsel %vm12661_vm6, %v4058_v18, %v3818_v28  ;;  %vm12663_vm0 = vmmov %vm12658_vm12  ;;  %v5127_v28 = vld [vmem:[#allocation2 + $0x8] sm:$0x1]  ;;  %v5195_v39 = vrot.slane %v5193_v62, 4 }
 0x3d9   : > { %v3612_v57 = vpop.permute.xlu1 %3611  ;;  %v3715_v20 = vpop.permute.xlu0 %3714  ;;  %v5616_v10 = vrot.slane %v5127_v28, 5  ;;  %v5199_v43 = vshll.u32 %v5127_v28, 16  ;;  %v5186_v23 = vor.u32 %v5185_v21, %v5182_v46 }
 0x3da   : > { %7886 = vmatmul.mubr.msk.bf16.gmra.mrb[32].mxu1 %vm12657_vm14, %v4086_v14  ;;  %v3996_v47 = vsel %vm12647_vm11, %v3964_v58, %v3715_v20  ;;  %vm12664_vm14 = vmmov %vm12659_vm1  ;;  %v3902_v35 = vsel %vm1419_vm8, %v3868_v41, %v3612_v57  ;;  %v5196_v54 = vor.u32 %v5195_v39, %v5191_v37 }
 0x3db   : > { %7889 = vmatprep.mubr.msk.bf16.mxu1 %vm12658_vm12, %v4088_v32  ;;  %vm12665_vm12 = vmmov %vm12660_vm3  ;;  %v5617_v8 = vsel %vm8146_vm4, %v5615_v59, %v5616_v10  ;;  %v5187_v49 = vrot.slane %v5186_v23, 4  ;;  %v5201_v38 = vrot.slane %v5199_v43, 5 }
 0x3dc   : > { %vm12667_vm1 = vmmov %vm12661_vm6  ;;  %v7642_v31 = vcombine.low %v5614_v3, %v5617_v8  ;;  %v5197_v32 = vrot.slane %v5196_v54, 4  ;;  %v10616_v3 = vld [vmem:[%s12432_s4 + $0x1] ss:$0 sm:$0xff] }
 0x3dd   : > { %v3647_v6 = vpop.permute.xlu1 %3646  ;;  %v3750_v19 = vpop.permute.xlu0 %3749  ;;  %vm12668_vm3 = vmmov %vm12663_vm0  ;;  %v5192_v14 = vsel %vm8189_vm5, %v5187_v49, %v5191_v37 }
 0x3de   : > { %v4028_v48 = vsel %vm12664_vm14, %v3996_v47, %v3750_v19  ;;  %v3934_v50 = vsel %vm1452_vm9, %v3902_v35, %v3647_v6  ;;  %vm12669_vm6 = vmmov %vm12662_vm10  ;;  %5967 = vrot.lane.b32.xlu1 %v7642_v31, %s8061_s11  ;;  %v5202_v26 = vsel %vm8189_vm5, %v5197_v32, %v5201_v38  ;;  %v12675_v6 = vld [vmem:[#allocation55_spill] sm:$0xff] }
 0x3df   : > { %vm12670_vm10 = vmmov %vm12647_vm11  ;;  %v7626_v52 = vcombine.low %v5192_v14, %v5202_v26 }
 0x3e0   : > { %vm12672_vm11 = vmmov %vm12665_vm12 }
 0x3e1   : > { %v3682_v17 = vpop.permute.xlu1 %3681  ;;  %v3785_v16 = vpop.permute.xlu0 %3784  ;;  %5887 = vrot.lane.b32.xlu0 %v7626_v52, %s8062_s12 }
 0x3e2   : > { %7890 = vmatmul.mubr.msk.bf16.gmra.mrb[36].mxu1 %vm12663_vm0, %v4090_v61  ;;  %v4060_v12 = vsel %vm12665_vm12, %v4028_v48, %v3785_v16  ;;  %v3966_v15 = vsel %vm12669_vm6, %v3934_v50, %v3682_v17  ;;  %vm12671_vm0 = vmmov %vm12664_vm14  ;;  %6137 = vrot.lane.b32.xlu1 %v7661_v45, %s8064_s20 }
 0x3e3   : > { %vm12673_vm14 = vmmov %vm12667_vm1 }
 0x3e4   : > { %vm12674_vm12 = vmmov %vm12668_vm3 }
 0x3e5   : > { %v3717_v1 = vpop.permute.xlu1 %3716  ;;  %v3820_v34 = vpop.permute.xlu0 %3819 }
 0x3e6   : > { %v4092_v22 = vsel %vm12667_vm1, %v4060_v12, %v3820_v34  ;;  %v3998_v11 = vsel %vm12670_vm10, %v3966_v15, %v3717_v1  ;;  %vm12676_vm1 = vmmov %vm12669_vm6 }
 0x3e7   : > { %7893 = vmatprep.mubr.msk.bf16.mxu1 %vm12668_vm3, %v4092_v22  ;;  %vm12677_vm3 = vmmov %vm12670_vm10 }
 0x3e8   : > { %vm12678_vm6 = vmmov %vm12671_vm0 }
 0x3e9   : > { %v3752_v29 = vpop.permute.xlu1 %3751  ;;  %v3822_v63 = vpop.permute.xlu0 %3821  ;;  %vm12679_vm10 = vmmov %vm12672_vm11 }
 0x3ea   : > { %v4030_v55 = vsel %vm12671_vm0, %v3998_v11, %v3752_v29  ;;  %vm12680_vm0 = vmmov %vm12673_vm14 }
 0x3ed   : > { %v3787_v56 = vpop.permute.xlu1 %3786  ;;  %v3614_v42 = vpop.permute.xlu0 %3613 }
 0x3ee   : > { %v4062_v4 = vsel %vm12672_vm11, %v4030_v55, %v3787_v56  ;;  %vm12681_vm11 = vmmov %vm12674_vm12 }
 0x3ef   : > { %v4094_v60 = vsel %vm12673_vm14, %v4062_v4, %v3822_v63  ;;  %vm12682_vm14 = vmmov %vm12676_vm1 }
 0x3f0   : > { %7894 = vmatmul.mubr.msk.bf16.gmra.mrb[40].mxu1 %vm12674_vm12, %v4094_v60  ;;  %vm12683_vm12 = vmmov %vm12677_vm3 }
 0x3f1   : > { %v3534_v57 = vpop.permute.xlu1 %3533  ;;  %v3649_v20 = vpop.permute.xlu0 %3648 }
 0x3f2   : > { %v3871_v19 = vsel %vm1370_vm7, %v12675_v6, %v3534_v57 }
 0x3f3   : > { %v3904_v17 = vsel %vm1419_vm8, %v3871_v19, %v3614_v42 }
 0x3f4   : > { %v3936_v58 = vsel %vm1452_vm9, %v3904_v17, %v3649_v20 }
 0x3f5   : > { %v3536_v25 = vpop.permute.xlu1 %3535  ;;  %v3684_v0 = vpop.permute.xlu0 %3683 }
 0x3f6   : > { %v3968_v12 = vsel %vm12676_vm1, %v3936_v58, %v3684_v0  ;;  %v3874_v28 = vsel %vm1370_vm7, %v10305_v24, %v3536_v25  ;;  %vm12684_vm1 = vmmov %vm12678_vm6  ;;  %v10611_v24 = vld [vmem:[%s12432_s4] ss:$0 sm:$0xff] }
 0x3f9   : > { %v3616_v18 = vpop.permute.xlu1 %3615  ;;  %v3719_v44 = vpop.permute.xlu0 %3718 }
 0x3fa   : > { %v4000_v1 = vsel %vm12677_vm3, %v3968_v12, %v3719_v44  ;;  %v3906_v40 = vsel %vm1419_vm8, %v3874_v28, %v3616_v18  ;;  %vm12685_vm3 = vmmov %vm12679_vm10 }
 0x3fd   : > { %v3651_v16 = vpop.permute.xlu1 %3650  ;;  %v3754_v61 = vpop.permute.xlu0 %3753 }
 0x3fe   : > { %v4032_v34 = vsel %vm12678_vm6, %v4000_v1, %v3754_v61  ;;  %v3938_v2 = vsel %vm1452_vm9, %v3906_v40, %v3651_v16  ;;  %vm12686_vm6 = vmmov %vm12680_vm0 }
 0x401   : > { %v3686_v47 = vpop.permute.xlu1 %3685  ;;  %v3789_v48 = vpop.permute.xlu0 %3788 }
 0x402   : > { %v4064_v30 = vsel %vm12679_vm10, %v4032_v34, %v3789_v48  ;;  %v3970_v5 = vsel %vm12682_vm14, %v3938_v2, %v3686_v47  ;;  %vm12687_vm10 = vmmov %vm12681_vm11 }
 0x405   : > { %v3721_v41 = vpop.permute.xlu1 %3720  ;;  %v3824_v22 = vpop.permute.xlu0 %3823 }
 0x406   : > { %v4096_v9 = vsel %vm12680_vm0, %v4064_v30, %v3824_v22  ;;  %v4002_v35 = vsel %vm12683_vm12, %v3970_v5, %v3721_v41 }
 0x407   : > { %7897 = vmatprep.mubr.msk.bf16.mxu1 %vm12681_vm11, %v4096_v9 }
 0x409   : > { %v3756_v7 = vpop.permute.xlu1 %3755 }
 0x40a   : > { %v4034_v27 = vsel %vm12684_vm1, %v4002_v35, %v3756_v7 }
 0x40d   : > { %v3791_v10 = vpop.permute.xlu1 %3790 }
 0x40e   : > { %v4066_v51 = vsel %vm12685_vm3, %v4034_v27, %v3791_v10 }
 0x411   : > { %v3826_v50 = vpop.permute.xlu1 %3825 }
 0x412   : > { %v4098_v29 = vsel %vm12686_vm6, %v4066_v51, %v3826_v50 }
 0x413   : > { %7898 = vmatmul.mubr.msk.bf16.gmra.mrb[44].mxu1 %vm12687_vm10, %v4098_v29 }
 0x45b   : > { %v7871_v63 = vpop.f32.mrb[16].mxu1 }
 0x45c   : > { %v4338_v59 = vmul.f32 %v7871_v63, %v10611_v24  ;;  %v4204_v15 = vpop.f32.mrb[17].mxu1 }
 0x45d   : > { %v4336_v36 = vmul.f32 %v10611_v24, %v4204_v15  ;;  %v7872_v46 = vpop.f32.mrb[18].mxu1 }
 0x45e   : > { %v10621_v21 = vadd.f32 %v10616_v3, %v4338_v59  ;;  %v4339_v8 = vmul.f32 %v7872_v46, %v10611_v24  ;;  %v4207_v33 = vpop.f32.mrb[19].mxu1 }
 0x45f   : > { %v10625_v37 = vadd.f32 %v10616_v3, %v4336_v36  ;;  %v4337_v62 = vmul.f32 %v10611_v24, %v4207_v33 }
 0x460   : > { %12688 = vst [vmem:[#allocation39_spill] sm:$0xff] %v10621_v21  ;;  %vm4407_vm0 = vcmp.ge.f32.partialorder %v10621_v21, 0.0  ;;  %v4439_v43 = vmul.f32 0.1, %v10621_v21  ;;  %v10631_v11 = vadd.f32 %v10616_v3, %v4339_v8 }
 0x461   : > { %12689 = vst [vmem:[#allocation48_spill] sm:$0xff] %v10625_v37  ;;  %vm4405_vm11 = vcmp.ge.f32.partialorder %v10625_v37, 0.0  ;;  %v4437_v31 = vmul.f32 0.1, %v10625_v37  ;;  %v10636_v23 = vadd.f32 %v10616_v3, %v4337_v62 }
 0x462   : > { %v4471_v55 = vsel %vm4407_vm0, %v10621_v21, %v4439_v43  ;;  %vm4408_vm14 = vcmp.ge.f32.partialorder %v10631_v11, 0.0  ;;  %v4440_v56 = vmul.f32 0.1, %v10631_v11 }
 0x463   : > { %v7724_v42 = vpack.c.bf16 %v4471_v55, %v4471_v55  ;;  %v4469_v39 = vsel %vm4405_vm11, %v10625_v37, %v4437_v31  ;;  %vm4406_vm12 = vcmp.ge.f32.partialorder %v10636_v23, 0.0  ;;  %v4438_v4 = vmul.f32 0.1, %v10636_v23 }
 0x464   : > { %v7722_v45 = vpack.c.bf16 %v4469_v39, %v4469_v39  ;;  %v4472_v49 = vsel %vm4408_vm14, %v10631_v11, %v4440_v56 }
 0x465   : > { %v7725_v60 = vpack.c.bf16 %v4472_v49, %v4472_v49  ;;  %v4470_v54 = vsel %vm4406_vm12, %v10636_v23, %v4438_v4  ;;  %v4615_v38 = vshrl.u32 %v7724_v42, 16  ;;  %v4618_v32 = vshll.u32 %v7724_v42, 16 }
 0x466   : > { %v7723_v57 = vpack.c.bf16 %v4470_v54, %v4470_v54  ;;  %v4598_v20 = vshrl.u32 %v7722_v45, 16  ;;  %v4601_v25 = vshll.u32 %v7722_v45, 16 }
 0x467   : > { %v4617_v14 = vrot.slane %v4615_v38, 7  ;;  %v4623_v26 = vshrl.u32 %v7725_v60, 16  ;;  %v4626_v61 = vshll.u32 %v7725_v60, 16 }
 0x468   : > { %v4600_v52 = vrot.slane %v4598_v20, 7  ;;  %v4606_v0 = vshrl.u32 %v7723_v57, 16  ;;  %v4609_v17 = vshll.u32 %v7723_v57, 16 }
 0x469   : > { %v4620_v6 = vor.u32 %v4618_v32, %v4617_v14  ;;  %v4625_v19 = vrot.slane %v4623_v26, 7  ;;  %v4621_v1 = vrot.slane %v4617_v14, 4 }
 0x46a   : > { %v4603_v18 = vor.u32 %v4601_v25, %v4600_v52  ;;  %v4608_v44 = vrot.slane %v4606_v0, 7  ;;  %v4604_v12 = vrot.slane %v4600_v52, 4 }
 0x46b   : > { %4875 = vrot.lane.b32.xlu1 %v4620_v6, %s8069_s14  ;;  %v4630_v16 = vrot.slane %v4625_v19, 4  ;;  %v4628_v48 = vor.u32 %v4626_v61, %v4625_v19 }
 0x46c   : > { %4869 = vrot.lane.b32.xlu0 %v4603_v18, %s8069_s14  ;;  %v4613_v58 = vrot.slane %v4608_v44, 4  ;;  %v4611_v47 = vor.u32 %v4609_v17, %v4608_v44 }
 0x46d   : > { %v4629_v41 = vsel %vm9330_vm13, %v4621_v1, %v4628_v48 }
 0x46e   : > { %v4612_v30 = vsel %vm9330_vm13, %v4604_v12, %v4611_v47 }
 0x46f   : > { %4879 = vrot.lane.b32.xlu1 %v4630_v16, %s8069_s14 }
 0x470   : > { %4873 = vrot.lane.b32.xlu0 %v4613_v58, %s8069_s14 }
 0x473   : > { %4871 = vrot.lane.b32.xlu1 %v4612_v30, %s8069_s14 }
 0x474   : > { %4877 = vrot.lane.b32.xlu0 %v4629_v41, %s8069_s14 }
 0x483   : > { %v7875_v22 = vpop.f32.mrb[20].mxu1 }
 0x484   : > { %v4342_v9 = vmul.f32 %v7875_v22, %v10611_v24  ;;  %v4220_v7 = vpop.f32.mrb[21].mxu1 }
 0x485   : > { %v4340_v28 = vmul.f32 %v10611_v24, %v4220_v7  ;;  %v7876_v40 = vpop.f32.mrb[22].mxu1 }
 0x486   : > { %v10659_v2 = vadd.f32 %v10616_v3, %v4342_v9  ;;  %v4343_v10 = vmul.f32 %v7876_v40, %v10611_v24  ;;  %v4223_v5 = vpop.f32.mrb[23].mxu1 }
 0x487   : > { %v10663_v35 = vadd.f32 %v10616_v3, %v4340_v28  ;;  %v4341_v27 = vmul.f32 %v10611_v24, %v4223_v5 }
 0x488   : > { %12691 = vst [vmem:[#allocation41_spill] sm:$0xff] %v10659_v2  ;;  %vm4411_vm1 = vcmp.ge.f32.partialorder %v10659_v2, 0.0  ;;  %v4443_v51 = vmul.f32 0.1, %v10659_v2  ;;  %v10669_v50 = vadd.f32 %v10616_v3, %v4343_v10 }
 0x489   : > { %12692 = vst [vmem:[#allocation50_spill] sm:$0xff] %v10663_v35  ;;  %vm4409_vm3 = vcmp.ge.f32.partialorder %v10663_v35, 0.0  ;;  %v4441_v29 = vmul.f32 0.1, %v10663_v35  ;;  %v10674_v63 = vadd.f32 %v10616_v3, %v4341_v27 }
 0x48a   : > { %12693 = vst [vmem:[#allocation44_spill] sm:$0xff] %v10669_v50  ;;  %v4475_v59 = vsel %vm4411_vm1, %v10659_v2, %v4443_v51  ;;  %vm4412_vm6 = vcmp.ge.f32.partialorder %v10669_v50, 0.0  ;;  %v4444_v15 = vmul.f32 0.1, %v10669_v50 }
 0x48b   : > { %v7728_v36 = vpack.c.bf16 %v4475_v59, %v4475_v59  ;;  %v4473_v46 = vsel %vm4409_vm3, %v10663_v35, %v4441_v29  ;;  %vm4410_vm10 = vcmp.ge.f32.partialorder %v10674_v63, 0.0  ;;  %v4442_v8 = vmul.f32 0.1, %v10674_v63 }
 0x48c   : > { %v7726_v33 = vpack.c.bf16 %v4473_v46, %v4473_v46  ;;  %v4476_v62 = vsel %vm4412_vm6, %v10669_v50, %v4444_v15 }
 0x48d   : > { %v7729_v43 = vpack.c.bf16 %v4476_v62, %v4476_v62  ;;  %v4474_v31 = vsel %vm4410_vm10, %v10674_v63, %v4442_v8  ;;  %v4649_v55 = vshrl.u32 %v7728_v36, 16  ;;  %v4652_v4 = vshll.u32 %v7728_v36, 16 }
 0x48e   : > { %v7727_v56 = vpack.c.bf16 %v4474_v31, %v4474_v31  ;;  %v4632_v42 = vshrl.u32 %v7726_v33, 16  ;;  %v4635_v60 = vshll.u32 %v7726_v33, 16 }
 0x48f   : > { %v4651_v39 = vrot.slane %v4649_v55, 7  ;;  %v4657_v45 = vshrl.u32 %v7729_v43, 16  ;;  %v4660_v52 = vshll.u32 %v7729_v43, 16 }
 0x490   : > { %v4634_v49 = vrot.slane %v4632_v42, 7  ;;  %v4640_v54 = vshrl.u32 %v7727_v56, 16  ;;  %v4643_v32 = vshll.u32 %v7727_v56, 16 }
 0x491   : > { %v4654_v38 = vor.u32 %v4652_v4, %v4651_v39  ;;  %v4659_v57 = vrot.slane %v4657_v45, 7  ;;  %v4655_v18 = vrot.slane %v4651_v39, 4 }
 0x492   : > { %v4637_v20 = vor.u32 %v4635_v60, %v4634_v49  ;;  %v4642_v14 = vrot.slane %v4640_v54, 7  ;;  %v4638_v19 = vrot.slane %v4634_v49, 4 }
 0x493   : > { %4887 = vrot.lane.b32.xlu1 %v4654_v38, %s8069_s14  ;;  %v4664_v26 = vrot.slane %v4659_v57, 4  ;;  %v4662_v6 = vor.u32 %v4660_v52, %v4659_v57 }
 0x494   : > { %4881 = vrot.lane.b32.xlu0 %v4637_v20, %s8069_s14  ;;  %v4647_v25 = vrot.slane %v4642_v14, 4  ;;  %v4645_v0 = vor.u32 %v4643_v32, %v4642_v14 }
 0x495   : > { %v4663_v16 = vsel %vm9330_vm13, %v4655_v18, %v4662_v6 }
 0x496   : > { %v4646_v44 = vsel %vm9330_vm13, %v4638_v19, %v4645_v0 }
 0x497   : > { %4891 = vrot.lane.b32.xlu1 %v4664_v26, %s8069_s14 }
 0x498   : > { %4885 = vrot.lane.b32.xlu0 %v4647_v25, %s8069_s14 }
 0x49b   : > { %4883 = vrot.lane.b32.xlu1 %v4646_v44, %s8069_s14  ;;  %v7879_v17 = vpop.f32.mrb[24].mxu1 }
 0x49c   : > { %v4346_v61 = vmul.f32 %v7879_v17, %v10611_v24  ;;  %4889 = vrot.lane.b32.xlu0 %v4663_v16, %s8069_s14  ;;  %v4236_v58 = vpop.f32.mrb[25].mxu1 }
 0x49d   : > { %v4344_v47 = vmul.f32 %v10611_v24, %v4236_v58  ;;  %v7880_v48 = vpop.f32.mrb[26].mxu1 }
 0x49e   : > { %v10697_v12 = vadd.f32 %v10616_v3, %v4346_v61  ;;  %v4347_v1 = vmul.f32 %v7880_v48, %v10611_v24  ;;  %v4239_v30 = vpop.f32.mrb[27].mxu1 }
 0x49f   : > { %v10701_v41 = vadd.f32 %v10616_v3, %v4344_v47  ;;  %v4345_v22 = vmul.f32 %v10611_v24, %v4239_v30 }
 0x4a0   : > { %12694 = vst [vmem:[#allocation52_spill] sm:$0xff] %v10697_v12  ;;  %vm4415_vm0 = vcmp.ge.f32.partialorder %v10697_v12, 0.0  ;;  %v4447_v9 = vmul.f32 0.1, %v10697_v12  ;;  %v10707_v7 = vadd.f32 %v10616_v3, %v4347_v1 }
 0x4a1   : > { %12695 = vst [vmem:[#allocation51_spill] sm:$0xff] %v10701_v41  ;;  %vm4413_vm11 = vcmp.ge.f32.partialorder %v10701_v41, 0.0  ;;  %v4445_v28 = vmul.f32 0.1, %v10701_v41  ;;  %v10712_v40 = vadd.f32 %v10616_v3, %v4345_v22 }
 0x4a2   : > { %12696 = vst [vmem:[#allocation54_spill] sm:$0xff] %v10707_v7  ;;  %v4479_v10 = vsel %vm4415_vm0, %v10697_v12, %v4447_v9  ;;  %vm4416_vm14 = vcmp.ge.f32.partialorder %v10707_v7, 0.0  ;;  %v4448_v5 = vmul.f32 0.1, %v10707_v7 }
 0x4a3   : > { %12697 = vst [vmem:[#allocation46_spill] sm:$0xff] %v10712_v40  ;;  %v7732_v27 = vpack.c.bf16 %v4479_v10, %v4479_v10  ;;  %v4477_v51 = vsel %vm4413_vm11, %v10701_v41, %v4445_v28  ;;  %vm4414_vm12 = vcmp.ge.f32.partialorder %v10712_v40, 0.0  ;;  %v4446_v29 = vmul.f32 0.1, %v10712_v40 }
 0x4a4   : > { %v7730_v59 = vpack.c.bf16 %v4477_v51, %v4477_v51  ;;  %v4480_v15 = vsel %vm4416_vm14, %v10707_v7, %v4448_v5 }
 0x4a5   : > { %v7733_v36 = vpack.c.bf16 %v4480_v15, %v4480_v15  ;;  %v4478_v46 = vsel %vm4414_vm12, %v10712_v40, %v4446_v29  ;;  %v7883_v8 = vpop.f32.mrb[28].mxu1  ;;  %v4683_v33 = vshrl.u32 %v7732_v27, 16  ;;  %v4686_v55 = vshll.u32 %v7732_v27, 16 }
 0x4a6   : > { %v7731_v62 = vpack.c.bf16 %v4478_v46, %v4478_v46  ;;  %v4350_v43 = vmul.f32 %v7883_v8, %v10611_v24  ;;  %v4252_v31 = vpop.f32.mrb[29].mxu1  ;;  %v4666_v56 = vshrl.u32 %v7730_v59, 16  ;;  %v4669_v45 = vshll.u32 %v7730_v59, 16 }
 0x4a7   : > { %v4348_v42 = vmul.f32 %v10611_v24, %v4252_v31  ;;  %v7884_v39 = vpop.f32.mrb[30].mxu1  ;;  %v4685_v4 = vrot.slane %v4683_v33, 7  ;;  %v4691_v49 = vshrl.u32 %v7733_v36, 16  ;;  %v4694_v47 = vshll.u32 %v7733_v36, 16 }
 0x4a8   : > { %v10725_v60 = vadd.f32 %v10616_v3, %v4350_v43  ;;  %v4351_v54 = vmul.f32 %v7884_v39, %v10611_v24  ;;  %v4255_v38 = vpop.f32.mrb[31].mxu1  ;;  %v4668_v57 = vrot.slane %v4666_v56, 7  ;;  %v4674_v20 = vshrl.u32 %v7731_v62, 16 }
 0x4a9   : > { %v4688_v14 = vor.u32 %v4686_v55, %v4685_v4  ;;  %v4693_v32 = vrot.slane %v4691_v49, 7  ;;  %v10729_v26 = vadd.f32 %v10616_v3, %v4348_v42  ;;  %v4349_v0 = vmul.f32 %v10611_v24, %v4255_v38 }
 0x4aa   : > { %12698 = vst [vmem:[#allocation42_spill] sm:$0xff] %v10725_v60  ;;  %v4671_v52 = vor.u32 %v4669_v45, %v4668_v57  ;;  %v4451_v25 = vmul.f32 0.1, %v10725_v60  ;;  %vm4419_vm1 = vcmp.ge.f32.partialorder %v10725_v60, 0.0  ;;  %v10736_v6 = vadd.f32 %v10616_v3, %v4351_v54 }
 0x4ab   : > { %12699 = vst [vmem:[#allocation43_spill] sm:$0xff] %v10729_v26  ;;  %4899 = vrot.lane.b32.xlu1 %v4688_v14, %s8069_s14  ;;  %v4676_v19 = vrot.slane %v4674_v20, 7  ;;  %v4698_v44 = vrot.slane %v4693_v32, 4  ;;  %v4449_v17 = vmul.f32 0.1, %v10729_v26  ;;  %vm4417_vm3 = vcmp.ge.f32.partialorder %v10729_v26, 0.0 }
 0x4ac   : > { %12700 = vst [vmem:[#allocation45_spill] sm:$0xff] %v10736_v6  ;;  %4893 = vrot.lane.b32.xlu0 %v4671_v52, %s8069_s14  ;;  %v4483_v48 = vsel %vm4419_vm1, %v10725_v60, %v4451_v25  ;;  %v10744_v1 = vadd.f32 %v10616_v3, %v4349_v0  ;;  %vm4420_vm6 = vcmp.ge.f32.partialorder %v10736_v6, 0.0  ;;  %v4452_v9 = vmul.f32 0.1, %v10736_v6 }
 0x4ad   : > { %v7887_v18 = vpop.f32.mrb[32].mxu1  ;;  %v4681_v58 = vrot.slane %v4676_v19, 4  ;;  %v4677_v5 = vshll.u32 %v7731_v62, 16  ;;  %v4689_v29 = vrot.slane %v4685_v4, 4  ;;  %v4696_v59 = vor.u32 %v4694_v47, %v4693_v32 }
 0x4ae   : > { %v4354_v16 = vmul.f32 %v7887_v18, %v10611_v24  ;;  %v4268_v61 = vpop.f32.mrb[33].mxu1  ;;  %12701 = vst [vmem:[#allocation49_spill] sm:$0xff] %v10744_v1  ;;  %v7736_v15 = vpack.c.bf16 %v4483_v48, %v4483_v48  ;;  %v4481_v36 = vsel %vm4417_vm3, %v10729_v26, %v4449_v17  ;;  %v4672_v46 = vrot.slane %v4668_v57, 4 }
 0x4af   : > { %v4352_v30 = vmul.f32 %v10611_v24, %v4268_v61  ;;  %4903 = vrot.lane.b32.xlu1 %v4698_v44, %s8069_s14  ;;  %v7888_v22 = vpop.f32.mrb[34].mxu1  ;;  %v4679_v8 = vor.u32 %v4677_v5, %v4676_v19  ;;  %v4450_v33 = vmul.f32 0.1, %v10744_v1  ;;  %v4697_v62 = vsel %vm9330_vm13, %v4689_v29, %v4696_v59 }
 0x4b0   : > { %v4355_v28 = vmul.f32 %v7888_v22, %v10611_v24  ;;  %4897 = vrot.lane.b32.xlu0 %v4681_v58, %s8069_s14  ;;  %v4271_v10 = vpop.f32.mrb[35].mxu1  ;;  %v10753_v27 = vadd.f32 %v10616_v3, %v4354_v16  ;;  %v4484_v31 = vsel %vm4420_vm6, %v10736_v6, %v4452_v9  ;;  %vm4418_vm10 = vcmp.ge.f32.partialorder %v10744_v1, 0.0 }
 0x4b1   : > { %v4353_v51 = vmul.f32 %v10611_v24, %v4271_v10  ;;  %v10761_v43 = vadd.f32 %v10616_v3, %v4352_v30  ;;  %v4680_v56 = vsel %vm9330_vm13, %v4672_v46, %v4679_v8  ;;  %v7734_v42 = vpack.c.bf16 %v4481_v36, %v4481_v36 }
 0x4b2   : > { %12702 = vst [vmem:[#allocation47_spill] sm:$0xff] %v10753_v27  ;;  %v10770_v55 = vadd.f32 %v10616_v3, %v4355_v28  ;;  %v4455_v39 = vmul.f32 0.1, %v10753_v27  ;;  %vm4423_vm0 = vcmp.ge.f32.partialorder %v10753_v27, 0.0  ;;  %v4717_v38 = vshrl.u32 %v7736_v15, 16 }
 0x4b3   : > { %12703 = vst [vmem:[#allocation38_spill] sm:$0xff] %v10761_v43  ;;  %v10777_v4 = vadd.f32 %v10616_v3, %v4353_v51  ;;  %4895 = vrot.lane.b32.xlu1 %v4680_v56, %s8069_s14  ;;  %v7737_v57 = vpack.c.bf16 %v4484_v31, %v4484_v31  ;;  %v4482_v20 = vsel %vm4418_vm10, %v10744_v1, %v4450_v33  ;;  %vm4421_vm11 = vcmp.ge.f32.partialorder %v10761_v43, 0.0 }
 0x4b4   : > { %12704 = vst [vmem:[#allocation53_spill] sm:$0xff] %v10770_v55  ;;  %4901 = vrot.lane.b32.xlu0 %v4697_v62, %s8069_s14  ;;  %v4453_v14 = vmul.f32 0.1, %v10761_v43  ;;  %v4456_v52 = vmul.f32 0.1, %v10770_v55  ;;  %v10787_v0 = vrot.slane %v4717_v38, 7  ;;  %v4487_v44 = vsel %vm4423_vm0, %v10753_v27, %v4455_v39 }
 0x4b5   : > { %12705 = vst [vmem:[#allocation40_spill] sm:$0xff] %v10777_v4  ;;  %v7891_v45 = vpop.f32.mrb[36].mxu1  ;;  %v4720_v19 = vshll.u32 %v7736_v15, 16  ;;  %vm4424_vm14 = vcmp.ge.f32.partialorder %v10770_v55, 0.0  ;;  %v4454_v17 = vmul.f32 0.1, %v10777_v4  ;;  %v7735_v48 = vpack.c.bf16 %v4482_v20, %v4482_v20 }
 0x4b6   : > { %v4358_v49 = vmul.f32 %v7891_v45, %v10611_v24  ;;  %v4284_v54 = vpop.f32.mrb[37].mxu1  ;;  %v4700_v16 = vshrl.u32 %v7734_v42, 16  ;;  %vm4422_vm12 = vcmp.ge.f32.partialorder %v10777_v4, 0.0  ;;  %v4703_v22 = vshll.u32 %v7734_v42, 16 }
 0x4b7   : > { %v7892_v32 = vpop.f32.mrb[38].mxu1  ;;  %v4356_v25 = vmul.f32 %v10611_v24, %v4284_v54  ;;  %v4722_v58 = vor.u32 %v4720_v19, %v10787_v0  ;;  %v4485_v9 = vsel %vm4421_vm11, %v10761_v43, %v4453_v14  ;;  %v4488_v28 = vsel %vm4424_vm14, %v10770_v55, %v4456_v52 }
 0x4b8   : > { %v4287_v18 = vpop.f32.mrb[39].mxu1  ;;  %v10794_v61 = vadd.f32 %v10616_v3, %v4358_v49  ;;  %v4359_v47 = vmul.f32 %v7892_v32, %v10611_v24  ;;  %v4702_v30 = vrot.slane %v4700_v16, 7  ;;  %v4725_v5 = vshrl.u32 %v7737_v57, 16 }
 0x4b9   : > { %v10803_v10 = vadd.f32 %v10616_v3, %v4356_v25  ;;  %4911 = vrot.lane.b32.xlu1 %v4722_v58, %s8069_s14  ;;  %v7740_v51 = vpack.c.bf16 %v4487_v44, %v4487_v44  ;;  %v4486_v29 = vsel %vm4422_vm12, %v10777_v4, %v4454_v17  ;;  %v4357_v15 = vmul.f32 %v10611_v24, %v4287_v18 }
 0x4ba   : > { %12706 = vst [vmem:[#allocation55_spill] sm:$0xff] %v10794_v61  ;;  %v4705_v59 = vor.u32 %v4703_v22, %v4702_v30  ;;  %v4459_v36 = vmul.f32 0.1, %v10794_v61  ;;  %v10810_v46 = vadd.f32 %v10616_v3, %v4359_v47  ;;  %v4727_v8 = vrot.slane %v4725_v5, 7 }
 0x4bb   : > { %12707 = vst [vmem:[#allocation15_spill] sm:$0xff] %v10803_v10  ;;  %v7738_v33 = vpack.c.bf16 %v4485_v9, %v4485_v9  ;;  %v10812_v62 = vpack.c.bf16 %v4488_v28, %v4488_v28  ;;  %vm4427_vm1 = vcmp.ge.f32.partialorder %v10794_v61, 0.0  ;;  %v4708_v31 = vshrl.u32 %v7735_v48, 16 }
 0x4bc   : > { %12708 = vst [vmem:[#allocation56_spill] sm:$0xff] %v10810_v46  ;;  %4905 = vrot.lane.b32.xlu0 %v4705_v59, %s8069_s14  ;;  %v7739_v56 = vpack.c.bf16 %v4486_v29, %v4486_v29  ;;  %vm4425_vm3 = vcmp.ge.f32.partialorder %v10803_v10, 0.0  ;;  %v4457_v42 = vmul.f32 0.1, %v10803_v10  ;;  %v4732_v39 = vrot.slane %v4727_v8, 4 }
 0x4bd   : > { %v10819_v45 = vadd.f32 %v10616_v3, %v4357_v15  ;;  %v4710_v49 = vrot.slane %v4708_v31, 7  ;;  %v4711_v54 = vshll.u32 %v7735_v48, 16  ;;  %v4751_v38 = vshrl.u32 %v7740_v51, 16 }
 0x4be   : > { %v4491_v20 = vsel %vm4427_vm1, %v10794_v61, %v4459_v36  ;;  %vm4428_vm6 = vcmp.ge.f32.partialorder %v10810_v46, 0.0  ;;  %v4460_v14 = vmul.f32 0.1, %v10810_v46  ;;  %4915 = vrot.lane.b32.xlu1 %v4732_v39, %s8069_s14  ;;  %v4728_v32 = vshll.u32 %v7737_v57, 16 }
 0x4bf   : > { %12709 = vst [vmem:[#allocation57_spill] sm:$0xff] %v10819_v45  ;;  %v4715_v52 = vrot.slane %v4710_v49, 4  ;;  %v4706_v25 = vrot.slane %v4702_v30, 4  ;;  %v4713_v19 = vor.u32 %v4711_v54, %v4710_v49  ;;  %v4734_v44 = vshrl.u32 %v7738_v33, 16 }
 0x4c0   : > { %v4730_v17 = vor.u32 %v4728_v32, %v4727_v8  ;;  %v10825_v16 = vrot.slane %v4751_v38, 7  ;;  %v4759_v48 = vshrl.u32 %v10812_v62, 16  ;;  %v4458_v22 = vmul.f32 0.1, %v10819_v45 }
 0x4c1   : > { %4909 = vrot.lane.b32.xlu0 %v4715_v52, %s8069_s14  ;;  %v4714_v57 = vsel %vm9330_vm13, %v4706_v25, %v4713_v19  ;;  %v4742_v30 = vshrl.u32 %v7739_v56, 16  ;;  %v7744_v28 = vpack.c.bf16 %v4491_v20, %v4491_v20  ;;  %vm4426_vm10 = vcmp.ge.f32.partialorder %v10819_v45, 0.0 }
 0x4c2   : > { %4907 = vrot.lane.b32.xlu1 %v4714_v57, %s8069_s14  ;;  %v4723_v5 = vrot.slane %v10787_v0, 4  ;;  %v4754_v29 = vshll.u32 %v7740_v51, 16  ;;  %v4489_v15 = vsel %vm4425_vm3, %v10803_v10, %v4457_v42  ;;  %v4492_v36 = vsel %vm4428_vm6, %v10810_v46, %v4460_v14 }
 0x4c3   : > { %v7895_v18 = vpop.f32.mrb[40].mxu1  ;;  %v4736_v8 = vrot.slane %v4734_v44, 7  ;;  %v4761_v51 = vrot.slane %v4759_v48, 7  ;;  %v4490_v54 = vsel %vm4426_vm10, %v10819_v45, %v4458_v22  ;;  %v4737_v42 = vshll.u32 %v7738_v33, 16 }
 0x4c4   : > { %v4362_v58 = vmul.f32 %v7895_v18, %v10611_v24  ;;  %v4300_v47 = vpop.f32.mrb[41].mxu1  ;;  %v4731_v39 = vsel %vm9330_vm13, %v4723_v5, %v4730_v17  ;;  %v4756_v49 = vor.u32 %v4754_v29, %v10825_v16  ;;  %v4744_v20 = vrot.slane %v4742_v30, 7 }
 0x4c5   : > { %v7896_v9 = vpop.f32.mrb[42].mxu1  ;;  %v4360_v31 = vmul.f32 %v10611_v24, %v4300_v47  ;;  %4913 = vrot.lane.b32.xlu0 %v4731_v39, %s8069_s14  ;;  %v7742_v32 = vpack.c.bf16 %v4489_v15, %v4489_v15  ;;  %v4739_v52 = vor.u32 %v4737_v42, %v4736_v8  ;;  %v4745_v19 = vshll.u32 %v7739_v56, 16 }
 0x4c6   : > { %v4303_v59 = vpop.f32.mrb[43].mxu1  ;;  %v10847_v0 = vadd.f32 %v10616_v3, %v4362_v58  ;;  %v4363_v38 = vmul.f32 %v7896_v9, %v10611_v24  ;;  %4923 = vrot.lane.b32.xlu1 %v4756_v49, %s8069_s14  ;;  %v7745_v18 = vpack.c.bf16 %v4492_v36, %v4492_v36  ;;  %v7743_v44 = vpack.c.bf16 %v4490_v54, %v4490_v54  ;;  %v10875_v49 = vpop.permute.xlu1 %5967 }
 0x4c7   : > { %v4361_v14 = vmul.f32 %v10611_v24, %v4303_v59  ;;  %v10855_v25 = vadd.f32 %v10616_v3, %v4360_v31  ;;  %v4766_v58 = vrot.slane %v4761_v51, 4  ;;  %v4747_v47 = vor.u32 %v4745_v19, %v4744_v20 }
 0x4c8   : > { %12710 = vst [vmem:[#allocation58_spill] sm:$0xff] %v10847_v0  ;;  %v4463_v17 = vmul.f32 0.1, %v10847_v0  ;;  %vm4431_vm0 = vcmp.ge.f32.partialorder %v10847_v0, 0.0  ;;  %v10861_v33 = vadd.f32 %v10616_v3, %v4363_v38  ;;  %v4785_v48 = vshrl.u32 %v7744_v28, 16 }
 0x4c9   : > { %12711 = vst [vmem:[#allocation59_spill] sm:$0xff] %v10855_v25  ;;  %4917 = vrot.lane.b32.xlu0 %v4739_v52, %s8069_s14  ;;  %v10864_v22 = vadd.f32 %v10616_v3, %v4361_v14  ;;  %v4762_v56 = vshll.u32 %v10812_v62, 16  ;;  %v4461_v57 = vmul.f32 0.1, %v10855_v25  ;;  %v4749_v9 = vrot.slane %v4744_v20, 4 }
 0x4ca   : > { %12712 = vst [vmem:[#allocation60_spill] sm:$0xff] %v10861_v33  ;;  %4927 = vrot.lane.b32.xlu1 %v4766_v58, %s8069_s14  ;;  %v4740_v30 = vrot.slane %v4736_v8, 4  ;;  %v4768_v5 = vshrl.u32 %v7742_v32, 16  ;;  %v4495_v29 = vsel %vm4431_vm0, %v10847_v0, %v4463_v17  ;;  %v4787_v15 = vrot.slane %v4785_v48, 7 }
 0x4cb   : > { %12713 = vst [vmem:[#allocation61_spill] sm:$0xff] %v10864_v22  ;;  %v4764_v59 = vor.u32 %v4762_v56, %v4761_v51  ;;  %v4793_v36 = vshrl.u32 %v7745_v18, 16  ;;  %vm4429_vm11 = vcmp.ge.f32.partialorder %v10855_v25, 0.0  ;;  %v4464_v31 = vmul.f32 0.1, %v10861_v33 }
 0x4cc   : > { %v4748_v39 = vsel %vm9330_vm13, %v4740_v30, %v4747_v47  ;;  %v4776_v62 = vshrl.u32 %v7743_v44, 16  ;;  %vm4432_vm14 = vcmp.ge.f32.partialorder %v10861_v33, 0.0  ;;  %v4462_v8 = vmul.f32 0.1, %v10864_v22 }
 0x4cd   : > { %4921 = vrot.lane.b32.xlu0 %v4749_v9, %s8069_s14  ;;  %v4757_v51 = vrot.slane %v10825_v16, 4  ;;  %v4788_v54 = vshll.u32 %v7744_v28, 16  ;;  %v7748_v42 = vpack.c.bf16 %v4495_v29, %v4495_v29  ;;  %vm4430_vm12 = vcmp.ge.f32.partialorder %v10864_v22, 0.0  ;;  %v10889_v9 = vpop.permute.xlu1 %6137 }
 0x4ce   : > { %4919 = vrot.lane.b32.xlu1 %v4748_v39, %s8069_s14  ;;  %v4770_v38 = vrot.slane %v4768_v5, 7  ;;  %v4493_v20 = vsel %vm4429_vm11, %v10855_v25, %v4461_v57  ;;  %v4795_v19 = vrot.slane %v4793_v36, 7  ;;  %v4496_v17 = vsel %vm4432_vm14, %v10861_v33, %v4464_v31  ;;  %12714 = vst [vmem:[#allocation62_spill] sm:$0xff] %v10889_v9  ;;  %v10891_v5 = vpop.permute.xlu0 %5887 }
 0x4cf   : > { %v4765_v14 = vsel %vm9330_vm13, %v4757_v51, %v4764_v59  ;;  %v4790_v52 = vor.u32 %v4788_v54, %v4787_v15  ;;  %v4771_v58 = vshll.u32 %v7742_v32, 16  ;;  %v4778_v47 = vrot.slane %v4776_v62, 7 }
 0x4d0   : > { %v4494_v16 = vsel %vm4430_vm12, %v10864_v22, %v4462_v8  ;;  %v7746_v28 = vpack.c.bf16 %v4493_v20, %v4493_v20  ;;  %v4779_v56 = vshll.u32 %v7743_v44, 16  ;;  %v7749_v57 = vpack.c.bf16 %v4496_v17, %v4496_v17  ;;  %v5020_v20 = vld [vmem:[#allocation2 + $0x18] sm:$0xf] }
 0x4d1   : > { %4925 = vrot.lane.b32.xlu0 %v4765_v14, %s8069_s14  ;;  %v4773_v48 = vor.u32 %v4771_v58, %v4770_v38  ;;  %v4800_v30 = vrot.slane %v4795_v19, 4  ;;  %v4819_v29 = vshrl.u32 %v7748_v42, 16  ;;  %v7747_v59 = vpack.c.bf16 %v4494_v16, %v4494_v16 }
 0x4d2   : > { %4935 = vrot.lane.b32.xlu1 %v4790_v52, %s8069_s14  ;;  %v4781_v36 = vor.u32 %v4779_v56, %v4778_v47  ;;  %v4796_v32 = vshll.u32 %v7745_v18, 16  ;;  %v4783_v31 = vrot.slane %v4778_v47, 4  ;;  %v4774_v39 = vrot.slane %v4770_v38, 4  ;;  %v5013_v47 = vld [vmem:[#allocation2 + $0xc] sm:$0xf] }
 0x4d3   : > { %v4802_v62 = vshrl.u32 %v7746_v28, 16  ;;  %v10895_v51 = vrot.slane %v4819_v29, 7  ;;  %v4827_v44 = vshrl.u32 %v7749_v57, 16  ;;  %v4810_v52 = vshrl.u32 %v7747_v59, 16 }
 0x4d4   : > { %v4798_v8 = vor.u32 %v4796_v32, %v4795_v19  ;;  %v4782_v54 = vsel %vm9330_vm13, %v4774_v39, %v4781_v36  ;;  %v4791_v17 = vrot.slane %v4787_v15, 4  ;;  %v4822_v58 = vshll.u32 %v7748_v42, 16  ;;  %v5024_v36 = vld [vmem:[#allocation2 + $0x20] sm:$0x1] }
 0x4d5   : > { %4929 = vrot.lane.b32.xlu0 %v4773_v48, %s8069_s14  ;;  %v4804_v16 = vrot.slane %v4802_v62, 7  ;;  %v4829_v29 = vrot.slane %v4827_v44, 7  ;;  %v4805_v15 = vshll.u32 %v7746_v28, 16  ;;  %v4812_v42 = vrot.slane %v4810_v52, 7  ;;  %v5017_v62 = vld [vmem:[#allocation2 + $0x14] sm:$0x1] }
 0x4d6   : > { %4939 = vrot.lane.b32.xlu1 %v4800_v30, %s8069_s14  ;;  %v4799_v56 = vsel %vm9330_vm13, %v4791_v17, %v4798_v8  ;;  %v4824_v30 = vor.u32 %v4822_v58, %v10895_v51  ;;  %v4830_v17 = vshll.u32 %v7749_v57, 16  ;;  %vm12717_vm1 = vcmask 60416  }
 0x4d7   : > { %v4834_v44 = vrot.slane %v4829_v29, 4  ;;  %vm12718_vm3 = vmmov %vm12717_vm1 }
 0x4d8   : > { %vm12724_vm14 = vmmov %vm12717_vm1 }
 0x4d9   : > { %4933 = vrot.lane.b32.xlu0 %v4783_v31, %s8069_s14  ;;  %vm12725_vm12 = vmmov %vm12717_vm1 }
 0x4da   : > { %4931 = vrot.lane.b32.xlu1 %v4782_v54, %s8069_s14 }
 0x4dd   : > { %v4876_v14 = vpop.permute.xlu1 %4875  ;;  %4937 = vrot.lane.b32.xlu0 %v4799_v56, %s8069_s14  ;;  %v4832_v56 = vor.u32 %v4830_v17, %v4829_v29 }
 0x4de   : > { %v5021_v38 = vsel %vm9251_vm15, %v4876_v14, %v5020_v20  ;;  %v4870_v19 = vpop.permute.xlu0 %4869  ;;  %4947 = vrot.lane.b32.xlu1 %v4824_v30, %s8069_s14  ;;  %v4807_v20 = vor.u32 %v4805_v15, %v4804_v16  ;;  %v4813_v14 = vshll.u32 %v7747_v59, 16 }
 0x4df   : > { %5022 = vst [vmem:[#allocation2 + $0x18] sm:$0xf] %v5021_v38  ;;  %v5014_v48 = vsel %vm9251_vm15, %v4870_v19, %v5013_v47  ;;  %v4817_v47 = vrot.slane %v4812_v42, 4  ;;  %v4808_v19 = vrot.slane %v4804_v16, 4 }
 0x4e0   : > { %5015 = vst [vmem:[#allocation2 + $0xc] sm:$0xf] %v5014_v48  ;;  %v4815_v28 = vor.u32 %v4813_v14, %v4812_v42 }
 0x4e1   : > { %v4880_v32 = vpop.permute.xlu1 %4879  ;;  %4941 = vrot.lane.b32.xlu0 %v4807_v20, %s8069_s14 }
 0x4e2   : > { %v5025_v39 = vsel %vm9617_vm2, %v4880_v32, %v5024_v36  ;;  %v4874_v54 = vpop.permute.xlu0 %4873  ;;  %4951 = vrot.lane.b32.xlu1 %v4834_v44, %s8069_s14  ;;  %v4816_v57 = vsel %vm9330_vm13, %v4808_v19, %v4815_v28  ;;  %v4825_v32 = vrot.slane %v10895_v51, 4 }
 0x4e3   : > { %5026 = vst [vmem:[#allocation2 + $0x20] sm:$0x1] %v5025_v39  ;;  %v5018_v8 = vsel %vm9617_vm2, %v4874_v54, %v5017_v62 }
 0x4e4   : > { %5019 = vst [vmem:[#allocation2 + $0x14] sm:$0x1] %v5018_v8  ;;  %v4833_v20 = vsel %vm9330_vm13, %v4825_v32, %v4832_v56 }
 0x4e5   : > { %v4872_v52 = vpop.permute.xlu1 %4871  ;;  %4945 = vrot.lane.b32.xlu0 %v4817_v47, %s8069_s14 }
 0x4e6   : > { %5016 = vst.msk [vmem:[#allocation2 + $0x10] sm:$0xf] %vm12717_vm1, %v4872_v52  ;;  %v7899_v58 = vpop.f32.mrb[44].mxu1  ;;  %v4878_v38 = vpop.permute.xlu0 %4877  ;;  %4943 = vrot.lane.b32.xlu1 %v4816_v57, %s8069_s14 }
 0x4e7   : > { %v4366_v48 = vmul.f32 %v7899_v58, %v10611_v24  ;;  %5023 = vst.msk [vmem:[#allocation2 + $0x1c] sm:$0xf] %vm12718_vm3, %v4878_v38  ;;  %v4316_v59 = vpop.f32.mrb[45].mxu1  ;;  %vm12726_vm3 = vcmask 1043456  }
 0x4e8   : > { %v4364_v30 = vmul.f32 %v10611_v24, %v4316_v59  ;;  %v7900_v15 = vpop.f32.mrb[46].mxu1 }
 0x4e9   : > { %v10924_v36 = vadd.f32 %v10616_v3, %v4366_v48  ;;  %v4367_v42 = vmul.f32 %v7900_v15, %v10611_v24  ;;  %v4319_v16 = vpop.f32.mrb[47].mxu1  ;;  %4949 = vrot.lane.b32.xlu0 %v4833_v20, %s8069_s14 }
 0x4ea   : > { %v10930_v29 = vadd.f32 %v10616_v3, %v4364_v30  ;;  %v4365_v39 = vmul.f32 %v10611_v24, %v4319_v16 }
 0x4eb   : > { %12719 = vst [vmem:[#allocation7_spill] sm:$0xff] %v10924_v36  ;;  %vm4435_vm6 = vcmp.ge.f32.partialorder %v10924_v36, 0.0  ;;  %v4467_v62 = vmul.f32 0.1, %v10924_v36  ;;  %v10936_v54 = vadd.f32 %v10616_v3, %v4367_v42 }
 0x4ec   : > { %12720 = vst [vmem:[#allocation37_spill] sm:$0xff] %v10930_v29  ;;  %vm4433_vm10 = vcmp.ge.f32.partialorder %v10930_v29, 0.0  ;;  %v4465_v8 = vmul.f32 0.1, %v10930_v29  ;;  %v10943_v51 = vadd.f32 %v10616_v3, %v4365_v39 }
 0x4ed   : > { %12721 = vst [vmem:[#allocation63_spill] sm:$0xff] %v10936_v54  ;;  %v4499_v24 = vsel %vm4435_vm6, %v10924_v36, %v4467_v62  ;;  %vm4436_vm0 = vcmp.ge.f32.partialorder %v10936_v54, 0.0  ;;  %v4468_v14 = vmul.f32 0.1, %v10936_v54  ;;  %vm12727_vm6 = vmmov %vm12717_vm1 }
 0x4ee   : > { %12722 = vst [vmem:[#allocation64_spill] sm:$0xff] %v10943_v51  ;;  %v7752_v44 = vpack.c.bf16 %v4499_v24, %v4499_v24  ;;  %v4497_v28 = vsel %vm4433_vm10, %v10930_v29, %v4465_v8  ;;  %vm4434_vm11 = vcmp.ge.f32.partialorder %v10943_v51, 0.0  ;;  %v4466_v52 = vmul.f32 0.1, %v10943_v51  ;;  %v5132_v8 = vld [vmem:[#allocation2 + $0x1c] sm:$0xf]  ;;  %vm12728_vm10 = vmmov %vm12726_vm3 }
 0x4ef   : > { %v7750_v17 = vpack.c.bf16 %v4497_v28, %v4497_v28  ;;  %v4500_v58 = vsel %vm4436_vm0, %v10936_v54, %v4468_v14  ;;  %vm12729_vm0 = vmmov %vm12717_vm1 }
 0x4f0   : > { %v7753_v3 = vpack.c.bf16 %v4500_v58, %v4500_v58  ;;  %v4498_v38 = vsel %vm4434_vm11, %v10943_v51, %v4466_v52  ;;  %v4853_v47 = vshrl.u32 %v7752_v44, 16  ;;  %v4856_v56 = vshll.u32 %v7752_v44, 16  ;;  %vm12730_vm11 = vmmov %vm12729_vm0 }
 0x4f1   : > { %v7751_v19 = vpack.c.bf16 %v4498_v38, %v4498_v38  ;;  %v4836_v48 = vshrl.u32 %v7750_v17, 16  ;;  %v4839_v57 = vshll.u32 %v7750_v17, 16  ;;  %v5627_v58 = vrot.slane %v5132_v8, 5  ;;  %v10958_v38 = vld [vmem:[#allocation2 + $0x10] sm:$0xf] }
 0x4f2   : > { %v4855_v59 = vrot.slane %v4853_v47, 7  ;;  %v4861_v30 = vshrl.u32 %v7753_v3, 16  ;;  %v4864_v14 = vshll.u32 %v7753_v3, 16 }
 0x4f3   : > { %v4838_v15 = vrot.slane %v4836_v48, 7  ;;  %v4844_v42 = vshrl.u32 %v7751_v19, 16  ;;  %v4847_v20 = vshll.u32 %v7751_v19, 16  ;;  %v5629_v19 = vrot.slane %v5627_v58, 4 }
 0x4f4   : > { %v4858_v16 = vor.u32 %v4856_v56, %v4855_v59  ;;  %v4863_v32 = vrot.slane %v4861_v30, 7  ;;  %v4859_v47 = vrot.slane %v4855_v59, 4  ;;  %v10962_v56 = vld [vmem:[#allocation2 + $0x20] sm:$0x1]  ;;  %v5620_v30 = vrot.slane %v10958_v38, 5 }
 0x4f5   : > { %v4841_v39 = vor.u32 %v4839_v57, %v4838_v15  ;;  %v4846_v62 = vrot.slane %v4844_v42, 7  ;;  %v4842_v17 = vrot.slane %v4838_v15, 4  ;;  %v5131_v57 = vld [vmem:[#allocation2 + $0x18] sm:$0xf]  ;;  %v5630_v59 = vrot.slane %v10962_v56, 5 }
 0x4f6   : > { %4959 = vrot.lane.b32.xlu1 %v4858_v16, %s8069_s14  ;;  %v4868_v24 = vrot.slane %v4863_v32, 4  ;;  %v4866_v44 = vor.u32 %v4864_v14, %v4863_v32  ;;  %v10969_v15 = vcombine.low %v5131_v57, %v5132_v8  ;;  %v10972_v42 = vld [vmem:[#allocation2 + $0x14] sm:$0x1]  ;;  %v7594_v16 = vrot.slane %v5131_v57, 9  ;;  %v5034_v14 = vld [vmem:[#allocation2 + $0x30] sm:$0xf] }
 0x4f7   : > { %4953 = vrot.lane.b32.xlu0 %v4841_v39, %s8069_s14  ;;  %v4851_v28 = vrot.slane %v4846_v62, 4  ;;  %v4849_v52 = vor.u32 %v4847_v20, %v4846_v62  ;;  %v5631_v34 = vsel %vm8146_vm4, %v5629_v19, %v5630_v59  ;;  %v5622_v32 = vrot.slane %v5620_v30, 4  ;;  %v5128_v39 = vld [vmem:[#allocation2 + $0xc] sm:$0xf] }
 0x4f8   : > { %v4867_v3 = vsel %vm9330_vm13, %v4859_v47, %v4866_v44  ;;  %v10981_v62 = vcombine.low %v5128_v39, %v10958_v38  ;;  %v5628_v20 = vsel %vm8146_vm4, %v7594_v16, %v5627_v58  ;;  %v5241_v19 = vshrl.u32 %v5132_v8, 16 }
 0x4f9   : > { %v4850_v48 = vsel %vm9330_vm13, %v4842_v17, %v4849_v52  ;;  %v7644_v52 = vcombine.low %v5628_v20, %v5631_v34  ;;  %v5027_v17 = vld [vmem:[#allocation2 + $0x24] sm:$0xf]  ;;  %v5237_v16 = vshll.u32 %v5132_v8, 16  ;;  %v5038_v34 = vld [vmem:[#allocation2 + $0x38] sm:$0x1]  ;;  %vm12723_vm13 = vmmov %vm12717_vm1 }
 0x4fa   : > { %4963 = vrot.lane.b32.xlu1 %v4868_v24, %s8069_s14  ;;  %v5623_v24 = vrot.slane %v10972_v42, 5 }
 0x4fb   : > { %4957 = vrot.lane.b32.xlu0 %v4851_v28, %s8069_s14  ;;  %v5239_v8 = vrot.slane %v5237_v16, 5  ;;  %v5207_v16 = vshll.u32 %v5128_v39, 16 }
 0x4fe   : > { %4955 = vrot.lane.b32.xlu1 %v4850_v48, %s8069_s14  ;;  %v7593_v48 = vrot.slane %v5128_v39, 9 }
 0x4ff   : > { %4961 = vrot.lane.b32.xlu0 %v4867_v3, %s8069_s14  ;;  %v5624_v3 = vsel %vm8146_vm4, %v5622_v32, %v5623_v24  ;;  %v5031_v32 = vld [vmem:[#allocation2 + $0x2c] sm:$0x1] }
 0x500   : > { %v5621_v59 = vsel %vm8146_vm4, %v7593_v48, %v5620_v30  ;;  %v5243_v30 = vrot.slane %v5241_v19, 4  ;;  %v5204_v19 = vshrl.u32 %v5128_v39, 16 }
 0x502   : > { %6107 = vrot.lane.b32.xlu1 %v10969_v15, %s8064_s20 }
 0x503   : > { %6004 = vrot.lane.b32.xlu0 %v10969_v15, %s8059_s30 }
 0x505   : > { %v4888_v28 = vpop.permute.xlu1 %4887 }
 0x506   : > { %v5035_v44 = vsel %vm9251_vm15, %v4888_v28, %v5034_v14  ;;  %6002 = vrot.lane.b32.xlu1 %v10981_v62, %s8059_s30  ;;  %v4882_v47 = vpop.permute.xlu0 %4881  ;;  %v7643_v14 = vcombine.low %v5621_v59, %v5624_v3  ;;  %v5217_v59 = vshrl.u32 %v10958_v38, 16 }
 0x507   : > { %5036 = vst [vmem:[#allocation2 + $0x30] sm:$0xf] %v5035_v44  ;;  %v5028_v58 = vsel %vm9251_vm15, %v4882_v47, %v5027_v17  ;;  %6074 = vrot.lane.b32.xlu0 %v7644_v52, %s8060_s8  ;;  %v5228_v44 = vshrl.u32 %v5131_v57, 16  ;;  %v5231_v47 = vshll.u32 %v5131_v57, 16  ;;  %v5247_v57 = vshll.u32 %v10962_v56, 16 }
 0x508   : > { %5029 = vst [vmem:[#allocation2 + $0x24] sm:$0xf] %v5028_v58 }
 0x509   : > { %v4892_v20 = vpop.permute.xlu1 %4891  ;;  %v5230_v58 = vrot.slane %v5228_v44, 4  ;;  %v5249_v44 = vrot.slane %v5247_v57, 5 }
 0x50a   : > { %v5039_v28 = vsel %vm9617_vm2, %v4892_v20, %v5038_v34  ;;  %6177 = vrot.lane.b32.xlu1 %v7644_v52, %s8066_s22  ;;  %v4886_v24 = vpop.permute.xlu0 %4885  ;;  %v5233_v34 = vrot.slane %v5231_v47, 5  ;;  %v5244_v20 = vor.u32 %v5243_v30, %v5239_v8 }
 0x50b   : > { %5040 = vst [vmem:[#allocation2 + $0x38] sm:$0x1] %v5039_v28  ;;  %v5032_v17 = vsel %vm9617_vm2, %v4886_v24, %v5031_v32  ;;  %5969 = vrot.lane.b32.xlu0 %v7643_v14, %s8061_s11  ;;  %v5213_v28 = vshll.u32 %v10958_v38, 16  ;;  %v5206_v38 = vrot.slane %v5204_v19, 4 }
 0x50c   : > { %5033 = vst [vmem:[#allocation2 + $0x2c] sm:$0x1] %v5032_v17  ;;  %v5234_v32 = vor.u32 %v5233_v34, %v5230_v58  ;;  %v5245_v24 = vrot.slane %v5244_v20, 4 }
 0x50d   : > { %v4884_v48 = vpop.permute.xlu1 %4883  ;;  %v5215_v17 = vrot.slane %v5213_v28, 5 }
 0x50e   : > { %5030 = vst.msk [vmem:[#allocation2 + $0x28] sm:$0xf] %vm12723_vm13, %v4884_v48  ;;  %5971 = vrot.lane.b32.xlu1 %v7644_v52, %s8061_s11  ;;  %v4890_v3 = vpop.permute.xlu0 %4889  ;;  %v5219_v52 = vrot.slane %v5217_v59, 4  ;;  %v11010_v48 = vld [vmem:[#allocation2 + $0x30] sm:$0xf]  ;;  %v5235_v30 = vrot.slane %v5234_v32, 4  ;;  %v5250_v56 = vsel %vm8189_vm5, %v5245_v24, %v5249_v44  ;;  %vm12731_vm13 = vmmov %vm12729_vm0 }
 0x50f   : > { %5037 = vst.msk [vmem:[#allocation2 + $0x34] sm:$0xf] %vm12724_vm14, %v4890_v3  ;;  %v5223_v59 = vshll.u32 %v10972_v42, 16  ;;  %v11034_v44 = vld [vmem:[#allocation2 + $0x24] sm:$0xf]  ;;  %v7596_v9 = vrot.slane %v11010_v48, 9  ;;  %vm12732_vm14 = vmmov %vm12729_vm0 }
 0x510   : > { %v5220_v39 = vor.u32 %v5219_v52, %v5215_v17  ;;  %v5240_v58 = vsel %vm8189_vm5, %v5235_v30, %v5239_v8  ;;  %v5041_v52 = vld [vmem:[#allocation2 + $0x3c] sm:$0xf] }
 0x511   : > { %v7628_v34 = vcombine.low %v5240_v58, %v5250_v56  ;;  %v5225_v42 = vrot.slane %v5223_v59, 5 }
 0x512   : > { %6072 = vrot.lane.b32.xlu1 %v7643_v14, %s8060_s8  ;;  %v5209_v14 = vrot.slane %v5207_v16, 5  ;;  %v5221_v57 = vrot.slane %v5220_v39, 4  ;;  %v5048_v16 = vld [vmem:[#allocation2 + $0x48] sm:$0xf]  ;;  %v11042_v56 = vld [vmem:[#allocation2 + $0x38] sm:$0x1] }
 0x513   : > { %v11058_v36 = vld [vmem:[#allocation2 + $0x2c] sm:$0x1] }
 0x514   : > { %v5210_v28 = vor.u32 %v5209_v14, %v5206_v38  ;;  %v5226_v39 = vsel %vm8189_vm5, %v5221_v57, %v5225_v42  ;;  %v5644_v57 = vrot.slane %v11042_v56, 5 }
 0x515   : > { %v11027_v20 = vld [vmem:[#allocation2 + $0x28] sm:$0xf] }
 0x516   : > { %v11012_v3 = vld [vmem:[#allocation2 + $0x34] sm:$0xf]  ;;  %v11040_v30 = vcombine.low %v11034_v44, %v11027_v20  ;;  %v5211_v14 = vrot.slane %v5210_v28, 4 }
 0x517   : > { %v11016_v47 = vcombine.low %v11010_v48, %v11012_v3  ;;  %v5641_v19 = vrot.slane %v11012_v3, 5 }
 0x518   : > { %v5216_v28 = vsel %vm8189_vm5, %v5211_v14, %v5215_v17  ;;  %v5285_v17 = vshll.u32 %v11012_v3, 16 }
 0x519   : > { %6111 = vrot.lane.b32.xlu1 %v11016_v47, %s8064_s20  ;;  %6008 = vrot.lane.b32.xlu0 %v11016_v47, %s8059_s30  ;;  %v5643_v58 = vrot.slane %v5641_v19, 4 }
 0x51d   : > { %v4900_v32 = vpop.permute.xlu1 %4899  ;;  %6142 = vrot.lane.b32.xlu1 %v7628_v34, %s8065_s21  ;;  %5891 = vrot.lane.b32.xlu0 %v7628_v34, %s8062_s12 }
 0x51e   : > { %v5049_v24 = vsel %vm9251_vm15, %v4900_v32, %v5048_v16  ;;  %v4894_v8 = vpop.permute.xlu0 %4893  ;;  %v5634_v16 = vrot.slane %v11027_v20, 5  ;;  %v5052_v32 = vld [vmem:[#allocation2 + $0x50] sm:$0x1] }
 0x51f   : > { %5050 = vst [vmem:[#allocation2 + $0x48] sm:$0xf] %v5049_v24  ;;  %v5042_v38 = vsel %vm9251_vm15, %v4894_v8, %v5041_v52  ;;  %v5045_v52 = vld [vmem:[#allocation2 + $0x44] sm:$0x1] }
 0x520   : > { %5043 = vst [vmem:[#allocation2 + $0x3c] sm:$0xf] %v5042_v38  ;;  %v7627_v38 = vcombine.low %v5216_v28, %v5226_v39  ;;  %v5642_v39 = vsel %vm8146_vm4, %v7596_v9, %v5641_v19  ;;  %v5287_v19 = vrot.slane %v5285_v17, 5 }
 0x521   : > { %v4904_v59 = vpop.permute.xlu1 %4903  ;;  %6006 = vrot.lane.b32.xlu1 %v11040_v30, %s8059_s30  ;;  %6039 = vrot.lane.b32.xlu0 %v7628_v34, %s8063_s19  ;;  %v5289_v34 = vshrl.u32 %v11012_v3, 16 }
 0x522   : > { %v5053_v24 = vsel %vm9617_vm2, %v4904_v59, %v5052_v32  ;;  %v4898_v8 = vpop.permute.xlu0 %4897  ;;  %v5645_v32 = vsel %vm8146_vm4, %v5643_v58, %v5644_v57  ;;  %v5636_v59 = vrot.slane %v5634_v16, 4  ;;  %v5276_v58 = vshrl.u32 %v11010_v48, 16 }
 0x523   : > { %5054 = vst [vmem:[#allocation2 + $0x50] sm:$0x1] %v5053_v24  ;;  %v5046_v42 = vsel %vm9617_vm2, %v4898_v8, %v5045_v52  ;;  %v5637_v24 = vrot.slane %v11058_v36, 5  ;;  %v8036_v52 = vld [vmem:[%s12433_s5] sm:$0xff]   ;;  %v5279_v8 = vshll.u32 %v11010_v48, 16  ;;  %v7646_v28 = vcombine.low %v5642_v39, %v5645_v32  ;;  %v8038_v32 = vld [vmem:[%s12433_s5 + $0x8] sm:$0xff]  }
 0x524   : > { %5047 = vst [vmem:[#allocation2 + $0x44] sm:$0x1] %v5046_v42  ;;  %v7595_v57 = vrot.slane %v11034_v44, 9  ;;  %v5291_v42 = vrot.slane %v5289_v34, 4  ;;  %7901 = vmatprep.subr.bf16.mxu0 %v8036_v52  ;;  %v5278_v39 = vrot.slane %v5276_v58, 4 }
 0x525   : > { %5889 = vrot.lane.b32.xlu1 %v7627_v38, %s8062_s12  ;;  %6109 = vrot.lane.b32.xlu0 %v11040_v30, %s8064_s20  ;;  %v4896_v3 = vpop.permute.xlu1 %4895  ;;  %v5638_v9 = vsel %vm8146_vm4, %v5636_v59, %v5637_v24  ;;  %v5295_v59 = vshll.u32 %v11042_v56, 16  ;;  %v5265_v24 = vshrl.u32 %v11027_v20, 16 }
 0x526   : > { %v4902_v14 = vpop.permute.xlu0 %4901  ;;  %5044 = vst.msk [vmem:[#allocation2 + $0x40] sm:$0xf] %vm12717_vm1, %v4896_v3  ;;  %v5635_v48 = vsel %vm8146_vm4, %v7595_v57, %v5634_v16  ;;  %7902 = vmatpush3.bf16.msra.mxu0 %v8036_v52  ;;  %v5281_v3 = vrot.slane %v5279_v8, 5  ;;  %v5292_v29 = vor.u32 %v5291_v42, %v5287_v19  ;;  %v8039_v16 = vld [vmem:[%s12433_s5 + $0x10] sm:$0xff]   ;;  %v5261_v57 = vshll.u32 %v11027_v20, 16  ;;  %vm12735_vm1 = vmmov %vm12729_vm0 }
 0x527   : > { %5051 = vst.msk [vmem:[#allocation2 + $0x4c] sm:$0xf] %vm12725_vm12, %v4902_v14  ;;  %v7645_v14 = vcombine.low %v5635_v48, %v5638_v9  ;;  %7903 = vmatprep.subr.bf16.mxu0 %v8038_v32  ;;  %v5055_v9 = vld [vmem:[#allocation2 + $0x54] sm:$0xf]  ;;  %v11103_v48 = vld [vmem:[#allocation2 + $0x48] sm:$0xf]  ;;  %vm12734_vm12 = vmmov %vm12729_vm0 }
 0x528   : > { %v5282_v58 = vor.u32 %v5281_v3, %v5278_v39  ;;  %v5293_v8 = vrot.slane %v5292_v29, 4  ;;  %v8041_v29 = vld [vmem:[%s12433_s5 + $0x18] sm:$0xff]   ;;  %v5252_v20 = vshrl.u32 %v11034_v44, 16  ;;  %v5255_v39 = vshll.u32 %v11034_v44, 16  ;;  %v5066_v3 = vld [vmem:[#allocation2 + $0x68] sm:$0x1] }
 0x529   : > { %6037 = vrot.lane.b32.xlu1 %v7627_v38, %s8063_s19  ;;  %6078 = vrot.lane.b32.xlu0 %v7646_v28, %s8060_s8  ;;  %v5062_v38 = vld [vmem:[#allocation2 + $0x60] sm:$0xf] }
 0x52a   : > { %7904 = vmatpush3.bf16.msra.mxu0 %v8038_v32  ;;  %v5297_v32 = vrot.slane %v5295_v59, 5 }
 0x52b   : > { %v4912_v34 = vpop.permute.xlu1 %4911  ;;  %7905 = vmatprep.subr.bf16.mxu0 %v8039_v16 }
 0x52c   : > { %v5063_v17 = vsel %vm9251_vm15, %v4912_v34, %v5062_v38  ;;  %v5283_v34 = vrot.slane %v5282_v58, 4  ;;  %v5298_v59 = vsel %vm8189_vm5, %v5293_v8, %v5297_v32  ;;  %v8042_v58 = vld [vmem:[%s12433_s5 + $0x20] ss:$0 sps:$4 sm:$0xff]   ;;  %v5059_v8 = vld [vmem:[#allocation2 + $0x5c] sm:$0x1]  ;;  %v5257_v32 = vrot.slane %v5255_v39, 5 }
 0x52d   : > { %6181 = vrot.lane.b32.xlu1 %v7646_v28, %s8066_s22  ;;  %6179 = vrot.lane.b32.xlu0 %v7645_v14, %s8066_s22  ;;  %5064 = vst [vmem:[#allocation2 + $0x60] sm:$0xf] %v5063_v17  ;;  %v5267_v17 = vrot.slane %v5265_v24, 4 }
 0x52e   : > { %v11096_v52 = vld [vmem:[#allocation2 + $0x4c] sm:$0xf]  ;;  %v4906_v56 = vpop.permute.xlu0 %4905  ;;  %7906 = vmatpush3.bf16.msra.mxu0 %v8039_v16  ;;  %v5263_v16 = vrot.slane %v5261_v57, 5  ;;  %v5288_v44 = vsel %vm8189_vm5, %v5283_v34, %v5287_v19  ;;  %v6550_v19 = vsel %vm12728_vm10, %v8042_v58, 0  ;;  %v11136_v34 = vld [vmem:[#allocation2 + $0x40] sm:$0xf] }
 0x52f   : > { %v5056_v42 = vsel %vm9251_vm15, %v4906_v56, %v5055_v9  ;;  %7907 = vmatprep.subr.bf16.mxu0 %v8041_v29  ;;  %v7630_v57 = vcombine.low %v5288_v44, %v5298_v59  ;;  %vm12744_vm10 = vcmask 326656  }
 0x530   : > { %5057 = vst [vmem:[#allocation2 + $0x54] sm:$0xf] %v5056_v42  ;;  %v4916_v38 = vpop.permute.xlu1 %4915 }
 0x531   : > { %5975 = vrot.lane.b32.xlu1 %v7646_v28, %s8061_s11  ;;  %5973 = vrot.lane.b32.xlu0 %v7645_v14, %s8061_s11  ;;  %v11112_v28 = vcombine.low %v11103_v48, %v11096_v52  ;;  %v5067_v9 = vsel %vm9617_vm2, %v4916_v38, %v5066_v3  ;;  %v5268_v3 = vor.u32 %v5267_v17, %v5263_v16 }
 0x532   : > { %5068 = vst [vmem:[#allocation2 + $0x68] sm:$0x1] %v5067_v9  ;;  %7908 = vmatpush3.bf16.msra.mxu0 %v8041_v29  ;;  %v5271_v29 = vshll.u32 %v11058_v36, 16  ;;  %v5655_v9 = vrot.slane %v11096_v52, 5  ;;  %v11143_v36 = vld [vmem:[#allocation2 + $0x3c] sm:$0xf] }
 0x533   : > { %v4910_v24 = vpop.permute.xlu0 %4909  ;;  %7956 = vmatprep.subr.msk.bf16.mxu0 %vm12726_vm3, %v8042_v58  ;;  %v5269_v17 = vrot.slane %v5268_v3, 4  ;;  %vm12736_vm3 = vmmov %vm12729_vm0 }
 0x534   : > { %v5060_v56 = vsel %vm9617_vm2, %v4910_v24, %v5059_v8  ;;  %v4908_v42 = vpop.permute.xlu1 %4907  ;;  %v5273_v58 = vrot.slane %v5271_v29, 5  ;;  %v5069_v8 = vld [vmem:[#allocation2 + $0x6c] sm:$0xf] }
 0x535   : > { %6076 = vrot.lane.b32.xlu1 %v7645_v14, %s8060_s8  ;;  %6012 = vrot.lane.b32.xlu0 %v11112_v28, %s8059_s30  ;;  %v5254_v14 = vrot.slane %v5252_v20, 4  ;;  %5061 = vst [vmem:[#allocation2 + $0x5c] sm:$0x1] %v5060_v56  ;;  %5058 = vst.msk [vmem:[#allocation2 + $0x58] sm:$0xf] %vm12727_vm6, %v4908_v42  ;;  %v11147_v56 = vcombine.low %v11143_v36, %v11136_v34  ;;  %vm12743_vm6 = vcmask 261120  }
 0x536   : > { %7910 = vmatpush3.bf16.msra.mxu0 %v6550_v19  ;;  %v5076_v20 = vld [vmem:[#allocation2 + $0x78] sm:$0xf]  ;;  %v11149_v42 = vld [vmem:[#allocation2 + $0x50] sm:$0x1] }
 0x537   : > { %v4914_v38 = vpop.permute.xlu0 %4913  ;;  %v5258_v59 = vor.u32 %v5257_v32, %v5254_v14  ;;  %v5080_v32 = vld [vmem:[#allocation2 + $0x80] sm:$0x1] }
 0x538   : > { %5065 = vst.msk [vmem:[#allocation2 + $0x64] sm:$0xf] %vm12729_vm0, %v4914_v38  ;;  %v4924_v39 = vpop.permute.xlu1 %4923  ;;  %v5657_v38 = vrot.slane %v5655_v9, 4 }
 0x539   : > { %6115 = vrot.lane.b32.xlu1 %v11112_v28, %s8064_s20  ;;  %5895 = vrot.lane.b32.xlu0 %v7630_v57, %s8062_s12  ;;  %v5077_v44 = vsel %vm9251_vm15, %v4924_v39, %v5076_v20  ;;  %v5259_v19 = vrot.slane %v5258_v59, 4  ;;  %v5658_v39 = vrot.slane %v11149_v42, 5  ;;  %v5337_v59 = vshrl.u32 %v11096_v52, 16 }
 0x53a   : > { %5078 = vst [vmem:[#allocation2 + $0x78] sm:$0xf] %v5077_v44 }
 0x53b   : > { %v4918_v24 = vpop.permute.xlu0 %4917  ;;  %v5264_v20 = vsel %vm8189_vm5, %v5259_v19, %v5263_v16  ;;  %v5333_v16 = vshll.u32 %v11096_v52, 16  ;;  %v5309_v52 = vshll.u32 %v11136_v34, 16 }
 0x53c   : > { %v5070_v14 = vsel %vm9251_vm15, %v4918_v24, %v5069_v8  ;;  %v4928_v3 = vpop.permute.xlu1 %4927  ;;  %v7598_v8 = vrot.slane %v11103_v48, 9 }
 0x53d   : > { %6146 = vrot.lane.b32.xlu1 %v7630_v57, %s8065_s21  ;;  %6043 = vrot.lane.b32.xlu0 %v7630_v57, %s8063_s19  ;;  %v5274_v57 = vsel %vm8189_vm5, %v5269_v17, %v5273_v58  ;;  %5071 = vst [vmem:[#allocation2 + $0x6c] sm:$0xf] %v5070_v14  ;;  %v5081_v29 = vsel %vm9617_vm2, %v4928_v3, %v5080_v32  ;;  %v5073_v17 = vld [vmem:[#allocation2 + $0x74] sm:$0x1]  ;;  %v5648_v3 = vrot.slane %v11136_v34, 5  ;;  %v11184_v0 = vrot.slane %v5333_v16, 5 }
 0x53e   : > { %5082 = vst [vmem:[#allocation2 + $0x80] sm:$0x1] %v5081_v29  ;;  %v7629_v58 = vcombine.low %v5264_v20, %v5274_v57  ;;  %v5659_v32 = vsel %vm8146_vm4, %v5657_v38, %v5658_v39  ;;  %v5656_v19 = vsel %vm8146_vm4, %v7598_v8, %v5655_v9  ;;  %v5324_v57 = vshrl.u32 %v11103_v48, 16  ;;  %v11179_v39 = vld [vmem:[#allocation2 + $0x44] sm:$0x1] }
 0x53f   : > { %v4922_v44 = vpop.permute.xlu0 %4921  ;;  %v5327_v29 = vshll.u32 %v11103_v48, 16  ;;  %v7648_v38 = vcombine.low %v5656_v19, %v5659_v32  ;;  %v5339_v9 = vrot.slane %v5337_v59, 4  ;;  %v5300_v48 = vshrl.u32 %v11143_v36, 16 }
 0x540   : > { %v5074_v24 = vsel %vm9617_vm2, %v4922_v44, %v5073_v17  ;;  %v4920_v14 = vpop.permute.xlu1 %4919  ;;  %v5090_v17 = vld [vmem:[#allocation2 + $0x90] sm:$0xf]  ;;  %v5303_v32 = vshll.u32 %v11143_v36, 16  ;;  %v5651_v19 = vrot.slane %v11179_v39, 5  ;;  %v7597_v16 = vrot.slane %v11143_v36, 9 }
 0x541   : > { %6010 = vrot.lane.b32.xlu1 %v11147_v56, %s8059_s30  ;;  %6113 = vrot.lane.b32.xlu0 %v11147_v56, %s8064_s20  ;;  %5075 = vst [vmem:[#allocation2 + $0x74] sm:$0x1] %v5074_v24  ;;  %5072 = vst.msk [vmem:[#allocation2 + $0x70] sm:$0xf] %vm12730_vm11, %v4920_v14  ;;  %v5313_v24 = vshrl.u32 %v11136_v34, 16  ;;  %v5650_v14 = vrot.slane %v5648_v3, 4  ;;  %v5340_v51 = vor.u32 %v5339_v9, %v11184_v0 }
 0x542   : > { %v5326_v54 = vrot.slane %v5324_v57, 4  ;;  %v5329_v59 = vrot.slane %v5327_v29, 5  ;;  %v11194_v25 = vrot.slane %v5309_v52, 5  ;;  %v5649_v36 = vsel %vm8146_vm4, %v7597_v16, %v5648_v3  ;;  %v5087_v29 = vld [vmem:[#allocation2 + $0x8c] sm:$0x1] }
 0x543   : > { %v4926_v20 = vpop.permute.xlu0 %4925  ;;  %v5315_v61 = vrot.slane %v5313_v24, 4  ;;  %v5343_v57 = vshll.u32 %v11149_v42, 16  ;;  %v5305_v9 = vrot.slane %v5303_v32, 5  ;;  %v11216_v42 = vld [vmem:[#allocation2 + $0x60] sm:$0xf]  ;;  %vm12746_vm11 = vcmask 457728  }
 0x544   : > { %5079 = vst.msk [vmem:[#allocation2 + $0x7c] sm:$0xf] %vm12731_vm13, %v4926_v20  ;;  %v4936_v44 = vpop.permute.xlu1 %4935  ;;  %v5083_v20 = vld [vmem:[#allocation2 + $0x84] sm:$0xf]  ;;  %vm12747_vm13 = vcmask 523264  }
 0x545   : > { %5893 = vrot.lane.b32.xlu1 %v7629_v58, %s8062_s12  ;;  %6144 = vrot.lane.b32.xlu0 %v7629_v58, %s8065_s21  ;;  %v5091_v8 = vsel %vm9251_vm15, %v4936_v44, %v5090_v17  ;;  %v5094_v17 = vld [vmem:[#allocation2 + $0x98] sm:$0x1]  ;;  %v5345_v3 = vrot.slane %v5343_v57, 5  ;;  %v5097_v57 = vld [vmem:[#allocation2 + $0x9c] sm:$0xf] }
 0x546   : > { %5092 = vst [vmem:[#allocation2 + $0x90] sm:$0xf] %v5091_v8  ;;  %v5652_v8 = vsel %vm8146_vm4, %v5650_v14, %v5651_v19  ;;  %v5302_v19 = vrot.slane %v5300_v48, 4 }
 0x547   : > { %v4930_v34 = vpop.permute.xlu0 %4929  ;;  %v7647_v14 = vcombine.low %v5649_v36, %v5652_v8 }
 0x548   : > { %v4940_v44 = vpop.permute.xlu1 %4939 }
 0x549   : > { %6041 = vrot.lane.b32.xlu1 %v7629_v58, %s8063_s19  ;;  %6082 = vrot.lane.b32.xlu0 %v7648_v38, %s8060_s8  ;;  %v5084_v58 = vsel %vm9251_vm15, %v4930_v34, %v5083_v20  ;;  %v5095_v33 = vsel %vm9617_vm2, %v4940_v44, %v5094_v17  ;;  %v11210_v34 = vld [vmem:[#allocation2 + $0x64] sm:$0xf]  ;;  %v5341_v17 = vrot.slane %v5340_v51, 4 }
 0x54a   : > { %5085 = vst [vmem:[#allocation2 + $0x84] sm:$0xf] %v5084_v58  ;;  %5096 = vst [vmem:[#allocation2 + $0x98] sm:$0x1] %v5095_v33  ;;  %v5330_v58 = vor.u32 %v5329_v59, %v5326_v54  ;;  %v5316_v33 = vor.u32 %v5315_v61, %v11194_v25  ;;  %v11221_v32 = vcombine.low %v11216_v42, %v11210_v34  ;;  %v5104_v61 = vld [vmem:[#allocation2 + $0xa8] sm:$0xf] }
 0x54b   : > { %v4934_v52 = vpop.permute.xlu0 %4933  ;;  %v5346_v16 = vsel %vm8189_vm5, %v5341_v17, %v5345_v3  ;;  %v5306_v59 = vor.u32 %v5305_v9, %v5302_v19  ;;  %v5108_v9 = vld [vmem:[#allocation2 + $0xb0] sm:$0x1]  ;;  %v5669_v17 = vrot.slane %v11210_v34, 5  ;;  %v5101_v3 = vld [vmem:[#allocation2 + $0xa4] sm:$0x1] }
 0x54c   : > { %v5088_v24 = vsel %vm9617_vm2, %v4934_v52, %v5087_v29  ;;  %v4932_v20 = vpop.permute.xlu1 %4931  ;;  %12733 = vst [vmem:[#allocation65_spill] sm:$0xff] %v11221_v32  ;;  %v5331_v51 = vrot.slane %v5330_v58, 4  ;;  %v5317_v44 = vrot.slane %v5316_v33, 4  ;;  %v11238_v58 = vld [vmem:[#allocation2 + $0x58] sm:$0xf] }
 0x54d   : > { %6185 = vrot.lane.b32.xlu1 %v7648_v38, %s8066_s22  ;;  %5979 = vrot.lane.b32.xlu0 %v7648_v38, %s8061_s11  ;;  %5089 = vst [vmem:[#allocation2 + $0x8c] sm:$0x1] %v5088_v24  ;;  %5086 = vst.msk [vmem:[#allocation2 + $0x88] sm:$0xf] %vm12732_vm14, %v4932_v20  ;;  %v5319_v38 = vshll.u32 %v11179_v39, 16  ;;  %v5307_v20 = vrot.slane %v5306_v59, 4 }
 0x54e   : > { %v5336_v39 = vsel %vm8189_vm5, %v5331_v51, %v11184_v0  ;;  %v5385_v59 = vshrl.u32 %v11210_v34, 16  ;;  %vm12748_vm14 = vcmask 588800  }
 0x54f   : > { %v4938_v48 = vpop.permute.xlu0 %4937  ;;  %v5321_v36 = vrot.slane %v5319_v38, 5  ;;  %v7632_v52 = vcombine.low %v5336_v39, %v5346_v16  ;;  %v5312_v33 = vsel %vm8189_vm5, %v5307_v20, %v11194_v25  ;;  %v5372_v39 = vshrl.u32 %v11216_v42, 16 }
 0x550   : > { %5093 = vst.msk [vmem:[#allocation2 + $0x94] sm:$0xf] %vm12734_vm12, %v4938_v48  ;;  %v4948_v54 = vpop.permute.xlu1 %4947  ;;  %v5387_v20 = vrot.slane %v5385_v59, 4  ;;  %vm12751_vm12 = vmmov %vm12743_vm6 }
 0x551   : > { %6080 = vrot.lane.b32.xlu1 %v7647_v14, %s8060_s8  ;;  %6183 = vrot.lane.b32.xlu0 %v7647_v14, %s8066_s22  ;;  %v5105_v8 = vsel %vm9251_vm15, %v4948_v54, %v5104_v61  ;;  %v5151_v61 = vld [vmem:[#allocation2 + $0x68] sm:$0x1]  ;;  %v5662_v54 = vrot.slane %v11238_v58, 5 }
 0x552   : > { %5106 = vst [vmem:[#allocation2 + $0xa8] sm:$0xf] %v5105_v8  ;;  %v5381_v8 = vshll.u32 %v11210_v34, 16  ;;  %v5672_v25 = vrot.slane %v5151_v61, 5 }
 0x553   : > { %v4942_v29 = vpop.permute.xlu0 %4941 }
 0x554   : > { %v5098_v19 = vsel %vm9251_vm15, %v4942_v29, %v5097_v57  ;;  %v4952_v24 = vpop.permute.xlu1 %4951  ;;  %v7600_v29 = vrot.slane %v11216_v42, 9  ;;  %v11471_v6 = vld [vmem:[#allocation2 + $0x8c] sm:$0x1] }
 0x555   : > { %5977 = vrot.lane.b32.xlu0 %v7647_v14, %s8061_s11  ;;  %6016 = vrot.lane.b32.xlu1 %v11221_v32, %s8059_s30  ;;  %v5322_v14 = vsel %vm8189_vm5, %v5317_v44, %v5321_v36  ;;  %5099 = vst [vmem:[#allocation2 + $0x9c] sm:$0xf] %v5098_v19  ;;  %v5109_v0 = vsel %vm9617_vm2, %v4952_v24, %v5108_v9  ;;  %v5671_v44 = vrot.slane %v5669_v17, 4  ;;  %v5375_v36 = vshll.u32 %v11216_v42, 16  ;;  %v11263_v19 = vld [vmem:[#allocation2 + $0x5c] sm:$0x1] }
 0x556   : > { %5110 = vst [vmem:[#allocation2 + $0xb0] sm:$0x1] %v5109_v0  ;;  %v11249_v48 = vcombine.low %v5312_v33, %v5322_v14  ;;  %v5664_v9 = vrot.slane %v5662_v54, 4  ;;  %v5383_v24 = vrot.slane %v5381_v8, 5  ;;  %v5146_v14 = vld [vmem:[#allocation2 + $0x54] sm:$0xf]  ;;  %v5670_v0 = vsel %vm8146_vm4, %v7600_v29, %v5669_v17 }
 0x557   : > { %v4946_v38 = vpop.permute.xlu0 %4945  ;;  %v5673_v34 = vsel %vm8146_vm4, %v5671_v44, %v5672_v25  ;;  %v5665_v42 = vrot.slane %v11263_v19, 5  ;;  %v11275_v33 = vcombine.low %v5146_v14, %v11238_v58  ;;  %v5391_v44 = vshll.u32 %v5151_v61, 16  ;;  %v5111_v61 = vld [vmem:[#allocation2 + $0xb4] sm:$0xf] }
 0x558   : > { %v5102_v51 = vsel %vm9617_vm2, %v4946_v38, %v5101_v3  ;;  %v4944_v16 = vpop.permute.xlu1 %4943  ;;  %v11277_v3 = vcombine.low %v5670_v0, %v5673_v34  ;;  %v5374_v38 = vrot.slane %v5372_v39, 4  ;;  %v5388_v59 = vor.u32 %v5387_v20, %v5383_v24 }
 0x559   : > { %6119 = vrot.lane.b32.xlu0 %v11221_v32, %s8064_s20  ;;  %6150 = vrot.lane.b32.xlu1 %v7632_v52, %s8065_s21  ;;  %5103 = vst [vmem:[#allocation2 + $0xa4] sm:$0x1] %v5102_v51  ;;  %5100 = vst.msk [vmem:[#allocation2 + $0xa0] sm:$0xf] %vm12735_vm1, %v4944_v16  ;;  %v7599_v51 = vrot.slane %v5146_v14, 9  ;;  %v5666_v16 = vsel %vm8146_vm4, %v5664_v9, %v5665_v42  ;;  %v5361_v8 = vshrl.u32 %v11238_v58, 16 }
 0x55a   : > { %v5357_v39 = vshll.u32 %v11238_v58, 16  ;;  %v5389_v9 = vrot.slane %v5388_v59, 4  ;;  %v5348_v0 = vshrl.u32 %v5146_v14, 16  ;;  %v11301_v42 = vld [vmem:[#allocation2 + $0x78] sm:$0xf]  ;;  %v5693_v41 = vrot.slane %v11471_v6, 5  ;;  %vm12752_vm1 = vmmov %vm12744_vm10 }
 0x55b   : > { %v4950_v57 = vpop.permute.xlu0 %4949  ;;  %v5663_v17 = vsel %vm8146_vm4, %v7599_v51, %v5662_v54  ;;  %v5351_v51 = vshll.u32 %v5146_v14, 16  ;;  %v5363_v59 = vrot.slane %v5361_v8, 4  ;;  %v5115_v14 = vld [vmem:[#allocation2 + $0xbc] sm:$0x1] }
 0x55c   : > { %5107 = vst.msk [vmem:[#allocation2 + $0xac] sm:$0xf] %vm12736_vm3, %v4950_v57  ;;  %v11288_v25 = vcombine.low %v5663_v17, %v5666_v16  ;;  %v5118_v57 = vld [vmem:[#allocation2 + $0xc0] sm:$0xf]  ;;  %v5122_v17 = vld [vmem:[#allocation2 + $0xc8] sm:$0x1] }
 0x55d   : > { %5899 = vrot.lane.b32.xlu0 %v7632_v52, %s8062_s12  ;;  %5897 = vrot.lane.b32.xlu1 %v11249_v48, %s8062_s12 }
 0x561   : > { %6047 = vrot.lane.b32.xlu0 %v7632_v52, %s8063_s19  ;;  %6045 = vrot.lane.b32.xlu1 %v11249_v48, %s8063_s19  ;;  %v5377_v52 = vrot.slane %v5375_v36, 5  ;;  %v11291_v36 = vld [vmem:[#allocation2 + $0x7c] sm:$0xf] }
 0x562   : > { %v11305_v16 = vcombine.low %v11301_v42, %v11291_v36 }
 0x563   : > { %v5378_v34 = vor.u32 %v5377_v52, %v5374_v38  ;;  %v5393_v38 = vrot.slane %v5391_v44, 5  ;;  %v5359_v52 = vrot.slane %v5357_v39, 5 }
 0x564   : > { %12737 = vst [vmem:[#allocation66_spill] sm:$0xff] %v11305_v16 }
 0x565   : > { %6117 = vrot.lane.b32.xlu0 %v11275_v33, %s8064_s20  ;;  %6086 = vrot.lane.b32.xlu1 %v11277_v3, %s8060_s8 }
 0x568   : > { %v4960_v29 = vpop.permute.xlu1 %4959 }
 0x569   : > { %v5119_v20 = vsel %vm9251_vm15, %v4960_v29, %v5118_v57  ;;  %6014 = vrot.lane.b32.xlu0 %v11275_v33, %s8059_s30  ;;  %5981 = vrot.lane.b32.xlu1 %v11288_v25, %s8061_s11  ;;  %v4954_v54 = vpop.permute.xlu0 %4953  ;;  %v5379_v29 = vrot.slane %v5378_v34, 4 }
 0x56a   : > { %5120 = vst [vmem:[#allocation2 + $0xc0] sm:$0xf] %v5119_v20  ;;  %v5112_v58 = vsel %vm9251_vm15, %v4954_v54, %v5111_v61  ;;  %v5394_v20 = vsel %vm8189_vm5, %v5389_v9, %v5393_v38  ;;  %v5350_v9 = vrot.slane %v5348_v0, 4  ;;  %v5353_v61 = vrot.slane %v5351_v51, 5  ;;  %vm12738_vm15 = vmmov %vm12729_vm0  ;;  %v11330_v38 = vld [vmem:[#allocation2 + $0x6c] sm:$0xf] }
 0x56b   : > { %5113 = vst [vmem:[#allocation2 + $0xb4] sm:$0xf] %v5112_v58  ;;  %v5384_v39 = vsel %vm8189_vm5, %v5379_v29, %v5383_v24  ;;  %v5364_v54 = vor.u32 %v5363_v59, %v5359_v52  ;;  %v5367_v24 = vshll.u32 %v11263_v19, 16 }
 0x56c   : > { %v4964_v57 = vpop.permute.xlu1 %4963  ;;  %v11319_v34 = vcombine.low %v5384_v39, %v5394_v20  ;;  %v5354_v51 = vor.u32 %v5353_v61, %v5350_v9  ;;  %v5429_v9 = vshll.u32 %v11291_v36, 16 }
 0x56d   : > { %v5123_v18 = vsel %vm9617_vm2, %v4964_v57, %v5122_v17  ;;  %6148 = vrot.lane.b32.xlu0 %v11249_v48, %s8065_s21  ;;  %6020 = vrot.lane.b32.xlu1 %v11305_v16, %s8059_s30  ;;  %v4958_v44 = vpop.permute.xlu0 %4957  ;;  %v11321_v48 = vld [vmem:[#allocation2 + $0x70] sm:$0xf]  ;;  %v5365_v59 = vrot.slane %v5364_v54, 4  ;;  %v5683_v57 = vrot.slane %v11291_v36, 5  ;;  %v5369_v19 = vrot.slane %v5367_v24, 5 }
 0x56e   : > { %5124 = vst [vmem:[#allocation2 + $0xc8] sm:$0x1] %v5123_v18  ;;  %v5116_v8 = vsel %vm9617_vm2, %v4958_v44, %v5115_v14  ;;  %vm12739_vm2 = vmmov %vm12729_vm0  ;;  %v11334_v0 = vcombine.low %v11330_v38, %v11321_v48  ;;  %v5355_v29 = vrot.slane %v5354_v51, 4  ;;  %v5157_v18 = vld [vmem:[#allocation2 + $0x80] sm:$0x1]  ;;  %v5433_v14 = vshrl.u32 %v11291_v36, 16 }
 0x56f   : > { %5117 = vst [vmem:[#allocation2 + $0xbc] sm:$0x1] %v5116_v8  ;;  %v5370_v20 = vsel %vm8189_vm5, %v5365_v59, %v5369_v19  ;;  %v5685_v8 = vrot.slane %v5683_v57, 4  ;;  %v5676_v39 = vrot.slane %v11321_v48, 5  ;;  %v5686_v61 = vrot.slane %v5157_v18, 5 }
 0x570   : > { %v4956_v58 = vpop.permute.xlu1 %4955  ;;  %12740 = vst [vmem:[#allocation67_spill] sm:$0xff] %v11334_v0  ;;  %v5420_v54 = vshrl.u32 %v11301_v42, 16  ;;  %v7602_v51 = vrot.slane %v11301_v42, 9  ;;  %v5154_v36 = vld [vmem:[#allocation2 + $0x74] sm:$0x1]  ;;  %v5431_v22 = vrot.slane %v5429_v9, 5 }
 0x571   : > { %5114 = vst.msk [vmem:[#allocation2 + $0xb8] sm:$0xf] %vm12738_vm15, %v4956_v58  ;;  %6189 = vrot.lane.b32.xlu0 %v11277_v3, %s8066_s22  ;;  %6051 = vrot.lane.b32.xlu1 %v11319_v34, %s8063_s19  ;;  %v4962_v31 = vpop.permute.xlu0 %4961  ;;  %v5423_v58 = vshll.u32 %v11301_v42, 16  ;;  %v5687_v19 = vsel %vm8146_vm4, %v5685_v8, %v5686_v61  ;;  %v5678_v10 = vrot.slane %v5676_v39, 4  ;;  %v5435_v27 = vrot.slane %v5433_v14, 4  ;;  %vm12754_vm15 = vmmov %vm12746_vm11 }
 0x572   : > { %5121 = vst.msk [vmem:[#allocation2 + $0xc4] sm:$0xf] %vm12739_vm2, %v4962_v31  ;;  %v5422_v42 = vrot.slane %v5420_v54, 4  ;;  %v5415_v43 = vshll.u32 %v5154_v36, 16  ;;  %vm12745_vm0 = vcmask 392192   ;;  %vm12755_vm2 = vmmov %vm12747_vm13 }
 0x573   : > { %v5425_v61 = vrot.slane %v5423_v58, 5  ;;  %v5436_v9 = vor.u32 %v5435_v27, %v5431_v22  ;;  %v11388_v58 = vld [vmem:[#allocation2 + $0x94] sm:$0xf]  ;;  %vm12753_vm3 = vmmov %vm12745_vm0 }
 0x574   : > { %v11336_v17 = vpop.permute.xlu1 %6107 }
 0x575   : > { %5983 = vrot.lane.b32.xlu0 %v11277_v3, %s8061_s11  ;;  %6121 = vrot.lane.b32.xlu1 %v11334_v0, %s8064_s20  ;;  %v5360_v3 = vsel %vm8189_vm5, %v5355_v29, %v5359_v52  ;;  %v11358_v31 = vpop.permute.xlu0 %6004  ;;  %v5684_v52 = vsel %vm8146_vm4, %v7602_v51, %v5683_v57  ;;  %v5679_v29 = vrot.slane %v5154_v36, 5  ;;  %v5439_v57 = vshll.u32 %v5157_v18, 16 }
 0x576   : > { %v7633_v24 = vcombine.low %v5360_v3, %v5370_v20  ;;  %v11370_v20 = vcombine.low %v5684_v52, %v5687_v19  ;;  %v7601_v3 = vrot.slane %v11330_v38, 9  ;;  %v5426_v27 = vor.u32 %v5425_v61, %v5422_v42  ;;  %v11395_v52 = vld [vmem:[#allocation2 + $0x90] sm:$0xf] }
 0x577   : > { %v5680_v8 = vsel %vm8146_vm4, %v5678_v10, %v5679_v29  ;;  %v5409_v10 = vshrl.u32 %v11321_v48, 16  ;;  %v5437_v51 = vrot.slane %v5436_v9, 4  ;;  %v5405_v19 = vshll.u32 %v11321_v48, 16 }
 0x578   : > { %v11346_v44 = vpop.permute.xlu1 %6002  ;;  %v5396_v18 = vshrl.u32 %v11330_v38, 16  ;;  %v5399_v29 = vshll.u32 %v11330_v38, 16  ;;  %v11403_v42 = vcombine.low %v11395_v52, %v11388_v58  ;;  %v5427_v48 = vrot.slane %v5426_v27, 4  ;;  %v11419_v27 = vld [vmem:[#allocation2 + $0x88] sm:$0xf] }
 0x579   : > { %6187 = vrot.lane.b32.xlu0 %v11288_v25, %s8066_s22  ;;  %5903 = vrot.lane.b32.xlu1 %v11319_v34, %s8062_s12  ;;  %v11375_v14 = vpop.permute.xlu0 %6074  ;;  %v5407_v61 = vrot.slane %v5405_v19, 5  ;;  %v5411_v9 = vrot.slane %v5409_v10, 4  ;;  %v7604_v12 = vrot.slane %v11395_v52, 9 }
 0x57a   : > { %12741 = vst [vmem:[#allocation68_spill] sm:$0xff] %v11403_v42  ;;  %v5432_v38 = vsel %vm8189_vm5, %v5427_v48, %v5431_v22  ;;  %v5401_v19 = vrot.slane %v5399_v29, 5  ;;  %v8047_v29 = vld [vmem:[#allocation2] sm:$0xf] }
 0x57b   : > { %v5412_v10 = vor.u32 %v5411_v9, %v5407_v61  ;;  %v8048_v9 = vld [vmem:[#allocation2 + $0x4] sm:$0xf] }
 0x57c   : > { %v11361_v59 = vpop.permute.xlu1 %6177  ;;  %v7610_v60 = vcombine.low %v8047_v29, %v8048_v9  ;;  %v5481_v29 = vshrl.u32 %v11388_v58, 16 }
 0x57d   : > { %6084 = vrot.lane.b32.xlu0 %v11288_v25, %s8060_s8  ;;  %5901 = vrot.lane.b32.xlu1 %v7633_v24, %s8062_s12  ;;  %v5677_v25 = vsel %vm8146_vm4, %v7601_v3, %v5676_v39  ;;  %v5441_v39 = vrot.slane %v5439_v57, 5  ;;  %v11399_v3 = vpop.permute.xlu0 %5969  ;;  %v5413_v45 = vrot.slane %v5412_v10, 4 }
 0x57e   : > { %v11385_v54 = vcombine.low %v5677_v25, %v5680_v8 }
 0x580   : > { %v11377_v46 = vpop.permute.xlu1 %5971 }
 0x581   : > { %6123 = vrot.lane.b32.xlu0 %v11305_v16, %s8064_s20  ;;  %6090 = vrot.lane.b32.xlu1 %v11370_v20, %s8060_s8 }
 0x584   : > { %v6073_v8 = vpop.permute.xlu1 %6072 }
 0x585   : > { %6154 = vrot.lane.b32.xlu0 %v11319_v34, %s8065_s21  ;;  %5985 = vrot.lane.b32.xlu1 %v11385_v54, %s8061_s11  ;;  %v5442_v34 = vsel %vm8189_vm5, %v5437_v51, %v5441_v39  ;;  %v5398_v51 = vrot.slane %v5396_v18, 4  ;;  %v11424_v39 = vld [vmem:[#allocation2 + $0x84] sm:$0xf]  ;;  %v5417_v18 = vrot.slane %v5415_v43, 5 }
 0x586   : > { %v11417_v16 = vcombine.low %v5432_v38, %v5442_v34  ;;  %v11430_v34 = vcombine.low %v11424_v39, %v11419_v27 }
 0x587   : > { %v5402_v38 = vor.u32 %v5401_v19, %v5398_v51  ;;  %v6211_v51 = vsel %vm1370_vm7, %v7610_v60, %v10891_v5 }
 0x588   : > { %12742 = vst [vmem:[#allocation69_spill] sm:$0xff] %v11430_v34  ;;  %v6258_v60 = vsel %vm1419_vm8, %v6211_v51, %v10875_v49 }
 0x589   : > { %6018 = vrot.lane.b32.xlu0 %v11334_v0, %s8059_s30  ;;  %6024 = vrot.lane.b32.xlu1 %v11403_v42, %s8059_s30  ;;  %v5403_v26 = vrot.slane %v5402_v38, 4  ;;  %v5418_v0 = vsel %vm8189_vm5, %v5413_v45, %v5417_v18  ;;  %v5163_v45 = vld [vmem:[#allocation2 + $0x98] sm:$0x1]  ;;  %v5690_v18 = vrot.slane %v11419_v27, 5  ;;  %v6290_v5 = vsel %vm1452_vm9, %v6258_v60, %v11346_v44 }
 0x58a   : > { %v5700_v32 = vrot.slane %v5163_v45, 5  ;;  %v5483_v60 = vrot.slane %v5481_v29, 4  ;;  %v7603_v29 = vrot.slane %v11424_v39, 9 }
 0x58b   : > { %v11413_v25 = vpop.permute.xlu1 %6111  ;;  %v11415_v57 = vpop.permute.xlu0 %6008  ;;  %v5408_v43 = vsel %vm8189_vm5, %v5403_v26, %v5407_v61  ;;  %v5477_v61 = vshll.u32 %v11388_v58, 16 }
 0x58c   : > { %v11452_v38 = vcombine.low %v5408_v43, %v5418_v0  ;;  %v5468_v0 = vshrl.u32 %v11395_v52, 16 }
 0x58d   : > { %6152 = vrot.lane.b32.xlu0 %v7633_v24, %s8065_s21  ;;  %6055 = vrot.lane.b32.xlu1 %v11417_v16, %s8063_s19  ;;  %v5479_v51 = vrot.slane %v5477_v61, 5  ;;  %v5691_v61 = vsel %vm8146_vm4, %v7603_v29, %v5690_v18 }
 0x58f   : > { %v6143_v22 = vpop.permute.xlu1 %6142  ;;  %v11426_v48 = vpop.permute.xlu0 %5891 }
 0x591   : > { %6049 = vrot.lane.b32.xlu0 %v7633_v24, %s8063_s19  ;;  %6125 = vrot.lane.b32.xlu1 %v11430_v34, %s8064_s20  ;;  %v5697_v24 = vrot.slane %v11388_v58, 5  ;;  %v5692_v58 = vrot.slane %v5690_v18, 4 }
 0x593   : > { %v11435_v55 = vpop.permute.xlu1 %6006  ;;  %v11437_v36 = vpop.permute.xlu0 %6039  ;;  %v5699_v26 = vrot.slane %v5697_v24, 4 }
 0x595   : > { %6193 = vrot.lane.b32.xlu0 %v11370_v20, %s8066_s22  ;;  %5907 = vrot.lane.b32.xlu1 %v11417_v16, %s8062_s12  ;;  %v5701_v44 = vsel %vm8146_vm4, %v5699_v26, %v5700_v32 }
 0x597   : > { %v5890_v19 = vpop.permute.xlu1 %5889  ;;  %v11450_v10 = vpop.permute.xlu0 %6109 }
 0x599   : > { %5987 = vrot.lane.b32.xlu0 %v11370_v20, %s8061_s11  ;;  %6156 = vrot.lane.b32.xlu1 %v11452_v38, %s8065_s21  ;;  %v5471_v20 = vshll.u32 %v11395_v52, 16 }
 0x59b   : > { %v6038_v9 = vpop.permute.xlu1 %6037  ;;  %v11466_v43 = vpop.permute.xlu0 %6078  ;;  %v5473_v26 = vrot.slane %v5471_v20, 5 }
 0x59c   : > { %v6322_v4 = vsel %vm12743_vm6, %v6290_v5, %v6038_v9  ;;  %vm12756_vm6 = vmmov %vm12748_vm14 }
 0x59d   : > { %v6354_v49 = vsel %vm12744_vm10, %v6322_v4, %v6073_v8  ;;  %6191 = vrot.lane.b32.xlu0 %v11385_v54, %s8066_s22  ;;  %5905 = vrot.lane.b32.xlu1 %v11452_v38, %s8062_s12  ;;  %v5698_v8 = vsel %vm8146_vm4, %v7604_v12, %v5697_v24  ;;  %v5484_v12 = vor.u32 %v5483_v60, %v5479_v51  ;;  %vm12757_vm10 = vmmov %vm12751_vm12 }
 0x59e   : > { %v6386_v5 = vsel %vm12745_vm0, %v6354_v49, %v11336_v17  ;;  %v11492_v32 = vcombine.low %v5698_v8, %v5701_v44  ;;  %v5694_v17 = vsel %vm8146_vm4, %v5692_v58, %v5693_v41  ;;  %v11513_v41 = vld [vmem:[#allocation2 + $0xac] sm:$0xf]  ;;  %v5453_v58 = vshll.u32 %v11419_v27, 16  ;;  %vm12758_vm0 = vmmov %vm12752_vm1 }
 0x59f   : > { %v11482_v52 = vpop.permute.xlu1 %6181  ;;  %v11484_v9 = vpop.permute.xlu0 %6179  ;;  %v6418_v4 = vsel %vm12746_vm11, %v6386_v5, %v6143_v22  ;;  %v5470_v22 = vrot.slane %v5468_v0, 4  ;;  %v11508_v49 = vcombine.low %v5691_v61, %v5694_v17  ;;  %v5485_v20 = vrot.slane %v5484_v12, 4  ;;  %v11550_v61 = vld [vmem:[#allocation2 + $0xa0] sm:$0xf]  ;;  %vm12759_vm11 = vmmov %vm12753_vm3 }
 0x5a0   : > { %v6450_v1 = vsel %vm12747_vm13, %v6418_v4, %v11361_v59  ;;  %v5444_v5 = vshrl.u32 %v11424_v39, 16  ;;  %v5447_v4 = vshll.u32 %v11424_v39, 16  ;;  %v6214_v8 = vsel %vm1370_vm7, %v10981_v62, %v5890_v19  ;;  %vm12760_vm13 = vmmov %vm12754_vm15 }
 0x5a1   : > { %7911 = vmatprep.mubr.msk.bf16.mxu0 %vm12748_vm14, %v6450_v1  ;;  %6088 = vrot.lane.b32.xlu0 %v11385_v54, %s8060_s8  ;;  %v5487_v1 = vshll.u32 %v5163_v45, 16  ;;  %v5457_v54 = vshrl.u32 %v11419_v27, 16  ;;  %v5474_v0 = vor.u32 %v5473_v26, %v5470_v22  ;;  %v11522_v45 = vld [vmem:[#allocation2 + $0xa8] sm:$0xf]  ;;  %v5455_v22 = vrot.slane %v5453_v58, 5  ;;  %vm12761_vm14 = vmmov %vm12755_vm2 }
 0x5a2   : > { %6094 = vrot.lane.b32.xlu1 %v11492_v32, %s8060_s8  ;;  %v11530_v27 = vcombine.low %v11522_v45, %v11513_v41  ;;  %v6260_v39 = vsel %vm1419_vm8, %v6214_v8, %v11399_v3 }
 0x5a3   : > { %v11502_v24 = vpop.permute.xlu1 %5975  ;;  %v11504_v59 = vpop.permute.xlu0 %5973  ;;  %v5489_v60 = vrot.slane %v5487_v1, 5  ;;  %v5475_v29 = vrot.slane %v5474_v0, 4  ;;  %v5459_v26 = vrot.slane %v5457_v54, 4  ;;  %v5446_v1 = vrot.slane %v5444_v5, 4 }
 0x5a4   : > { %12749 = vst [vmem:[#allocation70_spill] sm:$0xff] %v11530_v27  ;;  %v5449_v54 = vrot.slane %v5447_v4, 5  ;;  %v6292_v3 = vsel %vm1452_vm9, %v6260_v39, %v11358_v31  ;;  %v5711_v39 = vrot.slane %v11513_v41, 5 }
 0x5a5   : > { %6127 = vrot.lane.b32.xlu0 %v11403_v42, %s8064_s20  ;;  %v5490_v17 = vsel %vm8189_vm5, %v5485_v20, %v5489_v60  ;;  %v5480_v12 = vsel %vm8189_vm5, %v5475_v29, %v5479_v51  ;;  %v5460_v0 = vor.u32 %v5459_v26, %v5455_v22  ;;  %v11558_v51 = vld [vmem:[#allocation2 + $0x9c] sm:$0xf]  ;;  %v5463_v60 = vshll.u32 %v11471_v6, 16 }
 0x5a6   : > { %5989 = vrot.lane.b32.xlu1 %v11508_v49, %s8061_s11  ;;  %v11563_v8 = vcombine.low %v11558_v51, %v11550_v61  ;;  %v6324_v5 = vsel %vm12751_vm12, %v6292_v3, %v11437_v36  ;;  %v5450_v31 = vor.u32 %v5449_v54, %v5446_v1  ;;  %vm12762_vm12 = vmmov %vm12756_vm6 }
 0x5a7   : > { %v11518_v44 = vpop.permute.xlu1 %6076  ;;  %v11520_v18 = vpop.permute.xlu0 %6012  ;;  %v5461_v4 = vrot.slane %v5460_v0, 4  ;;  %v5465_v6 = vrot.slane %v5463_v60, 5  ;;  %v6356_v26 = vsel %vm12752_vm1, %v6324_v5, %v11375_v14  ;;  %v5169_v5 = vld [vmem:[#allocation2 + $0xb0] sm:$0x1]  ;;  %vm12763_vm1 = vmmov %vm12757_vm10 }
 0x5a8   : > { %12750 = vst [vmem:[#allocation71_spill] sm:$0xff] %v11563_v8  ;;  %v5451_v36 = vrot.slane %v5450_v31, 4  ;;  %v6388_v1 = vsel %vm12753_vm3, %v6356_v26, %v11450_v10  ;;  %v5704_v31 = vrot.slane %v11550_v61, 5  ;;  %v5525_v10 = vshll.u32 %v11513_v41, 16  ;;  %vm12765_vm3 = vmmov %vm12758_vm0 }
 0x5a9   : > { %6158 = vrot.lane.b32.xlu0 %v11417_v16, %s8065_s21  ;;  %v11546_v16 = vcombine.low %v5480_v12, %v5490_v17  ;;  %v6217_v12 = vsel %vm1370_vm7, %v10969_v15, %v11426_v48  ;;  %v5713_v48 = vrot.slane %v5711_v39, 4  ;;  %v5516_v26 = vshrl.u32 %v11522_v45, 16 }
 0x5aa   : > { %6028 = vrot.lane.b32.xlu1 %v11530_v27, %s8059_s30  ;;  %v5456_v0 = vsel %vm8189_vm5, %v5451_v36, %v5455_v22  ;;  %v6262_v22 = vsel %vm1419_vm8, %v6217_v12, %v11377_v46  ;;  %v7606_v46 = vrot.slane %v11522_v45, 9  ;;  %v11616_v12 = vld [vmem:[#allocation2 + $0xa4] sm:$0x1] }
 0x5ab   : > { %v11540_v62 = vpop.permute.xlu1 %6115  ;;  %v11542_v19 = vpop.permute.xlu0 %5895 }
 0x5ad   : > { %6022 = vrot.lane.b32.xlu0 %v11430_v34, %s8059_s30 }
 0x5ae   : > { %6059 = vrot.lane.b32.xlu1 %v11546_v16, %s8063_s19 }
 0x5af   : > { %v6147_v20 = vpop.permute.xlu1 %6146  ;;  %v11556_v58 = vpop.permute.xlu0 %6043 }
 0x5b1   : > { %6053 = vrot.lane.b32.xlu0 %v11452_v38, %s8063_s19  ;;  %v5466_v38 = vsel %vm8189_vm5, %v5461_v4, %v5465_v6  ;;  %v5529_v4 = vshrl.u32 %v11513_v41, 16  ;;  %v6294_v6 = vsel %vm1452_vm9, %v6262_v22, %v11435_v55 }
 0x5b2   : > { %6129 = vrot.lane.b32.xlu1 %v11563_v8, %s8064_s20  ;;  %v11594_v60 = vcombine.low %v5456_v0, %v5466_v38  ;;  %v5519_v38 = vshll.u32 %v11522_v45, 16  ;;  %v5527_v0 = vrot.slane %v5525_v10, 5 }
 0x5b3   : > { %v11571_v29 = vpop.permute.xlu1 %6010  ;;  %v11573_v17 = vpop.permute.xlu0 %6113 }
 0x5b5   : > { %6197 = vrot.lane.b32.xlu0 %v11492_v32, %s8066_s22 }
 0x5b6   : > { %5911 = vrot.lane.b32.xlu1 %v11546_v16, %s8062_s12 }
 0x5b7   : > { %v11589_v14 = vpop.permute.xlu1 %5893  ;;  %v6145_v54 = vpop.permute.xlu0 %6144 }
 0x5b8   : > { %v6420_v3 = vsel %vm12754_vm15, %v6388_v1, %v6145_v54  ;;  %v5706_v1 = vrot.slane %v5704_v31, 4  ;;  %vm12766_vm15 = vmmov %vm12763_vm1 }
 0x5b9   : > { %v6452_v15 = vsel %vm12755_vm2, %v6420_v3, %v11484_v9  ;;  %5991 = vrot.lane.b32.xlu0 %v11492_v32, %s8061_s11  ;;  %v5714_v32 = vrot.slane %v5169_v5, 5  ;;  %v5531_v3 = vrot.slane %v5529_v4, 4  ;;  %vm12767_vm2 = vmmov %vm12759_vm11 }
 0x5ba   : > { %6160 = vrot.lane.b32.xlu1 %v11594_v60, %s8065_s21  ;;  %7912 = vmatmul.mubr.msk.bf16.vlgmr.msra.gmra.mrb[16].mxu0 %vm12756_vm6, %v6452_v15  ;;  %vm12768_vm6 = vmmov %vm12758_vm0 }
 0x5bb   : > { %v6042_v9 = vpop.permute.xlu1 %6041  ;;  %v11611_v36 = vpop.permute.xlu0 %6082  ;;  %v5715_v55 = vsel %vm8146_vm4, %v5713_v48, %v5714_v32  ;;  %v5521_v32 = vrot.slane %v5519_v38, 5 }
 0x5bc   : > { %v6326_v41 = vsel %vm12757_vm10, %v6294_v6, %v6042_v9  ;;  %v5707_v9 = vrot.slane %v11616_v12, 5  ;;  %vm12769_vm10 = vmmov %vm12767_vm2 }
 0x5bd   : > { %v6358_v54 = vsel %vm12758_vm0, %v6326_v41, %v11518_v44  ;;  %6195 = vrot.lane.b32.xlu0 %v11508_v49, %s8066_s22  ;;  %v5712_v44 = vsel %vm8146_vm4, %v7606_v46, %v5711_v39  ;;  %v5518_v39 = vrot.slane %v5516_v26, 4  ;;  %v11660_v26 = vld [vmem:[#allocation2 + $0xc4] sm:$0xf]  ;;  %vm12770_vm0 = vmmov %vm12760_vm13 }
 0x5be   : > { %v6390_v15 = vsel %vm12759_vm11, %v6358_v54, %v11413_v25  ;;  %5909 = vrot.lane.b32.xlu1 %v11594_v60, %s8062_s12  ;;  %v11636_v48 = vcombine.low %v5712_v44, %v5715_v55  ;;  %v7605_v25 = vrot.slane %v11558_v51, 9  ;;  %v5708_v10 = vsel %vm8146_vm4, %v5706_v1, %v5707_v9  ;;  %vm12771_vm11 = vmmov %vm12770_vm0 }
 0x5bf   : > { %v11628_v45 = vpop.permute.xlu1 %6185  ;;  %v11630_v22 = vpop.permute.xlu0 %5979  ;;  %v6422_v6 = vsel %vm12760_vm13, %v6390_v15, %v6147_v20  ;;  %v5532_v20 = vor.u32 %v5531_v3, %v5527_v0  ;;  %v5535_v54 = vshll.u32 %v5169_v5, 16  ;;  %v5501_v1 = vshll.u32 %v11550_v61, 16  ;;  %vm12772_vm13 = vmmov %vm12761_vm14 }
 0x5c0   : > { %v6454_v4 = vsel %vm12761_vm14, %v6422_v6, %v11482_v52  ;;  %v5705_v52 = vsel %vm8146_vm4, %v7605_v25, %v5704_v31  ;;  %v5522_v38 = vor.u32 %v5521_v32, %v5518_v39  ;;  %v5492_v15 = vshrl.u32 %v11558_v51, 16  ;;  %v11670_v6 = vld [vmem:[#allocation2 + $0xc0] sm:$0xf]  ;;  %vm12773_vm14 = vmmov %vm12762_vm12 }
 0x5c1   : > { %6092 = vrot.lane.b32.xlu0 %v11508_v49, %s8060_s8  ;;  %7915 = vmatprep.mubr.msk.bf16.mxu0 %vm12762_vm12, %v6454_v4  ;;  %v5505_v49 = vshrl.u32 %v11550_v61, 16  ;;  %v11655_v55 = vcombine.low %v5705_v52, %v5708_v10  ;;  %v5533_v3 = vrot.slane %v5532_v20, 4  ;;  %v5495_v5 = vshll.u32 %v11558_v51, 16  ;;  %vm12774_vm12 = vmmov %vm12772_vm13 }
 0x5c2   : > { %6098 = vrot.lane.b32.xlu1 %v11636_v48, %s8060_s8  ;;  %v5537_v61 = vrot.slane %v5535_v54, 5  ;;  %v11674_v9 = vcombine.low %v11670_v6, %v11660_v26  ;;  %v5503_v4 = vrot.slane %v5501_v1, 5  ;;  %v5523_v10 = vrot.slane %v5522_v38, 4 }
 0x5c3   : > { %v11648_v41 = vpop.permute.xlu1 %6080  ;;  %v11650_v46 = vpop.permute.xlu0 %6183  ;;  %v5507_v25 = vrot.slane %v5505_v49, 4  ;;  %v5494_v52 = vrot.slane %v5492_v15, 4  ;;  %v5497_v54 = vrot.slane %v5495_v5, 5  ;;  %v5511_v38 = vshll.u32 %v11616_v12, 16 }
 0x5c4   : > { %v5538_v51 = vsel %vm8189_vm5, %v5533_v3, %v5537_v61  ;;  %v5528_v20 = vsel %vm8189_vm5, %v5523_v10, %v5527_v0  ;;  %v11701_v0 = vld [vmem:[#allocation2 + $0xb4] sm:$0xf]  ;;  %v6220_v5 = vsel %vm1370_vm7, %v11040_v30, %v11589_v14  ;;  %v6223_v12 = vsel %vm1370_vm7, %v11016_v47, %v11542_v19 }
 0x5c5   : > { %6131 = vrot.lane.b32.xlu0 %v11530_v27, %s8064_s20  ;;  %v11688_v49 = vcombine.low %v5528_v20, %v5538_v51  ;;  %v5508_v1 = vor.u32 %v5507_v25, %v5503_v4  ;;  %v5498_v15 = vor.u32 %v5497_v54, %v5494_v52  ;;  %v5513_v51 = vrot.slane %v5511_v38, 5 }
 0x5c6   : > { %5993 = vrot.lane.b32.xlu1 %v11655_v55, %s8061_s11  ;;  %v6264_v20 = vsel %vm1419_vm8, %v6220_v5, %v11504_v59  ;;  %v6266_v54 = vsel %vm1419_vm8, %v6223_v12, %v11502_v24  ;;  %v5752_v19 = vrot.slane %v11660_v26, 5  ;;  %v5733_v59 = vshll.u32 %v11660_v26, 16 }
 0x5c7   : > { %v11666_v31 = vpop.permute.xlu1 %6016  ;;  %v11668_v44 = vpop.permute.xlu0 %5977  ;;  %v5509_v10 = vrot.slane %v5508_v1, 4  ;;  %v5499_v52 = vrot.slane %v5498_v15, 4  ;;  %v5737_v1 = vshrl.u32 %v11660_v26, 16  ;;  %v6296_v38 = vsel %vm1452_vm9, %v6264_v20, %v11415_v57 }
 0x5c8   : > { %v5724_v5 = vshrl.u32 %v11670_v6, 16  ;;  %v5754_v20 = vrot.slane %v5752_v19, 4 }
 0x5c9   : > { %6162 = vrot.lane.b32.xlu0 %v11546_v16, %s8065_s21  ;;  %v11692_v16 = vld [vmem:[#allocation2 + $0xb8] sm:$0xf]  ;;  %v5514_v47 = vsel %vm8189_vm5, %v5509_v10, %v5513_v51  ;;  %v5504_v15 = vsel %vm8189_vm5, %v5499_v52, %v5503_v4  ;;  %v5175_v51 = vld [vmem:[#allocation2 + $0xc8] sm:$0x1]  ;;  %v6328_v52 = vsel %vm12766_vm15, %v6296_v38, %v11556_v58  ;;  %v5543_v58 = vshll.u32 %v11701_v0, 16 }
 0x5ca   : > { %6032 = vrot.lane.b32.xlu1 %v11674_v9, %s8059_s30  ;;  %v11708_v25 = vcombine.low %v11701_v0, %v11692_v16  ;;  %v11745_v26 = vcombine.low %v5504_v15, %v5514_v47  ;;  %v5553_v57 = vshrl.u32 %v11692_v16, 16  ;;  %v5549_v47 = vshll.u32 %v11692_v16, 16  ;;  %v11758_v15 = vld [vmem:[#allocation2 + $0xcc] sm:$0xf] }
 0x5cb   : > { %v11682_v39 = vpop.permute.xlu1 %6150  ;;  %v11684_v32 = vpop.permute.xlu0 %6119  ;;  %v5758_v27 = vshrl.u32 %v11758_v15, 16  ;;  %v5761_v42 = vshll.u32 %v11758_v15, 16  ;;  %v5755_v38 = vrot.slane %v5175_v51, 5  ;;  %v5726_v34 = vrot.slane %v5724_v5, 4 }
 0x5cc   : > { %v6360_v7 = vsel %vm12768_vm6, %v6328_v52, %v11466_v43  ;;  %v5555_v50 = vrot.slane %v5553_v57, 4  ;;  %v5743_v43 = vshll.u32 %v5175_v51, 16 }
 0x5cd   : > { %6026 = vrot.lane.b32.xlu0 %v11563_v8, %s8059_s30  ;;  %v5172_v8 = vld [vmem:[#allocation2 + $0xbc] sm:$0x1]  ;;  %v5756_v21 = vsel %vm8146_vm4, %v5754_v20, %v5755_v38  ;;  %v6392_v52 = vsel %vm12769_vm10, %v6360_v7, %v11573_v17  ;;  %v5178_v38 = vld [vmem:[#allocation2 + $0xd4] sm:$0x1] }
 0x5ce   : > { %6063 = vrot.lane.b32.xlu1 %v11688_v49, %s8063_s19  ;;  %v5721_v5 = vrot.slane %v5172_v8, 5 }
 0x5cf   : > { %v11697_v3 = vpop.permute.xlu1 %5897  ;;  %v11699_v61 = vpop.permute.xlu0 %5899 }
 0x5d1   : > { %6057 = vrot.lane.b32.xlu0 %v11594_v60, %s8063_s19  ;;  %v6298_v60 = vsel %vm1452_vm9, %v6266_v54, %v11571_v29  ;;  %v5727_v29 = vshll.u32 %v11670_v6, 16  ;;  %v5739_v54 = vrot.slane %v5737_v1, 4  ;;  %v11762_v1 = vld [vmem:[#allocation2 + $0xd0] sm:$0xf] }
 0x5d2   : > { %6133 = vrot.lane.b32.xlu1 %v11708_v25, %s8064_s20 }
 0x5d3   : > { %v6046_v30 = vpop.permute.xlu1 %6045  ;;  %v11719_v14 = vpop.permute.xlu0 %6047  ;;  %v5729_v40 = vrot.slane %v5727_v29, 5 }
 0x5d4   : > { %v6330_v24 = vsel %vm12763_vm1, %v6298_v60, %v6046_v30  ;;  %v5718_v30 = vrot.slane %v11692_v16, 5  ;;  %v11755_v60 = vrot.slane %v5733_v59, 5  ;;  %v7608_v59 = vrot.slane %v11670_v6, 9  ;;  %vm12775_vm1 = vmmov %vm12773_vm14 }
 0x5d5   : > { %6201 = vrot.lane.b32.xlu0 %v11636_v48, %s8066_s22  ;;  %v6362_v4 = vsel %vm12765_vm3, %v6330_v24, %v11648_v41  ;;  %v5771_v41 = vshrl.u32 %v11762_v1, 16  ;;  %v5540_v24 = vshrl.u32 %v11701_v0, 16  ;;  %v11783_v6 = vrot.slane %v5549_v47, 5  ;;  %vm12781_vm6 = vmmov %vm12775_vm1 }
 0x5d6   : > { %5915 = vrot.lane.b32.xlu1 %v11688_v49, %s8062_s12  ;;  %v6394_v2 = vsel %vm12767_vm2, %v6362_v4, %v11540_v62  ;;  %v5720_v35 = vrot.slane %v5718_v30, 4  ;;  %v7607_v62 = vrot.slane %v11701_v0, 9  ;;  %v5753_v20 = vsel %vm8146_vm4, %v7608_v59, %v5752_v19 }
 0x5d7   : > { %v11741_v10 = vpop.permute.xlu1 %6086  ;;  %v11743_v12 = vpop.permute.xlu0 %6117  ;;  %v5542_v4 = vrot.slane %v5540_v24, 4  ;;  %v6426_v57 = vsel %vm12770_vm0, %v6394_v2, %v11682_v39  ;;  %v11798_v0 = vcombine.low %v5753_v20, %v5756_v21  ;;  %v5730_v51 = vor.u32 %v5729_v40, %v5726_v34 }
 0x5d8   : > { %12764 = vst [vmem:[#allocation72_spill] sm:$0xff] %v11741_v10  ;;  %v5740_v10 = vor.u32 %v5739_v54, %v11755_v60  ;;  %v5767_v54 = vshll.u32 %v11762_v1, 16  ;;  %v5545_v24 = vrot.slane %v5543_v58, 5  ;;  %v5722_v17 = vsel %vm8146_vm4, %v5720_v35, %v5721_v5 }
 0x5d9   : > { %5995 = vrot.lane.b32.xlu0 %v11636_v48, %s8061_s11  ;;  %v5556_v2 = vor.u32 %v5555_v50, %v11783_v6  ;;  %v6458_v21 = vsel %vm12774_vm12, %v6426_v57, %v11628_v45  ;;  %v5559_v40 = vshll.u32 %v5172_v8, 16  ;;  %v5760_v34 = vrot.slane %v5758_v27, 4 }
 0x5da   : > { %6164 = vrot.lane.b32.xlu1 %v11745_v26, %s8065_s21  ;;  %v5741_v19 = vrot.slane %v5740_v10, 4  ;;  %v5719_v35 = vsel %vm8146_vm4, %v7607_v62, %v5718_v30  ;;  %v5763_v50 = vrot.slane %v5761_v42, 5  ;;  %v5769_v39 = vrot.slane %v5767_v54, 5 }
 0x5db   : > { %v11769_v48 = vpop.permute.xlu1 %5981  ;;  %v11771_v16 = vpop.permute.xlu0 %6014  ;;  %v5773_v10 = vrot.slane %v5771_v41, 4  ;;  %v7657_v58 = vcombine.low %v5719_v35, %v5722_v17  ;;  %v5546_v59 = vor.u32 %v5545_v24, %v5542_v4  ;;  %v5731_v8 = vrot.slane %v5730_v51, 4 }
 0x5dc   : > { %v5557_v45 = vrot.slane %v5556_v2, 4  ;;  %v5561_v5 = vrot.slane %v5559_v40, 5  ;;  %v5764_v41 = vor.u32 %v5763_v50, %v5760_v34  ;;  %v5777_v4 = vshll.u32 %v5178_v38, 16 }
 0x5dd   : > { %6199 = vrot.lane.b32.xlu0 %v11655_v55, %s8066_s22  ;;  %v5736_v42 = vsel %vm8189_vm5, %v5731_v8, %v11755_v60  ;;  %v5774_v62 = vor.u32 %v5773_v10, %v5769_v39  ;;  %v5789_v40 = vrot.slane %v5178_v38, 5 }
 0x5de   : > { %5913 = vrot.lane.b32.xlu1 %v11745_v26, %s8062_s12  ;;  %v5562_v20 = vsel %vm8189_vm5, %v5557_v45, %v5561_v5  ;;  %v5779_v24 = vrot.slane %v5777_v4, 5  ;;  %v12788_v4 = vld [vmem:[#allocation48_spill] sm:$0xff] }
 0x5df   : > { %v11788_v29 = vpop.permute.xlu1 %6020  ;;  %v6149_v37 = vpop.permute.xlu0 %6148  ;;  %v5775_v51 = vrot.slane %v5774_v62, 4 }
 0x5e0   : > { %v6424_v47 = vsel %vm12771_vm11, %v6392_v52, %v6149_v37  ;;  %v5745_v37 = vrot.slane %v5743_v43, 5  ;;  %v5547_v52 = vrot.slane %v5546_v59, 4 }
 0x5e1   : > { %6096 = vrot.lane.b32.xlu0 %v11655_v55, %s8060_s8  ;;  %v6456_v7 = vsel %vm12772_vm13, %v6424_v47, %v11650_v46  ;;  %v5765_v47 = vrot.slane %v5764_v41, 4 }
 0x5e2   : > { %6102 = vrot.lane.b32.xlu1 %v11798_v0, %s8060_s8  ;;  %7916 = vmatmul.mubr.msk.bf16.gmra.mrb[20].mxu0 %vm12773_vm14, %v6456_v7  ;;  %v5746_v27 = vsel %vm8189_vm5, %v5741_v19, %v5745_v37  ;;  %v5552_v57 = vsel %vm8189_vm5, %v5547_v52, %v11783_v6  ;;  %v5786_v7 = vrot.slane %v11762_v1, 5  ;;  %v6226_v1 = vsel %vm1370_vm7, %v11147_v56, %v11697_v3 }
 0x5e3   : > { %v11812_v55 = vpop.permute.xlu1 %6051  ;;  %7919 = vmatprep.mubr.msk.bf16.mxu0 %vm12775_vm1, %v6458_v21  ;;  %v11815_v46 = vpop.permute.xlu0 %6189  ;;  %v7641_v17 = vcombine.low %v5552_v57, %v5562_v20  ;;  %v5770_v6 = vsel %vm8189_vm5, %v5765_v47, %v5769_v39  ;;  %v5780_v21 = vsel %vm8189_vm5, %v5775_v51, %v5779_v24  ;;  %vm12777_vm5 = vmmov %vm12765_vm3  ;;  %v12792_v20 = vld [vmem:[#allocation39_spill] sm:$0xff]  ;;  %v12797_v24 = vld [vmem:[#allocation50_spill] sm:$0xff] }
 0x5e4   : > { %v5788_v37 = vrot.slane %v5786_v7, 4  ;;  %vm12778_vm3 = vmmov %vm12767_vm2 }
 0x5e5   : > { %6135 = vrot.lane.b32.xlu0 %v11674_v9, %s8064_s20  ;;  %v7659_v9 = vcombine.low %v5736_v42, %v5746_v27  ;;  %vm12780_vm2 = vmmov %vm12774_vm12 }
 0x5e6   : > { %5997 = vrot.lane.b32.xlu1 %v7657_v58, %s8061_s11  ;;  %v5790_v50 = vsel %vm8146_vm4, %v5788_v37, %v5789_v40  ;;  %vm12784_vm11 = vmmov %vm12778_vm3  ;;  %v12803_v37 = vld [vmem:[#allocation45_spill] sm:$0xff] }
 0x5e7   : > { %v11824_v43 = vpop.permute.xlu1 %6121  ;;  %v11826_v30 = vpop.permute.xlu0 %5983  ;;  %vm12786_vm14 = vmmov %vm12780_vm2 }
 0x5e9   : > { %6166 = vrot.lane.b32.xlu0 %v11688_v49, %s8065_s21  ;;  %v7609_v49 = vrot.slane %v11758_v15, 9  ;;  %v7662_v15 = vcombine.low %v5770_v6, %v5780_v21  ;;  %v12802_v21 = vld [vmem:[#allocation51_spill] sm:$0xff] }
 0x5ea   : > { %6067 = vrot.lane.b32.xlu1 %v7659_v9, %s8063_s19 }
 0x5eb   : > { %v11839_v54 = vpop.permute.xlu1 %5903  ;;  %v6188_v60 = vpop.permute.xlu0 %6187  ;;  %v5787_v53 = vsel %vm8146_vm4, %v7609_v49, %v5786_v7  ;;  %vm12776_vm4 = vmmov %vm12766_vm15  ;;  %v12799_v7 = vld [vmem:[#allocation54_spill] sm:$0xff] }
 0x5ec   : > { %v7663_v56 = vcombine.low %v5787_v53, %v5790_v50  ;;  %vm12779_vm15 = vmmov %vm12770_vm0  ;;  %v12805_v53 = vld [vmem:[#allocation40_spill] sm:$0xff]  ;;  %v12806_v50 = vld [vmem:[#allocation65_spill] sm:$0xff] }
 0x5ed   : > { %6030 = vrot.lane.b32.xlu0 %v11708_v25, %s8059_s30  ;;  %vm12782_vm10 = vmmov %vm12776_vm4 }
 0x5ee   : > { %6168 = vrot.lane.b32.xlu1 %v7641_v17, %s8065_s21  ;;  %vm12783_vm0 = vmmov %vm12777_vm5 }
 0x5ef   : > { %v5902_v19 = vpop.permute.xlu1 %5901  ;;  %v6085_v2 = vpop.permute.xlu0 %6084  ;;  %vm12785_vm13 = vmmov %vm12779_vm15 }
 0x5f0   : > { %vm12787_vm12 = vmmov %vm12776_vm4 }
 0x5f1   : > { %6061 = vrot.lane.b32.xlu0 %v11745_v26, %s8063_s19  ;;  %v6268_v26 = vsel %vm1419_vm8, %v6226_v1, %v11668_v44 }
 0x5f2   : > { %5917 = vrot.lane.b32.xlu1 %v7641_v17, %s8062_s12  ;;  %v6300_v10 = vsel %vm1452_vm9, %v6268_v26, %v11520_v18  ;;  %v6229_v18 = vsel %vm1370_vm7, %v11112_v28, %v11699_v61  ;;  %v6235_v26 = vsel %vm1370_vm7, %v12806_v50, %v11839_v54 }
 0x5f3   : > { %v11856_v34 = vpop.permute.xlu1 %6090  ;;  %v11858_v35 = vpop.permute.xlu0 %6123  ;;  %v6332_v13 = vsel %vm12776_vm4, %v6300_v10, %v11719_v14  ;;  %v6232_v14 = vsel %vm1370_vm7, %v11275_v33, %v5902_v19  ;;  %vm12791_vm4 = vmmov %vm12783_vm0  ;;  %v12801_v19 = vld [vmem:[#allocation49_spill] sm:$0xff] }
 0x5f4   : > { %v6364_v38 = vsel %vm12777_vm5, %v6332_v13, %v11611_v36  ;;  %v6272_v28 = vsel %vm1419_vm8, %v6232_v14, %v11769_v48  ;;  %vm12793_vm5 = vmmov %vm12778_vm3  ;;  %v12809_v14 = vld [vmem:[#allocation53_spill] sm:$0xff] }
 0x5f5   : > { %6203 = vrot.lane.b32.xlu0 %v7657_v58, %s8066_s22  ;;  %v6304_v42 = vsel %vm1452_vm9, %v6272_v28, %v11666_v31 }
 0x5f6   : > { %6172 = vrot.lane.b32.xlu1 %v7662_v15, %s8065_s21  ;;  %v6336_v31 = vsel %vm12787_vm12, %v6304_v42, %v11812_v55  ;;  %v12804_v15 = vld [vmem:[#allocation52_spill] sm:$0xff]  ;;  %vm12819_vm12 = vmmov %vm12775_vm1 }
 0x5f7   : > { %v11868_v3 = vpop.permute.xlu1 %5985  ;;  %v6155_v39 = vpop.permute.xlu0 %6154 }
 0x5f9   : > { %6100 = vrot.lane.b32.xlu0 %v7657_v58, %s8060_s8  ;;  %v6396_v58 = vsel %vm12778_vm3, %v6364_v38, %v11743_v12  ;;  %vm12795_vm3 = vmmov %vm12785_vm13  ;;  %v12808_v38 = vld [vmem:[#allocation43_spill] sm:$0xff] }
 0x5fa   : > { %6207 = vrot.lane.b32.xlu1 %v7663_v56, %s8066_s22  ;;  %v12807_v56 = vld [vmem:[#allocation67_spill] sm:$0xff] }
 0x5fb   : > { %v11876_v59 = vpop.permute.xlu1 %6024  ;;  %v11878_v44 = vpop.permute.xlu0 %6018 }
 0x5fd   : > { %6170 = vrot.lane.b32.xlu0 %v7659_v9, %s8065_s21 }
 0x5fe   : > { %6821 = vrot.lane.b32.xlu1 %v10636_v23, %s8061_s11  ;;  %v6270_v23 = vsel %vm1419_vm8, %v6229_v18, %v11630_v22  ;;  %v6274_v18 = vsel %vm1419_vm8, %v6235_v26, %v11826_v30  ;;  %v12812_v30 = vld [vmem:[#allocation42_spill] sm:$0xff] }
 0x5ff   : > { %v11892_v8 = vpop.permute.xlu1 %6055  ;;  %v6153_v27 = vpop.permute.xlu0 %6152  ;;  %v6302_v33 = vsel %vm1452_vm9, %v6270_v23, %v11771_v16  ;;  %v6306_v54 = vsel %vm1452_vm9, %v6274_v18, %v11878_v44 }
 0x600   : > { %v6428_v45 = vsel %vm12779_vm15, %v6396_v58, %v6153_v27  ;;  %vm12796_vm15 = vmmov %vm12780_vm2 }
 0x601   : > { %6065 = vrot.lane.b32.xlu0 %v7641_v17, %s8063_s19  ;;  %v6460_v36 = vsel %vm12780_vm2, %v6428_v45, %v6188_v60  ;;  %vm12798_vm2 = vmmov %vm12775_vm1 }
 0x602   : > { %6825 = vrot.lane.b32.xlu1 %v10631_v11, %s8061_s11  ;;  %7920 = vmatmul.mubr.msk.bf16.gmra.mrb[24].mxu0 %vm12781_vm6, %v6460_v36  ;;  %vm12810_vm6 = vmmov %vm12782_vm10 }
 0x603   : > { %v11906_v61 = vpop.permute.xlu1 %6125  ;;  %v6050_v12 = vpop.permute.xlu0 %6049 }
 0x604   : > { %v6334_v5 = vsel %vm12782_vm10, %v6302_v33, %v6050_v12  ;;  %vm12811_vm10 = vmmov %vm12783_vm0  ;;  %v12814_v33 = vld [vmem:[#allocation57_spill] sm:$0xff] }
 0x605   : > { %v6366_v22 = vsel %vm12783_vm0, %v6334_v5, %v6085_v2  ;;  %6205 = vrot.lane.b32.xlu0 %v11798_v0, %s8066_s22  ;;  %vm12813_vm0 = vmmov %vm12793_vm5 }
 0x606   : > { %v6398_v11 = vsel %vm12784_vm11, %v6366_v22, %v11684_v32  ;;  %6829 = vrot.lane.b32.xlu1 %v10674_v63, %s8061_s11  ;;  %v12789_v32 = vld [vmem:[#allocation44_spill] sm:$0xff]  ;;  %vm12815_vm11 = vmmov %vm12795_vm3  ;;  %v12818_v22 = vld [vmem:[#allocation38_spill] sm:$0xff] }
 0x607   : > { %v11918_v48 = vpop.permute.xlu1 %5907  ;;  %v6194_v16 = vpop.permute.xlu0 %6193  ;;  %v6430_v41 = vsel %vm12785_vm13, %v6398_v11, %v6155_v39  ;;  %v12790_v63 = vld [vmem:[#allocation72_spill] sm:$0xff]  ;;  %vm12816_vm13 = vmmov %vm12786_vm14 }
 0x608   : > { %v6462_v62 = vsel %vm12786_vm14, %v6430_v41, %v11815_v46  ;;  %v6368_v0 = vsel %vm12791_vm4, %v6336_v31, %v12790_v63  ;;  %v12794_v46 = vld [vmem:[#allocation46_spill] sm:$0xff]  ;;  %vm12817_vm14 = vmmov %vm12810_vm6  ;;  %v12822_v31 = vld [vmem:[#allocation47_spill] sm:$0xff] }
 0x609   : > { %6819 = vrot.lane.b32.xlu0 %v12788_v4, %s8061_s11  ;;  %7923 = vmatprep.mubr.msk.bf16.mxu0 %vm12775_vm1, %v6462_v62  ;;  %v6400_v55 = vsel %vm12793_vm5, %v6368_v0, %v11824_v43  ;;  %v12800_v43 = vld [vmem:[#allocation41_spill] sm:$0xff]  ;;  %vm12821_vm1 = vmmov %vm12791_vm4 }
 0x60a   : > { %6833 = vrot.lane.b32.xlu1 %v12789_v32, %s8061_s11  ;;  %vm12823_vm4 = vmmov %vm12813_vm0 }
 0x60b   : > { %v6157_v9 = vpop.permute.xlu1 %6156  ;;  %v11932_v52 = vpop.permute.xlu0 %5987  ;;  %vm12825_vm5 = vmmov %vm12795_vm3 }
 0x60c   : > { %v6432_v57 = vsel %vm12795_vm3, %v6400_v55, %v6157_v9  ;;  %vm12826_vm3 = vmmov %vm12816_vm13  ;;  %v12829_v9 = vld [vmem:[#allocation60_spill] sm:$0xff] }
 0x60d   : > { %6823 = vrot.lane.b32.xlu0 %v12792_v20, %s8061_s11 }
 0x60e   : > { %6837 = vrot.lane.b32.xlu1 %v12794_v46, %s8061_s11  ;;  %v12831_v46 = vld [vmem:[#allocation64_spill] sm:$0xff] }
 0x60f   : > { %v5906_v60 = vpop.permute.xlu1 %5905  ;;  %v6192_v47 = vpop.permute.xlu0 %6191 }
 0x610   : > { %v6464_v51 = vsel %vm12796_vm15, %v6432_v57, %v6192_v47  ;;  %v6238_v39 = vsel %vm1370_vm7, %v12807_v56, %v5906_v60  ;;  %vm12828_vm15 = vmmov %vm12798_vm2  ;;  %v12832_v47 = vld [vmem:[#allocation59_spill] sm:$0xff] }
 0x611   : > { %6827 = vrot.lane.b32.xlu0 %v12797_v24, %s8061_s11  ;;  %7924 = vmatmul.mubr.msk.bf16.gmra.mrb[28].mxu0 %vm12798_vm2, %v6464_v51  ;;  %v6276_v58 = vsel %vm1419_vm8, %v6238_v39, %v11868_v3  ;;  %v12833_v51 = vld [vmem:[#allocation63_spill] sm:$0xff]  ;;  %vm12838_vm2 = vmmov %vm12810_vm6 }
 0x612   : > { %6841 = vrot.lane.b32.xlu1 %v12799_v7, %s8061_s11  ;;  %v6308_v23 = vsel %vm1452_vm9, %v6276_v58, %v11788_v29 }
 0x613   : > { %v6089_v17 = vpop.permute.xlu0 %6088  ;;  %v6340_v29 = vsel %vm12817_vm14, %v6308_v23, %v11892_v8  ;;  %vm12845_vm14 = vmmov %vm12819_vm12 }
 0x614   : > { %v11947_v49 = vpop.permute.xlu1 %6094  ;;  %v6372_v11 = vsel %vm12821_vm1, %v6340_v29, %v11856_v34  ;;  %v12827_v34 = vld [vmem:[#allocation15_spill] sm:$0xff] }
 0x615   : > { %6831 = vrot.lane.b32.xlu0 %v12800_v43, %s8061_s11  ;;  %v6404_v8 = vsel %vm12823_vm4, %v6372_v11, %v11906_v61  ;;  %v12830_v61 = vld [vmem:[#allocation55_spill] sm:$0xff]  ;;  %v12835_v43 = vld [vmem:[#allocation69_spill] sm:$0xff] }
 0x616   : > { %6845 = vrot.lane.b32.xlu1 %v12801_v19, %s8061_s11 }
 0x617   : > { %v11953_v2 = vpop.permute.xlu0 %6127 }
 0x618   : > { %v11955_v6 = vpop.permute.xlu1 %5989 }
 0x619   : > { %6835 = vrot.lane.b32.xlu0 %v12802_v21, %s8061_s11 }
 0x61a   : > { %6849 = vrot.lane.b32.xlu1 %v12803_v37, %s8061_s11 }
 0x61b   : > { %v6159_v40 = vpop.permute.xlu0 %6158 }
 0x61c   : > { %v11961_v1 = vpop.permute.xlu1 %6028 }
 0x61d   : > { %6839 = vrot.lane.b32.xlu0 %v12804_v15, %s8061_s11 }
 0x61e   : > { %6853 = vrot.lane.b32.xlu1 %v12805_v53, %s8061_s11  ;;  %v12837_v53 = vld [vmem:[#allocation37_spill] sm:$0xff] }
 0x61f   : > { %v6023_v10 = vpop.permute.xlu0 %6022 }
 0x620   : > { %v11972_v13 = vpop.permute.xlu1 %6059 }
 0x621   : > { %6843 = vrot.lane.b32.xlu0 %v12808_v38, %s8061_s11 }
 0x622   : > { %6857 = vrot.lane.b32.xlu1 %v12809_v14, %s8061_s11  ;;  %v12840_v14 = vld [vmem:[#allocation7_spill] sm:$0xff] }
 0x623   : > { %v6054_v27 = vpop.permute.xlu0 %6053 }
 0x624   : > { %v11984_v45 = vpop.permute.xlu1 %6129  ;;  %v6338_v36 = vsel %vm12810_vm6, %v6306_v54, %v6054_v27  ;;  %vm12839_vm6 = vmmov %vm12821_vm1 }
 0x625   : > { %v6370_v28 = vsel %vm12811_vm10, %v6338_v36, %v6089_v17  ;;  %6847 = vrot.lane.b32.xlu0 %v12812_v30, %s8061_s11  ;;  %v12834_v17 = vld [vmem:[#allocation58_spill] sm:$0xff]  ;;  %vm12841_vm10 = vmmov %vm12813_vm0 }
 0x626   : > { %v6402_v3 = vsel %vm12813_vm0, %v6370_v28, %v11858_v35  ;;  %6861 = vrot.lane.b32.xlu1 %v12814_v33, %s8061_s11  ;;  %v12820_v35 = vld [vmem:[#allocation56_spill] sm:$0xff]  ;;  %vm12842_vm0 = vmmov %vm12825_vm5 }
 0x627   : > { %v6198_v44 = vpop.permute.xlu0 %6197  ;;  %v6434_v12 = vsel %vm12815_vm11, %v6402_v3, %v6159_v40  ;;  %v12836_v40 = vld [vmem:[#allocation66_spill] sm:$0xff]  ;;  %vm12843_vm11 = vmmov %vm12826_vm3 }
 0x628   : > { %v11997_v5 = vpop.permute.xlu1 %5911  ;;  %v6466_v42 = vsel %vm12816_vm13, %v6434_v12, %v6194_v16  ;;  %v12824_v16 = vld [vmem:[#allocation61_spill] sm:$0xff]  ;;  %v6241_v15 = vsel %vm1370_vm7, %v12836_v40, %v11918_v48  ;;  %vm12844_vm13 = vmmov %vm12838_vm2  ;;  %v12867_v40 = vld [vmem:[#allocation70_spill] sm:$0xff] }
 0x629   : > { %6851 = vrot.lane.b32.xlu0 %v12818_v22, %s8061_s11  ;;  %7927 = vmatprep.mubr.msk.bf16.mxu0 %vm12819_vm12, %v6466_v42  ;;  %v6278_v50 = vsel %vm1419_vm8, %v6241_v15, %v11932_v52  ;;  %vm12846_vm12 = vmmov %vm12821_vm1  ;;  %v12851_v42 = vld [vmem:[#allocation71_spill] sm:$0xff] }
 0x62a   : > { %6865 = vrot.lane.b32.xlu1 %v12820_v35, %s8061_s11  ;;  %v6310_v56 = vsel %vm1452_vm9, %v6278_v50, %v6023_v10  ;;  %vm12847_vm1 = vmmov %vm12823_vm4 }
 0x62b   : > { %v12009_v41 = vpop.permute.xlu0 %5991  ;;  %vm12848_vm4 = vmmov %vm12842_vm0 }
 0x62c   : > { %v6161_v62 = vpop.permute.xlu1 %6160 }
 0x62d   : > { %6855 = vrot.lane.b32.xlu0 %v12822_v31, %s8061_s11  ;;  %v6436_v4 = vsel %vm12825_vm5, %v6404_v8, %v6161_v62  ;;  %vm12849_vm5 = vmmov %vm12826_vm3 }
 0x62e   : > { %6869 = vrot.lane.b32.xlu1 %v12824_v16, %s8061_s11 }
 0x62f   : > { %v6196_v32 = vpop.permute.xlu0 %6195 }
 0x630   : > { %v5910_v63 = vpop.permute.xlu1 %5909  ;;  %v6468_v0 = vsel %vm12826_vm3, %v6436_v4, %v6196_v32  ;;  %vm12850_vm3 = vmmov %vm12845_vm14  ;;  %v12853_v4 = vld [vmem:[#allocation68_spill] sm:$0xff] }
 0x631   : > { %6859 = vrot.lane.b32.xlu0 %v12827_v34, %s8061_s11  ;;  %7928 = vmatmul.mubr.msk.bf16.gmra.mrb[32].mxu0 %vm12828_vm15, %v6468_v0  ;;  %v6244_v19 = vsel %vm1370_vm7, %v12835_v43, %v5910_v63  ;;  %vm12852_vm15 = vmmov %vm12838_vm2  ;;  %v6247_v32 = vsel %vm1370_vm7, %v12853_v4, %v11997_v5 }
 0x632   : > { %6873 = vrot.lane.b32.xlu1 %v12829_v9, %s8061_s11  ;;  %v6280_v26 = vsel %vm1419_vm8, %v6244_v19, %v11955_v6  ;;  %v6282_v63 = vsel %vm1419_vm8, %v6247_v32, %v12009_v41 }
 0x633   : > { %v6093_v20 = vpop.permute.xlu0 %6092  ;;  %v6312_v58 = vsel %vm1452_vm9, %v6280_v26, %v11876_v59  ;;  %v12868_v26 = vld [vmem:[#allocation62_spill] sm:$0xff] }
 0x634   : > { %v6099_v55 = vpop.permute.xlu1 %6098  ;;  %v6344_v36 = vsel %vm12844_vm13, %v6312_v58, %v11972_v13 }
 0x635   : > { %6863 = vrot.lane.b32.xlu0 %v12830_v61, %s8061_s11  ;;  %v6376_v59 = vsel %vm12846_vm12, %v6344_v36, %v11947_v49  ;;  %vm12861_vm12 = vmmov %vm12849_vm5  ;;  %v12121_v36 = vld [vmem:[%s12434_s6 + $0x1] ss:$0 sm:$0xff] }
 0x636   : > { %6877 = vrot.lane.b32.xlu1 %v12831_v46, %s8061_s11  ;;  %v6408_v30 = vsel %vm12847_vm1, %v6376_v59, %v11984_v45 }
 0x637   : > { %v6132_v57 = vpop.permute.xlu0 %6131 }
 0x638   : > { %v5994_v60 = vpop.permute.xlu1 %5993 }
 0x639   : > { %6867 = vrot.lane.b32.xlu0 %v12832_v47, %s8061_s11 }
 0x63a   : > { %6881 = vrot.lane.b32.xlu1 %v12833_v51, %s8061_s11 }
 0x63b   : > { %v6163_v24 = vpop.permute.xlu0 %6162 }
 0x63c   : > { %v12032_v7 = vpop.permute.xlu1 %6032 }
 0x63d   : > { %6871 = vrot.lane.b32.xlu0 %v12834_v17, %s8061_s11 }
 0x63f   : > { %v6027_v21 = vpop.permute.xlu0 %6026 }
 0x640   : > { %v6064_v37 = vpop.permute.xlu1 %6063  ;;  %v6314_v0 = vsel %vm1452_vm9, %v6282_v63, %v6027_v21 }
 0x641   : > { %6875 = vrot.lane.b32.xlu0 %v12837_v53, %s8061_s11 }
 0x643   : > { %v6058_v39 = vpop.permute.xlu0 %6057 }
 0x644   : > { %v6134_v38 = vpop.permute.xlu1 %6133  ;;  %v6342_v18 = vsel %vm12838_vm2, %v6310_v56, %v6058_v39  ;;  %vm12854_vm2 = vmmov %vm12839_vm6 }
 0x645   : > { %v6374_v48 = vsel %vm12839_vm6, %v6342_v18, %v6093_v20  ;;  %6879 = vrot.lane.b32.xlu0 %v12840_v14, %s8061_s11  ;;  %vm12855_vm6 = vmmov %vm12844_vm13 }
 0x646   : > { %v6406_v52 = vsel %vm12841_vm10, %v6374_v48, %v11953_v2  ;;  %vm12856_vm10 = vmmov %vm12854_vm2 }
 0x647   : > { %v6202_v54 = vpop.permute.xlu0 %6201  ;;  %v6438_v6 = vsel %vm12842_vm0, %v6406_v52, %v6163_v24  ;;  %vm12857_vm0 = vmmov %vm12847_vm1 }
 0x648   : > { %v5916_v27 = vpop.permute.xlu1 %5915  ;;  %v6470_v10 = vsel %vm12843_vm11, %v6438_v6, %v6198_v44  ;;  %vm12858_vm11 = vmmov %vm12857_vm0 }
 0x649   : > { %7931 = vmatprep.mubr.msk.bf16.mxu0 %vm12845_vm14, %v6470_v10  ;;  %vm12859_vm13 = vmmov %vm12848_vm4  ;;  %v6253_v15 = vsel %vm1370_vm7, %v12867_v40, %v5916_v27  ;;  %v12116_v27 = vld [vmem:[%s12434_s6] ss:$0 sm:$0xff] }
 0x64a   : > { %vm12860_vm14 = vmmov %vm12848_vm4 }
 0x64b   : > { %v5996_v23 = vpop.permute.xlu0 %5995  ;;  %vm12862_vm1 = vmmov %vm12849_vm5 }
 0x64c   : > { %v6165_v28 = vpop.permute.xlu1 %6164  ;;  %v6286_v53 = vsel %vm1419_vm8, %v6253_v15, %v5996_v23 }
 0x64d   : > { %v6440_v2 = vsel %vm12848_vm4, %v6408_v30, %v6165_v28  ;;  %vm12863_vm4 = vmmov %vm12850_vm3 }
 0x64f   : > { %v6200_v3 = vpop.permute.xlu0 %6199 }
 0x650   : > { %v5914_v33 = vpop.permute.xlu1 %5913  ;;  %v6472_v12 = vsel %vm12849_vm5, %v6440_v2, %v6200_v3  ;;  %vm12864_vm5 = vmmov %vm12850_vm3 }
 0x651   : > { %7932 = vmatmul.mubr.msk.bf16.gmra.mrb[36].mxu0 %vm12850_vm3, %v6472_v12  ;;  %v6250_v29 = vsel %vm1370_vm7, %v12851_v42, %v5914_v33  ;;  %vm12865_vm3 = vmmov %vm12855_vm6 }
 0x652   : > { %v6284_v35 = vsel %vm1419_vm8, %v6250_v29, %v5994_v60 }
 0x653   : > { %v6097_v44 = vpop.permute.xlu0 %6096  ;;  %v6316_v45 = vsel %vm1452_vm9, %v6284_v35, %v11961_v1 }
 0x654   : > { %v6103_v13 = vpop.permute.xlu1 %6102  ;;  %v6348_v8 = vsel %vm12852_vm15, %v6316_v45, %v6064_v37  ;;  %vm12866_vm15 = vmmov %vm12854_vm2 }
 0x655   : > { %v6380_v34 = vsel %vm12854_vm2, %v6348_v8, %v6099_v55  ;;  %vm12869_vm2 = vmmov %vm12857_vm0 }
 0x656   : > { %v6412_v60 = vsel %vm12857_vm0, %v6380_v34, %v6134_v38  ;;  %vm12871_vm0 = vmmov %vm12859_vm13 }
 0x657   : > { %v6136_v22 = vpop.permute.xlu0 %6135 }
 0x658   : > { %v5998_v49 = vpop.permute.xlu1 %5997 }
 0x65b   : > { %v6167_v11 = vpop.permute.xlu0 %6166 }
 0x65c   : > { %v6068_v62 = vpop.permute.xlu1 %6067 }
 0x65f   : > { %v6031_v31 = vpop.permute.xlu0 %6030 }
 0x660   : > { %v6169_v16 = vpop.permute.xlu1 %6168  ;;  %v6318_v50 = vsel %vm1452_vm9, %v6286_v53, %v6031_v31 }
 0x661   : > { %v6444_v47 = vsel %vm12859_vm13, %v6412_v60, %v6169_v16  ;;  %vm12873_vm13 = vmmov %vm12871_vm0 }
 0x663   : > { %v6062_v9 = vpop.permute.xlu0 %6061 }
 0x664   : > { %v5918_v20 = vpop.permute.xlu1 %5917  ;;  %v6346_v61 = vsel %vm12855_vm6, %v6314_v0, %v6062_v9  ;;  %vm12870_vm6 = vmmov %vm12865_vm3 }
 0x665   : > { %v6256_v1 = vsel %vm1370_vm7, %v11708_v25, %v5918_v20  ;;  %v6378_v46 = vsel %vm12856_vm10, %v6346_v61, %v6097_v44  ;;  %vm12874_vm7 = vmmov %vm12862_vm1 }
 0x666   : > { %v6410_v5 = vsel %vm12858_vm11, %v6378_v46, %v6132_v57  ;;  %v6288_v41 = vsel %vm1419_vm8, %v6256_v1, %v5998_v49  ;;  %vm12872_vm11 = vmmov %vm12869_vm2 }
 0x667   : > { %v6204_v51 = vpop.permute.xlu0 %6203  ;;  %v6442_v55 = vsel %vm12860_vm14, %v6410_v5, %v6167_v11  ;;  %v6320_v25 = vsel %vm1452_vm9, %v6288_v41, %v12032_v7  ;;  %vm12875_vm14 = vmmov %vm12862_vm1 }
 0x668   : > { %v6476_v24 = vsel %vm12861_vm12, %v6444_v47, %v6204_v51  ;;  %v6474_v17 = vsel %vm12862_vm1, %v6442_v55, %v6202_v54  ;;  %v6352_v57 = vsel %vm12865_vm3, %v6320_v25, %v6068_v62  ;;  %v6173_v37 = vpop.permute.xlu1 %6172  ;;  %vm12876_vm12 = vmmov %vm12863_vm4 }
 0x669   : > { %7935 = vmatprep.mubr.msk.bf16.mxu0 %vm12863_vm4, %v6474_v17  ;;  %v6384_v21 = vsel %vm12866_vm15, %v6352_v57, %v6103_v13  ;;  %vm12877_vm1 = vmmov %vm12863_vm4 }
 0x66a   : > { %7936 = vmatmul.mubr.msk.bf16.gmra.mrb[40].mxu0 %vm12864_vm5, %v6476_v24  ;;  %v6416_v56 = vsel %vm12869_vm2, %v6384_v21, %v12868_v26 }
 0x66b   : > { %v6101_v43 = vpop.permute.xlu0 %6100  ;;  %v6448_v18 = vsel %vm12871_vm0, %v6416_v56, %v6173_v37 }
 0x66c   : > { %v6208_v58 = vpop.permute.xlu1 %6207 }
 0x66d   : > { %v6480_v6 = vsel %vm12875_vm14, %v6448_v18, %v6208_v58 }
 0x66f   : > { %v6171_v19 = vpop.permute.xlu0 %6170 }
 0x670   : > { %v12147_v63 = vpop.permute.xlu1 %6821 }
 0x673   : > { %v6066_v7 = vpop.permute.xlu0 %6065 }
 0x674   : > { %v6350_v39 = vsel %vm12870_vm6, %v6318_v50, %v6066_v7  ;;  %v12153_v9 = vpop.permute.xlu1 %6825 }
 0x675   : > { %v6382_v38 = vsel %vm12856_vm10, %v6350_v39, %v6101_v43 }
 0x676   : > { %v6414_v48 = vsel %vm12872_vm11, %v6382_v38, %v6136_v22 }
 0x677   : > { %v6446_v14 = vsel %vm12873_vm13, %v6414_v48, %v6171_v19  ;;  %v6206_v52 = vpop.permute.xlu0 %6205 }
 0x678   : > { %v6478_v54 = vsel %vm12874_vm7, %v6446_v14, %v6206_v52  ;;  %v12157_v61 = vpop.permute.xlu1 %6829 }
 0x679   : > { %7939 = vmatprep.mubr.msk.bf16.mxu0 %vm12876_vm12, %v6478_v54 }
 0x67a   : > { %7940 = vmatmul.mubr.msk.bf16.gmra.mrb[44].mxu0 %vm12877_vm1, %v6480_v6 }
 0x67b   : > { %v12142_v16 = vpop.permute.xlu0 %6819 }
 0x67c   : > { %v12161_v60 = vpop.permute.xlu1 %6833 }
 0x67f   : > { %v12150_v34 = vpop.permute.xlu0 %6823 }
 0x680   : > { %v12169_v25 = vpop.permute.xlu1 %6837 }
 0x683   : > { %v12155_v20 = vpop.permute.xlu0 %6827 }
 0x684   : > { %v12178_v40 = vpop.permute.xlu1 %6841 }
 0x687   : > { %v12159_v1 = vpop.permute.xlu0 %6831 }
 0x688   : > { %v12187_v18 = vpop.permute.xlu1 %6845 }
 0x68b   : > { %v12164_v51 = vpop.permute.xlu0 %6835 }
 0x68c   : > { %v12195_v54 = vpop.permute.xlu1 %6849 }
 0x68d   : > { %v7913_v10 = vpop.f32.mrb[16].mxu0 }
 0x68e   : > { %v6720_v59 = vmul.f32 %v7913_v10, %v12116_v27  ;;  %v6586_v23 = vpop.f32.mrb[17].mxu0 }
 0x68f   : > { %v7914_v28 = vpop.f32.mrb[18].mxu0  ;;  %v6718_v2 = vmul.f32 %v12116_v27, %v6586_v23  ;;  %v12173_v19 = vpop.permute.xlu0 %6839 }
 0x690   : > { %v6757_v30 = vadd.f32 %v12121_v36, %v6720_v59  ;;  %v6721_v3 = vmul.f32 %v7914_v28, %v12116_v27  ;;  %v6589_v33 = vpop.f32.mrb[19].mxu0  ;;  %v12202_v59 = vpop.permute.xlu1 %6853 }
 0x691   : > { %v6719_v44 = vmul.f32 %v12116_v27, %v6589_v33  ;;  %v6755_v13 = vadd.f32 %v12121_v36, %v6718_v2 }
 0x692   : > { %v6758_v12 = vadd.f32 %v12121_v36, %v6721_v3  ;;  %6951 = vrot.lane.b32.xlu0 %v6757_v30, %s8059_s30 }
 0x693   : > { %v6756_v42 = vadd.f32 %v12121_v36, %v6719_v44  ;;  %v12181_v15 = vpop.permute.xlu0 %6843 }
 0x694   : > { %6953 = vrot.lane.b32.xlu1 %v6758_v12, %s8059_s30  ;;  %v12206_v28 = vpop.permute.xlu1 %6857 }
 0x696   : > { %6947 = vrot.lane.b32.xlu0 %v6755_v13, %s8059_s30 }
 0x697   : > { %v12190_v48 = vpop.permute.xlu0 %6847 }
 0x698   : > { %6949 = vrot.lane.b32.xlu1 %v6756_v42, %s8059_s30  ;;  %v12210_v2 = vpop.permute.xlu1 %6861 }
 0x69b   : > { %v12198_v6 = vpop.permute.xlu0 %6851 }
 0x69c   : > { %v12215_v13 = vpop.permute.xlu1 %6865 }
 0x69f   : > { %v12204_v23 = vpop.permute.xlu0 %6855 }
 0x6a3   : > { %v12208_v30 = vpop.permute.xlu0 %6859 }
 0x6a7   : > { %v12212_v3 = vpop.permute.xlu0 %6863 }
 0x6b5   : > { %v7917_v29 = vpop.f32.mrb[20].mxu0 }
 0x6b6   : > { %v6724_v22 = vmul.f32 %v7917_v29, %v12116_v27  ;;  %v6602_v49 = vpop.f32.mrb[21].mxu0 }
 0x6b7   : > { %v7918_v35 = vpop.f32.mrb[22].mxu0  ;;  %v6722_v62 = vmul.f32 %v12116_v27, %v6602_v49 }
 0x6b8   : > { %v6761_v11 = vadd.f32 %v12121_v36, %v6724_v22  ;;  %v6605_v45 = vpop.f32.mrb[23].mxu0  ;;  %v6725_v8 = vmul.f32 %v7918_v35, %v12116_v27 }
 0x6b9   : > { %v6759_v31 = vadd.f32 %v12121_v36, %v6722_v62  ;;  %v6723_v32 = vmul.f32 %v12116_v27, %v6605_v45 }
 0x6ba   : > { %6959 = vrot.lane.b32.xlu0 %v6761_v11, %s8059_s30  ;;  %v6762_v4 = vadd.f32 %v12121_v36, %v6725_v8  ;;  %v12220_v11 = vpop.permute.xlu0 %6867 }
 0x6bb   : > { %v6760_v0 = vadd.f32 %v12121_v36, %v6723_v32 }
 0x6be   : > { %6955 = vrot.lane.b32.xlu0 %v6759_v31, %s8059_s30 }
 0x6c2   : > { %6961 = vrot.lane.b32.xlu0 %v6762_v4, %s8059_s30  ;;  %v12228_v4 = vpop.permute.xlu1 %6869 }
 0x6c6   : > { %6957 = vrot.lane.b32.xlu0 %v6760_v0, %s8059_s30  ;;  %v12232_v0 = vpop.permute.xlu0 %6871 }
 0x6d5   : > { %v7921_v46 = vpop.f32.mrb[24].mxu0 }
 0x6d6   : > { %v6728_v5 = vmul.f32 %v7921_v46, %v12116_v27  ;;  %v6618_v47 = vpop.f32.mrb[25].mxu0 }
 0x6d7   : > { %v7922_v41 = vpop.f32.mrb[26].mxu0  ;;  %v6726_v24 = vmul.f32 %v12116_v27, %v6618_v47  ;;  %v12239_v47 = vpop.permute.xlu0 %6875 }
 0x6d8   : > { %v6765_v55 = vadd.f32 %v12121_v36, %v6728_v5  ;;  %v6621_v17 = vpop.f32.mrb[27].mxu0  ;;  %v6729_v57 = vmul.f32 %v7922_v41, %v12116_v27  ;;  %v12237_v5 = vpop.permute.xlu1 %6873 }
 0x6d9   : > { %v6763_v43 = vadd.f32 %v12121_v36, %v6726_v24  ;;  %v6727_v37 = vmul.f32 %v12116_v27, %v6621_v17 }
 0x6da   : > { %6967 = vrot.lane.b32.xlu0 %v6765_v55, %s8059_s30  ;;  %v6766_v21 = vadd.f32 %v12121_v36, %v6729_v57 }
 0x6db   : > { %v6764_v53 = vadd.f32 %v12121_v36, %v6727_v37  ;;  %v12243_v55 = vpop.permute.xlu0 %6879 }
 0x6dc   : > { %v12241_v41 = vpop.permute.xlu1 %6877 }
 0x6de   : > { %6963 = vrot.lane.b32.xlu0 %v6763_v43, %s8059_s30 }
 0x6e0   : > { %v12245_v24 = vpop.permute.xlu1 %6881 }
 0x6e2   : > { %6969 = vrot.lane.b32.xlu0 %v6766_v21, %s8059_s30 }
 0x6e4   : > { %v7925_v50 = vpop.f32.mrb[28].mxu0 }
 0x6e5   : > { %v6732_v26 = vmul.f32 %v7925_v50, %v12116_v27  ;;  %v6634_v56 = vpop.f32.mrb[29].mxu0  ;;  %v12878_v50 = vld [vmem:[#allocation4_spill] sm:$0xff] }
 0x6e6   : > { %v7926_v7 = vpop.f32.mrb[30].mxu0  ;;  %6965 = vrot.lane.b32.xlu0 %v6764_v53, %s8059_s30  ;;  %v6730_v58 = vmul.f32 %v12116_v27, %v6634_v56 }
 0x6e7   : > { %v6769_v39 = vadd.f32 %v12121_v36, %v6732_v26  ;;  %v6637_v38 = vpop.f32.mrb[31].mxu0  ;;  %v6733_v31 = vmul.f32 %v7926_v7, %v12116_v27  ;;  %v7043_v26 = vsel %vm1419_vm8, %v12878_v50, %v12142_v16 }
 0x6e8   : > { %v6767_v14 = vadd.f32 %v12121_v36, %v6730_v58  ;;  %v6731_v52 = vmul.f32 %v12116_v27, %v6637_v38 }
 0x6e9   : > { %v6770_v46 = vadd.f32 %v12121_v36, %v6733_v31 }
 0x6ea   : > { %6975 = vrot.lane.b32.xlu0 %v6769_v39, %s8059_s30  ;;  %v6768_v10 = vadd.f32 %v12121_v36, %v6731_v52  ;;  %v12879_v52 = vld [vmem:[#allocation5_spill] sm:$0xff] }
 0x6ee   : > { %6971 = vrot.lane.b32.xlu0 %v6767_v14, %s8059_s30 }
 0x6f2   : > { %6973 = vrot.lane.b32.xlu0 %v6768_v10, %s8059_s30  ;;  %v7044_v10 = vsel %vm1419_vm8, %v12879_v52, %v12147_v63 }
 0x704   : > { %v7929_v33 = vpop.f32.mrb[32].mxu0  ;;  %v6952_v17 = vpop.permute.xlu0 %6951 }
 0x705   : > { %v6736_v12 = vmul.f32 %v7929_v33, %v12116_v27  ;;  %v6650_v44 = vpop.f32.mrb[33].mxu0 }
 0x706   : > { %v7930_v42 = vpop.f32.mrb[34].mxu0  ;;  %v6734_v22 = vmul.f32 %v12116_v27, %v6650_v44  ;;  %v6954_v43 = vpop.permute.xlu1 %6953 }
 0x707   : > { %v6773_v29 = vadd.f32 %v12121_v36, %v6736_v12  ;;  %v6737_v49 = vmul.f32 %v7930_v42, %v12116_v27  ;;  %v6653_v35 = vpop.f32.mrb[35].mxu0 }
 0x708   : > { %v6735_v45 = vmul.f32 %v12116_v27, %v6653_v35  ;;  %v6771_v8 = vadd.f32 %v12121_v36, %v6734_v22  ;;  %v6948_v57 = vpop.permute.xlu0 %6947 }
 0x709   : > { %v6774_v62 = vadd.f32 %v12121_v36, %v6737_v49  ;;  %6983 = vrot.lane.b32.xlu0 %v6773_v29, %s8059_s30  ;;  %v7075_v7 = vsel %vm1452_vm9, %v7043_v26, %v6948_v57  ;;  %v12880_v29 = vld [vmem:[#allocation3_spill] sm:$0xff] }
 0x70a   : > { %v6772_v32 = vadd.f32 %v12121_v36, %v6735_v45  ;;  %v6950_v14 = vpop.permute.xlu1 %6949  ;;  %v7139_v33 = vmul.f32 0.1, %v7075_v7  ;;  %vm7107_vm4 = vcmp.ge.f32.partialorder %v7075_v7, 0.0  ;;  %v7045_v22 = vsel %vm1419_vm8, %v12880_v29, %v12150_v34 }
 0x70b   : > { %6985 = vrot.lane.b32.xlu1 %v6774_v62, %s8059_s30  ;;  %v7076_v12 = vsel %vm1452_vm9, %v7044_v10, %v6950_v14  ;;  %v7077_v62 = vsel %vm1452_vm9, %v7045_v22, %v6952_v17 }
 0x70c   : > { %v7140_v49 = vmul.f32 0.1, %v7076_v12  ;;  %v7171_v35 = vsel %vm7107_vm4, %v7075_v7, %v7139_v33  ;;  %vm7108_vm5 = vcmp.ge.f32.partialorder %v7076_v12, 0.0  ;;  %vm7109_vm3 = vcmp.ge.f32.partialorder %v7077_v62, 0.0 }
 0x70d   : > { %6979 = vrot.lane.b32.xlu0 %v6771_v8, %s8059_s30  ;;  %v12881_v8 = vld [vmem:[#allocation6_spill] sm:$0xff] }
 0x70e   : > { %v7172_v57 = vsel %vm7108_vm5, %v7076_v12, %v7140_v49 }
 0x70f   : > { %6981 = vrot.lane.b32.xlu1 %v6772_v32, %s8059_s30  ;;  %v7046_v32 = vsel %vm1419_vm8, %v12881_v8, %v12153_v9 }
 0x710   : > { %v7078_v34 = vsel %vm1452_vm9, %v7046_v32, %v6954_v43  ;;  %v12883_v43 = vld [vmem:[#allocation16_spill] sm:$0xff] }
 0x711   : > { %6977 = vrot.lane.b32.xlu0 %v6770_v46, %s8059_s30  ;;  %v7141_v46 = vmul.f32 0.1, %v7077_v62  ;;  %v7142_v50 = vmul.f32 0.1, %v7078_v34  ;;  %vm7110_vm15 = vcmp.ge.f32.partialorder %v7078_v34, 0.0  ;;  %v7048_v7 = vsel %vm1419_vm8, %v12883_v43, %v12157_v61 }
 0x713   : > { %v7173_v26 = vsel %vm7109_vm3, %v7077_v62, %v7141_v46 }
 0x724   : > { %v7933_v21 = vpop.f32.mrb[36].mxu0 }
 0x725   : > { %v6740_v37 = vmul.f32 %v7933_v21, %v12116_v27  ;;  %v6666_v53 = vpop.f32.mrb[37].mxu0 }
 0x726   : > { %v7934_v56 = vpop.f32.mrb[38].mxu0  ;;  %v6738_v38 = vmul.f32 %v12116_v27, %v6666_v53 }
 0x727   : > { %v6777_v39 = vadd.f32 %v12121_v36, %v6740_v37  ;;  %v6669_v58 = vpop.f32.mrb[39].mxu0  ;;  %v6741_v44 = vmul.f32 %v7934_v56, %v12116_v27  ;;  %v12882_v37 = vld [vmem:[#allocation13_spill] sm:$0xff] }
 0x728   : > { %v6775_v16 = vadd.f32 %v12121_v36, %v6738_v38  ;;  %v6739_v45 = vmul.f32 %v12116_v27, %v6669_v58  ;;  %v7047_v53 = vsel %vm1419_vm8, %v12882_v37, %v12155_v20  ;;  %v7174_v38 = vsel %vm7110_vm15, %v7078_v34, %v7142_v50  ;;  %v12884_v20 = vld [vmem:[#allocation12_spill] sm:$0xff] }
 0x729   : > { %6991 = vrot.lane.b32.xlu1 %v6777_v39, %s8059_s30  ;;  %v6778_v63 = vadd.f32 %v12121_v36, %v6741_v44  ;;  %v7049_v52 = vsel %vm1419_vm8, %v12884_v20, %v12159_v1 }
 0x72a   : > { %v6776_v21 = vadd.f32 %v12121_v36, %v6739_v45 }
 0x72c   : > { %v6960_v42 = vpop.permute.xlu0 %6959 }
 0x72d   : > { %6987 = vrot.lane.b32.xlu1 %v6775_v16, %s8059_s30  ;;  %v7081_v44 = vsel %vm1452_vm9, %v7049_v52, %v6960_v42 }
 0x72e   : > { %v7145_v1 = vmul.f32 0.1, %v7081_v44  ;;  %vm7113_vm10 = vcmp.ge.f32.partialorder %v7081_v44, 0.0 }
 0x72f   : > { %7203 = vxpose.xlu0.b32.start [1/16] (narrow) %v7171_v35, 32  ;;  %v12885_v35 = vld [vmem:[#allocation14_spill] sm:$0xff] }
 0x730   : > { %v6956_v31 = vpop.permute.xlu0 %6955  ;;  %v7050_v62 = vsel %vm1419_vm8, %v12885_v35, %v12161_v60  ;;  %v7177_v32 = vsel %vm7113_vm10, %v7081_v44, %v7145_v1 }
 0x731   : > { %6993 = vrot.lane.b32.xlu1 %v6778_v63, %s8059_s30  ;;  %v7079_v56 = vsel %vm1452_vm9, %v7047_v53, %v6956_v31 }
 0x732   : > { %v7143_v39 = vmul.f32 0.1, %v7079_v56  ;;  %vm7111_vm2 = vcmp.ge.f32.partialorder %v7079_v56, 0.0 }
 0x733   : > { %7204 = vxpose.xlu0.b32.cont [2/16] (narrow) %v7172_v57, 32 }
 0x734   : > { %v6962_v17 = vpop.permute.xlu0 %6961  ;;  %v7175_v16 = vsel %vm7111_vm2, %v7079_v56, %v7143_v39 }
 0x735   : > { %6989 = vrot.lane.b32.xlu1 %v6776_v21, %s8059_s30  ;;  %v7082_v45 = vsel %vm1452_vm9, %v7050_v62, %v6962_v17  ;;  %v12889_v62 = vld [vmem:[#allocation22_spill] sm:$0xff] }
 0x736   : > { %v7146_v8 = vmul.f32 0.1, %v7082_v45  ;;  %vm7114_vm0 = vcmp.ge.f32.partialorder %v7082_v45, 0.0 }
 0x737   : > { %7205 = vxpose.xlu0.b32.cont [3/16] (narrow) %v7173_v26, 32  ;;  %v12886_v26 = vld [vmem:[#allocation23_spill] sm:$0xff] }
 0x738   : > { %v6958_v9 = vpop.permute.xlu0 %6957  ;;  %v7178_v57 = vsel %vm7114_vm0, %v7082_v45, %v7146_v8  ;;  %v7051_v56 = vsel %vm1419_vm8, %v12886_v26, %v12164_v51  ;;  %v12887_v51 = vld [vmem:[#allocation24_spill] sm:$0xff] }
 0x739   : > { %v7080_v58 = vsel %vm1452_vm9, %v7048_v7, %v6958_v9 }
 0x73a   : > { %v7144_v10 = vmul.f32 0.1, %v7080_v58  ;;  %vm7112_vm6 = vcmp.ge.f32.partialorder %v7080_v58, 0.0 }
 0x73b   : > { %7206 = vxpose.xlu0.b32.cont [4/16] (narrow) %v7174_v38, 32 }
 0x73c   : > { %v7176_v63 = vsel %vm7112_vm6, %v7080_v58, %v7144_v10 }
 0x73d   : > { %v7937_v14 = vpop.f32.mrb[40].mxu0 }
 0x73e   : > { %v6744_v33 = vmul.f32 %v7937_v14, %v12116_v27  ;;  %v6682_v12 = vpop.f32.mrb[41].mxu0 }
 0x73f   : > { %v7938_v29 = vpop.f32.mrb[42].mxu0  ;;  %7207 = vxpose.xlu0.b32.cont [5/16] (narrow) %v7175_v16, 32  ;;  %v6742_v22 = vmul.f32 %v12116_v27, %v6682_v12  ;;  %v12888_v12 = vld [vmem:[#allocation21_spill] sm:$0xff] }
 0x740   : > { %v6781_v61 = vadd.f32 %v12121_v36, %v6744_v33  ;;  %v6685_v49 = vpop.f32.mrb[43].mxu0  ;;  %v6745_v31 = vmul.f32 %v7938_v29, %v12116_v27  ;;  %v7052_v33 = vsel %vm1419_vm8, %v12887_v51, %v12169_v25  ;;  %v7053_v16 = vsel %vm1419_vm8, %v12888_v12, %v12173_v19  ;;  %v12895_v51 = vld [vmem:[#allocation30_spill] sm:$0xff] }
 0x741   : > { %v6779_v42 = vadd.f32 %v12121_v36, %v6742_v22  ;;  %v6743_v46 = vmul.f32 %v12116_v27, %v6685_v49  ;;  %v7054_v25 = vsel %vm1419_vm8, %v12889_v62, %v12178_v40 }
 0x742   : > { %6999 = vrot.lane.b32.xlu1 %v6781_v61, %s8059_s30  ;;  %v6782_v60 = vadd.f32 %v12121_v36, %v6745_v31 }
 0x743   : > { %7208 = vxpose.xlu0.b32.cont [6/16] (narrow) %v7176_v63, 32  ;;  %v6780_v34 = vadd.f32 %v12121_v36, %v6743_v46 }
 0x746   : > { %6995 = vrot.lane.b32.xlu1 %v6779_v42, %s8059_s30  ;;  %v12890_v42 = vld [vmem:[#allocation32_spill] sm:$0xff] }
 0x747   : > { %7209 = vxpose.xlu0.b32.cont [7/16] (narrow) %v7177_v32, 32  ;;  %v7055_v31 = vsel %vm1419_vm8, %v12890_v42, %v12181_v15  ;;  %v12892_v15 = vld [vmem:[#allocation29_spill] sm:$0xff]  ;;  %v12898_v42 = vld [vmem:[#allocation18_spill] sm:$0xff] }
 0x74a   : > { %7001 = vrot.lane.b32.xlu1 %v6782_v60, %s8059_s30 }
 0x74b   : > { %7210 = vxpose.xlu0.b32.cont [8/16] (narrow) %v7178_v57, 32 }
 0x74c   : > { %v6968_v21 = vpop.permute.xlu0 %6967 }
 0x74d   : > { %v7941_v17 = vpop.f32.mrb[44].mxu0  ;;  %v7085_v22 = vsel %vm1452_vm9, %v7053_v16, %v6968_v21 }
 0x74e   : > { %v6748_v37 = vmul.f32 %v7941_v17, %v12116_v27  ;;  %6997 = vrot.lane.b32.xlu1 %v6780_v34, %s8059_s30  ;;  %v6698_v53 = vpop.f32.mrb[45].mxu0  ;;  %v7149_v1 = vmul.f32 0.1, %v7085_v22  ;;  %vm7117_vm7 = vcmp.ge.f32.partialorder %v7085_v22, 0.0 }
 0x74f   : > { %v7942_v50 = vpop.f32.mrb[46].mxu0  ;;  %v6746_v43 = vmul.f32 %v12116_v27, %v6698_v53 }
 0x750   : > { %v6785_v9 = vadd.f32 %v12121_v36, %v6748_v37  ;;  %v6701_v7 = vpop.f32.mrb[47].mxu0  ;;  %v6964_v39 = vpop.permute.xlu0 %6963  ;;  %v6749_v20 = vmul.f32 %v7942_v50, %v12116_v27  ;;  %v7181_v60 = vsel %vm7117_vm7, %v7085_v22, %v7149_v1  ;;  %v7057_v37 = vsel %vm1419_vm8, %v12892_v15, %v12190_v48 }
 0x751   : > { %v7083_v38 = vsel %vm1452_vm9, %v7051_v56, %v6964_v39  ;;  %v6783_v14 = vadd.f32 %v12121_v36, %v6746_v43  ;;  %v6747_v29 = vmul.f32 %v12116_v27, %v6701_v7  ;;  %v12893_v39 = vld [vmem:[#allocation9_spill] sm:$0xff] }
 0x752   : > { %v7147_v58 = vmul.f32 0.1, %v7083_v38  ;;  %7007 = vrot.lane.b32.xlu1 %v6785_v9, %s8059_s30  ;;  %vm7115_vm11 = vcmp.ge.f32.partialorder %v7083_v38, 0.0  ;;  %v6786_v44 = vadd.f32 %v12121_v36, %v6749_v20  ;;  %v12894_v20 = vld [vmem:[#allocation11_spill] sm:$0xff] }
 0x753   : > { %v6784_v19 = vadd.f32 %v12121_v36, %v6747_v29  ;;  %v12891_v36 = vld [vmem:[#allocation31_spill] sm:$0xff]  ;;  %v12896_v29 = vld [vmem:[#allocation8_spill] sm:$0xff] }
 0x754   : > { %v6970_v52 = vpop.permute.xlu0 %6969  ;;  %v7179_v10 = vsel %vm7115_vm11, %v7083_v38, %v7147_v58  ;;  %v7056_v46 = vsel %vm1419_vm8, %v12891_v36, %v12187_v18  ;;  %v7059_v38 = vsel %vm1419_vm8, %v12893_v39, %v12198_v6  ;;  %v12899_v36 = vld [vmem:[#allocation20_spill] sm:$0xff] }
 0x755   : > { %7211 = vxpose.xlu0.b32.cont [9/16] (narrow) %v7179_v10, 32  ;;  %v7086_v27 = vsel %vm1452_vm9, %v7054_v25, %v6970_v52  ;;  %v7060_v52 = vsel %vm1419_vm8, %v12894_v20, %v12202_v59 }
 0x756   : > { %7003 = vrot.lane.b32.xlu1 %v6783_v14, %s8059_s30  ;;  %v7150_v8 = vmul.f32 0.1, %v7086_v27  ;;  %vm7118_vm14 = vcmp.ge.f32.partialorder %v7086_v27, 0.0 }
 0x758   : > { %v6966_v61 = vpop.permute.xlu0 %6965  ;;  %v7182_v21 = vsel %vm7118_vm14, %v7086_v27, %v7150_v8 }
 0x759   : > { %v7084_v49 = vsel %vm1452_vm9, %v7052_v33, %v6966_v61  ;;  %v7058_v33 = vsel %vm1419_vm8, %v12895_v51, %v12195_v54  ;;  %v7061_v61 = vsel %vm1419_vm8, %v12896_v29, %v12204_v23  ;;  %v12897_v54 = vld [vmem:[#allocation10_spill] sm:$0xff] }
 0x75a   : > { %v7148_v35 = vmul.f32 0.1, %v7084_v49  ;;  %7009 = vrot.lane.b32.xlu1 %v6786_v44, %s8059_s30  ;;  %vm7116_vm13 = vcmp.ge.f32.partialorder %v7084_v49, 0.0  ;;  %v7062_v62 = vsel %vm1419_vm8, %v12897_v54, %v12206_v28 }
 0x75c   : > { %v6976_v63 = vpop.permute.xlu0 %6975  ;;  %v7180_v45 = vsel %vm7116_vm13, %v7084_v49, %v7148_v35 }
 0x75d   : > { %7212 = vxpose.xlu0.b32.cont [10/16] (narrow) %v7180_v45, 32  ;;  %v7089_v26 = vsel %vm1452_vm9, %v7057_v37, %v6976_v63  ;;  %v12901_v37 = vld [vmem:[#allocation19_spill] sm:$0xff] }
 0x75e   : > { %7005 = vrot.lane.b32.xlu1 %v6784_v19, %s8059_s30  ;;  %v7153_v56 = vmul.f32 0.1, %v7089_v26  ;;  %vm7121_vm4 = vcmp.ge.f32.partialorder %v7089_v26, 0.0  ;;  %s7689_s30 = sshll.u32 %s12911_s25, 6 }
 0x75f   : > { %s12403_s22 = scalar_lea.vmem %s12435_s7, %s7689_s30 }
 0x760   : > { %v6972_v32 = vpop.permute.xlu0 %6971  ;;  %v7185_v18 = vsel %vm7121_vm4, %v7089_v26, %v7153_v56 }
 0x761   : > { %v7087_v40 = vsel %vm1452_vm9, %v7055_v31, %v6972_v32  ;;  %7213 = vxpose.xlu0.b32.cont [11/16] (narrow) %v7181_v60, 32  ;;  %v7063_v31 = vsel %vm1419_vm8, %v12898_v42, %v12208_v30 }
 0x762   : > { %v7151_v57 = vmul.f32 0.1, %v7087_v40  ;;  %vm7119_vm12 = vcmp.ge.f32.partialorder %v7087_v40, 0.0 }
 0x764   : > { %v6974_v34 = vpop.permute.xlu0 %6973  ;;  %v7183_v50 = vsel %vm7119_vm12, %v7087_v40, %v7151_v57  ;;  %v12900_v57 = vld [vmem:[#allocation17_spill] sm:$0xff] }
 0x765   : > { %v7088_v17 = vsel %vm1452_vm9, %v7056_v46, %v6974_v34  ;;  %7214 = vxpose.xlu0.b32.cont [12/16] (narrow) %v7182_v21, 32  ;;  %v7064_v46 = vsel %vm1419_vm8, %v12899_v36, %v12210_v2  ;;  %v7065_v34 = vsel %vm1419_vm8, %v12900_v57, %v12212_v3 }
 0x766   : > { %v7152_v53 = vmul.f32 0.1, %v7088_v17  ;;  %vm7120_vm1 = vcmp.ge.f32.partialorder %v7088_v17, 0.0 }
 0x768   : > { %v7184_v9 = vsel %vm7120_vm1, %v7088_v17, %v7152_v53  ;;  %v7066_v53 = vsel %vm1419_vm8, %v12901_v37, %v12215_v13 }
 0x769   : > { %7215 = vxpose.xlu0.b32.cont [13/16] (narrow) %v7183_v50, 32 }
 0x76d   : > { %7216 = vxpose.xlu0.b32.cont [14/16] (narrow) %v7184_v9, 32 }
 0x771   : > { %7217 = vxpose.xlu0.b32.cont [15/16] (narrow) %v7185_v18, 32 }
 0x77b   : > { %v6984_v43 = vpop.permute.xlu0 %6983 }
 0x77c   : > { %v7093_v59 = vsel %vm1452_vm9, %v7061_v61, %v6984_v43  ;;  %v12902_v43 = vld [vmem:[#allocation26_spill] sm:$0xff] }
 0x77d   : > { %v6986_v7 = vpop.permute.xlu1 %6985  ;;  %v7157_v25 = vmul.f32 0.1, %v7093_v59  ;;  %vm7125_vm2 = vcmp.ge.f32.partialorder %v7093_v59, 0.0 }
 0x77e   : > { %v7094_v19 = vsel %vm1452_vm9, %v7062_v62, %v6986_v7  ;;  %v7067_v7 = vsel %vm1419_vm8, %v12902_v43, %v12220_v11 }
 0x77f   : > { %v6980_v58 = vpop.permute.xlu0 %6979  ;;  %v7158_v63 = vmul.f32 0.1, %v7094_v19  ;;  %v7189_v23 = vsel %vm7125_vm2, %v7093_v59, %v7157_v25  ;;  %vm7126_vm6 = vcmp.ge.f32.partialorder %v7094_v19, 0.0 }
 0x780   : > { %v7091_v48 = vsel %vm1452_vm9, %v7059_v38, %v6980_v58 }
 0x781   : > { %v6982_v14 = vpop.permute.xlu1 %6981  ;;  %v7155_v10 = vmul.f32 0.1, %v7091_v48  ;;  %vm7123_vm5 = vcmp.ge.f32.partialorder %v7091_v48, 0.0  ;;  %v7190_v45 = vsel %vm7126_vm6, %v7094_v19, %v7158_v63  ;;  %v12908_v63 = vld [vmem:[#allocation33_spill] sm:$0xff] }
 0x782   : > { %v7092_v12 = vsel %vm1452_vm9, %v7060_v52, %v6982_v14  ;;  %v12903_v14 = vld [vmem:[#allocation28_spill] sm:$0xff]  ;;  %v12904_v52 = vld [vmem:[#allocation25_spill] sm:$0xff] }
 0x783   : > { %v6978_v16 = vpop.permute.xlu0 %6977  ;;  %v7156_v22 = vmul.f32 0.1, %v7092_v12  ;;  %v7187_v49 = vsel %vm7123_vm5, %v7091_v48, %v7155_v10  ;;  %vm7124_vm15 = vcmp.ge.f32.partialorder %v7092_v12, 0.0  ;;  %v7068_v20 = vsel %vm1419_vm8, %v12903_v14, %v12228_v4 }
 0x784   : > { %v7090_v44 = vsel %vm1452_vm9, %v7058_v33, %v6978_v16  ;;  %v7069_v10 = vsel %vm1419_vm8, %v12904_v52, %v12232_v0  ;;  %v12905_v16 = vld [vmem:[#allocation27_spill] sm:$0xff]  ;;  %v12906_v0 = vld [vmem:[#allocation34_spill] sm:$0xff] }
 0x785   : > { %v7154_v6 = vmul.f32 0.1, %v7090_v44  ;;  %vm7122_vm3 = vcmp.ge.f32.partialorder %v7090_v44, 0.0  ;;  %v7188_v1 = vsel %vm7124_vm15, %v7092_v12, %v7156_v22  ;;  %v7071_v22 = vsel %vm1419_vm8, %v12906_v0, %v12239_v47  ;;  %v12907_v47 = vld [vmem:[#allocation36_spill] sm:$0xff] }
 0x786   : > { %v7072_v19 = vsel %vm1419_vm8, %v12907_v47, %v12241_v41 }
 0x787   : > { %7235 = vxpose.xlu1.b32.start [1/16] (narrow) %v7187_v49, 32  ;;  %v7186_v35 = vsel %vm7122_vm3, %v7090_v44, %v7154_v6  ;;  %v7070_v44 = vsel %vm1419_vm8, %v12905_v16, %v12237_v5 }
 0x788   : > { %7218 = vxpose.xlu0.b32.end [16/16] (narrow) %v7186_v35, 32 }
 0x78b   : > { %7236 = vxpose.xlu1.b32.cont [2/16] (narrow) %v7188_v1, 32 }
 0x78f   : > { %7237 = vxpose.xlu1.b32.cont [3/16] (narrow) %v7189_v23, 32  ;;  %v7073_v23 = vsel %vm1419_vm8, %v12908_v63, %v12243_v55 }
 0x793   : > { %7238 = vxpose.xlu1.b32.cont [4/16] (narrow) %v7190_v45, 32 }
 0x79b   : > { %v6992_v27 = vpop.permute.xlu1 %6991 }
 0x79c   : > { %v7097_v17 = vsel %vm1452_vm9, %v7065_v34, %v6992_v27 }
 0x79d   : > { %v7161_v50 = vmul.f32 0.1, %v7097_v17  ;;  %vm7129_vm11 = vcmp.ge.f32.partialorder %v7097_v17, 0.0 }
 0x79f   : > { %v6988_v8 = vpop.permute.xlu1 %6987  ;;  %v7193_v9 = vsel %vm7129_vm11, %v7097_v17, %v7161_v50 }
 0x7a0   : > { %v7095_v28 = vsel %vm1452_vm9, %v7063_v31, %v6988_v8 }
 0x7a1   : > { %v7159_v32 = vmul.f32 0.1, %v7095_v28  ;;  %vm7127_vm10 = vcmp.ge.f32.partialorder %v7095_v28, 0.0 }
 0x7a3   : > { %v6994_v60 = vpop.permute.xlu1 %6993  ;;  %v7191_v40 = vsel %vm7127_vm10, %v7095_v28, %v7159_v32  ;;  %v12909_v32 = vld [vmem:[#allocation35_spill] sm:$0xff] }
 0x7a4   : > { %7239 = vxpose.xlu1.b32.cont [5/16] (narrow) %v7191_v40, 32  ;;  %v7098_v56 = vsel %vm1452_vm9, %v7066_v53, %v6994_v60  ;;  %v7074_v41 = vsel %vm1419_vm8, %v12909_v32, %v12245_v24 }
 0x7a5   : > { %v7162_v2 = vmul.f32 0.1, %v7098_v56  ;;  %vm7130_vm13 = vcmp.ge.f32.partialorder %v7098_v56, 0.0 }
 0x7a7   : > { %v6990_v21 = vpop.permute.xlu1 %6989  ;;  %v7194_v3 = vsel %vm7130_vm13, %v7098_v56, %v7162_v2 }
 0x7a8   : > { %v7096_v30 = vsel %vm1452_vm9, %v7064_v46, %v6990_v21 }
 0x7a9   : > { %v7160_v15 = vmul.f32 0.1, %v7096_v30  ;;  %vm7128_vm0 = vcmp.ge.f32.partialorder %v7096_v30, 0.0 }
 0x7ab   : > { %v7192_v26 = vsel %vm7128_vm0, %v7096_v30, %v7160_v15 }
 0x7ac   : > { %7240 = vxpose.xlu1.b32.cont [6/16] (narrow) %v7192_v26, 32 }
 0x7b0   : > { %7241 = vxpose.xlu1.b32.cont [7/16] (narrow) %v7193_v9, 32 }
 0x7b4   : > { %v7000_v18 = vpop.permute.xlu1 %6999  ;;  %7242 = vxpose.xlu1.b32.cont [8/16] (narrow) %v7194_v3, 32 }
 0x7b5   : > { %v7101_v11 = vsel %vm1452_vm9, %v7069_v10, %v7000_v18 }
 0x7b6   : > { %v7165_v6 = vmul.f32 0.1, %v7101_v11  ;;  %vm7133_vm12 = vcmp.ge.f32.partialorder %v7101_v11, 0.0 }
 0x7b8   : > { %v6996_v39 = vpop.permute.xlu1 %6995  ;;  %v7197_v35 = vsel %vm7133_vm12, %v7101_v11, %v7165_v6 }
 0x7b9   : > { %v7099_v13 = vsel %vm1452_vm9, %v7067_v7, %v6996_v39 }
 0x7ba   : > { %v7163_v38 = vmul.f32 0.1, %v7099_v13  ;;  %vm7131_vm7 = vcmp.ge.f32.partialorder %v7099_v13, 0.0 }
 0x7bc   : > { %v7002_v58 = vpop.permute.xlu1 %7001  ;;  %v7195_v48 = vsel %vm7131_vm7, %v7099_v13, %v7163_v38 }
 0x7bd   : > { %7243 = vxpose.xlu1.b32.cont [9/16] (narrow) %v7195_v48, 32  ;;  %v7102_v4 = vsel %vm1452_vm9, %v7070_v44, %v7002_v58 }
 0x7be   : > { %v7166_v49 = vmul.f32 0.1, %v7102_v4  ;;  %vm7134_vm1 = vcmp.ge.f32.partialorder %v7102_v4, 0.0 }
 0x7c0   : > { %v6998_v51 = vpop.permute.xlu1 %6997  ;;  %v7198_v25 = vsel %vm7134_vm1, %v7102_v4, %v7166_v49 }
 0x7c1   : > { %v7100_v33 = vsel %vm1452_vm9, %v7068_v20, %v6998_v51 }
 0x7c2   : > { %v7164_v12 = vmul.f32 0.1, %v7100_v33  ;;  %vm7132_vm14 = vcmp.ge.f32.partialorder %v7100_v33, 0.0 }
 0x7c4   : > { %v7008_v29 = vpop.permute.xlu1 %7007  ;;  %v7196_v61 = vsel %vm7132_vm14, %v7100_v33, %v7164_v12 }
 0x7c5   : > { %7244 = vxpose.xlu1.b32.cont [10/16] (narrow) %v7196_v61, 32  ;;  %v7105_v31 = vsel %vm1452_vm9, %v7073_v23, %v7008_v29 }
 0x7c6   : > { %v7169_v60 = vmul.f32 0.1, %v7105_v31  ;;  %vm7137_vm3 = vcmp.ge.f32.partialorder %v7105_v31, 0.0 }
 0x7c8   : > { %v7004_v59 = vpop.permute.xlu1 %7003  ;;  %v7201_v57 = vsel %vm7137_vm3, %v7105_v31, %v7169_v60 }
 0x7c9   : > { %v7103_v54 = vsel %vm1452_vm9, %v7071_v22, %v7004_v59  ;;  %7245 = vxpose.xlu1.b32.cont [11/16] (narrow) %v7197_v35, 32 }
 0x7ca   : > { %v7167_v5 = vmul.f32 0.1, %v7103_v54  ;;  %vm7135_vm4 = vcmp.ge.f32.partialorder %v7103_v54, 0.0 }
 0x7cc   : > { %v7010_v62 = vpop.permute.xlu1 %7009  ;;  %v7219_v1 = vpop.trf.xlu0  ;;  %v7199_v27 = vsel %vm7135_vm4, %v7103_v54, %v7167_v5 }
 0x7cd   : > { %7246 = vxpose.xlu1.b32.cont [12/16] (narrow) %v7198_v25, 32  ;;  %7267 = vst [vmem:[%s12403_s22] sm:$0xff] %v7219_v1  ;;  %v7106_v36 = vsel %vm1452_vm9, %v7074_v41, %v7010_v62 }
 0x7ce   : > { %v7170_v46 = vmul.f32 0.1, %v7106_v36  ;;  %vm7138_vm15 = vcmp.ge.f32.partialorder %v7106_v36, 0.0 }
 0x7d0   : > { %v7006_v45 = vpop.permute.xlu1 %7005  ;;  %v7220_v42 = vpop.trf.xlu0  ;;  %v7202_v21 = vsel %vm7138_vm15, %v7106_v36, %v7170_v46 }
 0x7d1   : > { %v7104_v8 = vsel %vm1452_vm9, %v7072_v19, %v7006_v45  ;;  %7247 = vxpose.xlu1.b32.cont [13/16] (narrow) %v7199_v27, 32  ;;  %7269 = vst [vmem:[%s12403_s22 + $0x10] sm:$0xff] %v7220_v42 }
 0x7d2   : > { %v7168_v28 = vmul.f32 0.1, %v7104_v8  ;;  %vm7136_vm5 = vcmp.ge.f32.partialorder %v7104_v8, 0.0 }
 0x7d4   : > { %v7200_v55 = vsel %vm7136_vm5, %v7104_v8, %v7168_v28  ;;  %v7221_v40 = vpop.trf.xlu0 }
 0x7d5   : > { %7248 = vxpose.xlu1.b32.cont [14/16] (narrow) %v7200_v55, 32  ;;  %7271 = vst [vmem:[%s12403_s22 + $0x20] sm:$0xff] %v7221_v40 }
 0x7d8   : > { %v7222_v34 = vpop.trf.xlu0 }
 0x7d9   : > { %7249 = vxpose.xlu1.b32.cont [15/16] (narrow) %v7201_v57, 32  ;;  %7273 = vst [vmem:[%s12403_s22 + $0x30] sm:$0xff] %v7222_v34 }
 0x7dd   : > { %7250 = vxpose.xlu1.b32.end [16/16] (narrow) %v7202_v21, 32 }
 0x821   : > { %v7251_v24 = vpop.trf.xlu1 }
 0x822   : > { %7268 = vst [vmem:[%s12403_s22 + $0x8] sm:$0xff] %v7251_v24 }
 0x825   : > { %v7252_v17 = vpop.trf.xlu1 }
 0x826   : > { %7270 = vst [vmem:[%s12403_s22 + $0x18] sm:$0xff] %v7252_v17 }
 0x829   : > { %v7253_v30 = vpop.trf.xlu1 }
 0x82a   : > { %7272 = vst [vmem:[%s12403_s22 + $0x28] sm:$0xff] %v7253_v30 }
 0x82d   : > { %v7254_v15 = vpop.trf.xlu1 }
 0x82e   : > { %7274 = vst [vmem:[%s12403_s22 + $0x38] sm:$0xff] %v7254_v15 }
 0x82f PF: > { %s17_s24 = sadd.s32 1, %s8057_s24  }
 0x830   : > { %p14_p4 = scmp.ge.s32.totalorder %s17_s24, 4  }
 0x832   :  { %16 = sbr.rel (!%p14_p4) target bundleno = 1 (0x1), region = 79 }

</bundles_post_ra>
